<compile_context>
chip_gen: v6e
topology: v6e:2x2x1
jax: 0.10.0
libtpu: 0.0.40
codegen_flags: <defaults>
</compile_context>

<pallas_src>
import functools
from typing import NamedTuple, Tuple

import jax
import jax.numpy as jnp
from jax.experimental import pallas as pl
from jax.experimental.pallas import tpu as pltpu


SOFTPLUS_BETA = 100.0
SOFTPLUS_THRESHOLD = 20.0
INV_SQRT2 = 2.0 ** -0.5


# ------------------------------ shared helpers --------------------------------
def _softplus(x):
    """PyTorch nn.Softplus(beta=100) (threshold=20), usable inside the kernel."""
    bx = x * SOFTPLUS_BETA
    return jnp.where(bx > SOFTPLUS_THRESHOLD,
                     x,
                     jnp.log(1.0 + jnp.exp(bx)) * (1.0 / SOFTPLUS_BETA))


def positional_embed(x, freq_bands, axis):
    """IDR/NeRF 'fourier' embedder: [x, sin(f0 x), cos(f0 x), sin(f1 x), ...]."""
    feats = [x]
    for f in freq_bands:
        feats.append(jnp.sin(x * f))
        feats.append(jnp.cos(x * f))
    return jnp.concatenate(feats, axis=axis)


# --------------------------------- config --------------------------------------
class ImplicitCfg(NamedTuple):
    d_in: int
    dims: Tuple[int, ...]
    d_out: int
    feature_vector_size: int
    skip_in: Tuple[int, ...]
    multires: int
    cond_dim: int
    freq_bands: Tuple[float, ...]
    input_ch: int


def make_cfg(*, d_in, dims, d_out, feature_vector_size, skip_in, multires, cond_dim):
    freq_bands = tuple(float(2.0 ** i) for i in range(multires)) if multires > 0 else ()
    input_ch = d_in * (1 + 2 * len(freq_bands))
    return ImplicitCfg(d_in, tuple(dims), d_out, feature_vector_size, tuple(skip_in),
                       multires, cond_dim, freq_bands, input_ch)


def layer_in_out(cfg):
    """Replicates the PyTorch constructor's per-layer (in_features, out_features)."""
    dims = [cfg.input_ch] + list(cfg.dims) + [cfg.d_out + cfg.feature_vector_size]
    n_linear = len(dims) - 1
    shapes = []
    for l in range(n_linear):
        out_dim = dims[l + 1] - dims[0] if (l + 1) in cfg.skip_in else dims[l + 1]
        in_dim = dims[l] + cfg.cond_dim if l == 0 else dims[l]   # cond_layer = [0]
        shapes.append((in_dim, out_dim))
    return shapes


# ------------------------------- Pallas kernel ---------------------------------
def _implicit_kernel(skip_in, freq_bands, d_in, x_ref, b0_ref, *refs):
    """Channels-first MLP tile with in-kernel positional embedding.

    x_ref  : (1, d_in, T)   raw points, points on lanes
    b0_ref : (1, H0, 1)     layer-0 bias with the SMPL-cond term pre-folded
    refs   : [W0_x, W1, b1, W2, b2, ..., o_ref]   weights in (out, in) layout
    """
    *prefs, o_ref = refs
    f32 = jnp.float32

    x = x_ref[0].astype(f32)                                      # (d_in, T)

    # in-kernel fourier embedding, kept as a list of (d_in, T) pieces so no
    # sublane concat is needed; consumed via split matmuls below.
    emb_pieces = [x]
    for f in freq_bands:
        xf = x * f
        emb_pieces.append(jnp.sin(xf))
        emb_pieces.append(jnp.cos(xf))

    def emb_dot(w_cols):
        # w_cols: (out, input_ch) — multiply against the virtual embedded input
        # by summing split matmuls over the d_in-wide column slices.
        acc = jnp.dot(w_cols[:, 0:d_in], emb_pieces[0], preferred_element_type=f32)
        for i in range(1, len(emb_pieces)):
            acc = acc + jnp.dot(w_cols[:, i * d_in:(i + 1) * d_in], emb_pieces[i],
                                preferred_element_type=f32)
        return acc

    # layer 0: cond contribution already folded into b0_ref (hoisted to wrapper)
    h = _softplus(emb_dot(prefs[0][...]) + b0_ref[0])

    n_linear = (len(prefs) + 1) // 2
    idx = 1
    for l in range(1, n_linear):
        w = prefs[idx][...]
        b = prefs[idx + 1][...]
        idx += 2
        if l in skip_in:
            # torch: x = cat([h, input_emb], 1) / sqrt(2); lin(x)
            # 1/sqrt(2) is folded into w offline; concat expressed as split matmuls.
            hdim = h.shape[0]
            z = (jnp.dot(w[:, :hdim], h, preferred_element_type=f32)
                 + emb_dot(w[:, hdim:]) + b)
        else:
            z = jnp.dot(w, h, preferred_element_type=f32) + b
        if l < n_linear - 1:
            z = _softplus(z)
        h = z

    o_ref[0] = h.astype(o_ref.dtype)                              # (d_final, T)


# -------------------------------- JAX wrapper -----------------------------------
def implicit_net_forward(inputs, cond_smpl, params, cfg, *, tile_n=8192,
                         channels_last=False):
    """inputs: (B, N, d_in) points, cond_smpl: (B, 69).

    Returns channels-first (B, d_out+feat, N) by default (lane-dense, no extra
    transpose pass); set channels_last=True for the PyTorch (B, N, d_out+feat)
    layout.
    """
    B, N, d_in = inputs.shape
    assert d_in == cfg.d_in

    # --- tile sizing: big tiles amortize grid-step overhead; keep >=2 grid steps
    #     so both v7x TensorCores get parallel work; cap for 64 MiB VMEM chips.
    tile_n = min(tile_n, 32768, N)
    assert N % tile_n == 0 and tile_n % 128 == 0, "point tile must be a multiple of 128"
    while B * (N // tile_n) < 2 and tile_n % 256 == 0 and N % (tile_n // 2) == 0:
        tile_n //= 2

    shapes = layer_in_out(cfg)
    n_linear = len(shapes)

    # --- hoist all grid-invariant cond work: fold SMPL pose into layer-0 bias ---
    W0, b0 = params["lin0"]                         # (H0, input_ch + cond_dim), (H0,)
    W0_x = W0[:, :cfg.input_ch]                     # (H0, input_ch)
    W0_c = W0[:, cfg.input_ch:]                     # (H0, cond_dim)
    b0_eff = (jnp.dot(cond_smpl, W0_c.T, precision=jax.lax.Precision.HIGHEST)
              + b0)[:, :, None]                     # (B, H0, 1)

    # --- channels-first, lane-dense RAW input slab (embedding happens in-kernel)
    x_t = jnp.transpose(inputs, (0, 2, 1))                        # (B, d_in, N)

    flat_params = [W0_x]
    for l in range(1, n_linear):
        Wl, bl = params[f"lin{l}"]
        if l in cfg.skip_in:
            Wl = Wl * INV_SQRT2                     # fold the skip-concat 1/sqrt(2)
        flat_params += [Wl, bl[:, None]]            # weights (out,in), biases (out,1)
    d_final = shapes[-1][1]

    grid = (B, N // tile_n)

    def pt_spec(c):                                 # per-point tensors, tiled on lanes
        return pl.BlockSpec((1, c, tile_n), lambda b, i: (b, 0, i))

    def const_spec(arr):                            # resident 2-D parameters
        return pl.BlockSpec(arr.shape, lambda b, i: (0, 0))

    # ~0.8 KiB/point footprint incl. double-buffered I/O and f32 intermediates.
    vmem_limit = int(max(32 * 1024 * 1024, min(56 * 1024 * 1024, tile_n * 1280)))

    out_t = pl.pallas_call(
        functools.partial(_implicit_kernel, cfg.skip_in, cfg.freq_bands, cfg.d_in),
        out_shape=jax.ShapeDtypeStruct((B, d_final, N), jnp.float32),
        grid_spec=pltpu.PrefetchScalarGridSpec(
            num_scalar_prefetch=0,
            grid=grid,
            in_specs=[pt_spec(cfg.d_in),
                      pl.BlockSpec((1, b0_eff.shape[1], 1), lambda b, i: (b, 0, 0))]
                     + [const_spec(p) for p in flat_params],
            out_specs=pt_spec(d_final),
        ),
        compiler_params=pltpu.CompilerParams(
            dimension_semantics=("parallel", "parallel"),   # v7x: shard over both TCs
            vmem_limit_bytes=vmem_limit,
        ),
    )(x_t, b0_eff, *flat_params)

    if channels_last:
        return jnp.transpose(out_t, (0, 2, 1))      # PyTorch layout, extra XLA pass
    return out_t                                    # (B, d_out + feat, N), lane-dense


# ----------------------------- parameter creation --------------------------------
def _weight_norm_linear(key, d_in, d_out):
    # nn.utils.weight_norm(Linear): W = g * v / ||v||  (norm over input dim, per row)
    kv, kg, kb = jax.random.split(key, 3)
    v = jax.random.normal(kv, (d_out, d_in), jnp.float32) * 0.2
    g = jax.random.uniform(kg, (d_out,), jnp.float32, minval=0.5, maxval=1.5)
    b = jax.random.normal(kb, (d_out,), jnp.float32) * 0.05
    w_eff = g[:, None] * v / jnp.linalg.norm(v, axis=1, keepdims=True)
    return w_eff, b                                  # torch layout: (out, in), (out,)


def make_params(key, cfg):
    # TODO(synk): 'geometry'/'zero' init schemes not replicated; synthetic
    # weight-normed params are used (forward semantics are unchanged).
    shapes = layer_in_out(cfg)
    keys = jax.random.split(key, len(shapes))
    return {f"lin{l}": _weight_norm_linear(keys[l], din, dout)
            for l, (din, dout) in enumerate(shapes)}


# ------------------------------ pure-JAX reference --------------------------------
def reference_forward(inputs, cond_smpl, params, cfg):
    """Direct transcription of ImplicitNet.forward (cond='smpl', dim_pose_embed=0)."""
    B, N, d_in = inputs.shape
    x = inputs.reshape(B * N, d_in)
    x_emb = positional_embed(x, cfg.freq_bands, axis=-1)              # embed_fn
    inp_cond = jnp.broadcast_to(cond_smpl[:, None, :],
                                (B, N, cfg.cond_dim)).reshape(B * N, cfg.cond_dim)
    n_linear = len(layer_in_out(cfg))
    h = x_emb
    for l in range(n_linear):
        W, b = params[f"lin{l}"]
        if l == 0:                                                    # cond_layer = [0]
            h = jnp.concatenate([h, inp_cond], axis=-1)
        if l in cfg.skip_in:
            h = jnp.concatenate([h, x_emb], axis=-1) * INV_SQRT2
        h = jnp.dot(h, W.T, precision=jax.lax.Precision.HIGHEST) + b
        if l < n_linear - 1:
            h = _softplus(h)
    return h.reshape(B, N, -1)


# ------------------------------------- main ----------------------------------------
if __name__ == "__main__":
    jax.config.update("jax_default_matmul_precision", "highest")

    # small config consistent with the module: d_in=3, hidden dims, skip at layer 2,
    # SMPL conditioning (69), fourier embedder with multires=2, weight_norm on.
    cfg = make_cfg(d_in=3, dims=(32, 32, 32, 32), d_out=1, feature_vector_size=8,
                   skip_in=(2,), multires=2, cond_dim=69)

    key = jax.random.PRNGKey(0)
    k_pts, k_cond, k_par = jax.random.split(key, 3)

    B, N = 2, 512
    points = jax.random.normal(k_pts, (B, N, 3), jnp.float32)
    cond_smpl = 0.1 * jax.random.normal(k_cond, (B, 69), jnp.float32)   # cond['smpl']
    params = make_params(k_par, cfg)

    out = implicit_net_forward(points, cond_smpl, params, cfg)          # (B, C, N)
    out = jax.block_until_ready(out)

    ref = reference_forward(points, cond_smpl, params, cfg)             # (B, N, C)
    ref_cf = jnp.transpose(ref, (0, 2, 1))                              # (B, C, N)
    assert out.shape == (B, cfg.d_out + cfg.feature_vector_size, N)
    max_err = float(jnp.max(jnp.abs(out - ref_cf)))
    assert jnp.allclose(out, ref_cf, rtol=1e-3, atol=1e-3), \
        f"mismatch vs. pure-JAX reference (max abs err {max_err})"

    # TODO(synk): ImplicitNet.gradient() (torch.autograd SDF gradient), the empty-input
    # early return, cond='frame' and dim_pose_embed>0 branches are not implemented.
    print("KERNEL_OK")
</pallas_src>

<mosaic_0001>
module attributes {stable_mosaic.version = 11 : i64} {
  func.func @_implicit_kernel(%arg0: i32, %arg1: i32, %arg2: memref<1x3x512xf32, #tpu.memory_space<vmem>>, %arg3: memref<1x32x1xf32, #tpu.memory_space<vmem>>, %arg4: memref<32x15xf32, #tpu.memory_space<vmem>>, %arg5: memref<17x32xf32, #tpu.memory_space<vmem>>, %arg6: memref<17x1xf32, #tpu.memory_space<vmem>>, %arg7: memref<32x32xf32, #tpu.memory_space<vmem>>, %arg8: memref<32x1xf32, #tpu.memory_space<vmem>>, %arg9: memref<32x32xf32, #tpu.memory_space<vmem>>, %arg10: memref<32x1xf32, #tpu.memory_space<vmem>>, %arg11: memref<9x32xf32, #tpu.memory_space<vmem>>, %arg12: memref<9x1xf32, #tpu.memory_space<vmem>>, %arg13: memref<1x9x512xf32, #tpu.memory_space<vmem>>) attributes {dimension_semantics = [#tpu.dimension_semantics<parallel>, #tpu.dimension_semantics<parallel>], iteration_bounds = array<i64: 2, 1>, scalar_prefetch = 0 : i64, scratch_operands = 0 : i64, tpu.core_type = #tpu.core_type<tc>, window_params = [{transform_indices = @transform_0, window_bounds = array<i64: 1, 3, 512>}, {transform_indices = @transform_1, window_bounds = array<i64: 1, 32, 1>}, {pipeline_mode = #tpu.pipeline_mode<synchronous>, transform_indices = @transform_2, window_bounds = array<i64: 32, 15>}, {pipeline_mode = #tpu.pipeline_mode<synchronous>, transform_indices = @transform_3, window_bounds = array<i64: 17, 32>}, {pipeline_mode = #tpu.pipeline_mode<synchronous>, transform_indices = @transform_4, window_bounds = array<i64: 17, 1>}, {pipeline_mode = #tpu.pipeline_mode<synchronous>, transform_indices = @transform_5, window_bounds = array<i64: 32, 32>}, {pipeline_mode = #tpu.pipeline_mode<synchronous>, transform_indices = @transform_6, window_bounds = array<i64: 32, 1>}, {pipeline_mode = #tpu.pipeline_mode<synchronous>, transform_indices = @transform_7, window_bounds = array<i64: 32, 32>}, {pipeline_mode = #tpu.pipeline_mode<synchronous>, transform_indices = @transform_8, window_bounds = array<i64: 32, 1>}, {pipeline_mode = #tpu.pipeline_mode<synchronous>, transform_indices = @transform_9, window_bounds = array<i64: 9, 32>}, {pipeline_mode = #tpu.pipeline_mode<synchronous>, transform_indices = @transform_10, window_bounds = array<i64: 9, 1>}, {transform_indices = @transform_11, window_bounds = array<i64: 1, 9, 512>}]} {
    %c0 = arith.constant 0 : index
    %c0_0 = arith.constant 0 : index
    %c0_1 = arith.constant 0 : index
    %0 = vector.load %arg2[%c0, %c0_0, %c0_1] : memref<1x3x512xf32, #tpu.memory_space<vmem>>, vector<1x3x512xf32>
    %1 = vector.shape_cast %0 : vector<1x3x512xf32> to vector<3x512xf32>
    %cst = arith.constant 1.000000e+00 : f32
    %2 = vector.broadcast %cst : f32 to vector<3x512xf32>
    %3 = arith.mulf %1, %2 : vector<3x512xf32>
    %4 = math.sin %3 : vector<3x512xf32>
    %5 = math.cos %3 : vector<3x512xf32>
    %cst_2 = arith.constant 2.000000e+00 : f32
    %6 = vector.broadcast %cst_2 : f32 to vector<3x512xf32>
    %7 = arith.mulf %1, %6 : vector<3x512xf32>
    %8 = math.sin %7 : vector<3x512xf32>
    %9 = math.cos %7 : vector<3x512xf32>
    %c0_3 = arith.constant 0 : index
    %c0_4 = arith.constant 0 : index
    %10 = vector.load %arg4[%c0_3, %c0_4] : memref<32x15xf32, #tpu.memory_space<vmem>>, vector<32x15xf32>
    %11 = vector.extract_strided_slice %10 {offsets = [0, 0], sizes = [32, 3], strides = [1, 1]} : vector<32x15xf32> to vector<32x3xf32>
    %cst_5 = arith.constant dense<0.000000e+00> : vector<32x512xf32>
    %12 = tpu.matmul %11, %1, %cst_5 {dimension_numbers = #tpu.dot_dimension_numbers<[1], [0], [0], [1], [0, 0, 1, 1], [], []>, precision = #tpu.contract_precision<fp32>} : vector<32x3xf32>, vector<3x512xf32>, vector<32x512xf32> -> vector<32x512xf32>
    %13 = vector.extract_strided_slice %10 {offsets = [0, 3], sizes = [32, 3], strides = [1, 1]} : vector<32x15xf32> to vector<32x3xf32>
    %cst_6 = arith.constant dense<0.000000e+00> : vector<32x512xf32>
    %14 = tpu.matmul %13, %4, %cst_6 {dimension_numbers = #tpu.dot_dimension_numbers<[1], [0], [0], [1], [0, 0, 1, 1], [], []>, precision = #tpu.contract_precision<fp32>} : vector<32x3xf32>, vector<3x512xf32>, vector<32x512xf32> -> vector<32x512xf32>
    %15 = arith.addf %12, %14 : vector<32x512xf32>
    %16 = vector.extract_strided_slice %10 {offsets = [0, 6], sizes = [32, 3], strides = [1, 1]} : vector<32x15xf32> to vector<32x3xf32>
    %cst_7 = arith.constant dense<0.000000e+00> : vector<32x512xf32>
    %17 = tpu.matmul %16, %5, %cst_7 {dimension_numbers = #tpu.dot_dimension_numbers<[1], [0], [0], [1], [0, 0, 1, 1], [], []>, precision = #tpu.contract_precision<fp32>} : vector<32x3xf32>, vector<3x512xf32>, vector<32x512xf32> -> vector<32x512xf32>
    %18 = arith.addf %15, %17 : vector<32x512xf32>
    %19 = vector.extract_strided_slice %10 {offsets = [0, 9], sizes = [32, 3], strides = [1, 1]} : vector<32x15xf32> to vector<32x3xf32>
    %cst_8 = arith.constant dense<0.000000e+00> : vector<32x512xf32>
    %20 = tpu.matmul %19, %8, %cst_8 {dimension_numbers = #tpu.dot_dimension_numbers<[1], [0], [0], [1], [0, 0, 1, 1], [], []>, precision = #tpu.contract_precision<fp32>} : vector<32x3xf32>, vector<3x512xf32>, vector<32x512xf32> -> vector<32x512xf32>
    %21 = arith.addf %18, %20 : vector<32x512xf32>
    %22 = vector.extract_strided_slice %10 {offsets = [0, 12], sizes = [32, 3], strides = [1, 1]} : vector<32x15xf32> to vector<32x3xf32>
    %cst_9 = arith.constant dense<0.000000e+00> : vector<32x512xf32>
    %23 = tpu.matmul %22, %9, %cst_9 {dimension_numbers = #tpu.dot_dimension_numbers<[1], [0], [0], [1], [0, 0, 1, 1], [], []>, precision = #tpu.contract_precision<fp32>} : vector<32x3xf32>, vector<3x512xf32>, vector<32x512xf32> -> vector<32x512xf32>
    %24 = arith.addf %21, %23 : vector<32x512xf32>
    %c0_10 = arith.constant 0 : index
    %c0_11 = arith.constant 0 : index
    %c0_12 = arith.constant 0 : index
    %25 = vector.load %arg3[%c0_10, %c0_11, %c0_12] : memref<1x32x1xf32, #tpu.memory_space<vmem>>, vector<1x32x1xf32>
    %26 = vector.shape_cast %25 : vector<1x32x1xf32> to vector<32x1xf32>
    %27 = vector.broadcast %26 : vector<32x1xf32> to vector<32x512xf32>
    %28 = arith.addf %24, %27 : vector<32x512xf32>
    %cst_13 = arith.constant 1.000000e+02 : f32
    %29 = vector.broadcast %cst_13 : f32 to vector<32x512xf32>
    %30 = arith.mulf %28, %29 : vector<32x512xf32>
    %cst_14 = arith.constant 2.000000e+01 : f32
    %31 = vector.broadcast %cst_14 : f32 to vector<32x512xf32>
    %32 = arith.cmpf ogt, %30, %31 : vector<32x512xf32>
    %33 = math.exp %30 : vector<32x512xf32>
    %cst_15 = arith.constant 1.000000e+00 : f32
    %34 = vector.broadcast %cst_15 : f32 to vector<32x512xf32>
    %35 = arith.addf %34, %33 : vector<32x512xf32>
    %36 = math.log %35 : vector<32x512xf32>
    %cst_16 = arith.constant 0.00999999977 : f32
    %37 = vector.broadcast %cst_16 : f32 to vector<32x512xf32>
    %38 = arith.mulf %36, %37 : vector<32x512xf32>
    %39 = arith.select %32, %28, %38 : vector<32x512xi1>, vector<32x512xf32>
    %c0_17 = arith.constant 0 : index
    %c0_18 = arith.constant 0 : index
    %40 = vector.load %arg5[%c0_17, %c0_18] : memref<17x32xf32, #tpu.memory_space<vmem>>, vector<17x32xf32>
    %c0_19 = arith.constant 0 : index
    %c0_20 = arith.constant 0 : index
    %41 = vector.load %arg6[%c0_19, %c0_20] : memref<17x1xf32, #tpu.memory_space<vmem>>, vector<17x1xf32>
    %cst_21 = arith.constant dense<0.000000e+00> : vector<17x512xf32>
    %42 = tpu.matmul %40, %39, %cst_21 {dimension_numbers = #tpu.dot_dimension_numbers<[1], [0], [0], [1], [0, 0, 1, 1], [], []>, precision = #tpu.contract_precision<fp32>} : vector<17x32xf32>, vector<32x512xf32>, vector<17x512xf32> -> vector<17x512xf32>
    %43 = vector.broadcast %41 : vector<17x1xf32> to vector<17x512xf32>
    %44 = arith.addf %42, %43 : vector<17x512xf32>
    %cst_22 = arith.constant 1.000000e+02 : f32
    %45 = vector.broadcast %cst_22 : f32 to vector<17x512xf32>
    %46 = arith.mulf %44, %45 : vector<17x512xf32>
    %cst_23 = arith.constant 2.000000e+01 : f32
    %47 = vector.broadcast %cst_23 : f32 to vector<17x512xf32>
    %48 = arith.cmpf ogt, %46, %47 : vector<17x512xf32>
    %49 = math.exp %46 : vector<17x512xf32>
    %cst_24 = arith.constant 1.000000e+00 : f32
    %50 = vector.broadcast %cst_24 : f32 to vector<17x512xf32>
    %51 = arith.addf %50, %49 : vector<17x512xf32>
    %52 = math.log %51 : vector<17x512xf32>
    %cst_25 = arith.constant 0.00999999977 : f32
    %53 = vector.broadcast %cst_25 : f32 to vector<17x512xf32>
    %54 = arith.mulf %52, %53 : vector<17x512xf32>
    %55 = arith.select %48, %44, %54 : vector<17x512xi1>, vector<17x512xf32>
    %c0_26 = arith.constant 0 : index
    %c0_27 = arith.constant 0 : index
    %56 = vector.load %arg7[%c0_26, %c0_27] : memref<32x32xf32, #tpu.memory_space<vmem>>, vector<32x32xf32>
    %c0_28 = arith.constant 0 : index
    %c0_29 = arith.constant 0 : index
    %57 = vector.load %arg8[%c0_28, %c0_29] : memref<32x1xf32, #tpu.memory_space<vmem>>, vector<32x1xf32>
    %58 = vector.extract_strided_slice %56 {offsets = [0, 0], sizes = [32, 17], strides = [1, 1]} : vector<32x32xf32> to vector<32x17xf32>
    %cst_30 = arith.constant dense<0.000000e+00> : vector<32x512xf32>
    %59 = tpu.matmul %58, %55, %cst_30 {dimension_numbers = #tpu.dot_dimension_numbers<[1], [0], [0], [1], [0, 0, 1, 1], [], []>, precision = #tpu.contract_precision<fp32>} : vector<32x17xf32>, vector<17x512xf32>, vector<32x512xf32> -> vector<32x512xf32>
    %60 = vector.extract_strided_slice %56 {offsets = [0, 17], sizes = [32, 15], strides = [1, 1]} : vector<32x32xf32> to vector<32x15xf32>
    %61 = vector.extract_strided_slice %60 {offsets = [0, 0], sizes = [32, 3], strides = [1, 1]} : vector<32x15xf32> to vector<32x3xf32>
    %cst_31 = arith.constant dense<0.000000e+00> : vector<32x512xf32>
    %62 = tpu.matmul %61, %1, %cst_31 {dimension_numbers = #tpu.dot_dimension_numbers<[1], [0], [0], [1], [0, 0, 1, 1], [], []>, precision = #tpu.contract_precision<fp32>} : vector<32x3xf32>, vector<3x512xf32>, vector<32x512xf32> -> vector<32x512xf32>
    %63 = vector.extract_strided_slice %60 {offsets = [0, 3], sizes = [32, 3], strides = [1, 1]} : vector<32x15xf32> to vector<32x3xf32>
    %cst_32 = arith.constant dense<0.000000e+00> : vector<32x512xf32>
    %64 = tpu.matmul %63, %4, %cst_32 {dimension_numbers = #tpu.dot_dimension_numbers<[1], [0], [0], [1], [0, 0, 1, 1], [], []>, precision = #tpu.contract_precision<fp32>} : vector<32x3xf32>, vector<3x512xf32>, vector<32x512xf32> -> vector<32x512xf32>
    %65 = arith.addf %62, %64 : vector<32x512xf32>
    %66 = vector.extract_strided_slice %60 {offsets = [0, 6], sizes = [32, 3], strides = [1, 1]} : vector<32x15xf32> to vector<32x3xf32>
    %cst_33 = arith.constant dense<0.000000e+00> : vector<32x512xf32>
    %67 = tpu.matmul %66, %5, %cst_33 {dimension_numbers = #tpu.dot_dimension_numbers<[1], [0], [0], [1], [0, 0, 1, 1], [], []>, precision = #tpu.contract_precision<fp32>} : vector<32x3xf32>, vector<3x512xf32>, vector<32x512xf32> -> vector<32x512xf32>
    %68 = arith.addf %65, %67 : vector<32x512xf32>
    %69 = vector.extract_strided_slice %60 {offsets = [0, 9], sizes = [32, 3], strides = [1, 1]} : vector<32x15xf32> to vector<32x3xf32>
    %cst_34 = arith.constant dense<0.000000e+00> : vector<32x512xf32>
    %70 = tpu.matmul %69, %8, %cst_34 {dimension_numbers = #tpu.dot_dimension_numbers<[1], [0], [0], [1], [0, 0, 1, 1], [], []>, precision = #tpu.contract_precision<fp32>} : vector<32x3xf32>, vector<3x512xf32>, vector<32x512xf32> -> vector<32x512xf32>
    %71 = arith.addf %68, %70 : vector<32x512xf32>
    %72 = vector.extract_strided_slice %60 {offsets = [0, 12], sizes = [32, 3], strides = [1, 1]} : vector<32x15xf32> to vector<32x3xf32>
    %cst_35 = arith.constant dense<0.000000e+00> : vector<32x512xf32>
    %73 = tpu.matmul %72, %9, %cst_35 {dimension_numbers = #tpu.dot_dimension_numbers<[1], [0], [0], [1], [0, 0, 1, 1], [], []>, precision = #tpu.contract_precision<fp32>} : vector<32x3xf32>, vector<3x512xf32>, vector<32x512xf32> -> vector<32x512xf32>
    %74 = arith.addf %71, %73 : vector<32x512xf32>
    %75 = arith.addf %59, %74 : vector<32x512xf32>
    %76 = vector.broadcast %57 : vector<32x1xf32> to vector<32x512xf32>
    %77 = arith.addf %75, %76 : vector<32x512xf32>
    %cst_36 = arith.constant 1.000000e+02 : f32
    %78 = vector.broadcast %cst_36 : f32 to vector<32x512xf32>
    %79 = arith.mulf %77, %78 : vector<32x512xf32>
    %cst_37 = arith.constant 2.000000e+01 : f32
    %80 = vector.broadcast %cst_37 : f32 to vector<32x512xf32>
    %81 = arith.cmpf ogt, %79, %80 : vector<32x512xf32>
    %82 = math.exp %79 : vector<32x512xf32>
    %cst_38 = arith.constant 1.000000e+00 : f32
    %83 = vector.broadcast %cst_38 : f32 to vector<32x512xf32>
    %84 = arith.addf %83, %82 : vector<32x512xf32>
    %85 = math.log %84 : vector<32x512xf32>
    %cst_39 = arith.constant 0.00999999977 : f32
    %86 = vector.broadcast %cst_39 : f32 to vector<32x512xf32>
    %87 = arith.mulf %85, %86 : vector<32x512xf32>
    %88 = arith.select %81, %77, %87 : vector<32x512xi1>, vector<32x512xf32>
    %c0_40 = arith.constant 0 : index
    %c0_41 = arith.constant 0 : index
    %89 = vector.load %arg9[%c0_40, %c0_41] : memref<32x32xf32, #tpu.memory_space<vmem>>, vector<32x32xf32>
    %c0_42 = arith.constant 0 : index
    %c0_43 = arith.constant 0 : index
    %90 = vector.load %arg10[%c0_42, %c0_43] : memref<32x1xf32, #tpu.memory_space<vmem>>, vector<32x1xf32>
    %cst_44 = arith.constant dense<0.000000e+00> : vector<32x512xf32>
    %91 = tpu.matmul %89, %88, %cst_44 {dimension_numbers = #tpu.dot_dimension_numbers<[1], [0], [0], [1], [0, 0, 1, 1], [], []>, precision = #tpu.contract_precision<fp32>} : vector<32x32xf32>, vector<32x512xf32>, vector<32x512xf32> -> vector<32x512xf32>
    %92 = vector.broadcast %90 : vector<32x1xf32> to vector<32x512xf32>
    %93 = arith.addf %91, %92 : vector<32x512xf32>
    %cst_45 = arith.constant 1.000000e+02 : f32
    %94 = vector.broadcast %cst_45 : f32 to vector<32x512xf32>
    %95 = arith.mulf %93, %94 : vector<32x512xf32>
    %cst_46 = arith.constant 2.000000e+01 : f32
    %96 = vector.broadcast %cst_46 : f32 to vector<32x512xf32>
    %97 = arith.cmpf ogt, %95, %96 : vector<32x512xf32>
    %98 = math.exp %95 : vector<32x512xf32>
    %cst_47 = arith.constant 1.000000e+00 : f32
    %99 = vector.broadcast %cst_47 : f32 to vector<32x512xf32>
    %100 = arith.addf %99, %98 : vector<32x512xf32>
    %101 = math.log %100 : vector<32x512xf32>
    %cst_48 = arith.constant 0.00999999977 : f32
    %102 = vector.broadcast %cst_48 : f32 to vector<32x512xf32>
    %103 = arith.mulf %101, %102 : vector<32x512xf32>
    %104 = arith.select %97, %93, %103 : vector<32x512xi1>, vector<32x512xf32>
    %c0_49 = arith.constant 0 : index
    %c0_50 = arith.constant 0 : index
    %105 = vector.load %arg11[%c0_49, %c0_50] : memref<9x32xf32, #tpu.memory_space<vmem>>, vector<9x32xf32>
    %c0_51 = arith.constant 0 : index
    %c0_52 = arith.constant 0 : index
    %106 = vector.load %arg12[%c0_51, %c0_52] : memref<9x1xf32, #tpu.memory_space<vmem>>, vector<9x1xf32>
    %cst_53 = arith.constant dense<0.000000e+00> : vector<9x512xf32>
    %107 = tpu.matmul %105, %104, %cst_53 {dimension_numbers = #tpu.dot_dimension_numbers<[1], [0], [0], [1], [0, 0, 1, 1], [], []>, precision = #tpu.contract_precision<fp32>} : vector<9x32xf32>, vector<32x512xf32>, vector<9x512xf32> -> vector<9x512xf32>
    %108 = vector.broadcast %106 : vector<9x1xf32> to vector<9x512xf32>
    %109 = arith.addf %107, %108 : vector<9x512xf32>
    %c0_54 = arith.constant 0 : index
    %c0_55 = arith.constant 0 : index
    %c0_56 = arith.constant 0 : index
    %110 = vector.load %arg13[%c0_54, %c0_55, %c0_56] : memref<1x9x512xf32, #tpu.memory_space<vmem>>, vector<1x9x512xf32>
    %111 = vector.shape_cast %110 : vector<1x9x512xf32> to vector<9x512xf32>
    %112 = vector.shape_cast %109 : vector<9x512xf32> to vector<1x9x512xf32>
    tpu.vector_store %arg13[%c0_54, %c0_55, %c0_56], %112 {strides = array<i32>} : memref<1x9x512xf32, #tpu.memory_space<vmem>>, vector<1x9x512xf32>,
    return
  }
  func.func @transform_0(%arg0: i32, %arg1: i32) -> (i32, i32, i32) {
    %c0_i32 = arith.constant 0 : i32
    %c0_i32_0 = arith.constant 0 : i32
    return %arg0, %c0_i32, %arg1 : i32, i32, i32
  }
  func.func @transform_1(%arg0: i32, %arg1: i32) -> (i32, i32, i32) {
    %c0_i32 = arith.constant 0 : i32
    %c0_i32_0 = arith.constant 0 : i32
    %c0_i32_1 = arith.constant 0 : i32
    return %arg0, %c0_i32, %c0_i32_0 : i32, i32, i32
  }
  func.func @transform_2(%arg0: i32, %arg1: i32) -> (i32, i32) {
    %c0_i32 = arith.constant 0 : i32
    %c0_i32_0 = arith.constant 0 : i32
    %c0_i32_1 = arith.constant 0 : i32
    return %c0_i32, %c0_i32_0 : i32, i32
  }
  func.func @transform_3(%arg0: i32, %arg1: i32) -> (i32, i32) {
    %c0_i32 = arith.constant 0 : i32
    %c0_i32_0 = arith.constant 0 : i32
    %c0_i32_1 = arith.constant 0 : i32
    return %c0_i32, %c0_i32_0 : i32, i32
  }
  func.func @transform_4(%arg0: i32, %arg1: i32) -> (i32, i32) {
    %c0_i32 = arith.constant 0 : i32
    %c0_i32_0 = arith.constant 0 : i32
    %c0_i32_1 = arith.constant 0 : i32
    return %c0_i32, %c0_i32_0 : i32, i32
  }
  func.func @transform_5(%arg0: i32, %arg1: i32) -> (i32, i32) {
    %c0_i32 = arith.constant 0 : i32
    %c0_i32_0 = arith.constant 0 : i32
    %c0_i32_1 = arith.constant 0 : i32
    return %c0_i32, %c0_i32_0 : i32, i32
  }
  func.func @transform_6(%arg0: i32, %arg1: i32) -> (i32, i32) {
    %c0_i32 = arith.constant 0 : i32
    %c0_i32_0 = arith.constant 0 : i32
    %c0_i32_1 = arith.constant 0 : i32
    return %c0_i32, %c0_i32_0 : i32, i32
  }
  func.func @transform_7(%arg0: i32, %arg1: i32) -> (i32, i32) {
    %c0_i32 = arith.constant 0 : i32
    %c0_i32_0 = arith.constant 0 : i32
    %c0_i32_1 = arith.constant 0 : i32
    return %c0_i32, %c0_i32_0 : i32, i32
  }
  func.func @transform_8(%arg0: i32, %arg1: i32) -> (i32, i32) {
    %c0_i32 = arith.constant 0 : i32
    %c0_i32_0 = arith.constant 0 : i32
    %c0_i32_1 = arith.constant 0 : i32
    return %c0_i32, %c0_i32_0 : i32, i32
  }
  func.func @transform_9(%arg0: i32, %arg1: i32) -> (i32, i32) {
    %c0_i32 = arith.constant 0 : i32
    %c0_i32_0 = arith.constant 0 : i32
    %c0_i32_1 = arith.constant 0 : i32
    return %c0_i32, %c0_i32_0 : i32, i32
  }
  func.func @transform_10(%arg0: i32, %arg1: i32) -> (i32, i32) {
    %c0_i32 = arith.constant 0 : i32
    %c0_i32_0 = arith.constant 0 : i32
    %c0_i32_1 = arith.constant 0 : i32
    return %c0_i32, %c0_i32_0 : i32, i32
  }
  func.func @transform_11(%arg0: i32, %arg1: i32) -> (i32, i32, i32) {
    %c0_i32 = arith.constant 0 : i32
    %c0_i32_0 = arith.constant 0 : i32
    return %arg0, %c0_i32, %arg1 : i32, i32, i32
  }
}

</mosaic_0001>

<bundles_post_ra>
// kernel: tpu_custom_call.1
= control target key start
LH: loop header
LB: loop body
LE: loop exit
PB: predicated region body
PF: predicated region fallthrough
CT: control target
= control target key end

     0   :  { %s20332_s17 = smov 0   ;;  %s20334_s18 = smov 0   ;;  %s26089_s0 = inlined_call_operand.vmem [shape: f32[2,3,512], index: 0, kind: input, shape index: {}]   ;;  %s26090_s1 = inlined_call_operand.vmem [shape: f32[2,32,1], index: 1, kind: input, shape index: {}]   ;;  %s26091_s2 = inlined_call_operand.vmem [shape: f32[32,15], index: 2, kind: input, shape index: {}]   ;;  %s26092_s3 = inlined_call_operand.vmem [shape: f32[17,32], index: 3, kind: input, shape index: {}]   ;;  %s26093_s4 = inlined_call_operand.vmem [shape: f32[17,1], index: 4, kind: input, shape index: {}]   ;;  %s26094_s5 = inlined_call_operand.vmem [shape: f32[32,32], index: 5, kind: input, shape index: {}]   ;;  %s26095_s6 = inlined_call_operand.vmem [shape: f32[32,1], index: 6, kind: input, shape index: {}]   ;;  %s26096_s7 = inlined_call_operand.vmem [shape: f32[32,32], index: 7, kind: input, shape index: {}]   ;;  %s26097_s8 = inlined_call_operand.vmem [shape: f32[32,1], index: 8, kind: input, shape index: {}]   ;;  %s26098_s9 = inlined_call_operand.vmem [shape: f32[9,32], index: 9, kind: input, shape index: {}]   ;;  %s26099_s10 = inlined_call_operand.vmem [shape: f32[9,1], index: 10, kind: input, shape index: {}]   ;;  %s26100_s11 = inlined_call_operand.vmem [shape: f32[2,9,512], index: 11, kind: output, shape index: {}]  }
   0x1   :  { %s20336_s19 = smov 0  }
   0x2 LB: > { %s33_s20 = sadd.s32 1, %s20249_s18  ;;  %p19862_p0 = scmp.ge.s32.totalorder %s20253_s19, 1  ;;  %s20253_s19 = sphi %s20336_s19, %s21_s19   ;;  %s20249_s18 = sphi %s20334_s18, %s26754_s18   ;;  %s20245_s17 = sphi %s20332_s17, %s26753_s17  }
   0x3   : > { %p35_p1 = scmp.ge.s32.totalorder %s33_s20, 2  ;;  %p368_p2 = scmp.lt.s32.totalorder %s20253_s19, 3 }
   0x5   : > { %s26756_s20 = smov (%p35_p1, %s33_s20), 0  ;;  %p369_p3 = pnand %p19862_p0, %p368_p2 }
   0x7   : > { %372 = sbr.rel (%p369_p3) target bundleno = 2276 (0x8e4), region = 64 }
   0xc   : > { %v20353_v0 = vld [vmem:[%s26091_s2] sm:$0xff]  ;;  %v20358_v1 = vld [vmem:[%s26091_s2 + $0x10] sm:$0xff]  ;;  %p422_p4 = scmp.lt.s32.totalorder %s20245_s17, 1  ;;  %s20255_s25 = smov 125   ;;  %v20365_v2 = vld [vmem:[%s26091_s2 + $0x8] sm:$0xff]  ;;  %v26110_v6 = vmov 0.0  }
   0xd   : > { %1286 = vrot.lane.b32.xlu0 %v20353_v0, %s20255_s25  ;;  %1290 = vrot.lane.b32.xlu1 %v20358_v1, %s20255_s25  ;;  %v20370_v3 = vld [vmem:[%s26091_s2 + $0x18] sm:$0xff]  ;;  %v26106_v29 = vmov 683565275   ;;  %v26108_v31 = vmov 2475754826   ;;  %s20263_s15 = smov 122  }
   0xe   : > { %s26758_s17 = smov (!%p422_p4, %s20245_s17), 1  ;;  %1501 = vmatprep.mubr.f32.mxu1 %v26110_v6  ;;  %1382 = vmatprep.mubr.f32.mxu0 %v26110_v6  ;;  %v26114_v33 = vmov 2131351028   ;;  %v26116_v35 = vmov 2102212464   ;;  %s20264_s16 = smov 119  }
   0xf   : > { %s19903_s30 = sshll.u32 %s26758_s17, 4  ;;  %v26104_v37 = vmov 920167782   ;;  %v26103_v45 = vmov 1326507024   ;;  %s20265_s23 = smov 116  }
  0x10   : > { %s429_s14 = scalar_lea.vmem %s26089_s0, %s19903_s30  ;;  %s19904_s30 = sshll.u32 %s26758_s17, 5 }
  0x11   : > { %1288 = vrot.lane.b32.xlu0 %v20365_v2, %s20255_s25  ;;  %1292 = vrot.lane.b32.xlu1 %v20370_v3, %s20255_s25  ;;  %v20380_v4 = vld [vmem:[%s429_s14] sm:$0x77]  ;;  %v20382_v5 = vld [vmem:[%s429_s14 + $0x8] sm:$0x77]  ;;  %s21716_s14 = scalar_lea.vmem %s26090_s1, %s19904_s30  ;;  %s20267_s21 = smov 108  }
  0x12   : > { %v448_v7 = vand.u32 2147483647, %v20380_v4  ;;  %v451_v8 = vand.u32 2139095040, %v20380_v4  ;;  %v555_v9 = vand.u32 2139095040, %v20382_v5  ;;  %v552_v10 = vand.u32 2147483647, %v20382_v5 }
  0x13   : > { %vm450_vm14 = vcmp.lt.s32.totalorder %v20380_v4, 0  ;;  %s20268_s28 = smov 111   ;;  %s20269_s29 = smov 105  }
  0x14   : > { %v452_v11 = vshrl.u32 %v451_v8, 23  ;;  %v455_v12 = vand.u32 8388607, %v448_v7  ;;  %v556_v13 = vshrl.u32 %v555_v9, 23  ;;  %v559_v14 = vand.u32 8388607, %v552_v10 }
  0x15   : > { %3784 = vrot.lane.b32.xlu0 %v20353_v0, %s20263_s15  ;;  %3786 = vrot.lane.b32.xlu1 %v20365_v2, %s20263_s15  ;;  %vm449_vm15 = vcmp.le.f32.partialorder %v448_v7, 0.7853982  ;;  %s20270_s30 = smov 102   ;;  %s20271_s12 = smov 99  }
  0x16   : > { %v19869_v15 = vadd.s32 4294967169, %v452_v11  ;;  %v19873_v16 = vadd.s32 4294967169, %v556_v13  ;;  %v456_v18 = vor.u32 8388608, %v455_v12  ;;  %v560_v19 = vor.u32 8388608, %v559_v14  ;;  %s19905_s24 = sshll.u32 %s26758_s17, 6 }
  0x17   : > { %s26070_s27 = scalar_lea.vmem %s26100_s11, %s19905_s24 }
  0x18   : > { %v458_v17 = vadd.s32 1, %v19869_v15  ;;  %v562_v20 = vadd.s32 1, %v19873_v16  ;;  %v20394_v25 = vshll.u32 %v456_v18, 8  ;;  %v20396_v27 = vshll.u32 %v560_v19, 8 }
  0x19   : > { %3788 = vrot.lane.b32.xlu0 %v20358_v1, %s20263_s15  ;;  %3790 = vrot.lane.b32.xlu1 %v20370_v3, %s20263_s15 }
  0x1a   : > { %vm459_vm0 = vcmp.gt.s32.totalorder %v458_v17, 0  ;;  %vm563_vm1 = vcmp.gt.s32.totalorder %v562_v20, 0 }
  0x1b   : > { %v460_v21 = vsel %vm459_vm0, %v458_v17, 0  ;;  %v564_v24 = vsel %vm563_vm1, %v562_v20, 0  ;;  %vm554_vm0 = vcmp.lt.s32.totalorder %v20382_v5, 0  ;;  %vm20478_vm1 = vcmp.le.f32.partialorder %v552_v10, 0.7853982 }
  0x1c   : > { %v461_v22 = vshrl.u32 %v460_v21, 5  ;;  %v462_v23 = vand.u32 31, %v460_v21  ;;  %v566_v26 = vand.u32 31, %v564_v24  ;;  %v20403_v39 = vshrl.u32 %v564_v24, 5 }
  0x1d   : > { %5052 = vrot.lane.b32.xlu0 %v20353_v0, %s20264_s16  ;;  %5054 = vrot.lane.b32.xlu1 %v20365_v2, %s20264_s16 }
  0x1e   : > { %v463_v28 = vsub.s32 32, %v462_v23  ;;  %v465_v30 = vshll.u32 %v26106_v29, %v462_v23  ;;  %v468_v32 = vshll.u32 %v26108_v31, %v462_v23  ;;  %v471_v34 = vshll.u32 %v26114_v33, %v462_v23 }
  0x1f   : > { %v474_v36 = vshll.u32 %v26116_v35, %v462_v23  ;;  %v477_v38 = vshll.u32 %v26104_v37, %v462_v23  ;;  %vm480_vm2 = vcmp.lt.s32.totalorder %v461_v22, 1  ;;  %vm481_vm3 = vcmp.lt.s32.totalorder %v461_v22, 2 }
  0x20   : > { %v464_v40 = vshrl.u32 %v26106_v29, %v463_v28  ;;  %v466_v41 = vshrl.u32 %v26108_v31, %v463_v28  ;;  %v469_v42 = vshrl.u32 %v26114_v33, %v463_v28  ;;  %v472_v43 = vshrl.u32 %v26116_v35, %v463_v28 }
  0x21   : > { %v475_v44 = vshrl.u32 %v26104_v37, %v463_v28  ;;  %v478_v46 = vshrl.u32 %v26103_v45, %v463_v28  ;;  %vm483_vm4 = vcmp.lt.s32.totalorder %v461_v22, 4  ;;  %v567_v50 = vsub.s32 32, %v566_v26  ;;  %5056 = vrot.lane.b32.xlu0 %v20358_v1, %s20264_s16  ;;  %5058 = vrot.lane.b32.xlu1 %v20370_v3, %s20264_s16 }
  0x22   : > { %v467_v47 = vor.u32 %v466_v41, %v465_v30  ;;  %v470_v48 = vor.u32 %v469_v42, %v468_v32  ;;  %v473_v49 = vor.u32 %v472_v43, %v471_v34  ;;  %vm482_vm5 = vcmp.lt.s32.totalorder %v461_v22, 3 }
  0x23   : > { %v476_v51 = vor.u32 %v475_v44, %v474_v36  ;;  %v479_v52 = vor.u32 %v478_v46, %v477_v38  ;;  %v569_v53 = vshll.u32 %v26106_v29, %v566_v26  ;;  %v572_v61 = vshll.u32 %v26108_v31, %v566_v26 }
  0x24   : > { %v484_v54 = vsel %vm480_vm2, %v464_v40, %v467_v47  ;;  %v485_v55 = vsel %vm483_vm4, %v473_v49, 2102212464  ;;  %v488_v56 = vsel %vm480_vm2, %v467_v47, %v470_v48  ;;  %v492_v57 = vsel %vm480_vm2, %v470_v48, %v473_v49 }
  0x25   : > { %v486_v58 = vsel %vm482_vm5, %v470_v48, %v485_v55  ;;  %v489_v59 = vsel %vm483_vm4, %v476_v51, 920167782  ;;  %v493_v60 = vsel %vm483_vm4, %v479_v52, 1326507024  ;;  %v568_v8 = vshrl.u32 %v26106_v29, %v567_v50 }
  0x26   : > { %v490_v62 = vsel %vm482_vm5, %v473_v49, %v489_v59  ;;  %v494_v63 = vsel %vm482_vm5, %v476_v51, %v493_v60  ;;  %v570_v9 = vshrl.u32 %v26108_v31, %v567_v50  ;;  %v487_v11 = vsel %vm481_vm3, %v484_v54, %v486_v58 }
  0x27   : > { %v491_v12 = vsel %vm481_vm3, %v488_v56, %v490_v62  ;;  %v495_v13 = vsel %vm481_vm3, %v492_v57, %v494_v63  ;;  %v573_v14 = vshrl.u32 %v26114_v33, %v567_v50  ;;  %v575_v21 = vshll.u32 %v26114_v33, %v566_v26 }
  0x28   : > { %v20423_v15 = vmul.u32.u64.low %v20394_v25, %v495_v13  ;;  %v20424_v16 = vmul.u32.u64.high %v20394_v25, %v495_v13, %v20423_v15  ;;  %v20427_v17 = vmul.u32.u64.low %v20394_v25, %v491_v12  ;;  %v20428_v18 = vmul.u32.u64.high %v20394_v25, %v491_v12, %v20427_v17 }
  0x29   : > { %v571_v19 = vor.u32 %v570_v9, %v569_v53  ;;  %v574_v20 = vor.u32 %v573_v14, %v572_v61  ;;  %v576_v23 = vshrl.u32 %v26116_v35, %v567_v50  ;;  %v578_v24 = vshll.u32 %v26116_v35, %v566_v26 }
  0x2a   : > { %v579_v22 = vshrl.u32 %v26104_v37, %v567_v50  ;;  %v581_v28 = vshll.u32 %v26104_v37, %v566_v26  ;;  %v582_v30 = vshrl.u32 %v26103_v45, %v567_v50  ;;  %v503_v32 = vmul.u32 %v20394_v25, %v487_v11 }
  0x2b   : > { %v577_v34 = vor.u32 %v576_v23, %v575_v21  ;;  %vm584_vm6 = vcmp.lt.s32.totalorder %v20403_v39, 1  ;;  %vm585_vm7 = vcmp.lt.s32.totalorder %v20403_v39, 2  ;;  %vm505_vm8 = vc.u32 %v20424_v16, %v20427_v17 }
  0x2c   : > { %v506_v36 = vadd.s32 1, %v20428_v18  ;;  %v580_v38 = vor.u32 %v579_v22, %v578_v24  ;;  %vm586_vm9 = vcmp.lt.s32.totalorder %v20403_v39, 3  ;;  %v583_v40 = vor.u32 %v582_v30, %v581_v28 }
  0x2d   : > { %vm587_vm10 = vcmp.lt.s32.totalorder %v20403_v39, 4  ;;  %v588_v26 = vsel %vm584_vm6, %v568_v8, %v571_v19  ;;  %v592_v41 = vsel %vm584_vm6, %v571_v19, %v574_v20  ;;  %v596_v44 = vsel %vm584_vm6, %v574_v20, %v577_v34 }
  0x2e   : > { %v507_v42 = vsel %vm505_vm8, %v506_v36, %v20428_v18  ;;  %v589_v25 = vsel %vm587_vm10, %v577_v34, 2102212464  ;;  %v593_v43 = vsel %vm587_vm10, %v580_v38, 920167782  ;;  %v597_v49 = vsel %vm587_vm10, %v583_v40, 1326507024 }
  0x2f   : > { %v508_v46 = vadd.s32 %v507_v42, %v503_v32  ;;  %v590_v47 = vsel %vm586_vm9, %v574_v20, %v589_v25  ;;  %v594_v48 = vsel %vm586_vm9, %v577_v34, %v593_v43  ;;  %v598_v52 = vsel %vm586_vm9, %v580_v38, %v597_v49 }
  0x30   : > { %v591_v50 = vsel %vm585_vm7, %v588_v26, %v590_v47  ;;  %v595_v51 = vsel %vm585_vm7, %v592_v41, %v594_v48  ;;  %v599_v54 = vsel %vm585_vm7, %v596_v44, %v598_v52  ;;  %vm540_vm8 = vweird.f32 %v20380_v4 }
  0x31   : > { %v509_v53 = vadd.s32 536870912, %v508_v46  ;;  %v20451_v55 = vmul.u32.u64.low %v20396_v27, %v595_v51  ;;  %v20452_v56 = vmul.u32.u64.high %v20396_v27, %v595_v51, %v20451_v55  ;;  %v607_v60 = vmul.u32 %v20396_v27, %v591_v50 }
  0x32   : > { %v20455_v57 = vmul.u32.u64.low %v20396_v27, %v599_v54  ;;  %v20456_v58 = vmul.u32.u64.high %v20396_v27, %v599_v54, %v20455_v57  ;;  %v504_v27 = vadd.s32 %v20427_v17, %v20424_v16  ;;  %vm1307_vm9 = vcmask 1042432  }
  0x33   : > { %v510_v59 = vshrl.u32 %v509_v53, 30  ;;  %v610_v62 = vadd.s32 1, %v20452_v56 }
  0x34   : > { %vm609_vm11 = vc.u32 %v20456_v58, %v20451_v55  ;;  %v608_v17 = vadd.s32 %v20451_v55, %v20456_v58 }
  0x35   : > { %v511_v61 = vshll.u32 %v510_v59, 30  ;;  %v611_v39 = vsel %vm609_vm11, %v610_v62, %v20452_v56  ;;  %v534_v47 = vsub.s32 4, %v510_v59 }
  0x36   : > { %v612_v8 = vadd.s32 %v611_v39, %v607_v60 }
  0x37   : > { %v512_v63 = vsub.s32 %v508_v46, %v511_v61  ;;  %v535_v54 = vsel %vm450_vm14, %v534_v47, %v510_v59 }
  0x38   : > { %v613_v11 = vadd.s32 536870912, %v612_v8  ;;  %v537_v60 = vsel %vm449_vm15, 0, %v535_v54 }
  0x39   : > { %v514_v9 = vsub.s32 0, %v512_v63  ;;  %v541_v62 = vadd.s32 3, %v537_v60 }
  0x3a   : > { %v20462_v13 = vshrl.u32 %v613_v11, 30 }
  0x3b   : > { %v19870_v12 = vmin.u32 %v514_v9, %v512_v63  ;;  %v749_v9 = vand.u32 3, %v537_v60 }
  0x3c   : > { %v615_v15 = vshll.u32 %v20462_v13, 30  ;;  %v638_v11 = vsub.s32 4, %v20462_v13 }
  0x3d   : > { %v516_v14 = vclz %v19870_v12  ;;  %vm754_vm3 = vcmp.eq.s32.totalorder %v749_v9, 2  ;;  %vm751_vm5 = vcmp.eq.s32.totalorder %v749_v9, 0  ;;  %vm750_vm7 = vcmp.lt.s32.totalorder %v749_v9, 2 }
  0x3e   : > { %v616_v19 = vsub.s32 %v612_v8, %v615_v15  ;;  %v542_v8 = vand.u32 3, %v541_v62  ;;  %v639_v10 = vsel %vm554_vm0, %v638_v11, %v20462_v13 }
  0x3f   : > { %v19871_v18 = vadd.s32 4294967294, %v516_v14 }
  0x40   : > { %v618_v21 = vsub.s32 0, %v616_v19  ;;  %vm547_vm2 = vcmp.eq.s32.totalorder %v542_v8, 2  ;;  %vm544_vm4 = vcmp.eq.s32.totalorder %v542_v8, 0  ;;  %vm543_vm6 = vcmp.lt.s32.totalorder %v542_v8, 2 }
  0x41   : > { %vm19872_vm12 = vcmp.lt.s32.totalorder %v19871_v18, 0 }
  0x42   : > { %v519_v20 = vsel %vm19872_vm12, 0, %v19871_v18  ;;  %v19874_v28 = vmin.u32 %v618_v21, %v616_v19 }
  0x43   : > { %v520_v23 = vsub.s32 32, %v519_v20  ;;  %v521_v24 = vshll.u32 %v512_v63, %v519_v20  ;;  %v524_v22 = vsub.s32 4294967266, %v519_v20  ;;  %v20490_v20 = vsel %vm20478_vm1, 0, %v639_v10 }
  0x44   : > { %v620_v34 = vclz %v19874_v28 }
  0x45   : > { %v522_v30 = vshrl.u32 %v504_v27, %v520_v23  ;;  %v525_v32 = vadd.s32 127, %v524_v22 }
  0x46   : > { %v19875_v40 = vadd.s32 4294967294, %v620_v34 }
  0x47   : > { %v523_v36 = vor.u32 %v522_v30, %v521_v24  ;;  %v526_v38 = vshll.u32 %v525_v32, 23  ;;  %v645_v30 = vadd.s32 3, %v20490_v20 }
  0x48   : > { %vm19876_vm13 = vcmp.lt.s32.totalorder %v19875_v40, 0 }
  0x49   : > { %v527_v26 = vor.u32 4788187, %v526_v38  ;;  %v530_v16 = vcvt.s32.f32 %v523_v36  ;;  %v623_v42 = vsel %vm19876_vm13, 0, %v19875_v40  ;;  %vm644_vm13 = vweird.f32 %v20382_v5 }
  0x4a   : > { %v624_v25 = vsub.s32 32, %v623_v42  ;;  %v625_v43 = vshll.u32 %v616_v19, %v623_v42  ;;  %v628_v44 = vsub.s32 4294967266, %v623_v42 }
  0x4b   : > { %v528_v41 = vand.u32 2147483647, %v527_v26 }
  0x4c   : > { %v626_v48 = vshrl.u32 %v608_v17, %v624_v25  ;;  %v629_v49 = vadd.s32 127, %v628_v44 }
  0x4d   : > { %v531_v46 = vmul.f32 %v530_v16, %v528_v41  ;;  %v646_v41 = vand.u32 3, %v645_v30 }
  0x4e   : > { %v627_v51 = vor.u32 %v626_v48, %v625_v43  ;;  %v630_v52 = vshll.u32 %v629_v49, 23 }
  0x4f   : > { %v532_v50 = vxor.u32 2147483648, %v531_v46  ;;  %vm648_vm10 = vcmp.eq.s32.totalorder %v646_v41, 0  ;;  %vm651_vm11 = vcmp.eq.s32.totalorder %v646_v41, 2  ;;  %vm647_vm12 = vcmp.lt.s32.totalorder %v646_v41, 2 }
  0x50   : > { %v631_v56 = vor.u32 4788187, %v630_v52  ;;  %v634_v57 = vcvt.s32.f32 %v627_v51 }
  0x51   : > { %v533_v53 = vsel %vm450_vm14, %v532_v50, %v531_v46  ;;  %vm1298_vm14 = vcmask 23552  }
  0x52   : > { %v536_v55 = vsel %vm449_vm15, %v20380_v4, %v533_v53  ;;  %v632_v58 = vand.u32 2147483647, %v631_v56 }
  0x53   : > { %19967 = vcosq.f32 %v536_v55 }
  0x54   : > { %19969 = vsinq.f32 %v536_v55  ;;  %v635_v61 = vmul.f32 %v634_v57, %v632_v58 }
  0x56   : > { %v636_v63 = vxor.u32 2147483648, %v635_v61 }
  0x58   : > { %v637_v59 = vsel %vm554_vm0, %v636_v63, %v635_v61 }
  0x59   : > { %v640_v39 = vsel %vm20478_vm1, %v20382_v5, %v637_v59 }
  0x5a   : > { %19971 = vcosq.f32 %v640_v39 }
  0x5b   : > { %19973 = vsinq.f32 %v640_v39 }
  0x60   : > { %v19968_v12 = vpop.eup %19967 }
  0x61   : > { %v19970_v14 = vpop.eup %19969  ;;  %v548_v15 = vxor.u32 2147483648, %v19968_v12 }
  0x62   : > { %v545_v18 = vxor.u32 2147483648, %v19970_v14 }
  0x63   : > { %v549_v19 = vsel %vm547_vm2, %v548_v15, %v19970_v14  ;;  %v756_v27 = vsel %vm754_vm3, %v548_v15, %v19970_v14 }
  0x64   : > { %v546_v21 = vsel %vm544_vm4, %v19968_v12, %v545_v18  ;;  %v753_v23 = vsel %vm751_vm5, %v19968_v12, %v545_v18 }
  0x65   : > { %v550_v24 = vsel %vm543_vm6, %v546_v21, %v549_v19  ;;  %v757_v13 = vsel %vm750_vm7, %v753_v23, %v756_v27 }
  0x66   : > { %v551_v22 = vsel %vm540_vm8, nan, %v550_v24  ;;  %v20492_v28 = vsel %vm540_vm8, nan, %v757_v13 }
  0x67   : > { %v1296_v32 = vcombine.high %v551_v22, %v551_v22  ;;  %v1308_v34 = vsel %vm1307_vm9, %v551_v22, 0  ;;  %v20498_v38 = vpop.eup %19971 }
  0x68   : > { %v20496_v36 = vand.u32 4294901760, %v1308_v34  ;;  %v20501_v26 = vpop.eup %19973  ;;  %v26101_v44 = vxor.u32 2147483648, %v20498_v38 }
  0x69   : > { %v1310_v40 = vsel %vm1307_vm9, %v1296_v32, 0  ;;  %v26102_v43 = vxor.u32 2147483648, %v20501_v26 }
  0x6a   : > { %26293 = vst [vmem:[#allocation2_spill] sm:$0xff] %v20496_v36  ;;  %v20503_v16 = vand.u32 4294901760, %v1310_v40  ;;  %v20506_v17 = vsub.f32 %v1308_v34, %v20496_v36  ;;  %v653_v51 = vsel %vm651_vm11, %v26101_v44, %v20501_v26 }
  0x6b   : > { %v650_v50 = vsel %vm648_vm10, %v20498_v38, %v26102_v43 }
  0x6c   : > { %26294 = vst [vmem:[#allocation3_spill] sm:$0xff] %v20503_v16  ;;  %26295 = vst [vmem:[#allocation4_spill] sm:$0xff] %v20506_v17  ;;  %v20509_v42 = vsub.f32 %v1310_v40, %v20503_v16  ;;  %v20512_v25 = vand.u32 4294901760, %v20506_v17  ;;  %1347 = vmatprep.subr.mxu0 %v20503_v16  ;;  %v654_v53 = vsel %vm647_vm12, %v650_v50, %v653_v51 }
  0x6d   : > { %1349 = vmatpush1.msra.mxu0 %v20496_v36  ;;  %v655_v54 = vsel %vm644_vm13, nan, %v654_v53 }
  0x6e   : > { %26296 = vst [vmem:[#allocation5_spill] sm:$0xff] %v20509_v42  ;;  %26297 = vst [vmem:[#allocation6_spill] sm:$0xff] %v20512_v25  ;;  %v20519_v46 = vand.u32 4294901760, %v20509_v42  ;;  %v1466_v47 = vsub.f32 %v20506_v17, %v20512_v25  ;;  %1562 = vmatprep.subr.mxu0 %v20509_v42  ;;  %v1297_v55 = vcombine.high %v655_v54, %v655_v54 }
  0x70   : > { %26298 = vst [vmem:[#allocation7_spill] sm:$0xff] %v20519_v46  ;;  %v1460_v48 = vsub.f32 %v20509_v42, %v20519_v46  ;;  %v20526_v49 = vand.u32 4294901760, %v1466_v47  ;;  %v1314_v58 = vsel %vm1307_vm9, %v1297_v55, 0  ;;  %v1312_v47 = vsel %vm1307_vm9, %v655_v54, 0 }
  0x71   : > { %v20549_v63 = vand.u32 4294901760, %v1314_v58  ;;  %v20620_v51 = vand.u32 4294901760, %v1312_v47 }
  0x72   : > { %26299 = vst [vmem:[#allocation8_spill] sm:$0xff] %v20526_v49  ;;  %v20534_v52 = vand.u32 4294901760, %v1460_v48 }
  0x73   : > { %26301 = vst [vmem:[#allocation10_spill] sm:$0xff] %v20549_v63  ;;  %v20571_v18 = vsub.f32 %v1314_v58, %v20549_v63  ;;  %26304 = vst [vmem:[#allocation13_spill] sm:$0xff] %v20620_v51  ;;  %v20632_v55 = vsub.f32 %v1312_v47, %v20620_v51 }
  0x74   : > { %26300 = vst [vmem:[#allocation9_spill] sm:$0xff] %v20534_v52  ;;  %1462 = vmatprep.subr.mxu1 %v20534_v52 }
  0x75   : > { %1468 = vmatpush1.msra.mxu1 %v20526_v49  ;;  %26302 = vst [vmem:[#allocation11_spill] sm:$0xff] %v20571_v18  ;;  %v20592_v22 = vand.u32 4294901760, %v20571_v18  ;;  %26306 = vst [vmem:[#allocation15_spill] sm:$0xff] %v20632_v55 }
  0x76   : > { %1662 = vmatprep.subr.mxu1 %v20503_v16 }
  0x77   : > { %26303 = vst [vmem:[#allocation12_spill] sm:$0xff] %v20592_v22  ;;  %v2072_v41 = vsub.f32 %v20571_v18, %v20592_v22 }
  0x79   : > { %v20622_v53 = vand.u32 4294901760, %v2072_v41 }
  0x7b   : > { %26305 = vst [vmem:[#allocation14_spill] sm:$0xff] %v20622_v53 }
  0x7f   : > { %v1287_v56 = vpop.permute.xlu0 %1286  ;;  %v1291_v57 = vpop.permute.xlu1 %1290 }
  0x80   : > { %v1299_v60 = vsel %vm1298_vm14, %v1287_v56, 0  ;;  %v1303_v61 = vsel %vm1298_vm14, %v1291_v57, 0  ;;  %v20640_v56 = vand.u32 4294901760, %v20632_v55 }
  0x81   : > { %v20545_v62 = vand.u32 4294901760, %v1299_v60  ;;  %v20547_v7 = vand.u32 4294901760, %v1303_v61 }
  0x82   : > { %26307 = vst [vmem:[#allocation16_spill] sm:$0xff] %v20640_v56  ;;  %v2078_v57 = vsub.f32 %v20632_v55, %v20640_v56 }
  0x83   : > { %v20552_v59 = vsub.f32 %v1299_v60, %v20545_v62  ;;  %v1289_v39 = vpop.permute.xlu0 %1288  ;;  %1503 = vmatmul.mubr.f32.vlgmr.msra.gmra.mxu1 %v20545_v62  ;;  %v1293_v8 = vpop.permute.xlu1 %1292  ;;  %v20560_v12 = vsub.f32 %v1303_v61, %v20547_v7  ;;  %v2542_v60 = vcombine.high %v20380_v4, %v20380_v4 }
  0x84   : > { %v1301_v9 = vsel %vm1298_vm14, %v1289_v39, 0  ;;  %1508 = vmatprep.mubr.f32.mxu1 %v26110_v6  ;;  %v1305_v11 = vsel %vm1298_vm14, %v1293_v8, 0  ;;  %1664 = vmatpush1.msra.mxu1 %v20496_v36  ;;  %v20654_v58 = vand.u32 4294901760, %v2078_v57  ;;  %v2543_v57 = vcombine.high %v20382_v5, %v20382_v5 }
  0x85   : > { %v20562_v10 = vand.u32 4294901760, %v1301_v9  ;;  %v20564_v14 = vand.u32 4294901760, %v1305_v11  ;;  %v20567_v15 = vand.u32 4294901760, %v20552_v59  ;;  %1864 = vmatprep.subr.mxu1 %v20503_v16  ;;  %v20589_v13 = vand.u32 4294901760, %v20560_v12 }
  0x86   : > { %26308 = vst [vmem:[#allocation17_spill] sm:$0xff] %v20654_v58  ;;  %v2554_v61 = vsel %vm1307_vm9, %v2542_v60, 0 }
  0x87   : > { %v20574_v19 = vsub.f32 %v1301_v9, %v20562_v10  ;;  %1510 = vmatmul.mubr.f32.gmra.mxu1 %v20562_v10  ;;  %v1386_v27 = vsub.f32 %v20552_v59, %v20567_v15  ;;  %v20581_v21 = vsub.f32 %v1305_v11, %v20564_v14  ;;  %v1408_v34 = vsub.f32 %v20560_v12, %v20589_v13 }
  0x88   : > { %1515 = vmatprep.mubr.f32.mxu1 %v26110_v6  ;;  %v20683_v39 = vand.u32 4294901760, %v2554_v61 }
  0x89   : > { %v20583_v23 = vand.u32 4294901760, %v1386_v27  ;;  %v20586_v24 = vand.u32 4294901760, %v20574_v19  ;;  %v20606_v40 = vand.u32 4294901760, %v20581_v21  ;;  %v20616_v48 = vand.u32 4294901760, %v1408_v34 }
  0x8a   : > { %26309 = vst [vmem:[#allocation18_spill] sm:$0xff] %v20683_v39  ;;  %v20692_v8 = vsub.f32 %v2554_v61, %v20683_v39  ;;  %v2552_v27 = vsel %vm1307_vm9, %v20380_v4, 0 }
  0x8b   : > { %1388 = vmatmul.mubr.f32.vlgmr.msra.gmra.mxu0 %v20583_v23  ;;  %1517 = vmatmul.mubr.f32.gmra.mxu1 %v20547_v7  ;;  %v1397_v30 = vsub.f32 %v20574_v19, %v20586_v24  ;;  %v1419_v50 = vsub.f32 %v20581_v21, %v20606_v40 }
  0x8c   : > { %1393 = vmatprep.mubr.f32.mxu0 %v26110_v6  ;;  %1522 = vmatprep.mubr.f32.mxu1 %v26110_v6  ;;  %26310 = vst [vmem:[#allocation19_spill] sm:$0xff] %v20692_v8  ;;  %v20699_v9 = vand.u32 4294901760, %v20692_v8 }
  0x8d   : > { %v20600_v32 = vand.u32 4294901760, %v1397_v30  ;;  %1565 = vmatpush1.msra.mxu0 %v20506_v17  ;;  %v20628_v54 = vand.u32 4294901760, %v1419_v50  ;;  %v20718_v30 = vand.u32 4294901760, %v2552_v27 }
  0x8e   : > { %1767 = vmatprep.subr.mxu0 %v20519_v46  ;;  %26311 = vst [vmem:[#allocation20_spill] sm:$0xff] %v20699_v9  ;;  %v2704_v11 = vsub.f32 %v20692_v8, %v20699_v9 }
  0x8f   : > { %1399 = vmatmul.mubr.f32.gmra.mxu0 %v20600_v32  ;;  %1524 = vmatmul.mubr.f32.gmra.mxu1 %v20564_v14  ;;  %26312 = vst [vmem:[#allocation21_spill] sm:$0xff] %v20718_v30 }
  0x90   : > { %1404 = vmatprep.mubr.f32.mxu0 %v26110_v6  ;;  %1697 = vmatprep.mubr.f32.mxu1 %v26110_v6  ;;  %v20720_v34 = vand.u32 4294901760, %v2704_v11 }
  0x92   : > { %26313 = vst [vmem:[#allocation22_spill] sm:$0xff] %v20720_v34 }
  0x93   : > { %1410 = vmatmul.mubr.f32.gmra.mxu0 %v20616_v48  ;;  %1701 = vmatmul.mubr.f32.vlgmr.msra.gmra.mxu1 %v20567_v15 }
  0x94   : > { %1415 = vmatprep.mubr.f32.mxu0 %v26110_v6  ;;  %1706 = vmatprep.mubr.f32.mxu1 %v26110_v6 }
  0x95   : > { %1866 = vmatpush1.msra.mxu1 %v20496_v36 }
  0x96   : > { %2074 = vmatprep.subr.mxu1 %v20622_v53 }
  0x97   : > { %1421 = vmatmul.mubr.f32.gmra.mxu0 %v20628_v54  ;;  %1710 = vmatmul.mubr.f32.gmra.mxu1 %v20586_v24 }
  0x98   : > { %1598 = vmatprep.mubr.f32.mxu0 %v26110_v6  ;;  %1715 = vmatprep.mubr.f32.mxu1 %v26110_v6 }
  0x9b   : > { %1601 = vmatmul.mubr.f32.vlgmr.msra.gmra.mxu0 %v20552_v59  ;;  %1719 = vmatmul.mubr.f32.gmra.mxu1 %v20589_v13 }
  0x9c   : > { %1606 = vmatprep.mubr.f32.mxu0 %v26110_v6  ;;  %1724 = vmatprep.mubr.f32.mxu1 %v26110_v6 }
  0x9d   : > { %1771 = vmatpush1.msra.mxu0 %v20512_v25 }
  0x9e   : > { %1959 = vmatprep.subr.mxu0 %v20549_v63 }
  0x9f   : > { %1609 = vmatmul.mubr.f32.gmra.mxu0 %v20574_v19  ;;  %1728 = vmatmul.mubr.f32.gmra.mxu1 %v20606_v40 }
  0xa0   : > { %1614 = vmatprep.mubr.f32.mxu0 %v26110_v6  ;;  %1899 = vmatprep.mubr.f32.mxu1 %v26110_v6 }
  0xa3   : > { %1617 = vmatmul.mubr.f32.gmra.mxu0 %v20560_v12  ;;  %1901 = vmatmul.mubr.f32.vlgmr.msra.gmra.mxu1 %v20545_v62 }
  0xa4   : > { %1622 = vmatprep.mubr.f32.mxu0 %v26110_v6  ;;  %1906 = vmatprep.mubr.f32.mxu1 %v26110_v6 }
  0xa5   : > { %2080 = vmatpush1.msra.mxu1 %v20654_v58 }
  0xa6   : > { %2274 = vmatprep.subr.mxu1 %v20549_v63 }
  0xa7   : > { %1625 = vmatmul.mubr.f32.gmra.mxu0 %v20581_v21  ;;  %1908 = vmatmul.mubr.f32.gmra.mxu1 %v20562_v10 }
  0xa8   : > { %1804 = vmatprep.mubr.f32.mxu0 %v26110_v6  ;;  %1913 = vmatprep.mubr.f32.mxu1 %v26110_v6 }
  0xab   : > { %1806 = vmatmul.mubr.f32.vlgmr.msra.gmra.mxu0 %v20545_v62  ;;  %1915 = vmatmul.mubr.f32.gmra.mxu1 %v20547_v7 }
  0xac   : > { %1811 = vmatprep.mubr.f32.mxu0 %v26110_v6  ;;  %1920 = vmatprep.mubr.f32.mxu1 %v26110_v6 }
  0xad   : > { %1961 = vmatpush1.msra.mxu0 %v20620_v51 }
  0xae   : > { %2174 = vmatprep.subr.mxu0 %v20571_v18 }
  0xaf   : > { %1813 = vmatmul.mubr.f32.gmra.mxu0 %v20562_v10  ;;  %1922 = vmatmul.mubr.f32.gmra.mxu1 %v20564_v14 }
  0xb0   : > { %1818 = vmatprep.mubr.f32.mxu0 %v26110_v6  ;;  %2113 = vmatprep.mubr.f32.mxu1 %v26110_v6 }
  0xb3   : > { %1820 = vmatmul.mubr.f32.gmra.mxu0 %v20547_v7  ;;  %2115 = vmatmul.mubr.f32.vlgmr.msra.gmra.mxu1 %v20545_v62 }
  0xb4   : > { %1825 = vmatprep.mubr.f32.mxu0 %v26110_v6  ;;  %2120 = vmatprep.mubr.f32.mxu1 %v26110_v6 }
  0xb5   : > { %2276 = vmatpush1.msra.mxu1 %v20620_v51 }
  0xb6   : > { %2476 = vmatprep.subr.mxu1 %v20549_v63 }
  0xb7   : > { %1827 = vmatmul.mubr.f32.gmra.mxu0 %v20564_v14  ;;  %2122 = vmatmul.mubr.f32.gmra.mxu1 %v20562_v10 }
  0xb8   : > { %1994 = vmatprep.mubr.f32.mxu0 %v26110_v6  ;;  %2127 = vmatprep.mubr.f32.mxu1 %v26110_v6 }
  0xbb   : > { %2000 = vmatmul.mubr.f32.vlgmr.msra.gmra.mxu0 %v20583_v23  ;;  %2129 = vmatmul.mubr.f32.gmra.mxu1 %v20547_v7  ;;  %v20714_v23 = vmul.f32 2.0, %v20380_v4  ;;  %v20729_v4 = vsub.f32 %v2552_v27, %v20718_v30 }
  0xbc   : > { %2005 = vmatprep.mubr.f32.mxu0 %v26110_v6  ;;  %2134 = vmatprep.mubr.f32.mxu1 %v26110_v6 }
  0xbd   : > { %2177 = vmatpush1.msra.mxu0 %v20632_v55  ;;  %v867_v41 = vand.u32 2139095040, %v20714_v23  ;;  %26314 = vst [vmem:[#allocation23_spill] sm:$0xff] %v20729_v4 }
  0xbe   : > { %2379 = vmatprep.subr.mxu0 %v20592_v22 }
  0xbf   : > { %2011 = vmatmul.mubr.f32.gmra.mxu0 %v20600_v32  ;;  %2136 = vmatmul.mubr.f32.gmra.mxu1 %v20564_v14  ;;  %v868_v32 = vshrl.u32 %v867_v41, 23 }
  0xc0   : > { %2016 = vmatprep.mubr.f32.mxu0 %v26110_v6  ;;  %2309 = vmatprep.mubr.f32.mxu1 %v26110_v6 }
  0xc1   : > { %v19885_v47 = vadd.s32 4294967169, %v868_v32 }
  0xc3   : > { %2022 = vmatmul.mubr.f32.gmra.mxu0 %v20616_v48  ;;  %2313 = vmatmul.mubr.f32.vlgmr.msra.gmra.mxu1 %v20567_v15  ;;  %v20737_v15 = vand.u32 4294901760, %v20729_v4  ;;  %v874_v48 = vadd.s32 1, %v19885_v47 }
  0xc4   : > { %2027 = vmatprep.mubr.f32.mxu0 %v26110_v6  ;;  %2318 = vmatprep.mubr.f32.mxu1 %v26110_v6 }
  0xc5   : > { %2478 = vmatpush1.msra.mxu1 %v20620_v51  ;;  %26315 = vst [vmem:[#allocation24_spill] sm:$0xff] %v20737_v15  ;;  %vm875_vm15 = vcmp.gt.s32.totalorder %v874_v48, 0 }
  0xc6   : > { %2706 = vmatprep.subr.mxu1 %v20720_v34 }
  0xc7   : > { %2033 = vmatmul.mubr.f32.gmra.mxu0 %v20628_v54  ;;  %2322 = vmatmul.mubr.f32.gmra.mxu1 %v20586_v24  ;;  %v2710_v24 = vsub.f32 %v20729_v4, %v20737_v15  ;;  %v2548_v54 = vsel %vm1298_vm14, %v20358_v1, 0  ;;  %v2550_v1 = vsel %vm1298_vm14, %v20370_v3, 0 }
  0xc8   : > { %2210 = vmatprep.mubr.f32.mxu0 %v26110_v6  ;;  %2327 = vmatprep.mubr.f32.mxu1 %v26110_v6  ;;  %v20785_v60 = vand.u32 4294901760, %v2548_v54  ;;  %v20799_v27 = vand.u32 4294901760, %v2550_v1 }
  0xca   : > { %v20806_v41 = vsub.f32 %v2548_v54, %v20785_v60 }
  0xcb   : > { %2213 = vmatmul.mubr.f32.vlgmr.msra.gmra.mxu0 %v20552_v59  ;;  %2331 = vmatmul.mubr.f32.gmra.mxu1 %v20589_v13  ;;  %v2544_v59 = vsel %vm1298_vm14, %v20353_v0, 0  ;;  %v20753_v13 = vand.u32 4294901760, %v2710_v24  ;;  %v26113_v24 = vand.u32 2147483647, %v20714_v23 }
  0xcc   : > { %2218 = vmatprep.mubr.f32.mxu0 %v26110_v6  ;;  %2336 = vmatprep.mubr.f32.mxu1 %v26110_v6  ;;  %v20757_v50 = vand.u32 4294901760, %v2544_v59 }
  0xcd   : > { %2383 = vmatpush1.msra.mxu0 %v20640_v56  ;;  %26316 = vst [vmem:[#allocation25_spill] sm:$0xff] %v20753_v13 }
  0xce   : > { %2591 = vmatprep.subr.mxu0 %v20683_v39  ;;  %v20766_v0 = vsub.f32 %v2544_v59, %v20757_v50 }
  0xcf   : > { %2221 = vmatmul.mubr.f32.gmra.mxu0 %v20574_v19  ;;  %2340 = vmatmul.mubr.f32.gmra.mxu1 %v20606_v40  ;;  %v876_v19 = vsel %vm875_vm15, %v874_v48, 0 }
  0xd0   : > { %2226 = vmatprep.mubr.f32.mxu0 %v26110_v6  ;;  %2511 = vmatprep.mubr.f32.mxu1 %v26110_v6  ;;  %v878_v40 = vand.u32 31, %v876_v19  ;;  %v20814_v48 = vshrl.u32 %v876_v19, 5 }
  0xd2   : > { %v20790_v61 = vsub.s32 32, %v878_v40  ;;  %v893_v59 = vshll.u32 %v26104_v37, %v878_v40  ;;  %v884_v19 = vshll.u32 %v26108_v31, %v878_v40  ;;  %vm899_vm0 = vcmp.lt.s32.totalorder %v20814_v48, 4 }
  0xd3   : > { %2229 = vmatmul.mubr.f32.gmra.mxu0 %v20560_v12  ;;  %2513 = vmatmul.mubr.f32.vlgmr.msra.gmra.mxu1 %v20545_v62  ;;  %v2546_v12 = vsel %vm1298_vm14, %v20365_v2, 0  ;;  %v20783_v2 = vand.u32 4294901760, %v20766_v0  ;;  %vm896_vm1 = vcmp.lt.s32.totalorder %v20814_v48, 1  ;;  %vm898_vm2 = vcmp.lt.s32.totalorder %v20814_v48, 3 }
  0xd4   : > { %2234 = vmatprep.mubr.f32.mxu0 %v26110_v6  ;;  %2518 = vmatprep.mubr.f32.mxu1 %v26110_v6  ;;  %v891_v47 = vshrl.u32 %v26104_v37, %v20790_v61  ;;  %v882_v44 = vshrl.u32 %v26108_v31, %v20790_v61  ;;  %v885_v43 = vshrl.u32 %v26114_v33, %v20790_v61  ;;  %vm897_vm3 = vcmp.lt.s32.totalorder %v20814_v48, 2 }
  0xd5   : > { %2712 = vmatpush1.msra.mxu1 %v20753_v13  ;;  %v2630_v3 = vsub.f32 %v20766_v0, %v20783_v2  ;;  %v20837_v37 = vsub.f32 %v2550_v1, %v20799_v27 }
  0xd6   : > { %2906 = vmatprep.subr.mxu1 %v20683_v39 }
  0xd7   : > { %2237 = vmatmul.mubr.f32.gmra.mxu0 %v20581_v21  ;;  %2520 = vmatmul.mubr.f32.gmra.mxu1 %v20562_v10  ;;  %v20776_v21 = vand.u32 4294901760, %v2546_v12 }
  0xd8   : > { %2416 = vmatprep.mubr.f32.mxu0 %v26110_v6  ;;  %2525 = vmatprep.mubr.f32.mxu1 %v26110_v6 }
  0xd9   : > { %v20797_v11 = vsub.f32 %v2546_v12, %v20776_v21  ;;  %v894_v12 = vshrl.u32 %v26103_v45, %v20790_v61  ;;  %v888_v45 = vshrl.u32 %v26116_v35, %v20790_v61 }
  0xdb   : > { %2418 = vmatmul.mubr.f32.vlgmr.msra.gmra.mxu0 %v20545_v62  ;;  %2527 = vmatmul.mubr.f32.gmra.mxu1 %v20547_v7  ;;  %v2558_v62 = vsel %vm1307_vm9, %v2543_v57, 0  ;;  %v20822_v54 = vand.u32 4294901760, %v20797_v11  ;;  %v881_v57 = vshll.u32 %v26106_v29, %v878_v40  ;;  %v895_v13 = vor.u32 %v894_v12, %v893_v59 }
  0xdc   : > { %2423 = vmatprep.mubr.f32.mxu0 %v26110_v6  ;;  %2532 = vmatprep.mubr.f32.mxu1 %v26110_v6  ;;  %v20808_v32 = vand.u32 4294901760, %v2558_v62  ;;  %v886_v59 = vor.u32 %v885_v43, %v884_v19 }
  0xdd   : > { %2593 = vmatpush1.msra.mxu0 %v20718_v30  ;;  %v2641_v1 = vsub.f32 %v20797_v11, %v20822_v54 }
  0xde   : > { %2806 = vmatprep.subr.mxu0 %v20692_v8  ;;  %26317 = vst [vmem:[#allocation26_spill] sm:$0xff] %v20808_v32  ;;  %v20841_v31 = vsub.f32 %v2558_v62, %v20808_v32  ;;  %v26319_v62 = vmov 0.0  }
  0xdf   : > { %2425 = vmatmul.mubr.f32.gmra.mxu0 %v20562_v10  ;;  %2534 = vmatmul.mubr.f32.gmra.mxu1 %v20564_v14  ;;  %v890_v10 = vshll.u32 %v26116_v35, %v878_v40  ;;  %v909_v35 = vsel %vm899_vm0, %v895_v13, 1326507024 }
  0xe0   : > { %2430 = vmatprep.mubr.f32.mxu0 %v26110_v6  ;;  %2745 = vmatprep.mubr.f32.mxu1 %v26110_v6  ;;  %26318 = vst [vmem:[#allocation27_spill] sm:$0xff] %v20841_v31 }
  0xe1   : > { %v892_v29 = vor.u32 %v891_v47, %v890_v10  ;;  %v20853_v10 = vand.u32 4294901760, %v20806_v41  ;;  %v883_v47 = vor.u32 %v882_v44, %v881_v57 }
  0xe3   : > { %2432 = vmatmul.mubr.f32.gmra.mxu0 %v20547_v7  ;;  %2747 = vmatmul.mubr.f32.vlgmr.msra.gmra.mxu1 %v20757_v50  ;;  %v887_v7 = vshll.u32 %v26114_v33, %v878_v40  ;;  %v20848_v40 = vand.u32 4294901760, %v2630_v3  ;;  %v20862_v3 = vand.u32 4294901760, %v20837_v37  ;;  %v2652_v43 = vsub.f32 %v20806_v41, %v20853_v10 }
  0xe4   : > { %2437 = vmatprep.mubr.f32.mxu0 %v26110_v6  ;;  %2752 = vmatprep.mubr.f32.mxu1 %v26110_v6  ;;  %v871_v6 = vand.u32 8388607, %v26113_v24  ;;  %v20865_v24 = vand.u32 4294901760, %v20841_v31  ;;  %v910_v57 = vsel %vm898_vm2, %v892_v29, %v909_v35  ;;  %v20901_v35 = vmul.f32 2.0, %v20382_v5 }
  0xe5   : > { %2908 = vmatpush1.msra.mxu1 %v20718_v30  ;;  %v889_v12 = vor.u32 %v888_v45, %v887_v7  ;;  %v20871_v45 = vand.u32 4294901760, %v2641_v1  ;;  %v2663_v19 = vsub.f32 %v20837_v37, %v20862_v3  ;;  %v2556_v1 = vsel %vm1307_vm9, %v20382_v5, 0 }
  0xe6   : > { %3108 = vmatprep.subr.mxu1 %v20683_v39  ;;  %26320 = vst [vmem:[#allocation28_spill] sm:$0xff] %v20865_v24  ;;  %v872_v33 = vor.u32 8388608, %v871_v6  ;;  %v904_v6 = vsel %vm896_vm1, %v883_v47, %v886_v59  ;;  %v3316_v7 = vsub.f32 %v20841_v31, %v20865_v24  ;;  %26321 = vst [vmem:[#allocation29_spill] sm:$0xff] %v20901_v35  ;;  %v26335_v53 = vand.u32 2147483647, %v20901_v35 }
  0xe7   : > { %2439 = vmatmul.mubr.f32.gmra.mxu0 %v20564_v14  ;;  %2754 = vmatmul.mubr.f32.gmra.mxu1 %v20776_v21  ;;  %v905_v14 = vsel %vm899_vm0, %v892_v29, 920167782  ;;  %v908_v13 = vsel %vm896_vm1, %v886_v59, %v889_v12  ;;  %v20909_v8 = vand.u32 4294901760, %v2663_v19 }
  0xe8   : > { %2626 = vmatprep.mubr.f32.mxu0 %v26319_v62  ;;  %2759 = vmatprep.mubr.f32.mxu1 %v26319_v62  ;;  %v906_v44 = vsel %vm898_vm2, %v889_v12, %v905_v14  ;;  %v912_v14 = vshll.u32 %v872_v33, 8  ;;  %v20907_v33 = vand.u32 4294901760, %v2556_v1  ;;  %v20911_v34 = vand.u32 4294901760, %v3316_v7 }
  0xe9   : > { %v907_v29 = vsel %vm897_vm3, %v904_v6, %v906_v44  ;;  %v26324_v6 = vmov 683565275   ;;  %v975_v63 = vand.u32 8388607, %v26335_v53 }
  0xea   : > { %26322 = vst [vmem:[#allocation30_spill] sm:$0xff] %v20907_v33  ;;  %26323 = vst [vmem:[#allocation31_spill] sm:$0xff] %v20911_v34  ;;  %v880_v44 = vshrl.u32 %v26324_v6, %v20790_v61  ;;  %v20931_v19 = vsub.f32 %v2556_v1, %v20907_v33 }
  0xeb   : > { %2632 = vmatmul.mubr.f32.vlgmr.msra.gmra.mxu0 %v20848_v40  ;;  %2761 = vmatmul.mubr.f32.gmra.mxu1 %v20785_v60 }
  0xec   : > { %2637 = vmatprep.mubr.f32.mxu0 %v26319_v62  ;;  %2766 = vmatprep.mubr.f32.mxu1 %v26319_v62  ;;  %26325 = vst [vmem:[#allocation32_spill] sm:$0xff] %v20931_v19 }
  0xed   : > { %2809 = vmatpush1.msra.mxu0 %v20729_v4  ;;  %v20896_v4 = vand.u32 4294901760, %v2652_v43  ;;  %v20913_v43 = vmul.u32.u64.low %v912_v14, %v907_v29  ;;  %v20914_v39 = vmul.u32.u64.high %v912_v14, %v907_v29, %v20913_v43 }
  0xee   : > { %3011 = vmatprep.subr.mxu0 %v20699_v9  ;;  %v911_v9 = vsel %vm897_vm3, %v908_v13, %v910_v57  ;;  %v971_v13 = vand.u32 2139095040, %v20901_v35  ;;  %v901_v57 = vsel %vm899_vm0, %v889_v12, 2102212464  ;;  %v20943_v12 = vand.u32 4294901760, %v20931_v19 }
  0xef   : > { %2643 = vmatmul.mubr.f32.gmra.mxu0 %v20871_v45  ;;  %2768 = vmatmul.mubr.f32.gmra.mxu1 %v20799_v27  ;;  %v20921_v56 = vmul.u32.u64.low %v912_v14, %v911_v9  ;;  %v20922_v22 = vmul.u32.u64.high %v912_v14, %v911_v9, %v20921_v56  ;;  %v902_v9 = vsel %vm898_vm2, %v886_v59, %v901_v57  ;;  %v922_v1 = vadd.s32 1, %v20914_v39 }
  0xf0   : > { %2648 = vmatprep.mubr.f32.mxu0 %v26319_v62  ;;  %2941 = vmatprep.mubr.f32.mxu1 %v26319_v62  ;;  %v900_v56 = vsel %vm896_vm1, %v880_v44, %v883_v47  ;;  %v972_v61 = vshrl.u32 %v971_v13, 23  ;;  %26326 = vst [vmem:[#allocation33_spill] sm:$0xff] %v20943_v12  ;;  %v3322_v48 = vsub.f32 %v20931_v19, %v20943_v12 }
  0xf1   : > { %v903_v7 = vsel %vm897_vm3, %v900_v56, %v902_v9  ;;  %vm921_vm4 = vc.u32 %v20922_v22, %v20913_v43  ;;  %v20223_v56 = vld [vmem:[%s26091_s2] sm:$0xff]  ;;  %v20224_v9 = vld [vmem:[%s26091_s2 + $0x8] sm:$0xff] }
  0xf2   : > { %v19889_v47 = vadd.s32 4294967169, %v972_v61  ;;  %v919_v59 = vmul.u32 %v912_v14, %v903_v7  ;;  %v923_v29 = vsel %vm921_vm4, %v922_v1, %v20914_v39  ;;  %v20963_v13 = vand.u32 4294901760, %v3322_v48  ;;  %6320 = vrot.lane.b32.xlu0 %v20223_v56, %s20265_s23  ;;  %6322 = vrot.lane.b32.xlu1 %v20224_v9, %s20265_s23 }
  0xf3   : > { %2654 = vmatmul.mubr.f32.gmra.mxu0 %v20896_v4  ;;  %2945 = vmatmul.mubr.f32.vlgmr.msra.gmra.mxu1 %v20783_v2  ;;  %v3794_v1 = vcombine.high %v20492_v28, %v20492_v28  ;;  %v26329_v9 = vmov 2102212464  }
  0xf4   : > { %2659 = vmatprep.mubr.f32.mxu0 %v26319_v62  ;;  %2950 = vmatprep.mubr.f32.mxu1 %v26319_v62  ;;  %v978_v44 = vadd.s32 1, %v19889_v47  ;;  %26327 = vst [vmem:[#allocation34_spill] sm:$0xff] %v20963_v13  ;;  %v924_v57 = vadd.s32 %v923_v29, %v919_v59  ;;  %v20225_v47 = vld [vmem:[%s26091_s2 + $0x10] sm:$0xff] }
  0xf5   : > { %3110 = vmatpush1.msra.mxu1 %v20718_v30  ;;  %v3806_v29 = vsel %vm1307_vm9, %v3794_v1, 0  ;;  %v26330_v1 = vmov 920167782  }
  0xf6   : > { %3318 = vmatprep.subr.mxu1 %v20911_v34  ;;  %vm979_vm5 = vcmp.gt.s32.totalorder %v978_v44, 0  ;;  %v925_v39 = vadd.s32 536870912, %v924_v57  ;;  %6324 = vrot.lane.b32.xlu0 %v20225_v47, %s20265_s23 }
  0xf7   : > { %2665 = vmatmul.mubr.f32.gmra.mxu0 %v20909_v8  ;;  %2954 = vmatmul.mubr.f32.gmra.mxu1 %v20822_v54  ;;  %v980_v14 = vsel %vm979_vm5, %v978_v44, 0  ;;  %v20226_v44 = vld [vmem:[%s26091_s2 + $0x18] sm:$0xff] }
  0xf8   : > { %2842 = vmatprep.mubr.f32.mxu0 %v26319_v62  ;;  %2959 = vmatprep.mubr.f32.mxu1 %v26319_v62  ;;  %v20981_v61 = vshrl.u32 %v925_v39, 30  ;;  %v982_v7 = vand.u32 31, %v980_v14  ;;  %v21005_v39 = vand.u32 4294901760, %v3806_v29 }
  0xf9   : > { %6326 = vrot.lane.b32.xlu1 %v20226_v44, %s20265_s23  ;;  %v21013_v44 = vshrl.u32 %v980_v14, 5  ;;  %v26333_v14 = vmov 2131351028  }
  0xfa   : > { %v927_v48 = vshll.u32 %v20981_v61, 30  ;;  %v20994_v59 = vsub.s32 32, %v982_v7  ;;  %26328 = vst [vmem:[#allocation35_spill] sm:$0xff] %v21005_v39  ;;  %v994_v47 = vshll.u32 %v26329_v9, %v982_v7  ;;  %v997_v34 = vshll.u32 %v26330_v1, %v982_v7 }
  0xfb   : > { %2845 = vmatmul.mubr.f32.vlgmr.msra.gmra.mxu0 %v20766_v0  ;;  %2963 = vmatmul.mubr.f32.gmra.mxu1 %v20853_v10  ;;  %vm1003_vm6 = vcmp.lt.s32.totalorder %v21013_v44, 4  ;;  %vm1000_vm7 = vcmp.lt.s32.totalorder %v21013_v44, 1  ;;  %vm1002_vm8 = vcmp.lt.s32.totalorder %v21013_v44, 3  ;;  %vm1001_vm10 = vcmp.lt.s32.totalorder %v21013_v44, 2 }
  0xfc   : > { %2850 = vmatprep.mubr.f32.mxu0 %v26319_v62  ;;  %2968 = vmatprep.mubr.f32.mxu1 %v26319_v62  ;;  %v21007_v56 = vsub.s32 %v924_v57, %v927_v48  ;;  %v985_v57 = vshll.u32 %v26324_v6, %v982_v7  ;;  %v26332_v48 = vmov 2475754826  }
  0xfd   : > { %3015 = vmatpush1.msra.mxu0 %v20737_v15  ;;  %v26331_v15 = vmov 1326507024   ;;  %v986_v55 = vshrl.u32 %v26332_v48, %v20994_v59  ;;  %v988_v58 = vshll.u32 %v26332_v48, %v982_v7  ;;  %v21035_v48 = vsub.f32 %v3806_v29, %v21005_v39 }
  0xfe   : > { %3203 = vmatprep.subr.mxu0 %v20808_v32  ;;  %v998_v30 = vshrl.u32 %v26331_v15, %v20994_v59  ;;  %v991_v15 = vshll.u32 %v26333_v14, %v982_v7  ;;  %v930_v18 = vsub.s32 0, %v21007_v56 }
  0xff   : > { %2853 = vmatmul.mubr.f32.gmra.mxu0 %v20797_v11  ;;  %2972 = vmatmul.mubr.f32.gmra.mxu1 %v20862_v3  ;;  %26334 = vst [vmem:[#allocation36_spill] sm:$0xff] %v21035_v48 }
 0x100   : > { %2858 = vmatprep.mubr.f32.mxu0 %v26319_v62  ;;  %3143 = vmatprep.mubr.f32.mxu1 %v26319_v62  ;;  %v999_v25 = vor.u32 %v998_v30, %v997_v34  ;;  %v19886_v29 = vmin.u32 %v930_v18, %v21007_v56  ;;  %v21050_v30 = vand.u32 4294901760, %v21035_v48  ;;  %v976_v34 = vor.u32 8388608, %v975_v63 }
 0x102   : > { %26336 = vst [vmem:[#allocation37_spill] sm:$0xff] %v21050_v30  ;;  %v932_v63 = vclz %v19886_v29 }
 0x103   : > { %2861 = vmatmul.mubr.f32.gmra.mxu0 %v20806_v41  ;;  %3145 = vmatmul.mubr.f32.vlgmr.msra.gmra.mxu1 %v20757_v50 }
 0x104   : > { %2866 = vmatprep.mubr.f32.mxu0 %v26319_v62  ;;  %3150 = vmatprep.mubr.f32.mxu1 %v26319_v62 }
 0x105   : > { %3324 = vmatpush1.msra.mxu1 %v20963_v13  ;;  %v995_v13 = vshrl.u32 %v26330_v1, %v20994_v59  ;;  %v989_v1 = vshrl.u32 %v26333_v14, %v20994_v59 }
 0x106   : > { %3518 = vmatprep.subr.mxu1 %v20808_v32 }
 0x107   : > { %2869 = vmatmul.mubr.f32.gmra.mxu0 %v20837_v37  ;;  %3152 = vmatmul.mubr.f32.gmra.mxu1 %v20776_v21  ;;  %v996_v51 = vor.u32 %v995_v13, %v994_v47  ;;  %v987_v13 = vor.u32 %v986_v55, %v985_v57  ;;  %v990_v7 = vor.u32 %v989_v1, %v988_v58  ;;  %v1013_v47 = vsel %vm1003_vm6, %v999_v25, 1326507024 }
 0x108   : > { %3048 = vmatprep.mubr.f32.mxu0 %v26319_v62  ;;  %3157 = vmatprep.mubr.f32.mxu1 %v26319_v62  ;;  %v3956_v58 = vsub.f32 %v21035_v48, %v21050_v30  ;;  %v1016_v57 = vshll.u32 %v976_v34, 8 }
 0x109   : > { %v1009_v53 = vsel %vm1003_vm6, %v996_v51, 920167782  ;;  %v1014_v55 = vsel %vm1002_vm8, %v996_v51, %v1013_v47 }
 0x10a   : > { %v21083_v29 = vand.u32 4294901760, %v3956_v58  ;;  %v26342_v58 = vxor.u32 2147483648, %v20501_v26 }
 0x10b   : > { %3050 = vmatmul.mubr.f32.vlgmr.msra.gmra.mxu0 %v20757_v50  ;;  %3159 = vmatmul.mubr.f32.gmra.mxu1 %v20785_v60 }
 0x10c   : > { %3055 = vmatprep.mubr.f32.mxu0 %v26319_v62  ;;  %3164 = vmatprep.mubr.f32.mxu1 %v26319_v62  ;;  %26338 = vst [vmem:[#allocation39_spill] sm:$0xff] %v21083_v29 }
 0x10d   : > { %3205 = vmatpush1.msra.mxu0 %v20907_v33 }
 0x10e   : > { %3418 = vmatprep.subr.mxu0 %v20841_v31  ;;  %v992_v31 = vshrl.u32 %v26329_v9, %v20994_v59 }
 0x10f   : > { %3057 = vmatmul.mubr.f32.gmra.mxu0 %v20776_v21  ;;  %3166 = vmatmul.mubr.f32.gmra.mxu1 %v20799_v27 }
 0x110   : > { %3062 = vmatprep.mubr.f32.mxu0 %v26319_v62  ;;  %3357 = vmatprep.mubr.f32.mxu1 %v26319_v62  ;;  %v993_v9 = vor.u32 %v992_v31, %v991_v15  ;;  %v1008_v31 = vsel %vm1000_vm7, %v987_v13, %v990_v7  ;;  %v19887_v15 = vadd.s32 4294967294, %v932_v63 }
 0x112   : > { %v1010_v18 = vsel %vm1002_vm8, %v993_v9, %v1009_v53  ;;  %v1012_v25 = vsel %vm1000_vm7, %v990_v7, %v993_v9  ;;  %vm19888_vm11 = vcmp.lt.s32.totalorder %v19887_v15, 0 }
 0x113   : > { %3064 = vmatmul.mubr.f32.gmra.mxu0 %v20785_v60  ;;  %3359 = vmatmul.mubr.f32.vlgmr.msra.gmra.mxu1 %v20757_v50  ;;  %v1011_v14 = vsel %vm1001_vm10, %v1008_v31, %v1010_v18  ;;  %v1015_v51 = vsel %vm1001_vm10, %v1012_v25, %v1014_v55  ;;  %v1005_v31 = vsel %vm1003_vm6, %v993_v9, 2102212464  ;;  %v852_v9 = vand.u32 3, %v20490_v20 }
 0x114   : > { %3069 = vmatprep.mubr.f32.mxu0 %v26319_v62  ;;  %3364 = vmatprep.mubr.f32.mxu1 %v26319_v62  ;;  %v21093_v34 = vmul.u32.u64.low %v1016_v57, %v1015_v51  ;;  %v21094_v47 = vmul.u32.u64.high %v1016_v57, %v1015_v51, %v21093_v34 }
 0x115   : > { %3520 = vmatpush1.msra.mxu1 %v20907_v33  ;;  %vm854_vm15 = vcmp.eq.s32.totalorder %v852_v9, 0  ;;  %vm857_vm0 = vcmp.eq.s32.totalorder %v852_v9, 2  ;;  %vm853_vm1 = vcmp.lt.s32.totalorder %v852_v9, 2 }
 0x116   : > { %3720 = vmatprep.subr.mxu1 %v20808_v32 }
 0x117   : > { %3071 = vmatmul.mubr.f32.gmra.mxu0 %v20799_v27  ;;  %3366 = vmatmul.mubr.f32.gmra.mxu1 %v20776_v21 }
 0x118   : > { %3238 = vmatprep.mubr.f32.mxu0 %v26319_v62  ;;  %3371 = vmatprep.mubr.f32.mxu1 %v26319_v62 }
 0x11b   : > { %3244 = vmatmul.mubr.f32.vlgmr.msra.gmra.mxu0 %v20848_v40  ;;  %3373 = vmatmul.mubr.f32.gmra.mxu1 %v20785_v60  ;;  %v3804_v40 = vsel %vm1307_vm9, %v20492_v28, 0  ;;  %v21085_v28 = vmul.u32.u64.low %v1016_v57, %v1011_v14  ;;  %v21086_v53 = vmul.u32.u64.high %v1016_v57, %v1011_v14, %v21085_v28 }
 0x11c   : > { %3249 = vmatprep.mubr.f32.mxu0 %v26319_v62  ;;  %3378 = vmatprep.mubr.f32.mxu1 %v26319_v62  ;;  %v21081_v1 = vand.u32 4294901760, %v3804_v40 }
 0x11d   : > { %3421 = vmatpush1.msra.mxu0 %v20931_v19  ;;  %vm1025_vm12 = vc.u32 %v21094_v47, %v21085_v28 }
 0x11e   : > { %3623 = vmatprep.subr.mxu0 %v20865_v24  ;;  %26337 = vst [vmem:[#allocation38_spill] sm:$0xff] %v21081_v1  ;;  %v21102_v18 = vsub.f32 %v3804_v40, %v21081_v1 }
 0x11f   : > { %3255 = vmatmul.mubr.f32.gmra.mxu0 %v20871_v45  ;;  %3380 = vmatmul.mubr.f32.gmra.mxu1 %v20799_v27  ;;  %v984_v45 = vshrl.u32 %v26324_v6, %v20994_v59  ;;  %v935_v6 = vsel %vm19888_vm11, 0, %v19887_v15 }
 0x120   : > { %3260 = vmatprep.mubr.f32.mxu0 %v26319_v62  ;;  %3553 = vmatprep.mubr.f32.mxu1 %v26319_v62  ;;  %26339 = vst [vmem:[#allocation40_spill] sm:$0xff] %v21102_v18  ;;  %v21114_v59 = vand.u32 4294901760, %v21102_v18 }
 0x122   : > { %26340 = vst [vmem:[#allocation41_spill] sm:$0xff] %v21114_v59  ;;  %v3962_v20 = vsub.f32 %v21102_v18, %v21114_v59 }
 0x123   : > { %3266 = vmatmul.mubr.f32.gmra.mxu0 %v20896_v4  ;;  %3557 = vmatmul.mubr.f32.vlgmr.msra.gmra.mxu1 %v20783_v2  ;;  %v1004_v4 = vsel %vm1000_vm7, %v984_v45, %v987_v13  ;;  %v1006_v2 = vsel %vm1002_vm8, %v990_v7, %v1005_v31  ;;  %v940_v13 = vsub.s32 4294967266, %v935_v6  ;;  %v936_v7 = vsub.s32 32, %v935_v6 }
 0x124   : > { %3271 = vmatprep.mubr.f32.mxu0 %v26319_v62  ;;  %3562 = vmatprep.mubr.f32.mxu1 %v26319_v62  ;;  %v21137_v25 = vand.u32 4294901760, %v3962_v20  ;;  %vm956_vm7 = vweird.f32 %v20714_v23  ;;  %vm970_vm8 = vcmp.lt.s32.totalorder %v20901_v35, 0 }
 0x125   : > { %3722 = vmatpush1.msra.mxu1 %v20907_v33  ;;  %v941_v63 = vadd.s32 127, %v940_v13 }
 0x126   : > { %3958 = vmatprep.subr.mxu1 %v21083_v29  ;;  %26341 = vst [vmem:[#allocation42_spill] sm:$0xff] %v21137_v25 }
 0x127   : > { %3277 = vmatmul.mubr.f32.gmra.mxu0 %v20909_v8  ;;  %3566 = vmatmul.mubr.f32.gmra.mxu1 %v20822_v54  ;;  %v1007_v8 = vsel %vm1001_vm10, %v1004_v4, %v1006_v2  ;;  %v1026_v54 = vadd.s32 1, %v21086_v53  ;;  %v942_v14 = vshll.u32 %v941_v63, 23 }
 0x128   : > { %3454 = vmatprep.mubr.f32.mxu0 %v26319_v62  ;;  %3571 = vmatprep.mubr.f32.mxu1 %v26319_v62  ;;  %v1023_v44 = vmul.u32 %v1016_v57, %v1007_v8 }
 0x12b   : > { %3457 = vmatmul.mubr.f32.vlgmr.msra.gmra.mxu0 %v20766_v0  ;;  %3575 = vmatmul.mubr.f32.gmra.mxu1 %v20853_v10  ;;  %v1027_v0 = vsel %vm1025_vm12, %v1026_v54, %v21086_v53  ;;  %v920_v10 = vadd.s32 %v20913_v43, %v20922_v22  ;;  %v3785_v22 = vpop.permute.xlu0 %3784  ;;  %v937_v43 = vshll.u32 %v21007_v56, %v935_v6  ;;  %v943_v56 = vor.u32 4788187, %v942_v14 }
 0x12c   : > { %3462 = vmatprep.mubr.f32.mxu0 %v26319_v62  ;;  %3580 = vmatprep.mubr.f32.mxu1 %v26319_v62  ;;  %v1028_v55 = vadd.s32 %v1027_v0, %v1023_v44 }
 0x12d   : > { %3627 = vmatpush1.msra.mxu0 %v20943_v12  ;;  %v938_v57 = vshrl.u32 %v920_v10, %v936_v7  ;;  %v944_v2 = vand.u32 2147483647, %v943_v56 }
 0x12e   : > { %3843 = vmatprep.subr.mxu0 %v21005_v39  ;;  %v1029_v15 = vadd.s32 536870912, %v1028_v55 }
 0x12f   : > { %3465 = vmatmul.mubr.f32.gmra.mxu0 %v20797_v11  ;;  %3584 = vmatmul.mubr.f32.gmra.mxu1 %v20862_v3  ;;  %v856_v11 = vsel %vm854_vm15, %v20498_v38, %v26342_v58  ;;  %v26343_v3 = vxor.u32 2147483648, %v20498_v38  ;;  %v3796_v38 = vsel %vm1298_vm14, %v3785_v22, 0 }
 0x130   : > { %3470 = vmatprep.mubr.f32.mxu0 %v26319_v62  ;;  %3755 = vmatprep.mubr.f32.mxu1 %v26319_v62  ;;  %v21161_v45 = vand.u32 4294901760, %v3796_v38  ;;  %v21164_v31 = vshrl.u32 %v1029_v15, 30 }
 0x131   : > { %v859_v40 = vsel %vm857_vm0, %v26343_v3, %v20501_v26  ;;  %v3787_v26 = vpop.permute.xlu1 %3786  ;;  %vm1060_vm0 = vweird.f32 %v20901_v35 }
 0x132   : > { %v860_v51 = vsel %vm853_vm1, %v856_v11, %v859_v40  ;;  %v3798_v34 = vsel %vm1298_vm14, %v3787_v26, 0  ;;  %v21175_v9 = vsub.f32 %v3796_v38, %v21161_v45 }
 0x133   : > { %3473 = vmatmul.mubr.f32.gmra.mxu0 %v20806_v41  ;;  %3757 = vmatmul.mubr.f32.vlgmr.msra.gmra.mxu1 %v20757_v50  ;;  %v939_v41 = vor.u32 %v938_v57, %v937_v43  ;;  %v21159_v53 = vsel %vm644_vm13, nan, %v860_v51  ;;  %v21172_v5 = vand.u32 4294901760, %v3798_v34  ;;  %vm866_vm13 = vcmp.lt.s32.totalorder %v20714_v23, 0 }
 0x134   : > { %3478 = vmatprep.mubr.f32.mxu0 %v26319_v62  ;;  %3762 = vmatprep.mubr.f32.mxu1 %v26319_v62  ;;  %v3795_v4 = vcombine.high %v21159_v53, %v21159_v53  ;;  %v21190_v0 = vand.u32 4294901760, %v21175_v9  ;;  %v26346_v51 = vand.u32 2147483647, %v20714_v23 }
 0x135   : > { %3964 = vmatpush1.msra.mxu1 %v21137_v25  ;;  %v946_v6 = vcvt.s32.f32 %v939_v41  ;;  %v3791_v54 = vpop.permute.xlu1 %3790  ;;  %v21185_v44 = vsub.f32 %v3798_v34, %v21172_v5 }
 0x136   : > { %4158 = vmatprep.subr.mxu1 %v21005_v39  ;;  %v3810_v13 = vsel %vm1307_vm9, %v3795_v4, 0  ;;  %vm21224_vm2 = vcmp.le.f32.partialorder %v26346_v51, 0.7853982 }
 0x137   : > { %3481 = vmatmul.mubr.f32.gmra.mxu0 %v20837_v37  ;;  %3764 = vmatmul.mubr.f32.gmra.mxu1 %v20776_v21  ;;  %v3789_v37 = vpop.permute.xlu0 %3788  ;;  %v947_v20 = vmul.f32 %v946_v6, %v944_v2  ;;  %v21197_v63 = vand.u32 4294901760, %v3810_v13  ;;  %v21204_v3 = vand.u32 4294901760, %v21185_v44 }
 0x138   : > { %3660 = vmatprep.mubr.f32.mxu0 %v26319_v62  ;;  %3769 = vmatprep.mubr.f32.mxu1 %v26319_v62  ;;  %v3800_v8 = vsel %vm1298_vm14, %v3789_v37, 0 }
 0x139   : > { %v21192_v10 = vand.u32 4294901760, %v3800_v8  ;;  %26344 = vst [vmem:[#allocation43_spill] sm:$0xff] %v21197_v63  ;;  %v948_v11 = vxor.u32 2147483648, %v947_v20  ;;  %v21218_v57 = vsub.f32 %v3810_v13, %v21197_v63  ;;  %v3893_v26 = vsub.f32 %v21185_v44, %v21204_v3 }
 0x13b   : > { %3662 = vmatmul.mubr.f32.vlgmr.msra.gmra.mxu0 %v20757_v50  ;;  %3771 = vmatmul.mubr.f32.gmra.mxu1 %v20785_v60  ;;  %v1031_v50 = vshll.u32 %v21164_v31, 30  ;;  %v21210_v40 = vsub.f32 %v3800_v8, %v21192_v10  ;;  %26345 = vst [vmem:[#allocation44_spill] sm:$0xff] %v21218_v57  ;;  %v949_v38 = vsel %vm866_vm13, %v948_v11, %v947_v20  ;;  %v21244_v4 = vand.u32 4294901760, %v21218_v57 }
 0x13c   : > { %3667 = vmatprep.mubr.f32.mxu0 %v26319_v62  ;;  %3776 = vmatprep.mubr.f32.mxu1 %v26319_v62  ;;  %v952_v2 = vsel %vm21224_vm2, %v20714_v23, %v949_v38  ;;  %v950_v8 = vsub.s32 4, %v20981_v61  ;;  %v21256_v13 = vand.u32 4294901760, %v3893_v26  ;;  %v3808_v38 = vsel %vm1307_vm9, %v21159_v53, 0 }
 0x13d   : > { %3845 = vmatpush1.msra.mxu0 %v21081_v1  ;;  %v21194_v7 = vsub.s32 %v1028_v55, %v1031_v50  ;;  %v3882_v55 = vsub.f32 %v21175_v9, %v21190_v0  ;;  %v21240_v34 = vand.u32 4294901760, %v21210_v40  ;;  %26349 = vst [vmem:[#allocation45_spill] sm:$0xff] %v21244_v4  ;;  %19975 = vcosq.f32 %v952_v2 }
 0x13e   : > { %4058 = vmatprep.subr.mxu0 %v21035_v48  ;;  %v4568_v51 = vsub.f32 %v21218_v57, %v21244_v4  ;;  %19977 = vsinq.f32 %v952_v2 }
 0x13f   : > { %3669 = vmatmul.mubr.f32.gmra.mxu0 %v20776_v21  ;;  %3778 = vmatmul.mubr.f32.gmra.mxu1 %v20799_v27  ;;  %v3802_v21 = vsel %vm1298_vm14, %v3791_v54, 0  ;;  %v1034_v43 = vsub.s32 0, %v21194_v7  ;;  %v21234_v41 = vand.u32 4294901760, %v3882_v55  ;;  %v3904_v11 = vsub.f32 %v21210_v40, %v21240_v34 }
 0x140   : > { %3674 = vmatprep.mubr.f32.mxu0 %v26319_v62  ;;  %3997 = vmatprep.mubr.f32.mxu1 %v26319_v62  ;;  %v21288_v29 = vand.u32 4294901760, %v4568_v51 }
 0x141   : > { %v19890_v37 = vmin.u32 %v1034_v43, %v21194_v7  ;;  %v21280_v53 = vand.u32 4294901760, %v3904_v11 }
 0x142   : > { %26351 = vst [vmem:[#allocation47_spill] sm:$0xff] %v21288_v29 }
 0x143   : > { %v1504_v58 = vpop.f32.mrf.mxu1  ;;  %3676 = vmatmul.mubr.f32.gmra.mxu0 %v20785_v60  ;;  %3999 = vmatmul.mubr.f32.vlgmr.msra.gmra.mxu1 %v21161_v45  ;;  %v21212_v60 = vand.u32 4294901760, %v3802_v21  ;;  %v1036_v43 = vclz %v19890_v37 }
 0x144   : > { %3681 = vmatprep.mubr.f32.mxu0 %v26319_v62  ;;  %4004 = vmatprep.mubr.f32.mxu1 %v26319_v62 }
 0x145   : > { %v1506_v22 = vpop.f32.mrf.mxu1  ;;  %4160 = vmatpush1.msra.mxu1 %v21081_v1  ;;  %v19891_v25 = vadd.s32 4294967294, %v1036_v43 }
 0x146   : > { %4360 = vmatprep.subr.mxu1 %v21005_v39 }
 0x147   : > { %v1511_v14 = vpop.f32.mrf.mxu1  ;;  %3683 = vmatmul.mubr.f32.gmra.mxu0 %v20799_v27  ;;  %4006 = vmatmul.mubr.f32.gmra.mxu1 %v21172_v5  ;;  %v21237_v27 = vsub.f32 %v3802_v21, %v21212_v60  ;;  %vm19892_vm3 = vcmp.lt.s32.totalorder %v19891_v25, 0 }
 0x148   : > { %3878 = vmatprep.mubr.f32.mxu0 %v26319_v62  ;;  %4011 = vmatprep.mubr.f32.mxu1 %v26319_v62 }
 0x149   : > { %v1513_v56 = vpop.f32.mrf.mxu1  ;;  %v21262_v55 = vand.u32 4294901760, %v21237_v27 }
 0x14b   : > { %v1389_v6 = vpop.f32.mrf.mxu0  ;;  %v1518_v50 = vpop.f32.mrf.mxu1  ;;  %3884 = vmatmul.mubr.f32.vlgmr.msra.gmra.mxu0 %v21234_v41  ;;  %4013 = vmatmul.mubr.f32.gmra.mxu1 %v21192_v10  ;;  %v3915_v2 = vsub.f32 %v21237_v27, %v21262_v55 }
 0x14c   : > { %v21252_v54 = vadd.f32 %v1504_v58, %v1389_v6  ;;  %3889 = vmatprep.mubr.f32.mxu0 %v26319_v62  ;;  %4018 = vmatprep.mubr.f32.mxu1 %v26319_v62 }
 0x14d   : > { %v1391_v20 = vpop.f32.mrf.mxu0  ;;  %v1520_v21 = vpop.f32.mrf.mxu1  ;;  %4061 = vmatpush1.msra.mxu0 %v21102_v18  ;;  %v21284_v18 = vand.u32 4294901760, %v3808_v38  ;;  %v21300_v51 = vand.u32 4294901760, %v3915_v2 }
 0x14e   : > { %v21264_v58 = vadd.f32 %v1506_v22, %v1391_v20  ;;  %4263 = vmatprep.subr.mxu0 %v21050_v30  ;;  %v951_v22 = vsel %vm866_vm13, %v950_v8, %v20981_v61 }
 0x14f   : > { %v1400_v26 = vpop.f32.mrf.mxu0  ;;  %v1525_v6 = vpop.f32.mrf.mxu1  ;;  %3895 = vmatmul.mubr.f32.gmra.mxu0 %v21256_v13  ;;  %4020 = vmatmul.mubr.f32.gmra.mxu1 %v21212_v60  ;;  %26350 = vst [vmem:[#allocation46_spill] sm:$0xff] %v21284_v18  ;;  %v21292_v61 = vsel %vm21224_vm2, 0, %v951_v22  ;;  %v21304_v15 = vsub.f32 %v3808_v38, %v21284_v18  ;;  %v21316_v38 = vsel %vm19892_vm3, 0, %v19891_v25 }
 0x150   : > { %v21276_v37 = vadd.f32 %v1511_v14, %v1400_v26  ;;  %3900 = vmatprep.mubr.f32.mxu0 %v26319_v62  ;;  %4193 = vmatprep.mubr.f32.mxu1 %v26319_v62  ;;  %v957_v26 = vadd.s32 3, %v21292_v61  ;;  %v1044_v25 = vsub.s32 4294967266, %v21316_v38 }
 0x151   : > { %v1402_v20 = vpop.f32.mrf.mxu0  ;;  %v1527_v30 = vpop.f32.mrf.mxu1  ;;  %26352 = vst [vmem:[#allocation48_spill] sm:$0xff] %v21304_v15 }
 0x152   : > { %v21286_v48 = vadd.f32 %v1513_v56, %v1402_v20 }
 0x153   : > { %v1411_v14 = vpop.f32.mrf.mxu0  ;;  %v1702_v8 = vpop.f32.mrf.mxu1  ;;  %3906 = vmatmul.mubr.f32.gmra.mxu0 %v21280_v53  ;;  %4197 = vmatmul.mubr.f32.vlgmr.msra.gmra.mxu1 %v21190_v0 }
 0x154   : > { %v21296_v11 = vadd.f32 %v1518_v50, %v1411_v14  ;;  %3911 = vmatprep.mubr.f32.mxu0 %v26319_v62  ;;  %4202 = vmatprep.mubr.f32.mxu1 %v26319_v62 }
 0x155   : > { %v1413_v56 = vpop.f32.mrf.mxu0  ;;  %v1704_v43 = vpop.f32.mrf.mxu1  ;;  %4362 = vmatpush1.msra.mxu1 %v21081_v1 }
 0x156   : > { %v21307_v22 = vadd.f32 %v1520_v21, %v1413_v56  ;;  %4570 = vmatprep.subr.mxu1 %v21288_v29  ;;  %v21319_v21 = vand.u32 4294901760, %v21304_v15  ;;  %v958_v56 = vand.u32 3, %v957_v26  ;;  %v21321_v29 = vpop.eup %19975 }
 0x157   : > { %v1422_v50 = vpop.f32.mrf.mxu0  ;;  %v1711_v20 = vpop.f32.mrf.mxu1  ;;  %3917 = vmatmul.mubr.f32.gmra.mxu0 %v21300_v51  ;;  %4206 = vmatmul.mubr.f32.gmra.mxu1 %v21204_v3 }
 0x158   : > { %v21312_v2 = vadd.f32 %v1525_v6, %v1422_v50  ;;  %4094 = vmatprep.mubr.f32.mxu0 %v26319_v62  ;;  %4211 = vmatprep.mubr.f32.mxu1 %v26319_v62  ;;  %26353 = vst [vmem:[#allocation49_spill] sm:$0xff] %v21319_v21  ;;  %v21325_v12 = vpop.eup %19977  ;;  %vm960_vm4 = vcmp.eq.s32.totalorder %v958_v56, 0  ;;  %vm963_vm5 = vcmp.eq.s32.totalorder %v958_v56, 2  ;;  %vm959_vm6 = vcmp.lt.s32.totalorder %v958_v56, 2 }
 0x159   : > { %v1424_v14 = vpop.f32.mrf.mxu0  ;;  %v1713_v1 = vpop.f32.mrf.mxu1 }
 0x15a   : > { %v21323_v39 = vadd.f32 %v1527_v30, %v1424_v14  ;;  %v4574_v30 = vsub.f32 %v21304_v15, %v21319_v21 }
 0x15b   : > { %v1602_v6 = vpop.f32.mrf.mxu0  ;;  %v1720_v50 = vpop.f32.mrf.mxu1  ;;  %4097 = vmatmul.mubr.f32.vlgmr.msra.gmra.mxu0 %v21175_v9  ;;  %4215 = vmatmul.mubr.f32.gmra.mxu1 %v21240_v34 }
 0x15c   : > { %v1603_v24 = vadd.f32 %v1602_v6, %v21252_v54  ;;  %4102 = vmatprep.mubr.f32.mxu0 %v26319_v62  ;;  %4220 = vmatprep.mubr.f32.mxu1 %v26319_v62  ;;  %v21350_v17 = vand.u32 4294901760, %v4574_v30 }
 0x15d   : > { %v1604_v26 = vpop.f32.mrf.mxu0  ;;  %v1722_v19 = vpop.f32.mrf.mxu1  ;;  %4267 = vmatpush1.msra.mxu0 %v21114_v59  ;;  %v1024_v59 = vadd.s32 %v21085_v28, %v21094_v47  ;;  %v26355_v28 = vxor.u32 2147483648, %v21325_v12 }
 0x15e   : > { %v1605_v14 = vadd.f32 %v1604_v26, %v21264_v58  ;;  %v21337_v33 = vadd.f32 %v1702_v8, %v1603_v24  ;;  %4455 = vmatprep.subr.mxu0 %v21197_v63  ;;  %v1040_v58 = vsub.s32 32, %v21316_v38  ;;  %v1045_v24 = vadd.s32 127, %v1044_v25  ;;  %26354 = vst [vmem:[#allocation50_spill] sm:$0xff] %v21350_v17 }
 0x15f   : > { %v1610_v32 = vpop.f32.mrf.mxu0  ;;  %v1729_v46 = vpop.f32.mrf.mxu1  ;;  %4105 = vmatmul.mubr.f32.gmra.mxu0 %v21185_v44  ;;  %4224 = vmatmul.mubr.f32.gmra.mxu1 %v21262_v55  ;;  %v962_v47 = vsel %vm960_vm4, %v21321_v29, %v26355_v28 }
 0x160   : > { %v1611_v8 = vadd.f32 %v1610_v32, %v21276_v37  ;;  %4110 = vmatprep.mubr.f32.mxu0 %v26319_v62  ;;  %4395 = vmatprep.mubr.f32.mxu1 %v26319_v62  ;;  %v1705_v26 = vadd.f32 %v1704_v43, %v1605_v14  ;;  %v26356_v32 = vxor.u32 2147483648, %v21321_v29  ;;  %v1041_v43 = vshll.u32 %v21194_v7, %v21316_v38 }
 0x161   : > { %v1612_v6 = vpop.f32.mrf.mxu0  ;;  %v1731_v54 = vpop.f32.mrf.mxu1 }
 0x162   : > { %v1613_v49 = vadd.f32 %v1612_v6, %v21286_v48  ;;  %v1712_v42 = vadd.f32 %v1711_v20, %v1611_v8  ;;  %v965_v37 = vsel %vm963_vm5, %v26356_v32, %v21325_v12  ;;  %v1042_v48 = vshrl.u32 %v1024_v59, %v1040_v58 }
 0x163   : > { %v1618_v25 = vpop.f32.mrf.mxu0  ;;  %v1902_v52 = vpop.f32.mrf.mxu1  ;;  %4113 = vmatmul.mubr.f32.gmra.mxu0 %v21210_v40  ;;  %4397 = vmatmul.mubr.f32.vlgmr.msra.gmra.mxu1 %v21161_v45  ;;  %v1046_v20 = vshll.u32 %v1045_v24, 23  ;;  %v966_v28 = vsel %vm959_vm6, %v962_v47, %v965_v37 }
 0x164   : > { %v1619_v30 = vadd.f32 %v1618_v25, %v21296_v11  ;;  %4118 = vmatprep.mubr.f32.mxu0 %v26319_v62  ;;  %4402 = vmatprep.mubr.f32.mxu1 %v26319_v62  ;;  %v1714_v14 = vadd.f32 %v1713_v1, %v1613_v49  ;;  %v1043_v49 = vor.u32 %v1042_v48, %v1041_v43 }
 0x165   : > { %v1620_v6 = vpop.f32.mrf.mxu0  ;;  %v1904_v8 = vpop.f32.mrf.mxu1  ;;  %4576 = vmatpush1.msra.mxu1 %v21350_v17  ;;  %v1047_v1 = vor.u32 4788187, %v1046_v20 }
 0x166   : > { %v1621_v32 = vadd.f32 %v1620_v6, %v21307_v22  ;;  %v1721_v7 = vadd.f32 %v1720_v50, %v1619_v30  ;;  %4770 = vmatprep.subr.mxu1 %v21197_v63  ;;  %v21379_v22 = vsel %vm956_vm7, nan, %v966_v28 }
 0x167   : > { %v1626_v59 = vpop.f32.mrf.mxu0  ;;  %v1909_v11 = vpop.f32.mrf.mxu1  ;;  %4121 = vmatmul.mubr.f32.gmra.mxu0 %v21237_v27  ;;  %4404 = vmatmul.mubr.f32.gmra.mxu1 %v21172_v5  ;;  %v1048_v43 = vand.u32 2147483647, %v1047_v1 }
 0x168   : > { %v1627_v38 = vadd.f32 %v1626_v59, %v21312_v2  ;;  %4300 = vmatprep.mubr.f32.mxu0 %v26319_v62  ;;  %4409 = vmatprep.mubr.f32.mxu1 %v26319_v62  ;;  %v1723_v56 = vadd.f32 %v1722_v19, %v1621_v32  ;;  %v5062_v2 = vcombine.high %v21379_v22, %v21379_v22  ;;  %v1050_v19 = vcvt.s32.f32 %v1043_v49 }
 0x169   : > { %v1628_v50 = vpop.f32.mrf.mxu0  ;;  %v1911_v58 = vpop.f32.mrf.mxu1 }
 0x16a   : > { %v1629_v24 = vadd.f32 %v1628_v50, %v21323_v39  ;;  %v1730_v47 = vadd.f32 %v1729_v46, %v1627_v38  ;;  %v1051_v59 = vmul.f32 %v1050_v19, %v1048_v43 }
 0x16b   : > { %v1807_v37 = vpop.f32.mrf.mxu0  ;;  %v1916_v25 = vpop.f32.mrf.mxu1  ;;  %4302 = vmatmul.mubr.f32.vlgmr.msra.gmra.mxu0 %v21161_v45  ;;  %4411 = vmatmul.mubr.f32.gmra.mxu1 %v21192_v10 }
 0x16c   : > { %v1808_v48 = vadd.f32 %v1807_v37, %v21337_v33  ;;  %4307 = vmatprep.mubr.f32.mxu0 %v26319_v62  ;;  %4416 = vmatprep.mubr.f32.mxu1 %v26319_v62  ;;  %v1732_v20 = vadd.f32 %v1731_v54, %v1629_v24  ;;  %v5074_v33 = vsel %vm1307_vm9, %v5062_v2, 0 }
 0x16d   : > { %v1809_v39 = vpop.f32.mrf.mxu0  ;;  %v1918_v46 = vpop.f32.mrf.mxu1  ;;  %4457 = vmatpush1.msra.mxu0 %v21284_v18  ;;  %v21400_v38 = vand.u32 4294901760, %v5074_v33 }
 0x16e   : > { %v1810_v30 = vadd.f32 %v1809_v39, %v1705_v26  ;;  %4670 = vmatprep.subr.mxu0 %v21218_v57  ;;  %v21391_v6 = vadd.f32 %v1902_v52, %v1808_v48 }
 0x16f   : > { %v1814_v28 = vpop.f32.mrf.mxu0  ;;  %v1923_v32 = vpop.f32.mrf.mxu1  ;;  %4309 = vmatmul.mubr.f32.gmra.mxu0 %v21172_v5  ;;  %4418 = vmatmul.mubr.f32.gmra.mxu1 %v21212_v60  ;;  %26357 = vst [vmem:[#allocation51_spill] sm:$0xff] %v21400_v38  ;;  %v21414_v19 = vsub.f32 %v5074_v33, %v21400_v38 }
 0x170   : > { %v1815_v49 = vadd.f32 %v1814_v28, %v1712_v42  ;;  %4314 = vmatprep.mubr.f32.mxu0 %v26319_v62  ;;  %4609 = vmatprep.mubr.f32.mxu1 %v26319_v62  ;;  %v21398_v54 = vadd.f32 %v1904_v8, %v1810_v30  ;;  %v1052_v42 = vxor.u32 2147483648, %v1051_v59 }
 0x171   : > { %v1816_v26 = vpop.f32.mrf.mxu0  ;;  %v1925_v1 = vpop.f32.mrf.mxu1  ;;  %26358 = vst [vmem:[#allocation52_spill] sm:$0xff] %v21414_v19 }
 0x172   : > { %v1817_v52 = vadd.f32 %v1816_v26, %v1714_v14  ;;  %v21402_v50 = vadd.f32 %v1909_v11, %v1815_v49 }
 0x173   : > { %v1821_v24 = vpop.f32.mrf.mxu0  ;;  %v2116_v37 = vpop.f32.mrf.mxu1  ;;  %4316 = vmatmul.mubr.f32.gmra.mxu0 %v21192_v10  ;;  %4611 = vmatmul.mubr.f32.vlgmr.msra.gmra.mxu1 %v21161_v45 }
 0x174   : > { %v1822_v2 = vadd.f32 %v1821_v24, %v1721_v7  ;;  %4321 = vmatprep.mubr.f32.mxu0 %v26319_v62  ;;  %4616 = vmatprep.mubr.f32.mxu1 %v26319_v62  ;;  %v21408_v8 = vadd.f32 %v1911_v58, %v1817_v52  ;;  %v26359_v58 = vand.u32 2147483647, %v20901_v35  ;;  %v21433_v52 = vand.u32 4294901760, %v21414_v19 }
 0x175   : > { %v1823_v14 = vpop.f32.mrf.mxu0  ;;  %v2118_v43 = vpop.f32.mrf.mxu1  ;;  %4772 = vmatpush1.msra.mxu1 %v21284_v18 }
 0x176   : > { %v1824_v11 = vadd.f32 %v1823_v14, %v1723_v56  ;;  %4972 = vmatprep.subr.mxu1 %v21197_v63  ;;  %v21416_v48 = vadd.f32 %v1916_v25, %v1822_v2  ;;  %vm21422_vm10 = vcmp.le.f32.partialorder %v26359_v58, 0.7853982  ;;  %v1053_v56 = vsel %vm970_vm8, %v1052_v42, %v1051_v59  ;;  %26362 = vst [vmem:[#allocation53_spill] sm:$0xff] %v21433_v52 }
 0x177   : > { %v1828_v7 = vpop.f32.mrf.mxu0  ;;  %v2123_v39 = vpop.f32.mrf.mxu1  ;;  %4323 = vmatmul.mubr.f32.gmra.mxu0 %v21212_v60  ;;  %4618 = vmatmul.mubr.f32.gmra.mxu1 %v21172_v5  ;;  %v1056_v2 = vsel %vm21422_vm10, %v20901_v35, %v1053_v56  ;;  %v1054_v14 = vsub.s32 4, %v21164_v31 }
 0x178   : > { %v1829_v28 = vadd.f32 %v1828_v7, %v1730_v47  ;;  %4490 = vmatprep.mubr.f32.mxu0 %v26319_v62  ;;  %4623 = vmatprep.mubr.f32.mxu1 %v26319_v62  ;;  %v21430_v25 = vadd.f32 %v1918_v46, %v1824_v11  ;;  %19979 = vcosq.f32 %v1056_v2 }
 0x179   : > { %v1830_v33 = vpop.f32.mrf.mxu0  ;;  %v2125_v49 = vpop.f32.mrf.mxu1  ;;  %19981 = vsinq.f32 %v1056_v2 }
 0x17a   : > { %v1831_v26 = vadd.f32 %v1830_v33, %v1732_v20  ;;  %v21435_v24 = vadd.f32 %v1923_v32, %v1829_v28 }
 0x17b   : > { %v2001_v59 = vpop.f32.mrf.mxu0  ;;  %v2130_v47 = vpop.f32.mrf.mxu1  ;;  %4496 = vmatmul.mubr.f32.vlgmr.msra.gmra.mxu0 %v21234_v41  ;;  %4625 = vmatmul.mubr.f32.gmra.mxu1 %v21192_v10  ;;  %v5224_v41 = vsub.f32 %v21414_v19, %v21433_v52 }
 0x17c   : > { %v2117_v46 = vadd.f32 %v2116_v37, %v2001_v59  ;;  %4501 = vmatprep.mubr.f32.mxu0 %v26319_v62  ;;  %4630 = vmatprep.mubr.f32.mxu1 %v26319_v62  ;;  %v21444_v20 = vadd.f32 %v1925_v1, %v1831_v26  ;;  %v5072_v37 = vsel %vm1307_vm9, %v21379_v22, 0  ;;  %v1055_v22 = vsel %vm970_vm8, %v1054_v14, %v21164_v31 }
 0x17d   : > { %v2003_v42 = vpop.f32.mrf.mxu0  ;;  %v2132_v32 = vpop.f32.mrf.mxu1  ;;  %4673 = vmatpush1.msra.mxu0 %v21304_v15  ;;  %v21457_v28 = vand.u32 4294901760, %v5072_v37  ;;  %v21462_v26 = vand.u32 4294901760, %v5224_v41  ;;  %v21472_v59 = vsel %vm21422_vm10, 0, %v1055_v22 }
 0x17e   : > { %v2119_v11 = vadd.f32 %v2118_v43, %v2003_v42  ;;  %4875 = vmatprep.subr.mxu0 %v21244_v4  ;;  %v1061_v30 = vadd.s32 3, %v21472_v59 }
 0x17f   : > { %v2012_v7 = vpop.f32.mrf.mxu0  ;;  %v2137_v1 = vpop.f32.mrf.mxu1  ;;  %4507 = vmatmul.mubr.f32.gmra.mxu0 %v21256_v13  ;;  %4632 = vmatmul.mubr.f32.gmra.mxu1 %v21212_v60  ;;  %26363 = vst [vmem:[#allocation54_spill] sm:$0xff] %v21457_v28  ;;  %26364 = vst [vmem:[#allocation55_spill] sm:$0xff] %v21462_v26  ;;  %v21476_v42 = vsub.f32 %v5072_v37, %v21457_v28 }
 0x180   : > { %v2124_v58 = vadd.f32 %v2123_v39, %v2012_v7  ;;  %4512 = vmatprep.mubr.f32.mxu0 %v26319_v62  ;;  %4805 = vmatprep.mubr.f32.mxu1 %v26319_v62 }
 0x181   : > { %v2014_v43 = vpop.f32.mrf.mxu0  ;;  %v2139_v56 = vpop.f32.mrf.mxu1  ;;  %26365 = vst [vmem:[#allocation56_spill] sm:$0xff] %v21476_v42 }
 0x182   : > { %v2126_v33 = vadd.f32 %v2125_v49, %v2014_v43 }
 0x183   : > { %v2023_v2 = vpop.f32.mrf.mxu0  ;;  %v2314_v13 = vpop.f32.mrf.mxu1  ;;  %4518 = vmatmul.mubr.f32.gmra.mxu0 %v21280_v53  ;;  %4809 = vmatmul.mubr.f32.vlgmr.msra.gmra.mxu1 %v21190_v0 }
 0x184   : > { %v21466_v39 = vadd.f32 %v2130_v47, %v2023_v2  ;;  %4523 = vmatprep.mubr.f32.mxu0 %v26319_v62  ;;  %4814 = vmatprep.mubr.f32.mxu1 %v26319_v62 }
 0x185   : > { %v2025_v31 = vpop.f32.mrf.mxu0  ;;  %v2316_v49 = vpop.f32.mrf.mxu1  ;;  %4974 = vmatpush1.msra.mxu1 %v21284_v18 }
 0x186   : > { %v21478_v53 = vadd.f32 %v2132_v32, %v2025_v31  ;;  %5226 = vmatprep.subr.mxu1 %v21462_v26  ;;  %v21489_v32 = vand.u32 4294901760, %v21476_v42  ;;  %v21491_v7 = vpop.eup %19979 }
 0x187   : > { %v2034_v0 = vpop.f32.mrf.mxu0  ;;  %v2323_v47 = vpop.f32.mrf.mxu1  ;;  %4529 = vmatmul.mubr.f32.gmra.mxu0 %v21300_v51  ;;  %4818 = vmatmul.mubr.f32.gmra.mxu1 %v21204_v3  ;;  %26367 = vst [vmem:[#allocation58_spill] sm:$0xff] %v21491_v7 }
 0x188   : > { %v21484_v14 = vadd.f32 %v2137_v1, %v2034_v0  ;;  %4706 = vmatprep.mubr.f32.mxu0 %v26319_v62  ;;  %4823 = vmatprep.mubr.f32.mxu1 %v26319_v62  ;;  %26366 = vst [vmem:[#allocation57_spill] sm:$0xff] %v21489_v32  ;;  %v21495_v51 = vpop.eup %19981  ;;  %v1062_v1 = vand.u32 3, %v1061_v30 }
 0x189   : > { %v2036_v41 = vpop.f32.mrf.mxu0  ;;  %v2325_v37 = vpop.f32.mrf.mxu1 }
 0x18a   : > { %v21493_v43 = vadd.f32 %v2139_v56, %v2036_v41  ;;  %v5230_v56 = vsub.f32 %v21476_v42, %v21489_v32  ;;  %vm1064_vm11 = vcmp.eq.s32.totalorder %v1062_v1, 0  ;;  %vm1067_vm12 = vcmp.eq.s32.totalorder %v1062_v1, 2 }
 0x18b   : > { %v2214_v3 = vpop.f32.mrf.mxu0  ;;  %v2332_v22 = vpop.f32.mrf.mxu1  ;;  %4709 = vmatmul.mubr.f32.vlgmr.msra.gmra.mxu0 %v21175_v9  ;;  %4827 = vmatmul.mubr.f32.gmra.mxu1 %v21240_v34  ;;  %vm1063_vm15 = vcmp.lt.s32.totalorder %v1062_v1, 2 }
 0x18c   : > { %v2215_v2 = vadd.f32 %v2214_v3, %v2117_v46  ;;  %4714 = vmatprep.mubr.f32.mxu0 %v26319_v62  ;;  %4832 = vmatprep.mubr.f32.mxu1 %v26319_v62  ;;  %v5053_v9 = vpop.permute.xlu0 %5052 }
 0x18d   : > { %v2216_v31 = vpop.f32.mrf.mxu0  ;;  %v2334_v0 = vpop.f32.mrf.mxu1  ;;  %4879 = vmatpush1.msra.mxu0 %v21319_v21 }
 0x18e   : > { %v2217_v41 = vadd.f32 %v2216_v31, %v2119_v11  ;;  %v2315_v26 = vadd.f32 %v2314_v13, %v2215_v2  ;;  %5111 = vmatprep.subr.mxu0 %v21400_v38  ;;  %v21511_v31 = vand.u32 4294901760, %v5230_v56 }
 0x18f   : > { %v2222_v46 = vpop.f32.mrf.mxu0  ;;  %v2341_v30 = vpop.f32.mrf.mxu1  ;;  %4717 = vmatmul.mubr.f32.gmra.mxu0 %v21185_v44  ;;  %4836 = vmatmul.mubr.f32.gmra.mxu1 %v21262_v55  ;;  %v26369_v44 = vxor.u32 2147483648, %v21495_v51 }
 0x190   : > { %v2223_v3 = vadd.f32 %v2222_v46, %v2124_v58  ;;  %4722 = vmatprep.mubr.f32.mxu0 %v26319_v62  ;;  %5007 = vmatprep.mubr.f32.mxu1 %v26319_v62  ;;  %v2317_v11 = vadd.f32 %v2316_v49, %v2217_v41  ;;  %26368 = vst [vmem:[#allocation59_spill] sm:$0xff] %v21511_v31  ;;  %v26370_v58 = vxor.u32 2147483648, %v21491_v7 }
 0x191   : > { %v2224_v13 = vpop.f32.mrf.mxu0  ;;  %v2343_v2 = vpop.f32.mrf.mxu1  ;;  %v1066_v55 = vsel %vm1064_vm11, %v21491_v7, %v26369_v44 }
 0x192   : > { %v2225_v34 = vadd.f32 %v2224_v13, %v2126_v33  ;;  %v2324_v21 = vadd.f32 %v2323_v47, %v2223_v3  ;;  %v1069_v46 = vsel %vm1067_vm12, %v26370_v58, %v21495_v51  ;;  %v5055_v13 = vpop.permute.xlu1 %5054  ;;  %v5057_v58 = vpop.permute.xlu0 %5056 }
 0x193   : > { %v2230_v4 = vpop.f32.mrf.mxu0  ;;  %v2514_v15 = vpop.f32.mrf.mxu1  ;;  %4725 = vmatmul.mubr.f32.gmra.mxu0 %v21210_v40  ;;  %5009 = vmatmul.mubr.f32.vlgmr.msra.gmra.mxu1 %v21161_v45  ;;  %v1070_v41 = vsel %vm1063_vm15, %v1066_v55, %v1069_v46  ;;  %v5064_v40 = vsel %vm1298_vm14, %v5053_v9, 0 }
 0x194   : > { %v2231_v49 = vadd.f32 %v2230_v4, %v21466_v39  ;;  %4730 = vmatprep.mubr.f32.mxu0 %v26319_v62  ;;  %5014 = vmatprep.mubr.f32.mxu1 %v26319_v62  ;;  %v2326_v33 = vadd.f32 %v2325_v37, %v2225_v34  ;;  %v21539_v34 = vand.u32 4294901760, %v5064_v40 }
 0x195   : > { %v2232_v47 = vpop.f32.mrf.mxu0  ;;  %v2516_v56 = vpop.f32.mrf.mxu1  ;;  %5232 = vmatpush1.msra.mxu1 %v21511_v31 }
 0x196   : > { %v2233_v3 = vadd.f32 %v2232_v47, %v21478_v53  ;;  %v2333_v44 = vadd.f32 %v2332_v22, %v2231_v49  ;;  %5426 = vmatprep.subr.mxu1 %v21400_v38  ;;  %v21537_v53 = vsel %vm1060_vm0, nan, %v1070_v41 }
 0x197   : > { %v2238_v4 = vpop.f32.mrf.mxu0  ;;  %v2521_v39 = vpop.f32.mrf.mxu1  ;;  %4733 = vmatmul.mubr.f32.gmra.mxu0 %v21237_v27  ;;  %5016 = vmatmul.mubr.f32.gmra.mxu1 %v21172_v5  ;;  %v5066_v27 = vsel %vm1298_vm14, %v5055_v13, 0 }
 0x198   : > { %v2239_v37 = vadd.f32 %v2238_v4, %v21484_v14  ;;  %4912 = vmatprep.mubr.f32.mxu0 %v26319_v62  ;;  %5021 = vmatprep.mubr.f32.mxu1 %v26319_v62  ;;  %v2335_v1 = vadd.f32 %v2334_v0, %v2233_v3  ;;  %v5063_v0 = vcombine.high %v21537_v53, %v21537_v53  ;;  %v21552_v13 = vand.u32 4294901760, %v5066_v27 }
 0x199   : > { %v2240_v22 = vpop.f32.mrf.mxu0  ;;  %v2523_v9 = vpop.f32.mrf.mxu1  ;;  %v5068_v4 = vsel %vm1298_vm14, %v5057_v58, 0 }
 0x19a   : > { %v2241_v55 = vadd.f32 %v2240_v22, %v21493_v43  ;;  %v2342_v46 = vadd.f32 %v2341_v30, %v2239_v37  ;;  %v21550_v43 = vsub.f32 %v5064_v40, %v21539_v34  ;;  %v5059_v37 = vpop.permute.xlu1 %5058 }
 0x19b   : > { %v2419_v14 = vpop.f32.mrf.mxu0  ;;  %v2528_v49 = vpop.f32.mrf.mxu1  ;;  %4914 = vmatmul.mubr.f32.vlgmr.msra.gmra.mxu0 %v21161_v45  ;;  %5023 = vmatmul.mubr.f32.gmra.mxu1 %v21192_v10 }
 0x19c   : > { %v2420_v47 = vadd.f32 %v2419_v14, %v2315_v26  ;;  %4919 = vmatprep.mubr.f32.mxu0 %v26319_v62  ;;  %5028 = vmatprep.mubr.f32.mxu1 %v26319_v62  ;;  %v2344_v41 = vadd.f32 %v2343_v2, %v2241_v55  ;;  %v5078_v2 = vsel %vm1307_vm9, %v5063_v0, 0  ;;  %v21567_v55 = vand.u32 4294901760, %v21550_v43 }
 0x19d   : > { %v2421_v3 = vpop.f32.mrf.mxu0  ;;  %v2530_v30 = vpop.f32.mrf.mxu1  ;;  %5113 = vmatpush1.msra.mxu0 %v21457_v28  ;;  %v5070_v0 = vsel %vm1298_vm14, %v5059_v37, 0 }
 0x19e   : > { %v2422_v45 = vadd.f32 %v2421_v3, %v2317_v11  ;;  %5326 = vmatprep.subr.mxu0 %v21414_v19  ;;  %v21557_v26 = vadd.f32 %v2514_v15, %v2420_v47  ;;  %v21570_v15 = vsub.f32 %v5066_v27, %v21552_v13 }
 0x19f   : > { %v2426_v22 = vpop.f32.mrf.mxu0  ;;  %v2535_v14 = vpop.f32.mrf.mxu1  ;;  %4921 = vmatmul.mubr.f32.gmra.mxu0 %v21172_v5  ;;  %5030 = vmatmul.mubr.f32.gmra.mxu1 %v21212_v60  ;;  %v21572_v5 = vand.u32 4294901760, %v5068_v4 }
 0x1a0   : > { %v2427_v40 = vadd.f32 %v2426_v22, %v2324_v21  ;;  %4926 = vmatprep.mubr.f32.mxu0 %v26319_v62  ;;  %5265 = vmatprep.mubr.f32.mxu1 %v26319_v62  ;;  %v21564_v11 = vadd.f32 %v2516_v56, %v2422_v45  ;;  %v21575_v21 = vand.u32 4294901760, %v5078_v2  ;;  %v21588_v37 = vand.u32 4294901760, %v21570_v15 }
 0x1a1   : > { %v2428_v58 = vpop.f32.mrf.mxu0  ;;  %v2537_v47 = vpop.f32.mrf.mxu1 }
 0x1a2   : > { %v2429_v3 = vadd.f32 %v2428_v58, %v2326_v33  ;;  %26371 = vst [vmem:[#allocation60_spill] sm:$0xff] %v21575_v21  ;;  %v21577_v22 = vadd.f32 %v2521_v39, %v2427_v40  ;;  %v5150_v33 = vsub.f32 %v21550_v43, %v21567_v55  ;;  %v21591_v39 = vsub.f32 %v5068_v4, %v21572_v5 }
 0x1a3   : > { %v2433_v31 = vpop.f32.mrf.mxu0  ;;  %v2748_v56 = vpop.f32.mrf.mxu1  ;;  %4928 = vmatmul.mubr.f32.gmra.mxu0 %v21192_v10  ;;  %5267 = vmatmul.mubr.f32.vlgmr.msra.gmra.mxu1 %v21539_v34  ;;  %v21593_v58 = vand.u32 4294901760, %v5070_v0 }
 0x1a4   : > { %v2434_v45 = vadd.f32 %v2433_v31, %v2333_v44  ;;  %4933 = vmatprep.mubr.f32.mxu0 %v26319_v62  ;;  %5272 = vmatprep.mubr.f32.mxu1 %v26319_v62  ;;  %v21583_v27 = vadd.f32 %v2523_v9, %v2429_v3  ;;  %v21598_v44 = vsub.f32 %v5078_v2, %v21575_v21  ;;  %v21611_v2 = vand.u32 4294901760, %v21591_v39 }
 0x1a5   : > { %v2435_v40 = vpop.f32.mrf.mxu0  ;;  %v2750_v10 = vpop.f32.mrf.mxu1  ;;  %5428 = vmatpush1.msra.mxu1 %v21457_v28 }
 0x1a6   : > { %v2436_v31 = vadd.f32 %v2435_v40, %v2335_v1  ;;  %5628 = vmatprep.subr.mxu1 %v21400_v38  ;;  %26372 = vst [vmem:[#allocation61_spill] sm:$0xff] %v21598_v44  ;;  %v21600_v9 = vadd.f32 %v2528_v49, %v2434_v45  ;;  %v21608_v1 = vand.u32 4294901760, %v5150_v33  ;;  %v21614_v49 = vsub.f32 %v5070_v0, %v21593_v58 }
 0x1a7   : > { %v2440_v3 = vpop.f32.mrf.mxu0  ;;  %v2755_v19 = vpop.f32.mrf.mxu1  ;;  %4935 = vmatmul.mubr.f32.gmra.mxu0 %v21212_v60  ;;  %5274 = vmatmul.mubr.f32.gmra.mxu1 %v21552_v13  ;;  %v5161_v60 = vsub.f32 %v21570_v15, %v21588_v37  ;;  %v5172_v57 = vsub.f32 %v21591_v39, %v21611_v2 }
 0x1a8   : > { %v2441_v4 = vadd.f32 %v2440_v3, %v2342_v46  ;;  %5146 = vmatprep.mubr.f32.mxu0 %v26319_v62  ;;  %5279 = vmatprep.mubr.f32.mxu1 %v26319_v62  ;;  %v21606_v17 = vadd.f32 %v2530_v30, %v2436_v31  ;;  %v21619_v3 = vand.u32 4294901760, %v21598_v44 }
 0x1a9   : > { %v2442_v45 = vpop.f32.mrf.mxu0  ;;  %v2757_v40 = vpop.f32.mrf.mxu1 }
 0x1aa   : > { %v2443_v46 = vadd.f32 %v2442_v45, %v2344_v41  ;;  %26373 = vst [vmem:[#allocation62_spill] sm:$0xff] %v21619_v3  ;;  %v21621_v38 = vadd.f32 %v2535_v14, %v2441_v4  ;;  %v21631_v41 = vand.u32 4294901760, %v21614_v49  ;;  %v21633_v4 = vand.u32 4294901760, %v5161_v60 }
 0x1ab   : > { %v2633_v30 = vpop.f32.mrf.mxu0  ;;  %v2762_v33 = vpop.f32.mrf.mxu1  ;;  %5152 = vmatmul.mubr.f32.vlgmr.msra.gmra.mxu0 %v21608_v1  ;;  %5281 = vmatmul.mubr.f32.gmra.mxu1 %v21572_v5 }
 0x1ac   : > { %v2634_v0 = vadd.f32 %v2633_v30, %v21391_v6  ;;  %5157 = vmatprep.mubr.f32.mxu0 %v26319_v62  ;;  %5286 = vmatprep.mubr.f32.mxu1 %v26319_v62  ;;  %v21628_v31 = vadd.f32 %v2537_v47, %v2443_v46  ;;  %v5836_v47 = vsub.f32 %v21598_v44, %v21619_v3  ;;  %v5076_v46 = vsel %vm1307_vm9, %v21537_v53, 0 }
 0x1ad   : > { %v2635_v45 = vpop.f32.mrf.mxu0  ;;  %v2764_v14 = vpop.f32.mrf.mxu1  ;;  %5329 = vmatpush1.msra.mxu0 %v21476_v42  ;;  %v5183_v53 = vsub.f32 %v21614_v49, %v21631_v41 }
 0x1ae   : > { %v2636_v6 = vadd.f32 %v2635_v45, %v21398_v54  ;;  %v2749_v30 = vadd.f32 %v2748_v56, %v2634_v0  ;;  %5531 = vmatprep.subr.mxu0 %v21433_v52  ;;  %v21649_v45 = vand.u32 4294901760, %v5172_v57  ;;  %v21653_v52 = vand.u32 4294901760, %v5076_v46 }
 0x1af   : > { %v2644_v18 = vpop.f32.mrf.mxu0  ;;  %v2769_v63 = vpop.f32.mrf.mxu1  ;;  %5163 = vmatmul.mubr.f32.gmra.mxu0 %v21633_v4  ;;  %5288 = vmatmul.mubr.f32.gmra.mxu1 %v21593_v58  ;;  %v21656_v16 = vand.u32 4294901760, %v5836_v47  ;;  %v21663_v7 = vand.u32 4294901760, %v5183_v53 }
 0x1b0   : > { %v2645_v60 = vadd.f32 %v2644_v18, %v21402_v50  ;;  %5168 = vmatprep.mubr.f32.mxu0 %v26319_v62  ;;  %5461 = vmatprep.mubr.f32.mxu1 %v26319_v62  ;;  %v2751_v54 = vadd.f32 %v2750_v10, %v2636_v6  ;;  %26374 = vst [vmem:[#allocation63_spill] sm:$0xff] %v21653_v52 }
 0x1b1   : > { %v2646_v56 = vpop.f32.mrf.mxu0  ;;  %v2771_v0 = vpop.f32.mrf.mxu1  ;;  %26375 = vst [vmem:[#allocation64_spill] sm:$0xff] %v21656_v16 }
 0x1b2   : > { %v2647_v42 = vadd.f32 %v2646_v56, %v21408_v8  ;;  %v2756_v36 = vadd.f32 %v2755_v19, %v2645_v60  ;;  %v21667_v8 = vsub.f32 %v5076_v46, %v21653_v52 }
 0x1b3   : > { %v2655_v18 = vpop.f32.mrf.mxu0  ;;  %v2946_v50 = vpop.f32.mrf.mxu1  ;;  %5174 = vmatmul.mubr.f32.gmra.mxu0 %v21649_v45  ;;  %5465 = vmatmul.mubr.f32.vlgmr.msra.gmra.mxu1 %v21567_v55 }
 0x1b4   : > { %v2656_v10 = vadd.f32 %v2655_v18, %v21416_v48  ;;  %5179 = vmatprep.mubr.f32.mxu0 %v26319_v62  ;;  %5470 = vmatprep.mubr.f32.mxu1 %v26319_v62  ;;  %v2758_v57 = vadd.f32 %v2757_v40, %v2647_v42  ;;  %26376 = vst [vmem:[#allocation65_spill] sm:$0xff] %v21667_v8 }
 0x1b5   : > { %v2657_v6 = vpop.f32.mrf.mxu0  ;;  %v2948_v35 = vpop.f32.mrf.mxu1  ;;  %5630 = vmatpush1.msra.mxu1 %v21457_v28 }
 0x1b6   : > { %v2658_v19 = vadd.f32 %v2657_v6, %v21430_v25  ;;  %v2763_v47 = vadd.f32 %v2762_v33, %v2656_v10  ;;  %5838 = vmatprep.subr.mxu1 %v21656_v16  ;;  %v21677_v25 = vand.u32 4294901760, %v21667_v8 }
 0x1b7   : > { %v2666_v48 = vpop.f32.mrf.mxu0  ;;  %v2955_v60 = vpop.f32.mrf.mxu1  ;;  %5185 = vmatmul.mubr.f32.gmra.mxu0 %v21663_v7  ;;  %5474 = vmatmul.mubr.f32.gmra.mxu1 %v21588_v37 }
 0x1b8   : > { %v2667_v42 = vadd.f32 %v2666_v48, %v21435_v24  ;;  %5362 = vmatprep.mubr.f32.mxu0 %v26319_v62  ;;  %5479 = vmatprep.mubr.f32.mxu1 %v26319_v62  ;;  %v2765_v40 = vadd.f32 %v2764_v14, %v2658_v19  ;;  %26377 = vst [vmem:[#allocation66_spill] sm:$0xff] %v21677_v25  ;;  %v1165_v24 = vand.u32 3, %v21292_v61 }
 0x1b9   : > { %v2668_v46 = vpop.f32.mrf.mxu0  ;;  %v2957_v56 = vpop.f32.mrf.mxu1 }
 0x1ba   : > { %v2669_v33 = vadd.f32 %v2668_v46, %v21444_v20  ;;  %v2770_v53 = vadd.f32 %v2769_v63, %v2667_v42  ;;  %v5842_v63 = vsub.f32 %v21667_v8, %v21677_v25  ;;  %vm1167_vm1 = vcmp.eq.s32.totalorder %v1165_v24, 0 }
 0x1bb   : > { %v2846_v18 = vpop.f32.mrf.mxu0  ;;  %v2964_v10 = vpop.f32.mrf.mxu1  ;;  %5365 = vmatmul.mubr.f32.vlgmr.msra.gmra.mxu0 %v21550_v43  ;;  %5483 = vmatmul.mubr.f32.gmra.mxu1 %v21611_v2  ;;  %vm1170_vm13 = vcmp.eq.s32.totalorder %v1165_v24, 2  ;;  %vm1166_vm2 = vcmp.lt.s32.totalorder %v1165_v24, 2 }
 0x1bc   : > { %v2847_v6 = vadd.f32 %v2846_v18, %v2749_v30  ;;  %5370 = vmatprep.mubr.f32.mxu0 %v26319_v62  ;;  %5488 = vmatprep.mubr.f32.mxu1 %v26319_v62  ;;  %v2772_v14 = vadd.f32 %v2771_v0, %v2669_v33 }
 0x1bd   : > { %v2848_v19 = vpop.f32.mrf.mxu0  ;;  %v2966_v48 = vpop.f32.mrf.mxu1  ;;  %5535 = vmatpush1.msra.mxu0 %v21489_v32 }
 0x1be   : > { %v2849_v20 = vadd.f32 %v2848_v19, %v2751_v54  ;;  %v2947_v42 = vadd.f32 %v2946_v50, %v2847_v6  ;;  %5723 = vmatprep.subr.mxu0 %v21575_v21  ;;  %v21693_v54 = vand.u32 4294901760, %v5842_v63  ;;  %v26379_v6 = vxor.u32 2147483648, %v21325_v12 }
 0x1bf   : > { %v2854_v46 = vpop.f32.mrf.mxu0  ;;  %v2973_v16 = vpop.f32.mrf.mxu1  ;;  %5373 = vmatmul.mubr.f32.gmra.mxu0 %v21570_v15  ;;  %5492 = vmatmul.mubr.f32.gmra.mxu1 %v21631_v41 }
 0x1c0   : > { %v2855_v61 = vadd.f32 %v2854_v46, %v2756_v36  ;;  %5378 = vmatprep.mubr.f32.mxu0 %v26319_v62  ;;  %5663 = vmatprep.mubr.f32.mxu1 %v26319_v62  ;;  %v2949_v30 = vadd.f32 %v2948_v35, %v2849_v20  ;;  %26378 = vst [vmem:[#allocation67_spill] sm:$0xff] %v21693_v54  ;;  %v26380_v36 = vxor.u32 2147483648, %v21321_v29 }
 0x1c1   : > { %v2856_v0 = vpop.f32.mrf.mxu0  ;;  %v2975_v33 = vpop.f32.mrf.mxu1  ;;  %v1169_v19 = vsel %vm1167_vm1, %v21321_v29, %v26379_v6 }
 0x1c2   : > { %v2857_v50 = vadd.f32 %v2856_v0, %v2758_v57  ;;  %v21695_v18 = vadd.f32 %v2955_v60, %v2855_v61  ;;  %v1172_v46 = vsel %vm1170_vm13, %v26380_v36, %v21325_v12 }
 0x1c3   : > { %v2862_v32 = vpop.f32.mrf.mxu0  ;;  %v3146_v28 = vpop.f32.mrf.mxu1  ;;  %5381 = vmatmul.mubr.f32.gmra.mxu0 %v21591_v39  ;;  %5665 = vmatmul.mubr.f32.vlgmr.msra.gmra.mxu1 %v21539_v34  ;;  %v1173_v20 = vsel %vm1166_vm2, %v1169_v19, %v1172_v46  ;;  %v7589_v46 = vld [vmem:[%s21716_s14 + $0x8] sm:$0xff] }
 0x1c4   : > { %v2863_v35 = vadd.f32 %v2862_v32, %v2763_v47  ;;  %5386 = vmatprep.mubr.f32.mxu0 %v26319_v62  ;;  %5670 = vmatprep.mubr.f32.mxu1 %v26319_v62  ;;  %v2958_v57 = vadd.f32 %v2957_v56, %v2857_v50  ;;  %v7590_v56 = vld [vmem:[%s21716_s14 + $0x10] sm:$0xff]  ;;  %v20266_v50 = vmov 0  }
 0x1c5   : > { %v2864_v60 = vpop.f32.mrf.mxu0  ;;  %v3148_v63 = vpop.f32.mrf.mxu1  ;;  %5844 = vmatpush1.msra.mxu1 %v21693_v54  ;;  %19964 = vset.pattern.permute.xlu1 %v20266_v50 }
 0x1c6   : > { %v2865_v12 = vadd.f32 %v2864_v60, %v2765_v40  ;;  %v21710_v29 = vadd.f32 %v2964_v10, %v2863_v35  ;;  %6038 = vmatprep.subr.mxu1 %v21575_v21  ;;  %v21727_v10 = vsel %vm956_vm7, nan, %v1173_v20  ;;  %19963 = vset.pattern.permute.xlu0 %v20266_v50 }
 0x1c7   : > { %v2870_v32 = vpop.f32.mrf.mxu0  ;;  %v3153_v47 = vpop.f32.mrf.mxu1  ;;  %5389 = vmatmul.mubr.f32.gmra.mxu0 %v21614_v49  ;;  %5672 = vmatmul.mubr.f32.gmra.mxu1 %v21552_v13  ;;  %v6330_v23 = vcombine.high %v21727_v10, %v21727_v10 }
 0x1c8   : > { %v2871_v24 = vadd.f32 %v2870_v32, %v2770_v53  ;;  %5568 = vmatprep.mubr.f32.mxu0 %v26319_v62  ;;  %5677 = vmatprep.mubr.f32.mxu1 %v26319_v62  ;;  %v21723_v40 = vadd.f32 %v2966_v48, %v2865_v12  ;;  %v7591_v48 = vld [vmem:[%s21716_s14 + $0x18] sm:$0xff] }
 0x1c9   : > { %v2872_v61 = vpop.f32.mrf.mxu0  ;;  %v3155_v0 = vpop.f32.mrf.mxu1  ;;  %7604 = vperm.xlu1 %19964, %v7590_v56   ;;  %7609 = vperm.xlu0 %19963, %v7591_v48  }
 0x1ca   : > { %v2873_v6 = vadd.f32 %v2872_v61, %v2772_v14  ;;  %v21729_v19 = vadd.f32 %v2973_v16, %v2871_v24  ;;  %v7588_v24 = vld [vmem:[%s21716_s14] sm:$0xff] }
 0x1cb   : > { %v3051_v53 = vpop.f32.mrf.mxu0  ;;  %v3160_v36 = vpop.f32.mrf.mxu1  ;;  %5570 = vmatmul.mubr.f32.vlgmr.msra.gmra.mxu0 %v21539_v34  ;;  %5679 = vmatmul.mubr.f32.gmra.mxu1 %v21572_v5 }
 0x1cc   : > { %v3052_v35 = vadd.f32 %v3051_v53, %v2947_v42  ;;  %5575 = vmatprep.mubr.f32.mxu0 %v26319_v62  ;;  %5684 = vmatprep.mubr.f32.mxu1 %v26319_v62  ;;  %v2976_v16 = vadd.f32 %v2975_v33, %v2873_v6  ;;  %v6342_v42 = vsel %vm1307_vm9, %v6330_v23, 0  ;;  %v21749_v33 = vld [vmem:[%s26094_s5] sm:$0xff] }
 0x1cd   : > { %v3053_v14 = vpop.f32.mrf.mxu0  ;;  %v3162_v60 = vpop.f32.mrf.mxu1  ;;  %5725 = vmatpush1.msra.mxu0 %v21653_v52  ;;  %7599 = vperm.xlu1 %19964, %v7589_v46   ;;  %v21759_v23 = vand.u32 4294901760, %v6342_v42 }
 0x1ce   : > { %v21740_v20 = vadd.f32 %v3146_v28, %v3052_v35  ;;  %v3054_v12 = vadd.f32 %v3053_v14, %v2949_v30  ;;  %5938 = vmatprep.subr.mxu0 %v21598_v44  ;;  %7594 = vperm.xlu0 %19963, %v7588_v24  }
 0x1cf   : > { %v3058_v32 = vpop.f32.mrf.mxu0  ;;  %v3167_v56 = vpop.f32.mrf.mxu1  ;;  %5577 = vmatmul.mubr.f32.gmra.mxu0 %v21552_v13  ;;  %5686 = vmatmul.mubr.f32.gmra.mxu1 %v21593_v58  ;;  %26381 = vst [vmem:[#allocation68_spill] sm:$0xff] %v21759_v23 }
 0x1d0   : > { %v21752_v28 = vadd.f32 %v3148_v63, %v3054_v12  ;;  %v3059_v30 = vadd.f32 %v3058_v32, %v21695_v18  ;;  %5582 = vmatprep.mubr.f32.mxu0 %v26319_v62  ;;  %5877 = vmatprep.mubr.f32.mxu1 %v26319_v62  ;;  %v21768_v18 = vld [vmem:[%s26094_s5 + $0x10] sm:$0xff] }
 0x1d1   : > { %v3060_v61 = vpop.f32.mrf.mxu0  ;;  %v3169_v50 = vpop.f32.mrf.mxu1  ;;  %9205 = vrot.lane.b32.xlu1 %v21749_v33, %s20267_s21 }
 0x1d2   : > { %v21757_v6 = vadd.f32 %v3153_v47, %v3059_v30  ;;  %v3061_v53 = vadd.f32 %v3060_v61, %v2958_v57  ;;  %v21773_v57 = vld [vmem:[%s26094_s5 + $0x8] sm:$0xff] }
 0x1d3   : > { %v3065_v63 = vpop.f32.mrf.mxu0  ;;  %v3360_v48 = vpop.f32.mrf.mxu1  ;;  %5584 = vmatmul.mubr.f32.gmra.mxu0 %v21572_v5  ;;  %5879 = vmatmul.mubr.f32.vlgmr.msra.gmra.mxu1 %v21539_v34 }
 0x1d4   : > { %v21775_v47 = vadd.f32 %v3155_v0, %v3061_v53  ;;  %v3066_v46 = vadd.f32 %v3065_v63, %v21710_v29  ;;  %5589 = vmatprep.mubr.f32.mxu0 %v26319_v62  ;;  %5884 = vmatprep.mubr.f32.mxu1 %v26319_v62  ;;  %v21788_v0 = vsub.f32 %v6342_v42, %v21759_v23 }
 0x1d5   : > { %v3067_v35 = vpop.f32.mrf.mxu0  ;;  %v3362_v14 = vpop.f32.mrf.mxu1  ;;  %6040 = vmatpush1.msra.mxu1 %v21653_v52  ;;  %9207 = vrot.lane.b32.xlu0 %v21773_v57, %s20267_s21 }
 0x1d6   : > { %v21783_v12 = vadd.f32 %v3160_v36, %v3066_v46  ;;  %v3068_v32 = vadd.f32 %v3067_v35, %v21723_v40  ;;  %6240 = vmatprep.subr.mxu1 %v21575_v21  ;;  %26382 = vst [vmem:[#allocation69_spill] sm:$0xff] %v21788_v0  ;;  %9209 = vrot.lane.b32.xlu1 %v21768_v18, %s20267_s21  ;;  %v21797_v36 = vld [vmem:[%s26094_s5 + $0x18] sm:$0xff]  ;;  %v21809_v46 = vand.u32 4294901760, %v21788_v0 }
 0x1d7   : > { %v3072_v29 = vpop.f32.mrf.mxu0  ;;  %v3367_v24 = vpop.f32.mrf.mxu1  ;;  %5591 = vmatmul.mubr.f32.gmra.mxu0 %v21593_v58  ;;  %5886 = vmatmul.mubr.f32.gmra.mxu1 %v21552_v13 }
 0x1d8   : > { %v21799_v40 = vadd.f32 %v3162_v60, %v3068_v32  ;;  %v3073_v30 = vadd.f32 %v3072_v29, %v21729_v19  ;;  %5758 = vmatprep.mubr.f32.mxu0 %v26319_v62  ;;  %5891 = vmatprep.mubr.f32.mxu1 %v26319_v62  ;;  %26383 = vst [vmem:[#allocation70_spill] sm:$0xff] %v21809_v46 }
 0x1d9   : > { %v3074_v42 = vpop.f32.mrf.mxu0  ;;  %v3369_v61 = vpop.f32.mrf.mxu1  ;;  %9211 = vrot.lane.b32.xlu0 %v21797_v36, %s20267_s21 }
 0x1da   : > { %v21806_v53 = vadd.f32 %v3167_v56, %v3073_v30  ;;  %v3075_v63 = vadd.f32 %v3074_v42, %v2976_v16  ;;  %10445 = vrot.lane.b32.xlu1 %v21749_v33, %s20268_s28 }
 0x1db   : > { %v3245_v19 = vpop.f32.mrf.mxu0  ;;  %v3374_v60 = vpop.f32.mrf.mxu1  ;;  %5764 = vmatmul.mubr.f32.vlgmr.msra.gmra.mxu0 %v21608_v1  ;;  %5893 = vmatmul.mubr.f32.gmra.mxu1 %v21572_v5 }
 0x1dc   : > { %v21815_v35 = vadd.f32 %v3169_v50, %v3075_v63  ;;  %v3246_v32 = vadd.f32 %v3245_v19, %v21557_v26  ;;  %5769 = vmatprep.mubr.f32.mxu0 %v26319_v62  ;;  %5898 = vmatprep.mubr.f32.mxu1 %v26319_v62  ;;  %v6492_v50 = vsub.f32 %v21788_v0, %v21809_v46  ;;  %v6340_v26 = vsel %vm1307_vm9, %v21727_v10, 0 }
 0x1dd   : > { %v3247_v16 = vpop.f32.mrf.mxu0  ;;  %v3376_v56 = vpop.f32.mrf.mxu1  ;;  %5941 = vmatpush1.msra.mxu0 %v21667_v8  ;;  %10447 = vrot.lane.b32.xlu0 %v21773_v57, %s20268_s28 }
 0x1de   : > { %v3248_v29 = vadd.f32 %v3247_v16, %v21564_v11  ;;  %v3361_v1 = vadd.f32 %v3360_v48, %v3246_v32  ;;  %6143 = vmatprep.subr.mxu0 %v21619_v3  ;;  %10449 = vrot.lane.b32.xlu1 %v21768_v18, %s20268_s28  ;;  %v21836_v32 = vand.u32 4294901760, %v6340_v26 }
 0x1df   : > { %v3256_v30 = vpop.f32.mrf.mxu0  ;;  %v3381_v42 = vpop.f32.mrf.mxu1  ;;  %5775 = vmatmul.mubr.f32.gmra.mxu0 %v21633_v4  ;;  %5900 = vmatmul.mubr.f32.gmra.mxu1 %v21593_v58  ;;  %v21841_v4 = vand.u32 4294901760, %v6492_v50 }
 0x1e0   : > { %v3257_v11 = vadd.f32 %v3256_v30, %v21577_v22  ;;  %5780 = vmatprep.mubr.f32.mxu0 %v26319_v62  ;;  %6073 = vmatprep.mubr.f32.mxu1 %v26319_v62  ;;  %v3363_v48 = vadd.f32 %v3362_v14, %v3248_v29  ;;  %26384 = vst [vmem:[#allocation71_spill] sm:$0xff] %v21836_v32 }
 0x1e1   : > { %v3258_v63 = vpop.f32.mrf.mxu0  ;;  %v3383_v19 = vpop.f32.mrf.mxu1  ;;  %10451 = vrot.lane.b32.xlu0 %v21797_v36, %s20268_s28  ;;  %26385 = vst [vmem:[#allocation72_spill] sm:$0xff] %v21841_v4  ;;  %v21851_v50 = vsub.f32 %v6340_v26, %v21836_v32 }
 0x1e2   : > { %v3259_v10 = vadd.f32 %v3258_v63, %v21583_v27  ;;  %v3368_v16 = vadd.f32 %v3367_v24, %v3257_v11  ;;  %11685 = vrot.lane.b32.xlu1 %v21749_v33, %s20269_s29 }
 0x1e3   : > { %v3267_v22 = vpop.f32.mrf.mxu0  ;;  %v3558_v30 = vpop.f32.mrf.mxu1  ;;  %5786 = vmatmul.mubr.f32.gmra.mxu0 %v21649_v45  ;;  %6077 = vmatmul.mubr.f32.vlgmr.msra.gmra.mxu1 %v21567_v55  ;;  %26386 = vst [vmem:[#allocation73_spill] sm:$0xff] %v21851_v50  ;;  %v21865_v63 = vand.u32 4294901760, %v21851_v50 }
 0x1e4   : > { %v3268_v14 = vadd.f32 %v3267_v22, %v21600_v9  ;;  %5791 = vmatprep.mubr.f32.mxu0 %v26319_v62  ;;  %6082 = vmatprep.mubr.f32.mxu1 %v26319_v62  ;;  %v3370_v29 = vadd.f32 %v3369_v61, %v3259_v10 }
 0x1e5   : > { %v3269_v27 = vpop.f32.mrf.mxu0  ;;  %v3560_v24 = vpop.f32.mrf.mxu1  ;;  %6242 = vmatpush1.msra.mxu1 %v21653_v52  ;;  %11687 = vrot.lane.b32.xlu0 %v21773_v57, %s20269_s29  ;;  %26387 = vst [vmem:[#allocation74_spill] sm:$0xff] %v21865_v63 }
 0x1e6   : > { %v3270_v45 = vadd.f32 %v3269_v27, %v21606_v17  ;;  %v21855_v11 = vadd.f32 %v3374_v60, %v3268_v14  ;;  %6494 = vmatprep.subr.mxu1 %v21841_v4  ;;  %11689 = vrot.lane.b32.xlu1 %v21768_v18, %s20269_s29  ;;  %v6498_v27 = vsub.f32 %v21851_v50, %v21865_v63 }
 0x1e7   : > { %v3278_v55 = vpop.f32.mrf.mxu0  ;;  %v3567_v9 = vpop.f32.mrf.mxu1  ;;  %5797 = vmatmul.mubr.f32.gmra.mxu0 %v21663_v7  ;;  %6086 = vmatmul.mubr.f32.gmra.mxu1 %v21588_v37  ;;  %v1268_v37 = vand.u32 3, %v21472_v59 }
 0x1e8   : > { %v3279_v61 = vadd.f32 %v3278_v55, %v21621_v38  ;;  %5974 = vmatprep.mubr.f32.mxu0 %v26319_v62  ;;  %6091 = vmatprep.mubr.f32.mxu1 %v26319_v62  ;;  %v3377_v26 = vadd.f32 %v3376_v56, %v3270_v45  ;;  %v21896_v55 = vand.u32 4294901760, %v6498_v27 }
 0x1e9   : > { %v3280_v17 = vpop.f32.mrf.mxu0  ;;  %v3569_v60 = vpop.f32.mrf.mxu1  ;;  %11691 = vrot.lane.b32.xlu0 %v21797_v36, %s20269_s29  ;;  %vm1270_vm3 = vcmp.eq.s32.totalorder %v1268_v37, 0  ;;  %vm1273_vm4 = vcmp.eq.s32.totalorder %v1268_v37, 2  ;;  %vm1269_vm5 = vcmp.lt.s32.totalorder %v1268_v37, 2 }
 0x1ea   : > { %v3281_v10 = vadd.f32 %v3280_v17, %v21628_v31  ;;  %v21869_v22 = vadd.f32 %v3381_v42, %v3279_v61  ;;  %12941 = vrot.lane.b32.xlu1 %v21749_v33, %s20270_s30  ;;  %26388 = vst [vmem:[#allocation75_spill] sm:$0xff] %v21896_v55  ;;  %v6321_v61 = vpop.permute.xlu0 %6320  ;;  %v26390_v17 = vld [vmem:[#allocation58_spill] sm:$0xff] }
 0x1eb   : > { %v3458_v38 = vpop.f32.mrf.mxu0  ;;  %v3576_v7 = vpop.f32.mrf.mxu1  ;;  %5977 = vmatmul.mubr.f32.vlgmr.msra.gmra.mxu0 %v21550_v43  ;;  %6095 = vmatmul.mubr.f32.gmra.mxu1 %v21611_v2 }
 0x1ec   : > { %v3459_v56 = vadd.f32 %v3458_v38, %v3361_v1  ;;  %5982 = vmatprep.mubr.f32.mxu0 %v26319_v62  ;;  %6100 = vmatprep.mubr.f32.mxu1 %v26319_v62  ;;  %v21878_v31 = vadd.f32 %v3383_v19, %v3281_v10 }
 0x1ed   : > { %v3460_v42 = vpop.f32.mrf.mxu0  ;;  %v3578_v14 = vpop.f32.mrf.mxu1  ;;  %6147 = vmatpush1.msra.mxu0 %v21677_v25  ;;  %12943 = vrot.lane.b32.xlu0 %v21773_v57, %s20270_s30 }
 0x1ee   : > { %v3461_v43 = vadd.f32 %v3460_v42, %v3363_v48  ;;  %v21885_v2 = vadd.f32 %v3558_v30, %v3459_v56  ;;  %6379 = vmatprep.subr.mxu0 %v21759_v23  ;;  %12945 = vrot.lane.b32.xlu1 %v21768_v18, %s20270_s30 }
 0x1ef   : > { %v3466_v59 = vpop.f32.mrf.mxu0  ;;  %v3585_v1 = vpop.f32.mrf.mxu1  ;;  %5985 = vmatmul.mubr.f32.gmra.mxu0 %v21570_v15  ;;  %6104 = vmatmul.mubr.f32.gmra.mxu1 %v21631_v41 }
 0x1f0   : > { %v3467_v19 = vadd.f32 %v3466_v59, %v3368_v16  ;;  %5990 = vmatprep.mubr.f32.mxu0 %v26319_v62  ;;  %6275 = vmatprep.mubr.f32.mxu1 %v26319_v62  ;;  %v21894_v48 = vadd.f32 %v3560_v24, %v3461_v43  ;;  %v26389_v16 = vxor.u32 2147483648, %v21495_v51  ;;  %v26391_v24 = vxor.u32 2147483648, %v26390_v17  ;;  %v6323_v59 = vpop.permute.xlu1 %6322 }
 0x1f1   : > { %v3468_v30 = vpop.f32.mrf.mxu0  ;;  %v3587_v45 = vpop.f32.mrf.mxu1  ;;  %12947 = vrot.lane.b32.xlu0 %v21797_v36, %s20270_s30  ;;  %v6332_v43 = vsel %vm1298_vm14, %v6321_v61, 0 }
 0x1f2   : > { %v3469_v15 = vadd.f32 %v3468_v30, %v3370_v29  ;;  %v21900_v41 = vadd.f32 %v3567_v9, %v3467_v19  ;;  %v1272_v10 = vsel %vm1270_vm3, %v26390_v17, %v26389_v16  ;;  %v1275_v38 = vsel %vm1273_vm4, %v26391_v24, %v21495_v51  ;;  %14197 = vrot.lane.b32.xlu1 %v21749_v33, %s20271_s12  ;;  %v6325_v16 = vpop.permute.xlu0 %6324 }
 0x1f3   : > { %v3474_v56 = vpop.f32.mrf.mxu0  ;;  %v3758_v42 = vpop.f32.mrf.mxu1  ;;  %5993 = vmatmul.mubr.f32.gmra.mxu0 %v21591_v39  ;;  %6277 = vmatmul.mubr.f32.vlgmr.msra.gmra.mxu1 %v21539_v34  ;;  %v1276_v33 = vsel %vm1269_vm5, %v1272_v10, %v1275_v38 }
 0x1f4   : > { %v3475_v29 = vadd.f32 %v3474_v56, %v21855_v11  ;;  %5998 = vmatprep.mubr.f32.mxu0 %v26319_v62  ;;  %6282 = vmatprep.mubr.f32.mxu1 %v26319_v62  ;;  %v21915_v9 = vadd.f32 %v3569_v60, %v3469_v15  ;;  %v21941_v15 = vand.u32 4294901760, %v6332_v43 }
 0x1f5   : > { %v3476_v27 = vpop.f32.mrf.mxu0  ;;  %v3760_v51 = vpop.f32.mrf.mxu1  ;;  %6500 = vmatpush1.msra.mxu1 %v21896_v55  ;;  %14199 = vrot.lane.b32.xlu0 %v21773_v57, %s20271_s12  ;;  %v7777_v57 = vld [vmem:[%s26093_s4 + $0x10] sm:$0x1] }
 0x1f6   : > { %v3477_v39 = vadd.f32 %v3476_v27, %v3377_v26  ;;  %v21922_v11 = vadd.f32 %v3576_v7, %v3475_v29  ;;  %6694 = vmatprep.subr.mxu1 %v21759_v23  ;;  %14201 = vrot.lane.b32.xlu1 %v21768_v18, %s20271_s12  ;;  %v21939_v18 = vsel %vm1060_vm0, nan, %v1276_v33  ;;  %v21965_v38 = vsub.f32 %v6332_v43, %v21941_v15 }
 0x1f7   : > { %v3482_v60 = vpop.f32.mrf.mxu0  ;;  %v3765_v19 = vpop.f32.mrf.mxu1  ;;  %6001 = vmatmul.mubr.f32.gmra.mxu0 %v21614_v49  ;;  %6284 = vmatmul.mubr.f32.gmra.mxu1 %v21552_v13  ;;  %v6331_v24 = vcombine.high %v21939_v18, %v21939_v18 }
 0x1f8   : > { %v3483_v26 = vadd.f32 %v3482_v60, %v21869_v22  ;;  %6180 = vmatprep.mubr.f32.mxu0 %v26319_v62  ;;  %6289 = vmatprep.mubr.f32.mxu1 %v26319_v62  ;;  %v21935_v7 = vadd.f32 %v3578_v14, %v3477_v39  ;;  %v6334_v22 = vsel %vm1298_vm14, %v6323_v59, 0  ;;  %v6336_v39 = vsel %vm1298_vm14, %v6325_v16, 0  ;;  %v6327_v59 = vpop.permute.xlu1 %6326 }
 0x1f9   : > { %v3484_v30 = vpop.f32.mrf.mxu0  ;;  %v3767_v49 = vpop.f32.mrf.mxu1  ;;  %14203 = vrot.lane.b32.xlu0 %v21797_v36, %s20271_s12  ;;  %v7775_v36 = vld [vmem:[%s26093_s4] sm:$0xff]  ;;  %v21967_v27 = vand.u32 4294901760, %v6334_v22  ;;  %v6346_v60 = vsel %vm1307_vm9, %v6331_v24, 0  ;;  %v21995_v16 = vand.u32 4294901760, %v6336_v39 }
 0x1fa   : > { %v3485_v61 = vadd.f32 %v3484_v30, %v21878_v31  ;;  %v21947_v17 = vadd.f32 %v3585_v1, %v3483_v26  ;;  %7790 = vperm.xlu1 %19964, %v7777_v57   ;;  %v7776_v31 = vld [vmem:[%s26093_s4 + $0x8] sm:$0xff]  ;;  %v22001_v24 = vand.u32 4294901760, %v6346_v60 }
 0x1fb   : > { %v3663_v14 = vpop.f32.mrf.mxu0  ;;  %v3772_v10 = vpop.f32.mrf.mxu1  ;;  %6182 = vmatmul.mubr.f32.vlgmr.msra.gmra.mxu0 %v21539_v34  ;;  %6291 = vmatmul.mubr.f32.gmra.mxu1 %v21572_v5  ;;  %v21993_v37 = vsub.f32 %v6334_v22, %v21967_v27  ;;  %v9197_v22 = vld [vmem:[%s26095_s6] sm:$0xff] }
 0x1fc   : > { %v3664_v1 = vadd.f32 %v3663_v14, %v21885_v2  ;;  %6187 = vmatprep.mubr.f32.mxu0 %v26319_v62  ;;  %6296 = vmatprep.mubr.f32.mxu1 %v26319_v62  ;;  %v21962_v34 = vadd.f32 %v3587_v45, %v3485_v61  ;;  %26393 = vst [vmem:[#allocation58_spill] sm:$0xff] %v22001_v24 }
 0x1fd   : > { %v3665_v56 = vpop.f32.mrf.mxu0  ;;  %v3774_v29 = vpop.f32.mrf.mxu1  ;;  %6381 = vmatpush1.msra.mxu0 %v21836_v32  ;;  %7785 = vperm.xlu0 %19963, %v7776_v31  }
 0x1fe   : > { %v21970_v33 = vadd.f32 %v3758_v42, %v3664_v1  ;;  %v3666_v2 = vadd.f32 %v3665_v56, %v21894_v48  ;;  %6594 = vmatprep.subr.mxu0 %v21788_v0  ;;  %7780 = vperm.xlu1 %19964, %v7775_v36   ;;  %v9199_v42 = vld [vmem:[%s26095_s6 + $0x10] sm:$0xff]  ;;  %v9200_v48 = vld [vmem:[%s26095_s6 + $0x18] sm:$0xff]  ;;  %v22019_v56 = vand.u32 4294901760, %v21993_v37 }
 0x1ff   : > { %v3670_v45 = vpop.f32.mrf.mxu0  ;;  %v3779_v43 = vpop.f32.mrf.mxu1  ;;  %6189 = vmatmul.mubr.f32.gmra.mxu0 %v21552_v13  ;;  %6298 = vmatmul.mubr.f32.gmra.mxu1 %v21593_v58  ;;  %v21990_v13 = vand.u32 4294901760, %v21965_v38 }
 0x200   : > { %v21984_v57 = vadd.f32 %v3760_v51, %v3666_v2  ;;  %v3671_v26 = vadd.f32 %v3670_v45, %v21900_v41  ;;  %6194 = vmatprep.mubr.f32.mxu0 %v26319_v62  ;;  %6533 = vmatprep.mubr.f32.mxu1 %v26319_v62  ;;  %v6338_v41 = vsel %vm1298_vm14, %v6327_v59, 0  ;;  %v22022_v2 = vsub.f32 %v6336_v39, %v21995_v16 }
 0x201   : > { %v3672_v30 = vpop.f32.mrf.mxu0  ;;  %v3781_v61 = vpop.f32.mrf.mxu1  ;;  %16820 = vperm.xlu0 %19963, %v9200_v48   ;;  %v22032_v48 = vsub.f32 %v6346_v60, %v22001_v24 }
 0x202   : > { %v21997_v14 = vadd.f32 %v3765_v19, %v3671_v26  ;;  %v3673_v51 = vadd.f32 %v3672_v30, %v21915_v9  ;;  %16815 = vperm.xlu1 %19964, %v9199_v42   ;;  %v9198_v19 = vld [vmem:[%s26095_s6 + $0x8] sm:$0xff]  ;;  %v22024_v42 = vand.u32 4294901760, %v6338_v41  ;;  %v16989_v30 = vld [vmem:[%s26097_s8 + $0x10] sm:$0xff] }
 0x203   : > { %v3677_v36 = vpop.f32.mrf.mxu0  ;;  %v4000_v31 = vpop.f32.mrf.mxu1  ;;  %6196 = vmatmul.mubr.f32.gmra.mxu0 %v21572_v5  ;;  %6535 = vmatmul.mubr.f32.vlgmr.msra.gmra.mxu1 %v21941_v15  ;;  %v6418_v5 = vsub.f32 %v21965_v38, %v21990_v13  ;;  %26394 = vst [vmem:[#allocation29_spill] sm:$0xff] %v22032_v48 }
 0x204   : > { %v22011_v9 = vadd.f32 %v3767_v49, %v3673_v51  ;;  %v3678_v1 = vadd.f32 %v3677_v36, %v21922_v11  ;;  %6201 = vmatprep.mubr.f32.mxu0 %v26319_v62  ;;  %6540 = vmatprep.mubr.f32.mxu1 %v26319_v62  ;;  %v22053_v36 = vsub.f32 %v6338_v41, %v22024_v42  ;;  %v16987_v41 = vld [vmem:[%s26097_s8] sm:$0xff] }
 0x205   : > { %v3679_v59 = vpop.f32.mrf.mxu0  ;;  %v4002_v45 = vpop.f32.mrf.mxu1  ;;  %6696 = vmatpush1.msra.mxu1 %v21836_v32  ;;  %16810 = vperm.xlu0 %19963, %v9198_v19   ;;  %v22047_v51 = vand.u32 4294901760, %v6418_v5 }
 0x206   : > { %v22027_v11 = vadd.f32 %v3772_v10, %v3678_v1  ;;  %v3680_v49 = vadd.f32 %v3679_v59, %v21935_v7  ;;  %6896 = vmatprep.subr.mxu1 %v21759_v23  ;;  %16805 = vperm.xlu1 %19964, %v9197_v22   ;;  %v16990_v7 = vld [vmem:[%s26097_s8 + $0x18] sm:$0xff]  ;;  %v22061_v59 = vand.u32 4294901760, %v22032_v48 }
 0x207   : > { %v3684_v26 = vpop.f32.mrf.mxu0  ;;  %v4007_v39 = vpop.f32.mrf.mxu1  ;;  %6203 = vmatmul.mubr.f32.gmra.mxu0 %v21593_v58  ;;  %6542 = vmatmul.mubr.f32.gmra.mxu1 %v21967_v27  ;;  %v22050_v58 = vand.u32 4294901760, %v22022_v2 }
 0x208   : > { %v22042_v10 = vadd.f32 %v3774_v29, %v3680_v49  ;;  %v3685_v60 = vadd.f32 %v3684_v26, %v21947_v17  ;;  %6414 = vmatprep.mubr.f32.mxu0 %v26319_v62  ;;  %6547 = vmatprep.mubr.f32.mxu1 %v26319_v62  ;;  %v6429_v29 = vsub.f32 %v21993_v37, %v22019_v56 }
 0x209   : > { %v3686_v22 = vpop.f32.mrf.mxu0  ;;  %v4009_v19 = vpop.f32.mrf.mxu1  ;;  %17008 = vperm.xlu0 %19963, %v16990_v7   ;;  %26395 = vst [vmem:[#allocation76_spill] sm:$0xff] %v22061_v59  ;;  %v6440_v55 = vsub.f32 %v22022_v2, %v22050_v58 }
 0x20a   : > { %v22057_v1 = vadd.f32 %v3779_v43, %v3685_v60  ;;  %v3687_v17 = vadd.f32 %v3686_v22, %v21962_v34  ;;  %17003 = vperm.xlu1 %19964, %v16989_v30   ;;  %v16988_v43 = vld [vmem:[%s26097_s8 + $0x8] sm:$0xff]  ;;  %v22076_v30 = vand.u32 4294901760, %v22053_v36  ;;  %v22078_v22 = vand.u32 4294901760, %v6429_v29 }
 0x20b   : > { %v3885_v5 = vpop.f32.mrf.mxu0  ;;  %v4014_v49 = vpop.f32.mrf.mxu1  ;;  %6420 = vmatmul.mubr.f32.vlgmr.msra.gmra.mxu0 %v22047_v51  ;;  %6549 = vmatmul.mubr.f32.gmra.mxu1 %v21995_v16  ;;  %v18550_v29 = vld [vmem:[%s26099_s10 + $0x8] sm:$0x1] }
 0x20c   : > { %v22071_v26 = vadd.f32 %v3781_v61, %v3687_v17  ;;  %v4001_v34 = vadd.f32 %v4000_v31, %v3885_v5  ;;  %6425 = vmatprep.mubr.f32.mxu0 %v26319_v62  ;;  %6554 = vmatprep.mubr.f32.mxu1 %v26319_v62  ;;  %v7104_v31 = vsub.f32 %v22032_v48, %v22061_v59  ;;  %v6344_v17 = vsel %vm1307_vm9, %v21939_v18, 0 }
 0x20d   : > { %v3887_v7 = vpop.f32.mrf.mxu0  ;;  %v4016_v60 = vpop.f32.mrf.mxu1  ;;  %6597 = vmatpush1.msra.mxu0 %v21851_v50  ;;  %16998 = vperm.xlu0 %19963, %v16988_v43   ;;  %v22102_v50 = vand.u32 4294901760, %v6344_v17  ;;  %vm7793_vm9 = vcmask 261120  }
 0x20e   : > { %26396 = vst [vmem:[#allocation77_spill] sm:$0xff] %v22071_v26  ;;  %v4003_v61 = vadd.f32 %v4002_v45, %v3887_v7  ;;  %6799 = vmatprep.subr.mxu0 %v21809_v46  ;;  %16993 = vperm.xlu1 %19964, %v16987_v41   ;;  %v18549_v45 = vld [vmem:[%s26099_s10] sm:$0xff]  ;;  %v22098_v7 = vand.u32 4294901760, %v6440_v55  ;;  %v6451_v46 = vsub.f32 %v22053_v36, %v22076_v30  ;;  %v22104_v23 = vand.u32 4294901760, %v7104_v31 }
 0x20f   : > { %v3896_v5 = vpop.f32.mrf.mxu0  ;;  %v4021_v0 = vpop.f32.mrf.mxu1  ;;  %6431 = vmatmul.mubr.f32.gmra.mxu0 %v22078_v22  ;;  %6556 = vmatmul.mubr.f32.gmra.mxu1 %v22024_v42  ;;  %26397 = vst [vmem:[#allocation78_spill] sm:$0xff] %v22102_v50 }
 0x210   : > { %v4008_v43 = vadd.f32 %v4007_v39, %v3896_v5  ;;  %6436 = vmatprep.mubr.f32.mxu0 %v26319_v62  ;;  %6729 = vmatprep.mubr.f32.mxu1 %v26319_v62  ;;  %26398 = vst [vmem:[#allocation79_spill] sm:$0xff] %v22104_v23  ;;  %v22110_v8 = vand.u32 4294901760, %v6451_v46 }
 0x211   : > { %v3898_v18 = vpop.f32.mrf.mxu0  ;;  %v4023_v41 = vpop.f32.mrf.mxu1  ;;  %18553 = vperm.xlu0 %19963, %v18549_v45  }
 0x212   : > { %v4010_v4 = vadd.f32 %v4009_v19, %v3898_v18  ;;  %18558 = vperm.xlu1 %19964, %v18550_v29   ;;  %v22114_v19 = vsub.f32 %v6344_v17, %v22102_v50 }
 0x213   : > { %v3907_v25 = vpop.f32.mrf.mxu0  ;;  %v4198_v39 = vpop.f32.mrf.mxu1  ;;  %6442 = vmatmul.mubr.f32.gmra.mxu0 %v22098_v7  ;;  %6733 = vmatmul.mubr.f32.vlgmr.msra.gmra.mxu1 %v21990_v13 }
 0x214   : > { %v4015_v5 = vadd.f32 %v4014_v49, %v3907_v25  ;;  %6447 = vmatprep.mubr.f32.mxu0 %v26319_v62  ;;  %6738 = vmatprep.mubr.f32.mxu1 %v26319_v62  ;;  %26399 = vst [vmem:[#allocation80_spill] sm:$0xff] %v22114_v19  ;;  %v22122_v18 = vand.u32 4294901760, %v22114_v19 }
 0x215   : > { %v3909_v55 = vpop.f32.mrf.mxu0  ;;  %v4200_v3 = vpop.f32.mrf.mxu1  ;;  %6898 = vmatpush1.msra.mxu1 %v21836_v32 }
 0x216   : > { %v4017_v31 = vadd.f32 %v4016_v60, %v3909_v55  ;;  %7106 = vmatprep.subr.mxu1 %v22104_v23  ;;  %26400 = vst [vmem:[#allocation81_spill] sm:$0xff] %v22122_v18  ;;  %v7110_v32 = vsub.f32 %v22114_v19, %v22122_v18 }
 0x217   : > { %v3918_v29 = vpop.f32.mrf.mxu0  ;;  %v4207_v45 = vpop.f32.mrf.mxu1  ;;  %6453 = vmatmul.mubr.f32.gmra.mxu0 %v22110_v8  ;;  %6742 = vmatmul.mubr.f32.gmra.mxu1 %v22019_v56 }
 0x218   : > { %v4022_v25 = vadd.f32 %v4021_v0, %v3918_v29  ;;  %6630 = vmatprep.mubr.f32.mxu0 %v26319_v62  ;;  %6747 = vmatprep.mubr.f32.mxu1 %v26319_v62  ;;  %v22136_v21 = vand.u32 4294901760, %v7110_v32 }
 0x219   : > { %v3920_v46 = vpop.f32.mrf.mxu0  ;;  %v4209_v49 = vpop.f32.mrf.mxu1 }
 0x21a   : > { %v4024_v17 = vadd.f32 %v4023_v41, %v3920_v46  ;;  %26401 = vst [vmem:[#allocation82_spill] sm:$0xff] %v22136_v21 }
 0x21b   : > { %v4098_v60 = vpop.f32.mrf.mxu0  ;;  %v4216_v55 = vpop.f32.mrf.mxu1  ;;  %6633 = vmatmul.mubr.f32.vlgmr.msra.gmra.mxu0 %v21965_v38  ;;  %6751 = vmatmul.mubr.f32.gmra.mxu1 %v22050_v58 }
 0x21c   : > { %v4099_v23 = vadd.f32 %v4098_v60, %v4001_v34  ;;  %6638 = vmatprep.mubr.f32.mxu0 %v26319_v62  ;;  %6756 = vmatprep.mubr.f32.mxu1 %v26319_v62 }
 0x21d   : > { %v4100_v0 = vpop.f32.mrf.mxu0  ;;  %v4218_v29 = vpop.f32.mrf.mxu1  ;;  %6803 = vmatpush1.msra.mxu0 %v21865_v63 }
 0x21e   : > { %v4101_v54 = vadd.f32 %v4100_v0, %v4003_v61  ;;  %v4199_v41 = vadd.f32 %v4198_v39, %v4099_v23  ;;  %6991 = vmatprep.subr.mxu0 %v22001_v24 }
 0x21f   : > { %v4106_v46 = vpop.f32.mrf.mxu0  ;;  %v4225_v44 = vpop.f32.mrf.mxu1  ;;  %6641 = vmatmul.mubr.f32.gmra.mxu0 %v21993_v37  ;;  %6760 = vmatmul.mubr.f32.gmra.mxu1 %v22076_v30 }
 0x220   : > { %v4107_v34 = vadd.f32 %v4106_v46, %v4008_v43  ;;  %6646 = vmatprep.mubr.f32.mxu0 %v26319_v62  ;;  %6931 = vmatprep.mubr.f32.mxu1 %v26319_v62  ;;  %v4201_v60 = vadd.f32 %v4200_v3, %v4101_v54 }
 0x221   : > { %v4108_v63 = vpop.f32.mrf.mxu0  ;;  %v4227_v52 = vpop.f32.mrf.mxu1 }
 0x222   : > { %v4109_v61 = vadd.f32 %v4108_v63, %v4010_v4  ;;  %v4208_v23 = vadd.f32 %v4207_v45, %v4107_v34 }
 0x223   : > { %v4114_v39 = vpop.f32.mrf.mxu0  ;;  %v4398_v0 = vpop.f32.mrf.mxu1  ;;  %6649 = vmatmul.mubr.f32.gmra.mxu0 %v22022_v2  ;;  %6933 = vmatmul.mubr.f32.vlgmr.msra.gmra.mxu1 %v21941_v15 }
 0x224   : > { %v4115_v26 = vadd.f32 %v4114_v39, %v4015_v5  ;;  %6654 = vmatprep.mubr.f32.mxu0 %v26319_v62  ;;  %6938 = vmatprep.mubr.f32.mxu1 %v26319_v62  ;;  %v4210_v43 = vadd.f32 %v4209_v49, %v4109_v61 }
 0x225   : > { %v4116_v46 = vpop.f32.mrf.mxu0  ;;  %v4400_v3 = vpop.f32.mrf.mxu1  ;;  %7112 = vmatpush1.msra.mxu1 %v22136_v21 }
 0x226   : > { %v4117_v54 = vadd.f32 %v4116_v46, %v4017_v31  ;;  %v4217_v32 = vadd.f32 %v4216_v55, %v4115_v26  ;;  %7306 = vmatprep.subr.mxu1 %v22001_v24 }
 0x227   : > { %v4122_v4 = vpop.f32.mrf.mxu0  ;;  %v4405_v63 = vpop.f32.mrf.mxu1  ;;  %6657 = vmatmul.mubr.f32.gmra.mxu0 %v22053_v36  ;;  %6940 = vmatmul.mubr.f32.gmra.mxu1 %v21967_v27 }
 0x228   : > { %v4123_v5 = vadd.f32 %v4122_v4, %v4022_v25  ;;  %6836 = vmatprep.mubr.f32.mxu0 %v26319_v62  ;;  %6945 = vmatprep.mubr.f32.mxu1 %v26319_v62  ;;  %v4219_v45 = vadd.f32 %v4218_v29, %v4117_v54 }
 0x229   : > { %v4124_v49 = vpop.f32.mrf.mxu0  ;;  %v4407_v34 = vpop.f32.mrf.mxu1 }
 0x22a   : > { %v4125_v61 = vadd.f32 %v4124_v49, %v4024_v17  ;;  %v4226_v39 = vadd.f32 %v4225_v44, %v4123_v5 }
 0x22b   : > { %v4303_v31 = vpop.f32.mrf.mxu0  ;;  %v4412_v26 = vpop.f32.mrf.mxu1  ;;  %6838 = vmatmul.mubr.f32.vlgmr.msra.gmra.mxu0 %v21941_v15  ;;  %6947 = vmatmul.mubr.f32.gmra.mxu1 %v21995_v16 }
 0x22c   : > { %v4304_v55 = vadd.f32 %v4303_v31, %v4199_v41  ;;  %6843 = vmatprep.mubr.f32.mxu0 %v26319_v62  ;;  %6952 = vmatprep.mubr.f32.mxu1 %v26319_v62  ;;  %v4228_v25 = vadd.f32 %v4227_v52, %v4125_v61 }
 0x22d   : > { %v4305_v46 = vpop.f32.mrf.mxu0  ;;  %v4414_v4 = vpop.f32.mrf.mxu1  ;;  %6993 = vmatpush1.msra.mxu0 %v22102_v50 }
 0x22e   : > { %v4399_v29 = vadd.f32 %v4398_v0, %v4304_v55  ;;  %v4306_v54 = vadd.f32 %v4305_v46, %v4201_v60  ;;  %7206 = vmatprep.subr.mxu0 %v22032_v48 }
 0x22f   : > { %v4310_v44 = vpop.f32.mrf.mxu0  ;;  %v4419_v17 = vpop.f32.mrf.mxu1  ;;  %6845 = vmatmul.mubr.f32.gmra.mxu0 %v21967_v27  ;;  %6954 = vmatmul.mubr.f32.gmra.mxu1 %v22024_v42 }
 0x230   : > { %v22157_v41 = vadd.f32 %v4399_v29, %v21740_v20  ;;  %v4401_v5 = vadd.f32 %v4400_v3, %v4306_v54  ;;  %v4311_v49 = vadd.f32 %v4310_v44, %v4208_v23  ;;  %6850 = vmatprep.mubr.f32.mxu0 %v26319_v62  ;;  %7145 = vmatprep.mubr.f32.mxu1 %v26319_v62 }
 0x231   : > { %v4312_v52 = vpop.f32.mrf.mxu0  ;;  %v4421_v0 = vpop.f32.mrf.mxu1 }
 0x232   : > { %v22162_v60 = vadd.f32 %v4401_v5, %v21752_v28  ;;  %v4406_v61 = vadd.f32 %v4405_v63, %v4311_v49  ;;  %v4313_v31 = vadd.f32 %v4312_v52, %v4210_v43 }
 0x233   : > { %v4317_v55 = vpop.f32.mrf.mxu0  ;;  %v4612_v46 = vpop.f32.mrf.mxu1  ;;  %6852 = vmatmul.mubr.f32.gmra.mxu0 %v21995_v16  ;;  %7147 = vmatmul.mubr.f32.vlgmr.msra.gmra.mxu1 %v21941_v15 }
 0x234   : > { %v22167_v20 = vadd.f32 %v4406_v61, %v21757_v6  ;;  %v4408_v23 = vadd.f32 %v4407_v34, %v4313_v31  ;;  %v4318_v3 = vadd.f32 %v4317_v55, %v4217_v32  ;;  %6857 = vmatprep.mubr.f32.mxu0 %v26319_v62  ;;  %7152 = vmatprep.mubr.f32.mxu1 %v26319_v62 }
 0x235   : > { %v4319_v29 = vpop.f32.mrf.mxu0  ;;  %v4614_v28 = vpop.f32.mrf.mxu1  ;;  %7308 = vmatpush1.msra.mxu1 %v22102_v50 }
 0x236   : > { %v22173_v43 = vadd.f32 %v4408_v23, %v21775_v47  ;;  %v4413_v63 = vadd.f32 %v4412_v26, %v4318_v3  ;;  %v4320_v54 = vadd.f32 %v4319_v29, %v4219_v45  ;;  %7508 = vmatprep.subr.mxu1 %v22001_v24 }
 0x237   : > { %v4324_v44 = vpop.f32.mrf.mxu0  ;;  %v4619_v6 = vpop.f32.mrf.mxu1  ;;  %6859 = vmatmul.mubr.f32.gmra.mxu0 %v22024_v42  ;;  %7154 = vmatmul.mubr.f32.gmra.mxu1 %v21967_v27 }
 0x238   : > { %v22179_v32 = vadd.f32 %v4413_v63, %v21783_v12  ;;  %v4415_v34 = vadd.f32 %v4414_v4, %v4320_v54  ;;  %v4325_v5 = vadd.f32 %v4324_v44, %v4226_v39  ;;  %7026 = vmatprep.mubr.f32.mxu0 %v26319_v62  ;;  %7159 = vmatprep.mubr.f32.mxu1 %v26319_v62 }
 0x239   : > { %v4326_v47 = vpop.f32.mrf.mxu0  ;;  %v4621_v26 = vpop.f32.mrf.mxu1 }
 0x23a   : > { %v22184_v45 = vadd.f32 %v4415_v34, %v21799_v40  ;;  %v4420_v49 = vadd.f32 %v4419_v17, %v4325_v5  ;;  %v4327_v52 = vadd.f32 %v4326_v47, %v4228_v25 }
 0x23b   : > { %v4497_v61 = vpop.f32.mrf.mxu0  ;;  %v4626_v31 = vpop.f32.mrf.mxu1  ;;  %7032 = vmatmul.mubr.f32.vlgmr.msra.gmra.mxu0 %v22047_v51  ;;  %7161 = vmatmul.mubr.f32.gmra.mxu1 %v21995_v16 }
 0x23c   : > { %26402 = vst [vmem:[#allocation83_spill] sm:$0xff] %v22184_v45  ;;  %v22189_v12 = vadd.f32 %v4420_v49, %v21806_v53  ;;  %v4422_v39 = vadd.f32 %v4421_v0, %v4327_v52  ;;  %v4613_v4 = vadd.f32 %v4612_v46, %v4497_v61  ;;  %7037 = vmatprep.mubr.f32.mxu0 %v26319_v62 }
 0x23d   : > { %7166 = vmatprep.mubr.f32.mxu1 %v26319_v62  ;;  %v4499_v55 = vpop.f32.mrf.mxu0  ;;  %v4628_v40 = vpop.f32.mrf.mxu1  ;;  %7209 = vmatpush1.msra.mxu0 %v22114_v19 }
 0x23e   : > { %v22195_v25 = vadd.f32 %v4422_v39, %v21815_v35  ;;  %v22197_v17 = vadd.f32 %v4614_v28, %v4499_v55  ;;  %7411 = vmatprep.subr.mxu0 %v22061_v59 }
 0x23f   : > { %v4508_v51 = vpop.f32.mrf.mxu0  ;;  %v4633_v53 = vpop.f32.mrf.mxu1  ;;  %7043 = vmatmul.mubr.f32.gmra.mxu0 %v22078_v22  ;;  %7168 = vmatmul.mubr.f32.gmra.mxu1 %v22024_v42 }
 0x240   : > { %26403 = vst [vmem:[#allocation84_spill] sm:$0xff] %v22195_v25  ;;  %v4620_v0 = vadd.f32 %v4619_v6, %v4508_v51  ;;  %7048 = vmatprep.mubr.f32.mxu0 %v26319_v62  ;;  %7341 = vmatprep.mubr.f32.mxu1 %v26319_v62 }
 0x241   : > { %v4510_v46 = vpop.f32.mrf.mxu0  ;;  %v4635_v23 = vpop.f32.mrf.mxu1 }
 0x242   : > { %v22204_v3 = vadd.f32 %v4621_v26, %v4510_v46 }
 0x243   : > { %v4519_v35 = vpop.f32.mrf.mxu0  ;;  %v4810_v29 = vpop.f32.mrf.mxu1  ;;  %7054 = vmatmul.mubr.f32.gmra.mxu0 %v22098_v7  ;;  %7345 = vmatmul.mubr.f32.vlgmr.msra.gmra.mxu1 %v21990_v13 }
 0x244   : > { %v4627_v28 = vadd.f32 %v4626_v31, %v4519_v35  ;;  %7059 = vmatprep.mubr.f32.mxu0 %v26319_v62  ;;  %7350 = vmatprep.mubr.f32.mxu1 %v26319_v62 }
 0x245   : > { %v4521_v22 = vpop.f32.mrf.mxu0  ;;  %v4812_v63 = vpop.f32.mrf.mxu1  ;;  %7510 = vmatpush1.msra.mxu1 %v22102_v50 }
 0x246   : > { %v22211_v54 = vadd.f32 %v4628_v40, %v4521_v22 }
 0x247   : > { %v4530_v44 = vpop.f32.mrf.mxu0  ;;  %v4819_v6 = vpop.f32.mrf.mxu1  ;;  %7065 = vmatmul.mubr.f32.gmra.mxu0 %v22110_v8  ;;  %7354 = vmatmul.mubr.f32.gmra.mxu1 %v22019_v56 }
 0x248   : > { %v4634_v7 = vadd.f32 %v4633_v53, %v4530_v44  ;;  %7242 = vmatprep.mubr.f32.mxu0 %v26319_v62  ;;  %7359 = vmatprep.mubr.f32.mxu1 %v26319_v62 }
 0x249   : > { %v4532_v13 = vpop.f32.mrf.mxu0  ;;  %v4821_v34 = vpop.f32.mrf.mxu1 }
 0x24a   : > { %v22217_v5 = vadd.f32 %v4635_v23, %v4532_v13 }
 0x24b   : > { %v4710_v47 = vpop.f32.mrf.mxu0  ;;  %v4828_v26 = vpop.f32.mrf.mxu1  ;;  %7245 = vmatmul.mubr.f32.vlgmr.msra.gmra.mxu0 %v21965_v38  ;;  %7363 = vmatmul.mubr.f32.gmra.mxu1 %v22050_v58 }
 0x24c   : > { %v4711_v49 = vadd.f32 %v4710_v47, %v4613_v4  ;;  %7250 = vmatprep.mubr.f32.mxu0 %v26319_v62  ;;  %7368 = vmatprep.mubr.f32.mxu1 %v26319_v62 }
 0x24d   : > { %v4712_v8 = vpop.f32.mrf.mxu0  ;;  %v22223_v56 = vpop.f32.mrf.mxu1  ;;  %7415 = vmatpush1.msra.mxu0 %v22122_v18 }
 0x24e   : > { %v4811_v52 = vadd.f32 %v4810_v29, %v4711_v49  ;;  %v4713_v23 = vadd.f32 %v4712_v8, %v22197_v17 }
 0x24f   : > { %v4718_v61 = vpop.f32.mrf.mxu0  ;;  %v4837_v31 = vpop.f32.mrf.mxu1  ;;  %7253 = vmatmul.mubr.f32.gmra.mxu0 %v21993_v37  ;;  %7372 = vmatmul.mubr.f32.gmra.mxu1 %v22076_v30 }
 0x250   : > { %v4719_v38 = vadd.f32 %v4718_v61, %v4620_v0  ;;  %7258 = vmatprep.mubr.f32.mxu0 %v26319_v62  ;;  %7543 = vmatprep.mubr.f32.mxu1 %v26319_v62  ;;  %v4813_v13 = vadd.f32 %v4812_v63, %v4713_v23 }
 0x251   : > { %v4720_v58 = vpop.f32.mrf.mxu0  ;;  %v22230_v39 = vpop.f32.mrf.mxu1 }
 0x252   : > { %v4820_v4 = vadd.f32 %v4819_v6, %v4719_v38  ;;  %v4721_v22 = vadd.f32 %v4720_v58, %v22204_v3 }
 0x253   : > { %v4726_v55 = vpop.f32.mrf.mxu0  ;;  %v5010_v40 = vpop.f32.mrf.mxu1  ;;  %7261 = vmatmul.mubr.f32.gmra.mxu0 %v22022_v2  ;;  %7545 = vmatmul.mubr.f32.vlgmr.msra.gmra.mxu1 %v21941_v15 }
 0x254   : > { %v4727_v51 = vadd.f32 %v4726_v55, %v4627_v28  ;;  %7266 = vmatprep.mubr.f32.mxu0 %v26319_v62  ;;  %7550 = vmatprep.mubr.f32.mxu1 %v26319_v62 }
 0x255   : > { %v4728_v37 = vpop.f32.mrf.mxu0  ;;  %v5012_v30 = vpop.f32.mrf.mxu1 }
 0x256   : > { %v4829_v53 = vadd.f32 %v4828_v26, %v4727_v51  ;;  %v4729_v49 = vadd.f32 %v4728_v37, %v22211_v54 }
 0x257   : > { %v4734_v0 = vpop.f32.mrf.mxu0  ;;  %v5017_v46 = vpop.f32.mrf.mxu1  ;;  %7269 = vmatmul.mubr.f32.gmra.mxu0 %v22053_v36  ;;  %7552 = vmatmul.mubr.f32.gmra.mxu1 %v21967_v27 }
 0x258   : > { %v4735_v35 = vadd.f32 %v4734_v0, %v4634_v7  ;;  %7448 = vmatprep.mubr.f32.mxu0 %v26319_v62  ;;  %7557 = vmatprep.mubr.f32.mxu1 %v26319_v62 }
 0x259   : > { %v4736_v2 = vpop.f32.mrf.mxu0  ;;  %v5019_v29 = vpop.f32.mrf.mxu1 }
 0x25a   : > { %v4838_v28 = vadd.f32 %v4837_v31, %v4735_v35 }
 0x25b   : > { %v4915_v44 = vpop.f32.mrf.mxu0  ;;  %v5024_v6 = vpop.f32.mrf.mxu1  ;;  %7450 = vmatmul.mubr.f32.vlgmr.msra.gmra.mxu0 %v21941_v15  ;;  %7559 = vmatmul.mubr.f32.gmra.mxu1 %v21995_v16  ;;  %v4822_v15 = vadd.f32 %v4821_v34, %v4721_v22  ;;  %v4737_v34 = vadd.f32 %v4736_v2, %v22217_v5 }
 0x25c   : > { %v4916_v36 = vadd.f32 %v4915_v44, %v4811_v52  ;;  %7455 = vmatprep.mubr.f32.mxu0 %v26319_v62  ;;  %7564 = vmatprep.mubr.f32.mxu1 %v26319_v62 }
 0x25d   : > { %v4917_v17 = vpop.f32.mrf.mxu0  ;;  %v5026_v7 = vpop.f32.mrf.mxu1 }
 0x25e   : > { %v5011_v47 = vadd.f32 %v5010_v40, %v4916_v36  ;;  %v4918_v26 = vadd.f32 %v4917_v17, %v4813_v13  ;;  %v26407_v17 = vld [vmem:[#allocation77_spill] sm:$0xff] }
 0x25f   : > { %v4922_v8 = vpop.f32.mrf.mxu0  ;;  %v5031_v3 = vpop.f32.mrf.mxu1  ;;  %7457 = vmatmul.mubr.f32.gmra.mxu0 %v21967_v27  ;;  %7566 = vmatmul.mubr.f32.gmra.mxu1 %v22024_v42 }
 0x260   : > { %v22250_v52 = vadd.f32 %v5011_v47, %v21970_v33  ;;  %v5013_v63 = vadd.f32 %v5012_v30, %v4918_v26  ;;  %v4923_v61 = vadd.f32 %v4922_v8, %v4820_v4  ;;  %7462 = vmatprep.mubr.f32.mxu0 %v26319_v62  ;;  %8013 = vmatprep.mubr.f32.mxu1 %v26319_v62 }
 0x261   : > { %v4924_v31 = vpop.f32.mrf.mxu0  ;;  %v5033_v38 = vpop.f32.mrf.mxu1  ;;  %v4831_v33 = vadd.f32 %v22223_v56, %v4729_v49 }
 0x262   : > { %v22255_v54 = vadd.f32 %v5013_v63, %v21984_v57  ;;  %v5018_v58 = vadd.f32 %v5017_v46, %v4923_v61  ;;  %v4925_v55 = vadd.f32 %v4924_v31, %v4822_v15 }
 0x263   : > { %v4929_v27 = vpop.f32.mrf.mxu0  ;;  %v5268_v40 = vpop.f32.mrf.mxu1  ;;  %7464 = vmatmul.mubr.f32.gmra.mxu0 %v21995_v16 }
 0x264   : > { %26404 = vst [vmem:[#allocation85_spill] sm:$0xff] %v22255_v54  ;;  %v22261_v4 = vadd.f32 %v5018_v58, %v21997_v14  ;;  %v5020_v51 = vadd.f32 %v5019_v29, %v4925_v55  ;;  %v4930_v37 = vadd.f32 %v4929_v27, %v4829_v53  ;;  %7469 = vmatprep.mubr.f32.mxu0 %v26319_v62 }
 0x265   : > { %v4931_v30 = vpop.f32.mrf.mxu0  ;;  %v22264_v57 = vpop.f32.mrf.mxu1  ;;  %v4840_v53 = vadd.f32 %v22230_v39, %v4737_v34 }
 0x266   : > { %v22267_v0 = vadd.f32 %v5020_v51, %v22011_v9  ;;  %v5025_v46 = vadd.f32 %v5024_v6, %v4930_v37  ;;  %v4932_v23 = vadd.f32 %v4931_v30, %v4831_v33 }
 0x267   : > { %v4936_v16 = vpop.f32.mrf.mxu0  ;;  %v5275_v35 = vpop.f32.mrf.mxu1  ;;  %7471 = vmatmul.mubr.f32.gmra.mxu0 %v22024_v42 }
 0x268   : > { %26405 = vst [vmem:[#allocation86_spill] sm:$0xff] %v22267_v0  ;;  %v22271_v5 = vadd.f32 %v5025_v46, %v22027_v11  ;;  %v5027_v14 = vadd.f32 %v5026_v7, %v4932_v23  ;;  %v4937_v56 = vadd.f32 %v4936_v16, %v4838_v28  ;;  %7875 = vmatprep.mubr.f32.mxu0 %v26319_v62 }
 0x269   : > { %v4938_v2 = vpop.f32.mrf.mxu0  ;;  %v22275_v29 = vpop.f32.mrf.mxu1 }
 0x26a   : > { %v22278_v9 = vadd.f32 %v5027_v14, %v22042_v10  ;;  %v5032_v22 = vadd.f32 %v5031_v3, %v4937_v56  ;;  %v4939_v44 = vadd.f32 %v4938_v2, %v4840_v53 }
 0x26b   : > { %v5153_v6 = vpop.f32.mrf.mxu0  ;;  %v5282_v36 = vpop.f32.mrf.mxu1 }
 0x26c   : > { %26406 = vst [vmem:[#allocation87_spill] sm:$0xff] %v22278_v9  ;;  %v22281_v42 = vadd.f32 %v5032_v22, %v22057_v1  ;;  %v5034_v11 = vadd.f32 %v5033_v38, %v4939_v44  ;;  %v5269_v13 = vadd.f32 %v5268_v40, %v5153_v6 }
 0x26d   : > { %v22283_v28 = vpop.f32.mrf.mxu0  ;;  %v22285_v39 = vpop.f32.mrf.mxu1 }
 0x26e   : > { %v22288_v7 = vadd.f32 %v5034_v11, %v26407_v17 }
 0x26f   : > { %v5164_v47 = vpop.f32.mrf.mxu0  ;;  %v5289_v26 = vpop.f32.mrf.mxu1 }
 0x270   : > { %26408 = vst [vmem:[#allocation77_spill] sm:$0xff] %v22288_v7  ;;  %v5276_v10 = vadd.f32 %v5275_v35, %v5164_v47 }
 0x271   : > { %v22290_v49 = vpop.f32.mrf.mxu0  ;;  %v22292_v8 = vpop.f32.mrf.mxu1 }
 0x273   : > { %v5175_v3 = vpop.f32.mrf.mxu0  ;;  %v5466_v15 = vpop.f32.mrf.mxu1 }
 0x274   : > { %v5283_v1 = vadd.f32 %v5282_v36, %v5175_v3 }
 0x275   : > { %v22294_v63 = vpop.f32.mrf.mxu0  ;;  %v22296_v61 = vpop.f32.mrf.mxu1 }
 0x277   : > { %v5186_v31 = vpop.f32.mrf.mxu0  ;;  %v5475_v38 = vpop.f32.mrf.mxu1 }
 0x278   : > { %v5290_v58 = vadd.f32 %v5289_v26, %v5186_v31 }
 0x279   : > { %v22298_v55 = vpop.f32.mrf.mxu0  ;;  %v22300_v27 = vpop.f32.mrf.mxu1 }
 0x27b   : > { %v5366_v40 = vpop.f32.mrf.mxu0  ;;  %v5484_v33 = vpop.f32.mrf.mxu1 }
 0x27c   : > { %v5367_v34 = vadd.f32 %v5366_v40, %v5269_v13 }
 0x27d   : > { %v22302_v51 = vpop.f32.mrf.mxu0  ;;  %v22304_v37 = vpop.f32.mrf.mxu1 }
 0x27e   : > { %v5467_v30 = vadd.f32 %v5466_v15, %v5367_v34 }
 0x27f   : > { %v5374_v46 = vpop.f32.mrf.mxu0  ;;  %v5493_v23 = vpop.f32.mrf.mxu1 }
 0x280   : > { %v5375_v16 = vadd.f32 %v5374_v46, %v5276_v10 }
 0x281   : > { %v22306_v35 = vpop.f32.mrf.mxu0  ;;  %v22308_v14 = vpop.f32.mrf.mxu1 }
 0x282   : > { %v5476_v56 = vadd.f32 %v5475_v38, %v5375_v16 }
 0x283   : > { %v5382_v53 = vpop.f32.mrf.mxu0  ;;  %v5666_v2 = vpop.f32.mrf.mxu1 }
 0x284   : > { %v5383_v22 = vadd.f32 %v5382_v53, %v5283_v1 }
 0x285   : > { %v22310_v44 = vpop.f32.mrf.mxu0  ;;  %v22312_v6 = vpop.f32.mrf.mxu1 }
 0x286   : > { %v5485_v36 = vadd.f32 %v5484_v33, %v5383_v22 }
 0x287   : > { %v5390_v11 = vpop.f32.mrf.mxu0  ;;  %v5673_v13 = vpop.f32.mrf.mxu1 }
 0x288   : > { %v5391_v17 = vadd.f32 %v5390_v11, %v5290_v58 }
 0x289   : > { %v22314_v47 = vpop.f32.mrf.mxu0  ;;  %v22316_v26 = vpop.f32.mrf.mxu1 }
 0x28a   : > { %v5494_v10 = vadd.f32 %v5493_v23, %v5391_v17 }
 0x28b   : > { %v5571_v3 = vpop.f32.mrf.mxu0  ;;  %v5680_v15 = vpop.f32.mrf.mxu1 }
 0x28c   : > { %v5572_v31 = vadd.f32 %v5571_v3, %v5467_v30 }
 0x28d   : > { %v22318_v38 = vpop.f32.mrf.mxu0  ;;  %v22320_v40 = vpop.f32.mrf.mxu1 }
 0x28e   : > { %v5667_v1 = vadd.f32 %v5666_v2, %v5572_v31 }
 0x28f   : > { %v5578_v34 = vpop.f32.mrf.mxu0  ;;  %v5687_v46 = vpop.f32.mrf.mxu1 }
 0x290   : > { %v22323_v33 = vadd.f32 %v5667_v1, %v22157_v41  ;;  %v5579_v16 = vadd.f32 %v5578_v34, %v5476_v56 }
 0x291   : > { %v22325_v58 = vpop.f32.mrf.mxu0  ;;  %v22327_v53 = vpop.f32.mrf.mxu1 }
 0x292   : > { %26409 = vst [vmem:[#allocation88_spill] sm:$0xff] %v22327_v53  ;;  %v5674_v22 = vadd.f32 %v5673_v13, %v5579_v16 }
 0x293   : > { %v5585_v23 = vpop.f32.mrf.mxu0  ;;  %v5880_v11 = vpop.f32.mrf.mxu1 }
 0x294   : > { %v22330_v30 = vadd.f32 %v5674_v22, %v22167_v20  ;;  %v5586_v17 = vadd.f32 %v5585_v23, %v5485_v36 }
 0x295   : > { %v22332_v3 = vpop.f32.mrf.mxu0  ;;  %v22334_v2 = vpop.f32.mrf.mxu1 }
 0x296   : > { %26410 = vst [vmem:[#allocation89_spill] sm:$0xff] %v22334_v2  ;;  %v5681_v31 = vadd.f32 %v5680_v15, %v5586_v17  ;;  %v5278_v2 = vadd.f32 %v22275_v29, %v22290_v49 }
 0x297   : > { %v5592_v18 = vpop.f32.mrf.mxu0  ;;  %v5887_v41 = vpop.f32.mrf.mxu1 }
 0x298   : > { %v22337_v56 = vadd.f32 %v5681_v31, %v22179_v32  ;;  %v5593_v1 = vadd.f32 %v5592_v18, %v5494_v10 }
 0x299   : > { %v22339_v34 = vpop.f32.mrf.mxu0  ;;  %v22341_v13 = vpop.f32.mrf.mxu1 }
 0x29a   : > { %26411 = vst [vmem:[#allocation90_spill] sm:$0xff] %v22337_v56  ;;  %26412 = vst [vmem:[#allocation91_spill] sm:$0xff] %v22341_v13  ;;  %v5688_v16 = vadd.f32 %v5687_v46, %v5593_v1 }
 0x29b   : > { %v5765_v59 = vpop.f32.mrf.mxu0  ;;  %v5894_v20 = vpop.f32.mrf.mxu1 }
 0x29c   : > { %v22344_v36 = vadd.f32 %v5688_v16, %v22189_v12  ;;  %v5881_v22 = vadd.f32 %v5880_v11, %v5765_v59 }
 0x29d   : > { %v22346_v23 = vpop.f32.mrf.mxu0  ;;  %v22348_v15 = vpop.f32.mrf.mxu1 }
 0x29e   : > { %26413 = vst [vmem:[#allocation92_spill] sm:$0xff] %v22344_v36  ;;  %26414 = vst [vmem:[#allocation93_spill] sm:$0xff] %v22346_v23 }
 0x29f   : > { %26415 = vst [vmem:[#allocation94_spill] sm:$0xff] %v22348_v15  ;;  %v5776_v17 = vpop.f32.mrf.mxu0  ;;  %v5901_v19 = vpop.f32.mrf.mxu1 }
 0x2a0   : > { %v5888_v32 = vadd.f32 %v5887_v41, %v5776_v17 }
 0x2a1   : > { %v22350_v31 = vpop.f32.mrf.mxu0  ;;  %v22352_v18 = vpop.f32.mrf.mxu1 }
 0x2a2   : > { %26416 = vst [vmem:[#allocation95_spill] sm:$0xff] %v22350_v31  ;;  %26417 = vst [vmem:[#allocation96_spill] sm:$0xff] %v22352_v18 }
 0x2a3   : > { %v5787_v10 = vpop.f32.mrf.mxu0  ;;  %v6078_v21 = vpop.f32.mrf.mxu1 }
 0x2a4   : > { %v5895_v46 = vadd.f32 %v5894_v20, %v5787_v10 }
 0x2a5   : > { %v22354_v1 = vpop.f32.mrf.mxu0  ;;  %v22356_v48 = vpop.f32.mrf.mxu1 }
 0x2a6   : > { %26418 = vst [vmem:[#allocation97_spill] sm:$0xff] %v22354_v1  ;;  %26419 = vst [vmem:[#allocation98_spill] sm:$0xff] %v22356_v48 }
 0x2a7   : > { %v5798_v12 = vpop.f32.mrf.mxu0  ;;  %v6087_v59 = vpop.f32.mrf.mxu1 }
 0x2a8   : > { %v5902_v11 = vadd.f32 %v5901_v19, %v5798_v12 }
 0x2a9   : > { %v22358_v16 = vpop.f32.mrf.mxu0  ;;  %v22360_v50 = vpop.f32.mrf.mxu1 }
 0x2aa   : > { %26420 = vst [vmem:[#allocation99_spill] sm:$0xff] %v22358_v16  ;;  %26421 = vst [vmem:[#allocation100_spill] sm:$0xff] %v22360_v50 }
 0x2ab   : > { %v5978_v24 = vpop.f32.mrf.mxu0  ;;  %v6096_v41 = vpop.f32.mrf.mxu1 }
 0x2ac   : > { %v5979_v17 = vadd.f32 %v5978_v24, %v5881_v22 }
 0x2ad   : > { %v22362_v62 = vpop.f32.mrf.mxu0  ;;  %v22364_v7 = vpop.f32.mrf.mxu1 }
 0x2ae   : > { %26422 = vst [vmem:[#allocation101_spill] sm:$0xff] %v22362_v62  ;;  %26423 = vst [vmem:[#allocation102_spill] sm:$0xff] %v22364_v7  ;;  %v6079_v9 = vadd.f32 %v6078_v21, %v5979_v17 }
 0x2af   : > { %v5986_v20 = vpop.f32.mrf.mxu0  ;;  %v6105_v10 = vpop.f32.mrf.mxu1 }
 0x2b0   : > { %v5987_v0 = vadd.f32 %v5986_v20, %v5888_v32 }
 0x2b1   : > { %v22366_v54 = vpop.f32.mrf.mxu0  ;;  %v22368_v48 = vpop.f32.mrf.mxu1 }
 0x2b2   : > { %26424 = vst [vmem:[#allocation103_spill] sm:$0xff] %v22366_v54  ;;  %26425 = vst [vmem:[#allocation104_spill] sm:$0xff] %v22368_v48  ;;  %v6088_v19 = vadd.f32 %v6087_v59, %v5987_v0 }
 0x2b3   : > { %v5994_v12 = vpop.f32.mrf.mxu0  ;;  %v6278_v18 = vpop.f32.mrf.mxu1 }
 0x2b4   : > { %v5995_v16 = vadd.f32 %v5994_v12, %v5895_v46 }
 0x2b5   : > { %v22370_v50 = vpop.f32.mrf.mxu0  ;;  %v22372_v15 = vpop.f32.mrf.mxu1 }
 0x2b6   : > { %26426 = vst [vmem:[#allocation105_spill] sm:$0xff] %v22370_v50  ;;  %26427 = vst [vmem:[#allocation106_spill] sm:$0xff] %v22372_v15  ;;  %v6097_v24 = vadd.f32 %v6096_v41, %v5995_v16 }
 0x2b7   : > { %v6002_v22 = vpop.f32.mrf.mxu0  ;;  %v6285_v62 = vpop.f32.mrf.mxu1 }
 0x2b8   : > { %v6003_v7 = vadd.f32 %v6002_v22, %v5902_v11 }
 0x2b9   : > { %v22374_v21 = vpop.f32.mrf.mxu0  ;;  %v22376_v17 = vpop.f32.mrf.mxu1 }
 0x2ba   : > { %26428 = vst [vmem:[#allocation107_spill] sm:$0xff] %v22374_v21  ;;  %26429 = vst [vmem:[#allocation108_spill] sm:$0xff] %v22376_v17  ;;  %v6106_v32 = vadd.f32 %v6105_v10, %v6003_v7 }
 0x2bb   : > { %v6183_v20 = vpop.f32.mrf.mxu0  ;;  %v6292_v54 = vpop.f32.mrf.mxu1 }
 0x2bc   : > { %v6184_v48 = vadd.f32 %v6183_v20, %v6079_v9 }
 0x2bd   : > { %v22378_v0 = vpop.f32.mrf.mxu0  ;;  %v22380_v59 = vpop.f32.mrf.mxu1 }
 0x2be   : > { %26430 = vst [vmem:[#allocation109_spill] sm:$0xff] %v22378_v0  ;;  %26431 = vst [vmem:[#allocation110_spill] sm:$0xff] %v22380_v59  ;;  %v6279_v46 = vadd.f32 %v6278_v18, %v6184_v48 }
 0x2bf   : > { %v6190_v12 = vpop.f32.mrf.mxu0  ;;  %v6299_v50 = vpop.f32.mrf.mxu1 }
 0x2c0   : > { %v22383_v16 = vadd.f32 %v6279_v46, %v22250_v52  ;;  %v6191_v41 = vadd.f32 %v6190_v12, %v6088_v19 }
 0x2c1   : > { %v22385_v11 = vpop.f32.mrf.mxu0  ;;  %v22387_v22 = vpop.f32.mrf.mxu1 }
 0x2c2   : > { %26432 = vst [vmem:[#allocation111_spill] sm:$0xff] %v22383_v16  ;;  %26433 = vst [vmem:[#allocation112_spill] sm:$0xff] %v22385_v11  ;;  %v6286_v17 = vadd.f32 %v6285_v62, %v6191_v41 }
 0x2c3   : > { %26434 = vst [vmem:[#allocation113_spill] sm:$0xff] %v22387_v22  ;;  %v6197_v7 = vpop.f32.mrf.mxu0  ;;  %v6536_v10 = vpop.f32.mrf.mxu1 }
 0x2c4   : > { %v22390_v9 = vadd.f32 %v6286_v17, %v22261_v4  ;;  %v6198_v20 = vadd.f32 %v6197_v7, %v6097_v24 }
 0x2c5   : > { %v22392_v15 = vpop.f32.mrf.mxu0  ;;  %v6538_v48 = vpop.f32.mrf.mxu1 }
 0x2c6   : > { %26435 = vst [vmem:[#allocation114_spill] sm:$0xff] %v22390_v9  ;;  %26436 = vst [vmem:[#allocation115_spill] sm:$0xff] %v22392_v15  ;;  %v6293_v18 = vadd.f32 %v6292_v54, %v6198_v20 }
 0x2c7   : > { %v6204_v59 = vpop.f32.mrf.mxu0  ;;  %v6543_v0 = vpop.f32.mrf.mxu1 }
 0x2c8   : > { %v22395_v52 = vadd.f32 %v6293_v18, %v22271_v5  ;;  %v6205_v19 = vadd.f32 %v6204_v59, %v6106_v32 }
 0x2c9   : > { %v22397_v46 = vpop.f32.mrf.mxu0  ;;  %v6545_v12 = vpop.f32.mrf.mxu1 }
 0x2ca   : > { %26437 = vst [vmem:[#allocation116_spill] sm:$0xff] %v22395_v52  ;;  %26438 = vst [vmem:[#allocation117_spill] sm:$0xff] %v22397_v46  ;;  %v6300_v62 = vadd.f32 %v6299_v50, %v6205_v19 }
 0x2cb   : > { %v6421_v41 = vpop.f32.mrf.mxu0  ;;  %v6550_v16 = vpop.f32.mrf.mxu1 }
 0x2cc   : > { %v22400_v4 = vadd.f32 %v6300_v62, %v22281_v42 }
 0x2cd   : > { %v6423_v24 = vpop.f32.mrf.mxu0  ;;  %v22402_v17 = vpop.f32.mrf.mxu1 }
 0x2ce   : > { %26439 = vst [vmem:[#allocation118_spill] sm:$0xff] %v22400_v4  ;;  %v5271_v4 = vadd.f32 %v22264_v57, %v22283_v28  ;;  %v5377_v57 = vadd.f32 %v22306_v35, %v5278_v2  ;;  %v6537_v28 = vadd.f32 %v6536_v10, %v6421_v41 }
 0x2cf   : > { %v6432_v7 = vpop.f32.mrf.mxu0  ;;  %v22404_v54 = vpop.f32.mrf.mxu1 }
 0x2d0   : > { %v5369_v11 = vadd.f32 %v22302_v51, %v5271_v4  ;;  %v6539_v4 = vadd.f32 %v6538_v48, %v6423_v24  ;;  %v5478_v29 = vadd.f32 %v22300_v27, %v5377_v57  ;;  %v6544_v49 = vadd.f32 %v6543_v0, %v6432_v7 }
 0x2d1   : > { %v6434_v20 = vpop.f32.mrf.mxu0  ;;  %v22406_v9 = vpop.f32.mrf.mxu1 }
 0x2d2   : > { %v5469_v23 = vadd.f32 %v22296_v61, %v5369_v11  ;;  %v6546_v48 = vadd.f32 %v6545_v12, %v6434_v20 }
 0x2d3   : > { %v6443_v5 = vpop.f32.mrf.mxu0  ;;  %v6734_v32 = vpop.f32.mrf.mxu1 }
 0x2d4   : > { %v5574_v53 = vadd.f32 %v22318_v38, %v5469_v23  ;;  %v5581_v38 = vadd.f32 %v22325_v58, %v5478_v29  ;;  %v22434_v23 = vpop.permute.xlu0 %7609  ;;  %v6551_v58 = vadd.f32 %v6550_v16, %v6443_v5 }
 0x2d5   : > { %v6445_v59 = vpop.f32.mrf.mxu0  ;;  %v6736_v18 = vpop.f32.mrf.mxu1  ;;  %26443 = vst [vmem:[#allocation122_spill] sm:$0xff] %v22434_v23 }
 0x2d6   : > { %v5669_v35 = vadd.f32 %v22312_v6, %v5574_v53  ;;  %v6553_v20 = vadd.f32 %v22402_v17, %v6445_v59 }
 0x2d7   : > { %v6454_v52 = vpop.f32.mrf.mxu0  ;;  %v6743_v50 = vpop.f32.mrf.mxu1 }
 0x2d8   : > { %v6305_v6 = vadd.f32 %v5669_v35, %v22162_v60 }
 0x2d9   : > { %v22408_v19 = vpop.f32.mrf.mxu0  ;;  %v22410_v22 = vpop.f32.mrf.mxu1 }
 0x2db   : > { %v6634_v42 = vpop.f32.mrf.mxu0  ;;  %v22412_v62 = vpop.f32.mrf.mxu1 }
 0x2dc   : > { %v6635_v45 = vadd.f32 %v6634_v42, %v6537_v28 }
 0x2dd   : > { %v6636_v46 = vpop.f32.mrf.mxu0  ;;  %v22416_v15 = vpop.f32.mrf.mxu1 }
 0x2de   : > { %26440 = vst [vmem:[#allocation119_spill] sm:$0xff] %v22416_v15  ;;  %v6637_v61 = vadd.f32 %v6636_v46, %v6539_v4  ;;  %v6735_v24 = vadd.f32 %v6734_v32, %v6635_v45  ;;  %v22442_v45 = vpop.permute.xlu1 %7604 }
 0x2df   : > { %v6642_v21 = vpop.f32.mrf.mxu0  ;;  %v22419_v1 = vpop.f32.mrf.mxu1  ;;  %26444 = vst [vmem:[#allocation123_spill] sm:$0xff] %v22442_v45 }
 0x2e0   : > { %26441 = vst [vmem:[#allocation120_spill] sm:$0xff] %v22419_v1  ;;  %v5285_v1 = vadd.f32 %v22285_v39, %v22294_v63  ;;  %v6643_v41 = vadd.f32 %v6642_v21, %v6544_v49  ;;  %v5292_v39 = vadd.f32 %v22292_v8, %v22298_v55  ;;  %v6737_v7 = vadd.f32 %v6736_v18, %v6637_v61 }
 0x2e1   : > { %v6644_v13 = vpop.f32.mrf.mxu0  ;;  %v22421_v31 = vpop.f32.mrf.mxu1  ;;  %v5676_v21 = vadd.f32 %v22316_v26, %v5581_v38 }
 0x2e2   : > { %26442 = vst [vmem:[#allocation121_spill] sm:$0xff] %v22421_v31  ;;  %v5385_v11 = vadd.f32 %v22310_v44, %v5285_v1  ;;  %v6645_v0 = vadd.f32 %v6644_v13, %v6546_v48  ;;  %v5393_v44 = vadd.f32 %v22314_v47, %v5292_v39  ;;  %v6744_v55 = vadd.f32 %v6743_v50, %v6643_v41 }
 0x2e3   : > { %v6650_v25 = vpop.f32.mrf.mxu0  ;;  %v6934_v36 = vpop.f32.mrf.mxu1  ;;  %v6558_v47 = vadd.f32 %v22404_v54, %v6454_v52  ;;  %v6309_v59 = vadd.f32 %v5676_v21, %v22173_v43 }
 0x2e4   : > { %v5487_v53 = vadd.f32 %v22304_v37, %v5385_v11  ;;  %v6651_v32 = vadd.f32 %v6650_v25, %v6551_v58  ;;  %v22447_v37 = vpop.permute.xlu0 %7594  ;;  %v6746_v57 = vadd.f32 %v22410_v22, %v6645_v0  ;;  %v26450_v58 = vld [vmem:[#allocation90_spill] sm:$0xff] }
 0x2e5   : > { %v6652_v56 = vpop.f32.mrf.mxu0  ;;  %v6936_v51 = vpop.f32.mrf.mxu1 }
 0x2e6   : > { %v5588_v13 = vadd.f32 %v22332_v3, %v5487_v53  ;;  %v6653_v50 = vadd.f32 %v6652_v56, %v6553_v20  ;;  %v6753_v22 = vadd.f32 %v22412_v62, %v6651_v32 }
 0x2e7   : > { %v6658_v31 = vpop.f32.mrf.mxu0  ;;  %v6941_v15 = vpop.f32.mrf.mxu1 }
 0x2e8   : > { %v6659_v28 = vadd.f32 %v6658_v31, %v6558_v47  ;;  %v22462_v31 = vpop.permute.xlu1 %7599 }
 0x2e9   : > { %v6660_v2 = vpop.f32.mrf.mxu0  ;;  %v6943_v10 = vpop.f32.mrf.mxu1  ;;  %26445 = vst [vmem:[#allocation124_spill] sm:$0xff] %v22462_v31 }
 0x2eb   : > { %v6839_v63 = vpop.f32.mrf.mxu0  ;;  %v6948_v27 = vpop.f32.mrf.mxu1 }
 0x2ec   : > { %v6840_v46 = vadd.f32 %v6839_v63, %v6735_v24  ;;  %v26447_v24 = vld [vmem:[#allocation120_spill] sm:$0xff] }
 0x2ed   : > { %v6841_v1 = vpop.f32.mrf.mxu0  ;;  %v6950_v42 = vpop.f32.mrf.mxu1 }
 0x2ee   : > { %v6935_v12 = vadd.f32 %v6934_v36, %v6840_v46  ;;  %v6842_v8 = vadd.f32 %v6841_v1, %v6737_v7  ;;  %v5496_v36 = vadd.f32 %v22308_v14, %v5393_v44 }
 0x2ef   : > { %v6846_v60 = vpop.f32.mrf.mxu0  ;;  %v6955_v18 = vpop.f32.mrf.mxu1 }
 0x2f0   : > { %v7572_v16 = vadd.f32 %v6935_v12, %v22323_v33  ;;  %v6937_v5 = vadd.f32 %v6936_v51, %v6842_v8  ;;  %v6847_v26 = vadd.f32 %v6846_v60, %v6744_v55  ;;  %v5683_v33 = vadd.f32 %v22320_v40, %v5588_v13  ;;  %v26451_v12 = vld [vmem:[#allocation121_spill] sm:$0xff]  ;;  %v26452_v13 = vld [vmem:[#allocation88_spill] sm:$0xff] }
 0x2f1   : > { %v6848_v3 = vpop.f32.mrf.mxu0  ;;  %v6957_v4 = vpop.f32.mrf.mxu1  ;;  %v6560_v51 = vadd.f32 %v22406_v9, %v22408_v19  ;;  %v5595_v40 = vadd.f32 %v22339_v34, %v5496_v36  ;;  %v26446_v19 = vld [vmem:[#allocation119_spill] sm:$0xff]  ;;  %v26454_v36 = vld [vmem:[#allocation92_spill] sm:$0xff] }
 0x2f2   : > { %v22453_v17 = vadd.f32 %v22447_v37, %v7572_v16  ;;  %v7573_v25 = vadd.f32 %v6937_v5, %v6305_v6  ;;  %v6942_v52 = vadd.f32 %v6941_v15, %v6847_v26  ;;  %v6849_v54 = vadd.f32 %v6848_v3, %v6746_v57 }
 0x2f3   : > { %v6853_v14 = vpop.f32.mrf.mxu0  ;;  %v22460_v56 = vpop.f32.mrf.mxu1  ;;  %v6661_v61 = vadd.f32 %v6660_v2, %v6560_v51  ;;  %v6755_v62 = vadd.f32 %v26446_v19, %v6653_v50  ;;  %v5690_v20 = vadd.f32 %v26452_v13, %v5595_v40 }
 0x2f4   : > { %v22465_v29 = vmul.f32 100.0, %v22453_v17  ;;  %v22468_v15 = vadd.f32 %v22447_v37, %v7573_v25  ;;  %v7576_v43 = vadd.f32 %v6942_v52, %v22330_v30  ;;  %v6944_v49 = vadd.f32 %v6943_v10, %v6849_v54  ;;  %v26448_v10 = vld [vmem:[#allocation83_spill] sm:$0xff] }
 0x2f5   : > { %v6854_v9 = vadd.f32 %v6853_v14, %v6753_v22  ;;  %v6855_v11 = vpop.f32.mrf.mxu0  ;;  %v22473_v35 = vpop.f32.mrf.mxu1  ;;  %v6762_v30 = vadd.f32 %v26447_v24, %v6659_v28  ;;  %v6313_v39 = vadd.f32 %v5683_v33, %v26448_v10  ;;  %v6764_v8 = vadd.f32 %v26451_v12, %v6661_v61  ;;  %v7772_v28 = vld [vmem:[%s26092_s3] sm:$0xff]  ;;  %v26456_v33 = vld [vmem:[#allocation84_spill] sm:$0xff] }
 0x2f6   : > { %v7660_v38 = vmul.f32 1.442695, %v22465_v29  ;;  %v22477_v48 = vmul.f32 100.0, %v22468_v15  ;;  %v22480_v41 = vadd.f32 %v22462_v31, %v7576_v43  ;;  %v7577_v34 = vadd.f32 %v6944_v49, %v6309_v59 }
 0x2f7   : > { %v6949_v2 = vadd.f32 %v6948_v27, %v6854_v9  ;;  %v6856_v63 = vadd.f32 %v6855_v11, %v6755_v62  ;;  %v6860_v0 = vpop.f32.mrf.mxu0  ;;  %v22484_v46 = vpop.f32.mrf.mxu1  ;;  %v6317_v51 = vadd.f32 %v5690_v20, %v26456_v33  ;;  %v26466_v20 = vld [vmem:[#allocation99_spill] sm:$0xff]  ;;  %vm7644_vm7 = vcmp.gt.f32.partialorder %v22465_v29, 20.0 }
 0x2f8   : > { %19983 = vpow2.f32 %v7660_v38  ;;  %v7662_v7 = vmul.f32 1.442695, %v22477_v48  ;;  %v22488_v44 = vmul.f32 100.0, %v22480_v41  ;;  %v6861_v6 = vadd.f32 %v6860_v0, %v6762_v30  ;;  %v7773_v38 = vld [vmem:[%s26092_s3 + $0x8] sm:$0xff] }
 0x2f9   : > { %v22491_v53 = vadd.f32 %v22462_v31, %v7577_v34  ;;  %v7580_v1 = vadd.f32 %v6949_v2, %v26450_v58  ;;  %v6951_v21 = vadd.f32 %v6950_v42, %v6856_v63  ;;  %v6862_v27 = vpop.f32.mrf.mxu0  ;;  %v22495_v55 = vpop.f32.mrf.mxu1  ;;  %v26461_v34 = vld [vmem:[#allocation89_spill] sm:$0xff]  ;;  %v26462_v63 = vld [vmem:[#allocation95_spill] sm:$0xff]  ;;  %vm7645_vm6 = vcmp.gt.f32.partialorder %v22477_v48, 20.0 }
 0x2fa   : > { %19985 = vpow2.f32 %v7662_v7  ;;  %v7668_v47 = vmul.f32 1.442695, %v22488_v44  ;;  %v6956_v32 = vadd.f32 %v6955_v18, %v6861_v6  ;;  %v6863_v26 = vadd.f32 %v6862_v27, %v6764_v8  ;;  %v26463_v0 = vld [vmem:[#allocation91_spill] sm:$0xff] }
 0x2fb   : > { %26449 = vst [vmem:[#allocation119_spill] sm:$0xff] %v22491_v53  ;;  %v22500_v60 = vmul.f32 100.0, %v22491_v53  ;;  %v22503_v16 = vadd.f32 %v22442_v45, %v7580_v1  ;;  %v7581_v5 = vadd.f32 %v6951_v21, %v6313_v39  ;;  %v22505_v42 = vpop.f32.mrf.mxu0  ;;  %v22507_v57 = vpop.f32.mrf.mxu1  ;;  %v26460_v39 = vld [vmem:[#allocation93_spill] sm:$0xff]  ;;  %v5890_v7 = vadd.f32 %v26463_v0, %v26462_v63  ;;  %v26465_v21 = vld [vmem:[#allocation94_spill] sm:$0xff] }
 0x2fc   : > { %19987 = vpow2.f32 %v7668_v47  ;;  %v7584_v50 = vadd.f32 %v6956_v32, %v26454_v36  ;;  %v6958_v52 = vadd.f32 %v6957_v4, %v6863_v26  ;;  %v7795_v4 = vsel %vm7793_vm9, %v7772_v28, 0  ;;  %v26464_v1 = vld [vmem:[#allocation97_spill] sm:$0xff]  ;;  %v26467_v47 = vld [vmem:[#allocation96_spill] sm:$0xff]  ;;  %v26469_v36 = vld [vmem:[#allocation103_spill] sm:$0xff] }
 0x2fd   : > { %26453 = vst [vmem:[#allocation120_spill] sm:$0xff] %v22503_v16  ;;  %v7670_v18 = vmul.f32 1.442695, %v22500_v60  ;;  %v22515_v3 = vmul.f32 100.0, %v22503_v16  ;;  %v22518_v25 = vadd.f32 %v22442_v45, %v7581_v5  ;;  %v22520_v54 = vpop.f32.mrf.mxu0  ;;  %v22522_v59 = vpop.f32.mrf.mxu1  ;;  %v22552_v10 = vand.u32 4294901760, %v7795_v4  ;;  %v26468_v5 = vld [vmem:[#allocation101_spill] sm:$0xff] }
 0x2fe   : > { %v22526_v22 = vadd.f32 %v22434_v23, %v7584_v50  ;;  %v7585_v9 = vadd.f32 %v6958_v52, %v6317_v51  ;;  %v5883_v2 = vadd.f32 %v26461_v34, %v26460_v39  ;;  %v5897_v12 = vadd.f32 %v26465_v21, %v26464_v1  ;;  %v26470_v52 = vld [vmem:[#allocation105_spill] sm:$0xff]  ;;  %v26475_v21 = vld [vmem:[#allocation100_spill] sm:$0xff] }
 0x2ff   : > { %26455 = vst [vmem:[#allocation83_spill] sm:$0xff] %v22518_v25  ;;  %19989 = vpow2.f32 %v7670_v18  ;;  %v7676_v14 = vmul.f32 1.442695, %v22515_v3  ;;  %v22530_v43 = vmul.f32 100.0, %v22518_v25  ;;  %v22532_v49 = vpop.f32.mrf.mxu0  ;;  %v22534_v40 = vpop.f32.mrf.mxu1  ;;  %26459 = vst [vmem:[#allocation88_spill] sm:$0xff] %v22552_v10  ;;  %v7798_v27 = vsel %vm7793_vm9, %v7773_v38, 0 }
 0x300   : > { %26457 = vst [vmem:[#allocation90_spill] sm:$0xff] %v22526_v22  ;;  %v22538_v61 = vmul.f32 100.0, %v22526_v22  ;;  %v22550_v30 = vadd.f32 %v22434_v23, %v7585_v9  ;;  %v5904_v32 = vadd.f32 %v26467_v47, %v26466_v20  ;;  %v5981_v26 = vadd.f32 %v26468_v5, %v5883_v2  ;;  %v26472_v38 = vld [vmem:[#allocation107_spill] sm:$0xff]  ;;  %v26476_v20 = vld [vmem:[#allocation102_spill] sm:$0xff]  ;;  %v26486_v25 = vld [vmem:[#allocation113_spill] sm:$0xff] }
 0x301   : > { %19991 = vpow2.f32 %v7676_v14  ;;  %v7678_v19 = vmul.f32 1.442695, %v22530_v43  ;;  %v22541_v62 = vpop.f32.mrf.mxu0  ;;  %v22543_v11 = vpop.f32.mrf.mxu1  ;;  %v5989_v50 = vadd.f32 %v26469_v36, %v5890_v7  ;;  %v5997_v33 = vadd.f32 %v26470_v52, %v5897_v12  ;;  %v26474_v7 = vld [vmem:[#allocation98_spill] sm:$0xff]  ;;  %v26478_v36 = vld [vmem:[#allocation109_spill] sm:$0xff] }
 0x302   : > { %v7684_v24 = vmul.f32 1.442695, %v22538_v61  ;;  %26458 = vst [vmem:[#allocation121_spill] sm:$0xff] %v22550_v30  ;;  %v22565_v8 = vmul.f32 100.0, %v22550_v30  ;;  %v22579_v9 = vsub.f32 %v7795_v4, %v22552_v10  ;;  %v22586_v2 = vand.u32 4294901760, %v7798_v27  ;;  %v26483_v23 = vld [vmem:[#allocation106_spill] sm:$0xff] }
 0x303   : > { %19993 = vpow2.f32 %v7678_v19  ;;  %v22558_v6 = vpop.f32.mrf.mxu0  ;;  %v22560_v58 = vpop.f32.mrf.mxu1  ;;  %v6081_v1 = vadd.f32 %v26474_v7, %v5981_v26  ;;  %v6090_v12 = vadd.f32 %v26475_v21, %v5989_v50  ;;  %v6099_v47 = vadd.f32 %v26476_v20, %v5997_v33  ;;  %v26481_v7 = vld [vmem:[#allocation115_spill] sm:$0xff]  ;;  %v26482_v20 = vld [vmem:[#allocation117_spill] sm:$0xff] }
 0x304   : > { %19995 = vpow2.f32 %v7684_v24  ;;  %v7686_v14 = vmul.f32 1.442695, %v22565_v8  ;;  %26471 = vst [vmem:[#allocation92_spill] sm:$0xff] %v22579_v9  ;;  %v6005_v24 = vadd.f32 %v26472_v38, %v5904_v32  ;;  %26473 = vst [vmem:[#allocation84_spill] sm:$0xff] %v22586_v2  ;;  %v22596_v5 = vand.u32 4294901760, %v22579_v9 }
 0x305   : > { %v19984_v13 = vpop.eup %19983  ;;  %v22572_v28 = vpop.f32.mrf.mxu0  ;;  %v6186_v52 = vadd.f32 %v26478_v36, %v6081_v1  ;;  %v22603_v50 = vsub.f32 %v7798_v27, %v22586_v2  ;;  %v6200_v21 = vadd.f32 %v26481_v7, %v6099_v47  ;;  %v26485_v7 = vld [vmem:[#allocation110_spill] sm:$0xff]  ;;  %vm7648_vm8 = vcmp.gt.f32.partialorder %v22488_v44, 20.0 }
 0x306   : > { %v22574_v18 = vpop.f32.mrf.mxu1  ;;  %v7692_v51 = vadd.f32 1.0, %v19984_v13  ;;  %26477 = vst [vmem:[#allocation93_spill] sm:$0xff] %v22596_v5  ;;  %v7879_v27 = vsub.f32 %v22579_v9, %v22596_v5  ;;  %vm7649_vm10 = vcmp.gt.f32.partialorder %v22500_v60, 20.0  ;;  %vm7652_vm11 = vcmp.gt.f32.partialorder %v22515_v3, 20.0 }
 0x307   : > { %v19986_v19 = vpop.eup %19985  ;;  %v22582_v39 = vpop.f32.mrf.mxu0  ;;  %v6281_v22 = vadd.f32 %v26483_v23, %v6186_v52  ;;  %v22620_v47 = vand.u32 4294901760, %v22603_v50  ;;  %vm7653_vm12 = vcmp.gt.f32.partialorder %v22530_v43, 20.0  ;;  %vm7656_vm15 = vcmp.gt.f32.partialorder %v22538_v61, 20.0 }
 0x308   : > { %v22584_v34 = vpop.f32.mrf.mxu1  ;;  %19997 = vlog2.f32 %v7692_v51  ;;  %v7693_v63 = vadd.f32 1.0, %v19986_v19  ;;  %v26479_v51 = vld [vmem:[#allocation104_spill] sm:$0xff]  ;;  %vm7657_vm0 = vcmp.gt.f32.partialorder %v22565_v8, 20.0 }
 0x309   : > { %v19988_v0 = vpop.eup %19987  ;;  %19999 = vpow2.f32 %v7686_v14  ;;  %v22590_v13 = vpop.f32.mrf.mxu0  ;;  %v6108_v19 = vadd.f32 %v26479_v51, %v6005_v24  ;;  %v7774_v14 = vld [vmem:[%s26092_s3 + $0x10] sm:$0x1] }
 0x30a   : > { %v22592_v4 = vpop.f32.mrf.mxu1  ;;  %20001 = vlog2.f32 %v7693_v63  ;;  %v7696_v32 = vadd.f32 1.0, %v19988_v0  ;;  %v26480_v63 = vld [vmem:[#allocation112_spill] sm:$0xff]  ;;  %v7801_v2 = vsel %vm7793_vm9, %v7774_v14, 0 }
 0x30b   : > { %v7246_v38 = vpop.f32.mrf.mxu0  ;;  %v6193_v0 = vadd.f32 %v26480_v63, %v6090_v12  ;;  %v6207_v1 = vadd.f32 %v26482_v20, %v6108_v19  ;;  %v26484_v19 = vld [vmem:[#allocation108_spill] sm:$0xff]  ;;  %v6295_v20 = vadd.f32 %v26485_v7, %v6200_v21 }
 0x30c   : > { %v22600_v26 = vpop.f32.mrf.mxu1  ;;  %v19990_v33 = vpop.eup %19989  ;;  %20003 = vlog2.f32 %v7696_v32 }
 0x30d   : > { %v7697_v36 = vadd.f32 1.0, %v19990_v33  ;;  %v7248_v24 = vpop.f32.mrf.mxu0  ;;  %v6288_v33 = vadd.f32 %v26484_v19, %v6193_v0  ;;  %v6302_v5 = vadd.f32 %v26486_v25, %v6207_v1  ;;  %v22632_v0 = vand.u32 4294901760, %v7879_v27  ;;  %v26488_v25 = vld [vmem:[#allocation86_spill] sm:$0xff]  ;;  %v26489_v1 = vld [vmem:[#allocation87_spill] sm:$0xff]  ;;  %v26490_v19 = vld [vmem:[#allocation77_spill] sm:$0xff] }
 0x30e   : > { %v22611_v51 = vpop.f32.mrf.mxu1  ;;  %v19992_v10 = vpop.eup %19991  ;;  %v7151_v27 = vadd.f32 %v22473_v35, %v22520_v54 }
 0x30f   : > { %20005 = vlog2.f32 %v7697_v36  ;;  %v7700_v30 = vadd.f32 1.0, %v19992_v10  ;;  %v7254_v12 = vpop.f32.mrf.mxu0  ;;  %v22627_v10 = vand.u32 4294901760, %v7801_v2  ;;  %v26487_v36 = vld [vmem:[#allocation85_spill] sm:$0xff]  ;;  %v22645_v7 = vadd.f32 %v6302_v5, %v26490_v19 }
 0x310   : > { %v22617_v63 = vpop.f32.mrf.mxu1  ;;  %v19994_v32 = vpop.eup %19993  ;;  %v22630_v31 = vadd.f32 %v6281_v22, %v26487_v36  ;;  %v7163_v5 = vadd.f32 %v22507_v57, %v22558_v6 }
 0x311   : > { %v19996_v45 = vpop.eup %19995  ;;  %20007 = vlog2.f32 %v7700_v30  ;;  %v7701_v14 = vadd.f32 1.0, %v19994_v32  ;;  %v7256_v9 = vpop.f32.mrf.mxu0  ;;  %v22637_v30 = vadd.f32 %v6288_v33, %v26488_v25  ;;  %v22640_v32 = vadd.f32 %v6295_v20, %v26489_v1 }
 0x312   : > { %v22625_v23 = vpop.f32.mrf.mxu1  ;;  %v7704_v52 = vadd.f32 1.0, %v19996_v45  ;;  %v7149_v45 = vadd.f32 %v22460_v56, %v22505_v42  ;;  %v22651_v33 = vsub.f32 %v7801_v2, %v22627_v10  ;;  %v7156_v56 = vadd.f32 %v22484_v46, %v22532_v49 }
 0x313   : > { %20009 = vlog2.f32 %v7701_v14  ;;  %v7262_v16 = vpop.f32.mrf.mxu0  ;;  %v7158_v42 = vadd.f32 %v22495_v55, %v22541_v62  ;;  %v7165_v25 = vadd.f32 %v22522_v59, %v22572_v28  ;;  %v7249_v2 = vadd.f32 %v7248_v24, %v7151_v27 }
 0x314   : > { %v7546_v53 = vpop.f32.mrf.mxu1  ;;  %20011 = vlog2.f32 %v7704_v52  ;;  %v7247_v35 = vadd.f32 %v7246_v38, %v7149_v45  ;;  %v7170_v46 = vadd.f32 %v22534_v40, %v22582_v39  ;;  %v7255_v49 = vadd.f32 %v7254_v12, %v7156_v56 }
 0x315   : > { %v19998_v22 = vpop.eup %19997  ;;  %v7264_v14 = vpop.f32.mrf.mxu0  ;;  %v7257_v57 = vadd.f32 %v7256_v9, %v7158_v42  ;;  %v7263_v6 = vadd.f32 %v7262_v16, %v7163_v5  ;;  %v7172_v59 = vadd.f32 %v22543_v11, %v22590_v13  ;;  %v7349_v40 = vadd.f32 %v22574_v18, %v7249_v2 }
 0x316   : > { %v7548_v36 = vpop.f32.mrf.mxu1  ;;  %v20000_v20 = vpop.eup %19999  ;;  %v7709_v19 = vmul.f32 0.6931472, %v19998_v22  ;;  %v7265_v38 = vadd.f32 %v7264_v14, %v7165_v25  ;;  %v7347_v28 = vadd.f32 %v22560_v58, %v7247_v35  ;;  %v7356_v56 = vadd.f32 %v22584_v34, %v7255_v49 }
 0x317   : > { %v20002_v54 = vpop.eup %20001  ;;  %v7705_v52 = vadd.f32 1.0, %v20000_v20  ;;  %v7270_v1 = vpop.f32.mrf.mxu0  ;;  %v7358_v58 = vadd.f32 %v22592_v4, %v7257_v57  ;;  %v7365_v42 = vadd.f32 %v22600_v26, %v7263_v6 }
 0x318   : > { %v7553_v21 = vpop.f32.mrf.mxu1  ;;  %v7711_v55 = vmul.f32 0.6931472, %v20002_v54  ;;  %v7271_v27 = vadd.f32 %v7270_v1, %v7170_v46  ;;  %v7740_v39 = vmul.f32 0.01, %v7709_v19  ;;  %v7367_v5 = vadd.f32 %v22611_v51, %v7265_v38  ;;  %v26491_v19 = vld [vmem:[#allocation111_spill] sm:$0xff] }
 0x319   : > { %v20004_v62 = vpop.eup %20003  ;;  %20013 = vlog2.f32 %v7705_v52  ;;  %v7272_v45 = vpop.f32.mrf.mxu0 }
 0x31a   : > { %v7717_v24 = vmul.f32 0.6931472, %v20004_v62  ;;  %v7741_v22 = vmul.f32 0.01, %v7711_v55  ;;  %v7273_v16 = vadd.f32 %v7272_v45, %v7172_v59  ;;  %v7555_v9 = vpop.f32.mrf.mxu1  ;;  %v7374_v26 = vadd.f32 %v22617_v63, %v7271_v27 }
 0x31b   : > { %v7451_v20 = vpop.f32.mrf.mxu0  ;;  %v22688_v1 = vsel %vm7644_vm7, %v22453_v17, %v7740_v39 }
 0x31c   : > { %v20006_v12 = vpop.eup %20005  ;;  %v7452_v14 = vadd.f32 %v7451_v20, %v7347_v28  ;;  %v7744_v11 = vmul.f32 0.01, %v7717_v24  ;;  %v22682_v34 = vsel %vm7645_vm6, %v22468_v15, %v7741_v22  ;;  %v7560_v44 = vpop.f32.mrf.mxu1  ;;  %v7376_v48 = vadd.f32 %v22625_v23, %v7273_v16  ;;  %v26492_v28 = vld [vmem:[#allocation119_spill] sm:$0xff]  ;;  %v26493_v20 = vld [vmem:[#allocation114_spill] sm:$0xff] }
 0x31d   : > { %v7453_v13 = vpop.f32.mrf.mxu0  ;;  %v7719_v18 = vmul.f32 0.6931472, %v20006_v12  ;;  %v22695_v6 = vand.u32 4294901760, %v22682_v34  ;;  %v22709_v22 = vand.u32 4294901760, %v22688_v1 }
 0x31e   : > { %v20008_v35 = vpop.eup %20007  ;;  %v7547_v54 = vadd.f32 %v7546_v53, %v7452_v14  ;;  %v7454_v52 = vadd.f32 %v7453_v13, %v7349_v40  ;;  %v7760_v25 = vsel %vm7648_vm8, %v22480_v41, %v7744_v11  ;;  %vm15462_vm8 = vcmask 1040384  }
 0x31f   : > { %v7458_v4 = vpop.f32.mrf.mxu0  ;;  %v7725_v2 = vmul.f32 0.6931472, %v20008_v35  ;;  %v7745_v51 = vmul.f32 0.01, %v7719_v18  ;;  %v22692_v63 = vand.u32 4294901760, %v7760_v25  ;;  %v26495_v18 = vld [vmem:[#allocation124_spill] sm:$0xff] }
 0x320   : > { %v20010_v53 = vpop.eup %20009  ;;  %v7574_v46 = vadd.f32 %v7547_v54, %v26491_v19  ;;  %v7549_v41 = vadd.f32 %v7548_v36, %v7454_v52  ;;  %v7459_v49 = vadd.f32 %v7458_v4, %v7356_v56  ;;  %v26494_v56 = vld [vmem:[#allocation120_spill] sm:$0xff] }
 0x321   : > { %v20012_v15 = vpop.eup %20011  ;;  %v7460_v55 = vpop.f32.mrf.mxu0  ;;  %v7727_v62 = vmul.f32 0.6931472, %v20010_v53  ;;  %v7748_v57 = vmul.f32 0.01, %v7725_v2  ;;  %v22706_v24 = vsel %vm7649_vm10, %v26492_v28, %v7745_v51  ;;  %v22722_v11 = vsub.f32 %v7760_v25, %v22692_v63 }
 0x322   : > { %v22698_v17 = vadd.f32 %v22447_v37, %v7574_v46  ;;  %v7575_v29 = vadd.f32 %v7549_v41, %v22630_v31  ;;  %v7554_v38 = vadd.f32 %v7553_v21, %v7459_v49  ;;  %v7461_v45 = vadd.f32 %v7460_v55, %v7358_v58  ;;  %v7562_v21 = vpop.f32.mrf.mxu1  ;;  %v26497_v41 = vld [vmem:[#allocation116_spill] sm:$0xff] }
 0x323   : > { %v7465_v36 = vpop.f32.mrf.mxu0  ;;  %v7733_v23 = vmul.f32 0.6931472, %v20012_v15  ;;  %v7749_v59 = vmul.f32 0.01, %v7727_v62  ;;  %v7764_v60 = vsel %vm7652_vm11, %v26494_v56, %v7748_v57  ;;  %v26498_v57 = vld [vmem:[#allocation123_spill] sm:$0xff]  ;;  %vm15453_vm10 = vcmask 138240  }
 0x324   : > { %v22712_v27 = vmul.f32 100.0, %v22698_v17  ;;  %v22715_v31 = vadd.f32 %v22447_v37, %v7575_v29  ;;  %v7578_v40 = vadd.f32 %v7554_v38, %v26493_v20  ;;  %v7556_v39 = vadd.f32 %v7555_v9, %v7461_v45  ;;  %v26496_v9 = vld [vmem:[#allocation83_spill] sm:$0xff]  ;;  %v7567_v53 = vpop.f32.mrf.mxu1 }
 0x325   : > { %v7466_v12 = vadd.f32 %v7465_v36, %v7365_v42  ;;  %v7467_v16 = vpop.f32.mrf.mxu0  ;;  %v7752_v14 = vmul.f32 0.01, %v7733_v23  ;;  %v7765_v42 = vsel %vm7653_vm12, %v26496_v9, %v7749_v59  ;;  %v22744_v55 = vand.u32 4294901760, %v7764_v60  ;;  %v26499_v36 = vld [vmem:[#allocation118_spill] sm:$0xff]  ;;  %v26500_v59 = vld [vmem:[#allocation121_spill] sm:$0xff] }
 0x326   : > { %v20014_v13 = vpop.eup %20013  ;;  %v7664_v58 = vmul.f32 1.442695, %v22712_v27  ;;  %v22726_v37 = vmul.f32 100.0, %v22715_v31  ;;  %v22729_v35 = vadd.f32 %v26495_v18, %v7578_v40  ;;  %v7579_v54 = vadd.f32 %v7556_v39, %v22637_v30  ;;  %v7569_v45 = vpop.f32.mrf.mxu1 }
 0x327   : > { %v7561_v3 = vadd.f32 %v7560_v44, %v7466_v12  ;;  %v7468_v52 = vadd.f32 %v7467_v16, %v7367_v5  ;;  %v7472_v4 = vpop.f32.mrf.mxu0  ;;  %v7735_v25 = vmul.f32 0.6931472, %v20014_v13  ;;  %v26502_v12 = vld [vmem:[#allocation122_spill] sm:$0xff]  ;;  %v22774_v13 = vand.u32 4294901760, %v7765_v42 }
 0x328   : > { %20015 = vpow2.f32 %v7664_v58  ;;  %v7666_v2 = vmul.f32 1.442695, %v22726_v37  ;;  %v22737_v51 = vmul.f32 100.0, %v22729_v35  ;;  %v7473_v19 = vadd.f32 %v7472_v4, %v7374_v26 }
 0x329   : > { %v22740_v46 = vadd.f32 %v26495_v18, %v7579_v54  ;;  %v7582_v43 = vadd.f32 %v7561_v3, %v26497_v41  ;;  %v7563_v49 = vadd.f32 %v7562_v21, %v7468_v52  ;;  %v7474_v15 = vpop.f32.mrf.mxu0  ;;  %v7753_v30 = vmul.f32 0.01, %v7735_v25  ;;  %v26501_v21 = vld [vmem:[#allocation90_spill] sm:$0xff] }
 0x32a   : > { %20017 = vpow2.f32 %v7666_v2  ;;  %v7672_v5 = vmul.f32 1.442695, %v22737_v51  ;;  %v7568_v44 = vadd.f32 %v7567_v53, %v7473_v19  ;;  %v7475_v38 = vadd.f32 %v7474_v15, %v7376_v48 }
 0x32b   : > { %v22747_v62 = vmul.f32 100.0, %v22740_v46  ;;  %v22750_v29 = vadd.f32 %v26498_v57, %v7582_v43  ;;  %v7583_v26 = vadd.f32 %v7563_v49, %v22640_v32  ;;  %v7769_v28 = vsel %vm7657_vm0, %v26500_v59, %v7753_v30 }
 0x32c   : > { %20019 = vpow2.f32 %v7672_v5  ;;  %v7586_v23 = vadd.f32 %v7568_v44, %v26499_v36  ;;  %v7768_v20 = vsel %vm7656_vm15, %v26501_v21, %v7752_v14  ;;  %v7570_v48 = vadd.f32 %v7569_v45, %v7475_v38 }
 0x32d   : > { %v7674_v40 = vmul.f32 1.442695, %v22747_v62  ;;  %v22762_v39 = vmul.f32 100.0, %v22750_v29  ;;  %v22765_v32 = vadd.f32 %v26498_v57, %v7583_v26  ;;  %v22770_v56 = vand.u32 4294901760, %v7769_v28 }
 0x32e   : > { %v22768_v16 = vadd.f32 %v26502_v12, %v7586_v23  ;;  %v22772_v8 = vand.u32 4294901760, %v7768_v20  ;;  %v22781_v58 = vand.u32 4294901760, %v22706_v24  ;;  %v7587_v9 = vadd.f32 %v7570_v48, %v22645_v7 }
 0x32f   : > { %20021 = vpow2.f32 %v7674_v40  ;;  %v7680_v61 = vmul.f32 1.442695, %v22762_v39  ;;  %v22778_v14 = vmul.f32 100.0, %v22765_v32  ;;  %7828 = vmatprep.subr.mxu0 %v22770_v56  ;;  %v22792_v3 = vsub.f32 %v7764_v60, %v22744_v55 }
 0x330   : > { %v22784_v18 = vmul.f32 100.0, %v22768_v16  ;;  %v22789_v54 = vsub.f32 %v7768_v20, %v22772_v8  ;;  %7830 = vmatpush1.msra.mxu0 %v22772_v8  ;;  %v22797_v4 = vsub.f32 %v7769_v28, %v22770_v56  ;;  %v22800_v25 = vsub.f32 %v7765_v42, %v22774_v13 }
 0x331   : > { %20023 = vpow2.f32 %v7680_v61  ;;  %v7682_v52 = vmul.f32 1.442695, %v22778_v14  ;;  %v22804_v2 = vadd.f32 %v26502_v12, %v7587_v9  ;;  %7832 = vmatprep.subr.mxu0 %v22774_v13  ;;  %v22810_v53 = vsub.f32 %v22682_v34, %v22695_v6 }
 0x332   : > { %v7688_v7 = vmul.f32 1.442695, %v22784_v18  ;;  %v7941_v60 = vand.u32 4294901760, %v22789_v54  ;;  %7834 = vmatpush1.msra.mxu0 %v22744_v55  ;;  %v7935_v19 = vand.u32 4294901760, %v22797_v4  ;;  %v7947_v42 = vand.u32 4294901760, %v22800_v25 }
 0x333   : > { %20025 = vpow2.f32 %v7682_v52  ;;  %v7953_v41 = vand.u32 4294901760, %v22792_v3  ;;  %v22817_v43 = vmul.f32 100.0, %v22804_v2  ;;  %7836 = vmatprep.subr.mxu0 %v22781_v58  ;;  %v22825_v49 = vsub.f32 %v22706_v24, %v22781_v58 }
 0x334   : > { %20027 = vpow2.f32 %v7688_v7  ;;  %v7942_v34 = vsub.f32 %v22789_v54, %v7941_v60  ;;  %7838 = vmatpush1.msra.mxu0 %v22692_v63  ;;  %v22830_v30 = vsub.f32 %v22688_v1, %v22709_v22  ;;  %v7936_v5 = vsub.f32 %v22797_v4, %v7935_v19 }
 0x335   : > { %v20016_v15 = vpop.eup %20015  ;;  %v7948_v44 = vsub.f32 %v22800_v25, %v7947_v42  ;;  %v7965_v57 = vand.u32 4294901760, %v22722_v11  ;;  %v7690_v24 = vmul.f32 1.442695, %v22817_v43  ;;  %7840 = vmatprep.subr.mxu0 %v22695_v6  ;;  %v7954_v26 = vsub.f32 %v22792_v3, %v7953_v41 }
 0x336   : > { %v7959_v1 = vand.u32 4294901760, %v22825_v49  ;;  %v22846_v38 = vand.u32 4294901760, %v22651_v33  ;;  %7842 = vmatpush1.msra.mxu0 %v22709_v22  ;;  %v7937_v36 = vand.u32 4294901760, %v7936_v5  ;;  %v7943_v23 = vand.u32 4294901760, %v7942_v34 }
 0x337   : > { %v20018_v45 = vpop.eup %20017  ;;  %7881 = vmatmul.mubr.f32.vlgmr.msra.gmra.mxu0 %v22632_v0  ;;  %8061 = vmatprep.subr.mxu0 %v22797_v4  ;;  %v7966_v28 = vsub.f32 %v22722_v11, %v7965_v57  ;;  %v26240_v21 = vand.u32 4294901760, %v22810_v53  ;;  %20029 = vpow2.f32 %v7690_v24  ;;  %v7949_v40 = vand.u32 4294901760, %v7948_v44 }
 0x338   : > { %v7960_v59 = vsub.f32 %v22825_v49, %v7959_v1  ;;  %7938 = vmatprep.subr.mxu1 %v7937_v36  ;;  %8064 = vmatpush1.msra.mxu0 %v22789_v54  ;;  %v26503_v48 = vsub.f32 %v22603_v50, %v22620_v47  ;;  %v26241_v61 = vand.u32 4294901760, %v22830_v30  ;;  %v7955_v52 = vand.u32 4294901760, %v7954_v26 }
 0x339   : > { %v20020_v20 = vpop.eup %20019  ;;  %7944 = vmatpush1.msra.mxu1 %v7943_v23  ;;  %8067 = vmatprep.subr.mxu0 %v22800_v25  ;;  %v7972_v7 = vsub.f32 %v22810_v53, %v26240_v21  ;;  %v7901_v34 = vsub.f32 %v22651_v33, %v22846_v38  ;;  %v26504_v5 = vmov 0.0   ;;  %v7695_v23 = vadd.f32 1.0, %v20018_v45 }
 0x33a   : > { %v22862_v12 = vand.u32 4294901760, %v26503_v48  ;;  %v7698_v9 = vadd.f32 1.0, %v20020_v20  ;;  %7950 = vmatprep.subr.mxu1 %v7949_v40  ;;  %7886 = vmatprep.mubr.f32.mxu0 %v26504_v5  ;;  %v7961_v44 = vand.u32 4294901760, %v7960_v59  ;;  %v7978_v24 = vsub.f32 %v22830_v30, %v26241_v61 }
 0x33b   : > { %7956 = vmatpush1.msra.mxu1 %v7955_v52  ;;  %8070 = vmatpush1.msra.mxu0 %v22792_v3  ;;  %v7967_v26 = vand.u32 4294901760, %v7966_v28  ;;  %v7973_v48 = vand.u32 4294901760, %v7972_v7  ;;  %v7694_v40 = vadd.f32 1.0, %v20016_v15  ;;  %v22878_v59 = vand.u32 4294901760, %v7901_v34  ;;  %v26506_v7 = vld [vmem:[#allocation92_spill] sm:$0xff] }
 0x33c   : > { %v20022_v36 = vpop.eup %20021  ;;  %7892 = vmatmul.mubr.f32.gmra.mxu0 %v22862_v12  ;;  %7962 = vmatprep.subr.mxu1 %v7961_v44  ;;  %20031 = vlog2.f32 %v7698_v9  ;;  %v7979_v45 = vand.u32 4294901760, %v7978_v24  ;;  %v26507_v44 = vld [vmem:[#allocation84_spill] sm:$0xff]  ;;  %v26509_v24 = vand.u32 4294901760, %v22830_v30  ;;  %vm7650_vm1 = vcmp.gt.f32.partialorder %v22737_v51, 20.0 }
 0x33d   : > { %v7699_v20 = vadd.f32 1.0, %v20022_v36  ;;  %8073 = vmatprep.subr.mxu0 %v22825_v49  ;;  %7968 = vmatpush1.msra.mxu1 %v7967_v26  ;;  %vm7654_vm13 = vcmp.gt.f32.partialorder %v22762_v39, 20.0  ;;  %vm7655_vm2 = vcmp.gt.f32.partialorder %v22778_v14, 20.0  ;;  %vm7658_vm3 = vcmp.gt.f32.partialorder %v22784_v18, 20.0 }
 0x33e   : > { %v20024_v21 = vpop.eup %20023  ;;  %8076 = vmatpush1.msra.mxu0 %v22722_v11  ;;  %7974 = vmatprep.subr.mxu1 %v7973_v48  ;;  %vm7651_vm4 = vcmp.gt.f32.partialorder %v22747_v62, 20.0  ;;  %vm7647_vm5 = vcmp.gt.f32.partialorder %v22726_v37, 20.0  ;;  %vm7646_vm6 = vcmp.gt.f32.partialorder %v22712_v27, 20.0  ;;  %vm7659_vm7 = vcmp.gt.f32.partialorder %v22817_v43, 20.0 }
 0x33f   : > { %20033 = vlog2.f32 %v7699_v20  ;;  %v7702_v61 = vadd.f32 1.0, %v20024_v21  ;;  %8079 = vmatprep.subr.mxu0 %v22810_v53  ;;  %7897 = vmatprep.mubr.f32.mxu0 %v26504_v5  ;;  %v26505_v21 = vld [vmem:[#allocation88_spill] sm:$0xff] }
 0x340   : > { %v20026_v28 = vpop.eup %20025  ;;  %20035 = vlog2.f32 %v7695_v23  ;;  %7980 = vmatpush1.msra.mxu1 %v7979_v45  ;;  %8082 = vmatpush1.msra.mxu0 %v22830_v30 }
 0x341   : > { %v20028_v52 = vpop.eup %20027  ;;  %20037 = vlog2.f32 %v7702_v61  ;;  %v7703_v15 = vadd.f32 1.0, %v20026_v28  ;;  %7903 = vmatmul.mubr.f32.gmra.mxu0 %v22878_v59  ;;  %8015 = vmatmul.mubr.f32.vlgmr.msra.gmra.mxu1 %v26505_v21 }
 0x342   : > { %20039 = vlog2.f32 %v7694_v40  ;;  %v7706_v9 = vadd.f32 1.0, %v20028_v52  ;;  %8165 = vmatprep.subr.mxu1 %v22770_v56  ;;  %8267 = vmatprep.subr.mxu0 %v7935_v19 }
 0x343   : > { %20041 = vlog2.f32 %v7703_v15  ;;  %8167 = vmatpush1.msra.mxu1 %v22772_v8  ;;  %8020 = vmatprep.mubr.f32.mxu1 %v26504_v5 }
 0x344   : > { %20043 = vlog2.f32 %v7706_v9  ;;  %8169 = vmatprep.subr.mxu1 %v22774_v13  ;;  %8115 = vmatprep.mubr.f32.mxu0 %v26504_v5  ;;  %v20030_v61 = vpop.eup %20029 }
 0x345   : > { %8171 = vmatpush1.msra.mxu1 %v22744_v55  ;;  %8118 = vmatmul.mubr.f32.vlgmr.msra.gmra.mxu0 %v26506_v7  ;;  %v7707_v34 = vadd.f32 1.0, %v20030_v61 }
 0x346   : > { %8022 = vmatmul.mubr.f32.gmra.mxu1 %v26507_v44  ;;  %8173 = vmatprep.subr.mxu1 %v22781_v58 }
 0x347   : > { %8271 = vmatpush1.msra.mxu0 %v7941_v60  ;;  %8175 = vmatpush1.msra.mxu1 %v22692_v63  ;;  %20045 = vlog2.f32 %v7707_v34 }
 0x348   : > { %8275 = vmatprep.subr.mxu0 %v7947_v42  ;;  %8177 = vmatprep.subr.mxu1 %v22695_v6  ;;  %v26508_v42 = vand.u32 4294901760, %v22810_v53 }
 0x349   : > { %8279 = vmatpush1.msra.mxu0 %v7953_v41  ;;  %8027 = vmatprep.mubr.f32.mxu1 %v26504_v5  ;;  %v20032_v4 = vpop.eup %20031 }
 0x34a   : > { %8123 = vmatprep.mubr.f32.mxu0 %v26504_v5  ;;  %8179 = vmatpush1.msra.mxu1 %v22709_v22  ;;  %v7721_v49 = vmul.f32 0.6931472, %v20032_v4 }
 0x34b   : > { %8283 = vmatprep.subr.mxu0 %v7959_v1  ;;  %8029 = vmatmul.mubr.f32.gmra.mxu1 %v22627_v10 }
 0x34c   : > { %v20034_v54 = vpop.eup %20033  ;;  %8126 = vmatmul.mubr.f32.gmra.mxu0 %v22603_v50  ;;  %8375 = vmatprep.subr.mxu1 %v22770_v56  ;;  %v26510_v56 = vld [vmem:[#allocation93_spill] sm:$0xff]  ;;  %v7746_v48 = vmul.f32 0.01, %v7721_v49 }
 0x34d   : > { %v20036_v25 = vpop.eup %20035  ;;  %8287 = vmatpush1.msra.mxu0 %v7965_v57  ;;  %8131 = vmatprep.mubr.f32.mxu0 %v26504_v5  ;;  %v7723_v60 = vmul.f32 0.6931472, %v20034_v54 }
 0x34e   : > { %v20038_v3 = vpop.eup %20037  ;;  %8291 = vmatprep.subr.mxu0 %v26508_v42  ;;  %8212 = vmatprep.mubr.f32.mxu1 %v26504_v5  ;;  %v7715_v36 = vmul.f32 0.6931472, %v20036_v25 }
 0x34f   : > { %v20040_v19 = vpop.eup %20039  ;;  %v7729_v41 = vmul.f32 0.6931472, %v20038_v3  ;;  %8295 = vmatpush1.msra.mxu0 %v26509_v24  ;;  %8216 = vmatmul.mubr.f32.vlgmr.msra.gmra.mxu1 %v26510_v56  ;;  %v7747_v26 = vmul.f32 0.01, %v7723_v60 }
 0x350   : > { %v20042_v1 = vpop.eup %20041  ;;  %8134 = vmatmul.mubr.f32.gmra.mxu0 %v22651_v33  ;;  %8377 = vmatpush1.msra.mxu1 %v22772_v8  ;;  %v7713_v20 = vmul.f32 0.6931472, %v20040_v19 }
 0x351   : > { %v20044_v11 = vpop.eup %20043  ;;  %v7731_v57 = vmul.f32 0.6931472, %v20042_v1  ;;  %v7750_v23 = vmul.f32 0.01, %v7729_v41  ;;  %8379 = vmatprep.subr.mxu1 %v22774_v13  ;;  %8221 = vmatprep.mubr.f32.mxu1 %v26504_v5  ;;  %v7743_v13 = vmul.f32 0.01, %v7715_v36  ;;  %v7763_v18 = vsel %vm7651_vm4, %v22740_v46, %v7747_v26 }
 0x352   : > { %v7737_v53 = vmul.f32 0.6931472, %v20044_v11  ;;  %8381 = vmatpush1.msra.mxu1 %v22744_v55  ;;  %8328 = vmatprep.mubr.f32.mxu0 %v26504_v5  ;;  %v7742_v45 = vmul.f32 0.01, %v7713_v20  ;;  %v22963_v51 = vand.u32 4294901760, %v7763_v18 }
 0x353   : > { %v7751_v30 = vmul.f32 0.01, %v7731_v57  ;;  %8383 = vmatprep.subr.mxu1 %v22781_v58  ;;  %8225 = vmatmul.mubr.f32.gmra.mxu1 %v22620_v47  ;;  %v7766_v40 = vsel %vm7654_vm13, %v22750_v29, %v7750_v23  ;;  %v7759_v46 = vsel %vm7647_vm5, %v22715_v31, %v7743_v13 }
 0x354   : > { %v7754_v8 = vmul.f32 0.01, %v7737_v53  ;;  %8330 = vmatmul.mubr.f32.vlgmr.msra.gmra.mxu0 %v26505_v21  ;;  %8385 = vmatpush1.msra.mxu1 %v22692_v63  ;;  %v20046_v39 = vpop.eup %20045  ;;  %v22954_v62 = vand.u32 4294901760, %v7766_v40  ;;  %v7758_v31 = vsel %vm7646_vm6, %v22698_v17, %v7742_v45  ;;  %v22988_v15 = vsub.f32 %v7763_v18, %v22963_v51 }
 0x355   : > { %v7767_v55 = vsel %vm7655_vm2, %v22765_v32, %v7751_v30  ;;  %8387 = vmatprep.subr.mxu1 %v22695_v6  ;;  %8230 = vmatprep.mubr.f32.mxu1 %v26504_v5  ;;  %v7739_v63 = vmul.f32 0.6931472, %v20046_v39  ;;  %v7762_v6 = vsel %vm7650_vm1, %v22729_v35, %v7746_v48  ;;  %v22984_v43 = vand.u32 4294901760, %v7758_v31 }
 0x356   : > { %v7770_v14 = vsel %vm7658_vm3, %v22768_v16, %v7754_v8  ;;  %v22942_v58 = vand.u32 4294901760, %v7767_v55  ;;  %8389 = vmatpush1.msra.mxu1 %v22709_v22  ;;  %8335 = vmatprep.mubr.f32.mxu0 %v26504_v5  ;;  %v22967_v37 = vand.u32 4294901760, %v7762_v6  ;;  %v22974_v16 = vand.u32 4294901760, %v7759_v46 }
 0x357   : > { %v22947_v29 = vand.u32 4294901760, %v7770_v14  ;;  %8234 = vmatmul.mubr.f32.gmra.mxu1 %v22846_v38  ;;  %v7755_v22 = vmul.f32 0.01, %v7739_v63  ;;  %v22980_v52 = vsub.f32 %v7766_v40, %v22954_v62  ;;  %v23007_v25 = vsub.f32 %v7758_v31, %v22984_v43 }
 0x358   : > { %8337 = vmatmul.mubr.f32.gmra.mxu0 %v26507_v44  ;;  %8422 = vmatprep.mubr.f32.mxu1 %v26504_v5  ;;  %v22971_v27 = vsub.f32 %v7767_v55, %v22942_v58  ;;  %v22999_v34 = vsub.f32 %v7759_v46, %v22974_v16  ;;  %v8600_v60 = vand.u32 4294901760, %v22988_v15  ;;  %v9208_v55 = vpop.permute.xlu0 %9207 }
 0x359   : > { %v22961_v32 = vsub.f32 %v7770_v14, %v22947_v29  ;;  %8342 = vmatprep.mubr.f32.mxu0 %v26504_v5  ;;  %v7771_v35 = vsel %vm7659_vm7, %v22804_v2, %v7755_v22  ;;  %v22992_v2 = vsub.f32 %v7762_v6, %v22967_v37  ;;  %v8594_v54 = vand.u32 4294901760, %v22980_v52  ;;  %v26513_v22 = vld [vmem:[#allocation9_spill] sm:$0xff] }
 0x35a   : > { %v22977_v28 = vand.u32 4294901760, %v7771_v35  ;;  %v8588_v61 = vand.u32 4294901760, %v22971_v27  ;;  %v8612_v49 = vand.u32 4294901760, %v22999_v34  ;;  %v8601_v11 = vsub.f32 %v22988_v15, %v8600_v60 }
 0x35b   : > { %8424 = vmatmul.mubr.f32.vlgmr.msra.gmra.mxu1 %v26505_v21  ;;  %v8582_v17 = vand.u32 4294901760, %v22961_v32  ;;  %v8606_v41 = vand.u32 4294901760, %v22992_v2  ;;  %v8595_v24 = vsub.f32 %v22980_v52, %v8594_v54  ;;  %v8618_v57 = vand.u32 4294901760, %v23007_v25 }
 0x35c   : > { %8344 = vmatmul.mubr.f32.gmra.mxu0 %v22627_v10  ;;  %8429 = vmatprep.mubr.f32.mxu1 %v26504_v5  ;;  %v8575_v9 = vsub.f32 %v7771_v35, %v22977_v28  ;;  %v8589_v42 = vsub.f32 %v22971_v27, %v8588_v61  ;;  %v8613_v26 = vsub.f32 %v22999_v34, %v8612_v49  ;;  %v9215_v40 = vsel %vm1298_vm14, %v9208_v55, 0  ;;  %v9212_v63 = vpop.permute.xlu0 %9211  ;;  %v26515_v35 = vld [vmem:[#allocation8_spill] sm:$0xff] }
 0x35d   : > { %8469 = vmatprep.subr.mxu0 %v22977_v28  ;;  %8516 = vmatprep.mubr.f32.mxu0 %v26504_v5  ;;  %v8583_v3 = vsub.f32 %v22961_v32, %v8582_v17  ;;  %v8607_v53 = vsub.f32 %v22992_v2, %v8606_v41  ;;  %v8596_v20 = vand.u32 4294901760, %v8595_v24  ;;  %v8619_v30 = vsub.f32 %v23007_v25, %v8618_v57  ;;  %v26528_v24 = vld [vmem:[#allocation22_spill] sm:$0xff] }
 0x35e   : > { %8471 = vmatpush1.msra.mxu0 %v22947_v29  ;;  %v8576_v4 = vand.u32 4294901760, %v8575_v9  ;;  %v8590_v23 = vand.u32 4294901760, %v8589_v42  ;;  %v8614_v8 = vand.u32 4294901760, %v8613_v26  ;;  %v23094_v14 = vand.u32 4294901760, %v9215_v40  ;;  %v26527_v42 = vld [vmem:[#allocation18_spill] sm:$0xff] }
 0x35f   : > { %8431 = vmatmul.mubr.f32.gmra.mxu1 %v26507_v44  ;;  %8473 = vmatprep.subr.mxu0 %v22942_v58  ;;  %v8584_v36 = vand.u32 4294901760, %v8583_v3  ;;  %v8608_v48 = vand.u32 4294901760, %v8607_v53  ;;  %v8620_v13 = vand.u32 4294901760, %v8619_v30 }
 0x360   : > { %8436 = vmatprep.mubr.f32.mxu1 %v26504_v5  ;;  %8475 = vmatpush1.msra.mxu0 %v22954_v62  ;;  %v8577_v19 = vsub.f32 %v8575_v9, %v8576_v4  ;;  %v23111_v45 = vsub.f32 %v9215_v40, %v23094_v14 }
 0x361   : > { %8477 = vmatprep.subr.mxu0 %v22963_v51 }
 0x362   : > { %8479 = vmatpush1.msra.mxu0 %v22967_v37  ;;  %v8578_v1 = vand.u32 4294901760, %v8577_v19  ;;  %v26526_v19 = vld [vmem:[#allocation16_spill] sm:$0xff] }
 0x363   : > { %8438 = vmatmul.mubr.f32.gmra.mxu1 %v22627_v10  ;;  %8481 = vmatprep.subr.mxu0 %v22974_v16 }
 0x364   : > { %8483 = vmatpush1.msra.mxu0 %v22984_v43  ;;  %8654 = vmatprep.mubr.f32.mxu1 %v26504_v5 }
 0x365   : > { %8522 = vmatmul.mubr.f32.vlgmr.msra.gmra.mxu0 %v22632_v0  ;;  %8579 = vmatprep.subr.mxu1 %v8578_v1  ;;  %v8602_v0 = vand.u32 4294901760, %v8601_v11 }
 0x366   : > { %8702 = vmatprep.subr.mxu0 %v8575_v9  ;;  %8585 = vmatpush1.msra.mxu1 %v8584_v36  ;;  %v26520_v9 = vld [vmem:[#allocation14_spill] sm:$0xff] }
 0x367   : > { %8705 = vmatpush1.msra.mxu0 %v22961_v32  ;;  %8591 = vmatprep.subr.mxu1 %v8590_v23  ;;  %v26514_v32 = vld [vmem:[#allocation5_spill] sm:$0xff] }
 0x368   : > { %8708 = vmatprep.subr.mxu0 %v22971_v27  ;;  %8527 = vmatprep.mubr.f32.mxu0 %v26504_v5 }
 0x369   : > { %8597 = vmatpush1.msra.mxu1 %v8596_v20  ;;  %8711 = vmatpush1.msra.mxu0 %v22980_v52  ;;  %v26516_v52 = vld [vmem:[#allocation4_spill] sm:$0xff] }
 0x36a   : > { %8533 = vmatmul.mubr.f32.gmra.mxu0 %v22862_v12  ;;  %8603 = vmatprep.subr.mxu1 %v8602_v0  ;;  %v9206_v12 = vpop.permute.xlu1 %9205  ;;  %v26529_v0 = vld [vmem:[#allocation21_spill] sm:$0xff] }
 0x36b   : > { %8714 = vmatprep.subr.mxu0 %v22988_v15  ;;  %8609 = vmatpush1.msra.mxu1 %v8608_v48  ;;  %v26530_v48 = vld [vmem:[#allocation19_spill] sm:$0xff] }
 0x36c   : > { %8717 = vmatpush1.msra.mxu0 %v22992_v2  ;;  %8615 = vmatprep.subr.mxu1 %v8614_v8  ;;  %v26519_v2 = vld [vmem:[#allocation10_spill] sm:$0xff] }
 0x36d   : > { %8720 = vmatprep.subr.mxu0 %v22999_v34  ;;  %8538 = vmatprep.mubr.f32.mxu0 %v26504_v5  ;;  %v26522_v34 = vld [vmem:[#allocation11_spill] sm:$0xff] }
 0x36e   : > { %8621 = vmatpush1.msra.mxu1 %v8620_v13  ;;  %8723 = vmatpush1.msra.mxu0 %v23007_v25  ;;  %v9210_v39 = vpop.permute.xlu1 %9209  ;;  %v26525_v25 = vld [vmem:[#allocation12_spill] sm:$0xff] }
 0x36f   : > { %8544 = vmatmul.mubr.f32.gmra.mxu0 %v22878_v59  ;;  %8656 = vmatmul.mubr.f32.vlgmr.msra.gmra.mxu1 %v26505_v21  ;;  %v9213_v59 = vsel %vm1298_vm14, %v9206_v12, 0  ;;  %v9217_v18 = vsel %vm1298_vm14, %v9210_v39, 0 }
 0x370   : > { %8806 = vmatprep.subr.mxu1 %v22977_v28  ;;  %8908 = vmatprep.subr.mxu0 %v8576_v4  ;;  %v26523_v4 = vld [vmem:[#allocation17_spill] sm:$0xff] }
 0x371   : > { %8808 = vmatpush1.msra.mxu1 %v22947_v29  ;;  %8661 = vmatprep.mubr.f32.mxu1 %v26504_v5 }
 0x372   : > { %8810 = vmatprep.subr.mxu1 %v22942_v58  ;;  %8756 = vmatprep.mubr.f32.mxu0 %v26504_v5  ;;  %v10446_v3 = vpop.permute.xlu1 %10445 }
 0x373   : > { %8812 = vmatpush1.msra.mxu1 %v22954_v62  ;;  %8759 = vmatmul.mubr.f32.vlgmr.msra.gmra.mxu0 %v26506_v7  ;;  %v23077_v7 = vand.u32 4294901760, %v9213_v59  ;;  %v10453_v1 = vsel %vm1298_vm14, %v10446_v3, 0 }
 0x374   : > { %8663 = vmatmul.mubr.f32.gmra.mxu1 %v26507_v44  ;;  %8814 = vmatprep.subr.mxu1 %v22963_v51  ;;  %v23267_v36 = vand.u32 4294901760, %v10453_v1 }
 0x375   : > { %8912 = vmatpush1.msra.mxu0 %v8582_v17  ;;  %8816 = vmatpush1.msra.mxu1 %v22967_v37 }
 0x376   : > { %8916 = vmatprep.subr.mxu0 %v8588_v61  ;;  %8818 = vmatprep.subr.mxu1 %v22974_v16  ;;  %v26521_v61 = vld [vmem:[#allocation13_spill] sm:$0xff]  ;;  %v23277_v53 = vsub.f32 %v10453_v1, %v23267_v36 }
 0x377   : > { %8920 = vmatpush1.msra.mxu0 %v8594_v54  ;;  %8668 = vmatprep.mubr.f32.mxu1 %v26504_v5  ;;  %v26524_v54 = vld [vmem:[#allocation15_spill] sm:$0xff] }
 0x378   : > { %8764 = vmatprep.mubr.f32.mxu0 %v26504_v5  ;;  %8820 = vmatpush1.msra.mxu1 %v22984_v43  ;;  %v23293_v13 = vand.u32 4294901760, %v23277_v53 }
 0x379   : > { %8924 = vmatprep.subr.mxu0 %v8600_v60  ;;  %8670 = vmatmul.mubr.f32.gmra.mxu1 %v22627_v10  ;;  %v10450_v60 = vpop.permute.xlu1 %10449 }
 0x37a   : > { %8767 = vmatmul.mubr.f32.gmra.mxu0 %v22603_v50  ;;  %9016 = vmatprep.subr.mxu1 %v22977_v28  ;;  %v23092_v50 = vsub.f32 %v9213_v59, %v23077_v7  ;;  %v10457_v20 = vsel %vm1298_vm14, %v10450_v60, 0  ;;  %v10531_v40 = vsub.f32 %v23277_v53, %v23293_v13 }
 0x37b   : > { %8928 = vmatpush1.msra.mxu0 %v8606_v41  ;;  %8772 = vmatprep.mubr.f32.mxu0 %v26504_v5  ;;  %v10448_v41 = vpop.permute.xlu0 %10447  ;;  %v23295_v12 = vand.u32 4294901760, %v10457_v20 }
 0x37c   : > { %8932 = vmatprep.subr.mxu0 %v8612_v49  ;;  %8853 = vmatprep.mubr.f32.mxu1 %v26504_v5 }
 0x37d   : > { %8936 = vmatpush1.msra.mxu0 %v8618_v57  ;;  %8857 = vmatmul.mubr.f32.vlgmr.msra.gmra.mxu1 %v26510_v56  ;;  %v23106_v56 = vand.u32 4294901760, %v23092_v50  ;;  %v23257_v49 = vpop.permute.xlu1 %11685  ;;  %v10455_v57 = vsel %vm1298_vm14, %v10448_v41, 0 }
 0x37e   : > { %8775 = vmatmul.mubr.f32.gmra.mxu0 %v22651_v33  ;;  %9018 = vmatpush1.msra.mxu1 %v22947_v29  ;;  %v23108_v33 = vand.u32 4294901760, %v9217_v18  ;;  %v23279_v26 = vand.u32 4294901760, %v10455_v57 }
 0x37f   : > { %9020 = vmatprep.subr.mxu1 %v22942_v58  ;;  %8862 = vmatprep.mubr.f32.mxu1 %v26504_v5  ;;  %v9219_v58 = vsel %vm1298_vm14, %v9212_v63, 0  ;;  %v9291_v29 = vsub.f32 %v23092_v50, %v23106_v56  ;;  %v10452_v11 = vpop.permute.xlu0 %10451  ;;  %v23325_v63 = vand.u32 4294901760, %v10531_v40 }
 0x380   : > { %9022 = vmatpush1.msra.mxu1 %v22954_v62  ;;  %8969 = vmatprep.mubr.f32.mxu0 %v26504_v5  ;;  %v23125_v6 = vsub.f32 %v9217_v18, %v23108_v33  ;;  %v23128_v62 = vand.u32 4294901760, %v23111_v45  ;;  %v23130_v46 = vand.u32 4294901760, %v9219_v58  ;;  %v23298_v59 = vsub.f32 %v10455_v57, %v23279_v26 }
 0x381   : > { %9024 = vmatprep.subr.mxu1 %v22963_v51  ;;  %8866 = vmatmul.mubr.f32.gmra.mxu1 %v22620_v47  ;;  %v26511_v47 = vld [vmem:[#allocation3_spill] sm:$0xff]  ;;  %v23139_v51 = vand.u32 4294901760, %v9291_v29  ;;  %v23272_v23 = vpop.permute.xlu1 %11689  ;;  %v10459_v55 = vsel %vm1298_vm14, %v10452_v11, 0 }
 0x382   : > { %8971 = vmatmul.mubr.f32.vlgmr.msra.gmra.mxu0 %v26505_v21  ;;  %9026 = vmatpush1.msra.mxu1 %v22967_v37  ;;  %v23142_v37 = vand.u32 4294901760, %v23125_v6  ;;  %v23145_v31 = vsub.f32 %v9219_v58, %v23130_v46  ;;  %v9302_v27 = vsub.f32 %v23111_v45, %v23128_v62  ;;  %v23311_v39 = vand.u32 4294901760, %v23298_v59 }
 0x383   : > { %9028 = vmatprep.subr.mxu1 %v22974_v16  ;;  %8871 = vmatprep.mubr.f32.mxu1 %v26504_v5  ;;  %v23286_v30 = vpop.permute.xlu0 %11687  ;;  %v23313_v18 = vand.u32 4294901760, %v10459_v55 }
 0x384   : > { %9030 = vmatpush1.msra.mxu1 %v22984_v43  ;;  %8976 = vmatprep.mubr.f32.mxu0 %v26504_v5  ;;  %v23160_v16 = vand.u32 4294901760, %v9302_v27  ;;  %v9313_v28 = vsub.f32 %v23125_v6, %v23142_v37  ;;  %v26517_v43 = vld [vmem:[#allocation7_spill] sm:$0xff]  ;;  %v10542_v29 = vsub.f32 %v23298_v59, %v23311_v39 }
 0x385   : > { %8875 = vmatmul.mubr.f32.gmra.mxu1 %v22846_v38  ;;  %9252 = vmatprep.subr.mxu0 %v26511_v47  ;;  %v26512_v38 = vld [vmem:[#allocation2_spill] sm:$0xff]  ;;  %v23289_v8 = vpop.permute.xlu1 %12941 }
 0x386   : > { %8978 = vmatmul.mubr.f32.gmra.mxu0 %v26507_v44  ;;  %9063 = vmatprep.mubr.f32.mxu1 %v26504_v5 }
 0x387   : > { %8983 = vmatprep.mubr.f32.mxu0 %v26504_v5  ;;  %9254 = vmatpush1.msra.mxu0 %v26512_v38 }
 0x388   : > { %9367 = vmatprep.subr.mxu1 %v26513_v22  ;;  %9467 = vmatprep.subr.mxu0 %v26514_v32  ;;  %v26532_v32 = vld [vmem:[#allocation23_spill] sm:$0xff] }
 0x389   : > { %9065 = vmatmul.mubr.f32.vlgmr.msra.gmra.mxu1 %v26505_v21  ;;  %v23156_v21 = vand.u32 4294901760, %v23145_v31 }
 0x38a   : > { %8985 = vmatmul.mubr.f32.gmra.mxu0 %v22627_v10  ;;  %9070 = vmatprep.mubr.f32.mxu1 %v26504_v5 }
 0x38b   : > { %9287 = vmatprep.mubr.f32.mxu0 %v26504_v5  ;;  %9373 = vmatpush1.msra.mxu1 %v26515_v35  ;;  %v9324_v17 = vsub.f32 %v23145_v31, %v23156_v21 }
 0x38c   : > { %9567 = vmatprep.subr.mxu1 %v26511_v47 }
 0x38d   : > { %9072 = vmatmul.mubr.f32.gmra.mxu1 %v26507_v44  ;;  %v23170_v44 = vand.u32 4294901760, %v9313_v28  ;;  %v23178_v15 = vand.u32 4294901760, %v9324_v17 }
 0x38e   : > { %9293 = vmatmul.mubr.f32.vlgmr.msra.gmra.mxu0 %v23139_v51  ;;  %9077 = vmatprep.mubr.f32.mxu1 %v26504_v5 }
 0x38f   : > { %9298 = vmatprep.mubr.f32.mxu0 %v26504_v5  ;;  %9470 = vmatpush1.msra.mxu0 %v26516_v52 }
 0x390   : > { %9672 = vmatprep.subr.mxu0 %v26517_v43 }
 0x391   : > { %9079 = vmatmul.mubr.f32.gmra.mxu1 %v22627_v10  ;;  %v26518_v10 = vld [vmem:[#allocation6_spill] sm:$0xff] }
 0x392   : > { %9304 = vmatmul.mubr.f32.gmra.mxu0 %v23160_v16  ;;  %9406 = vmatprep.mubr.f32.mxu1 %v26504_v5 }
 0x393   : > { %9309 = vmatprep.mubr.f32.mxu0 %v26504_v5 }
 0x395   : > { %9408 = vmatmul.mubr.f32.vlgmr.msra.gmra.mxu1 %v23077_v7 }
 0x396   : > { %9315 = vmatmul.mubr.f32.gmra.mxu0 %v23170_v44  ;;  %9413 = vmatprep.mubr.f32.mxu1 %v26504_v5 }
 0x397   : > { %9320 = vmatprep.mubr.f32.mxu0 %v26504_v5  ;;  %9569 = vmatpush1.msra.mxu1 %v26512_v38 }
 0x398   : > { %9769 = vmatprep.subr.mxu1 %v26511_v47  ;;  %v23331_v47 = vsub.f32 %v10459_v55, %v23313_v18  ;;  %v26536_v55 = vld [vmem:[#allocation31_spill] sm:$0xff] }
 0x399   : > { %9415 = vmatmul.mubr.f32.gmra.mxu1 %v23094_v14 }
 0x39a   : > { %9326 = vmatmul.mubr.f32.gmra.mxu0 %v23178_v15  ;;  %9420 = vmatprep.mubr.f32.mxu1 %v26504_v5 }
 0x39b   : > { %9503 = vmatprep.mubr.f32.mxu0 %v26504_v5 }
 0x39d   : > { %9422 = vmatmul.mubr.f32.gmra.mxu1 %v23108_v33 }
 0x39e   : > { %9506 = vmatmul.mubr.f32.vlgmr.msra.gmra.mxu0 %v23092_v50  ;;  %9427 = vmatprep.mubr.f32.mxu1 %v26504_v5 }
 0x39f   : > { %9511 = vmatprep.mubr.f32.mxu0 %v26504_v5  ;;  %9676 = vmatpush1.msra.mxu0 %v26518_v10 }
 0x3a0   : > { %9864 = vmatprep.subr.mxu0 %v26519_v2 }
 0x3a1   : > { %9429 = vmatmul.mubr.f32.gmra.mxu1 %v23130_v46 }
 0x3a2   : > { %9514 = vmatmul.mubr.f32.gmra.mxu0 %v23111_v45  ;;  %9602 = vmatprep.mubr.f32.mxu1 %v26504_v5 }
 0x3a3   : > { %9519 = vmatprep.mubr.f32.mxu0 %v26504_v5 }
 0x3a5   : > { %9606 = vmatmul.mubr.f32.vlgmr.msra.gmra.mxu1 %v23106_v56 }
 0x3a6   : > { %9522 = vmatmul.mubr.f32.gmra.mxu0 %v23125_v6  ;;  %9611 = vmatprep.mubr.f32.mxu1 %v26504_v5 }
 0x3a7   : > { %9527 = vmatprep.mubr.f32.mxu0 %v26504_v5  ;;  %9771 = vmatpush1.msra.mxu1 %v26512_v38  ;;  %v23348_v38 = vand.u32 4294901760, %v10542_v29 }
 0x3a8   : > { %9979 = vmatprep.subr.mxu1 %v26520_v9 }
 0x3a9   : > { %9615 = vmatmul.mubr.f32.gmra.mxu1 %v23128_v62 }
 0x3aa   : > { %9530 = vmatmul.mubr.f32.gmra.mxu0 %v23145_v31  ;;  %9620 = vmatprep.mubr.f32.mxu1 %v26504_v5 }
 0x3ab   : > { %9709 = vmatprep.mubr.f32.mxu0 %v26504_v5 }
 0x3ad   : > { %9624 = vmatmul.mubr.f32.gmra.mxu1 %v23142_v37 }
 0x3ae   : > { %9711 = vmatmul.mubr.f32.vlgmr.msra.gmra.mxu0 %v23077_v7  ;;  %9629 = vmatprep.mubr.f32.mxu1 %v26504_v5 }
 0x3af   : > { %9716 = vmatprep.mubr.f32.mxu0 %v26504_v5  ;;  %9866 = vmatpush1.msra.mxu0 %v26521_v61 }
 0x3b0   : > { %10079 = vmatprep.subr.mxu0 %v26522_v34 }
 0x3b1   : > { %9633 = vmatmul.mubr.f32.gmra.mxu1 %v23156_v21 }
 0x3b2   : > { %9718 = vmatmul.mubr.f32.gmra.mxu0 %v23094_v14  ;;  %9804 = vmatprep.mubr.f32.mxu1 %v26504_v5 }
 0x3b3   : > { %9723 = vmatprep.mubr.f32.mxu0 %v26504_v5 }
 0x3b5   : > { %9806 = vmatmul.mubr.f32.vlgmr.msra.gmra.mxu1 %v23077_v7 }
 0x3b6   : > { %9725 = vmatmul.mubr.f32.gmra.mxu0 %v23108_v33  ;;  %9811 = vmatprep.mubr.f32.mxu1 %v26504_v5 }
 0x3b7   : > { %9730 = vmatprep.mubr.f32.mxu0 %v26504_v5  ;;  %9985 = vmatpush1.msra.mxu1 %v26523_v4 }
 0x3b8   : > { %10179 = vmatprep.subr.mxu1 %v26519_v2 }
 0x3b9   : > { %9813 = vmatmul.mubr.f32.gmra.mxu1 %v23094_v14 }
 0x3ba   : > { %9732 = vmatmul.mubr.f32.gmra.mxu0 %v23130_v46  ;;  %9818 = vmatprep.mubr.f32.mxu1 %v26504_v5 }
 0x3bb   : > { %9899 = vmatprep.mubr.f32.mxu0 %v26504_v5 }
 0x3bd   : > { %9820 = vmatmul.mubr.f32.gmra.mxu1 %v23108_v33 }
 0x3be   : > { %9905 = vmatmul.mubr.f32.vlgmr.msra.gmra.mxu0 %v23139_v51  ;;  %9825 = vmatprep.mubr.f32.mxu1 %v26504_v5  ;;  %v26533_v51 = vld [vmem:[#allocation20_spill] sm:$0xff] }
 0x3bf   : > { %9910 = vmatprep.mubr.f32.mxu0 %v26504_v5  ;;  %10082 = vmatpush1.msra.mxu0 %v26524_v54 }
 0x3c0   : > { %10284 = vmatprep.subr.mxu0 %v26525_v25 }
 0x3c1   : > { %9827 = vmatmul.mubr.f32.gmra.mxu1 %v23130_v46 }
 0x3c2   : > { %9916 = vmatmul.mubr.f32.gmra.mxu0 %v23160_v16  ;;  %10018 = vmatprep.mubr.f32.mxu1 %v26504_v5 }
 0x3c3   : > { %9921 = vmatprep.mubr.f32.mxu0 %v26504_v5 }
 0x3c5   : > { %10020 = vmatmul.mubr.f32.vlgmr.msra.gmra.mxu1 %v23077_v7 }
 0x3c6   : > { %9927 = vmatmul.mubr.f32.gmra.mxu0 %v23170_v44  ;;  %10025 = vmatprep.mubr.f32.mxu1 %v26504_v5 }
 0x3c7   : > { %9932 = vmatprep.mubr.f32.mxu0 %v26504_v5  ;;  %10181 = vmatpush1.msra.mxu1 %v26521_v61 }
 0x3c8   : > { %10381 = vmatprep.subr.mxu1 %v26519_v2  ;;  %v26535_v2 = vld [vmem:[#allocation26_spill] sm:$0xff] }
 0x3c9   : > { %10027 = vmatmul.mubr.f32.gmra.mxu1 %v23094_v14 }
 0x3ca   : > { %9938 = vmatmul.mubr.f32.gmra.mxu0 %v23178_v15  ;;  %10032 = vmatprep.mubr.f32.mxu1 %v26504_v5  ;;  %v26534_v15 = vld [vmem:[#allocation24_spill] sm:$0xff] }
 0x3cb   : > { %10115 = vmatprep.mubr.f32.mxu0 %v26504_v5 }
 0x3cd   : > { %10034 = vmatmul.mubr.f32.gmra.mxu1 %v23108_v33 }
 0x3ce   : > { %10118 = vmatmul.mubr.f32.vlgmr.msra.gmra.mxu0 %v23092_v50  ;;  %10039 = vmatprep.mubr.f32.mxu1 %v26504_v5  ;;  %v23308_v50 = vsub.f32 %v10457_v20, %v23295_v12 }
 0x3cf   : > { %10123 = vmatprep.mubr.f32.mxu0 %v26504_v5  ;;  %10288 = vmatpush1.msra.mxu0 %v26526_v19 }
 0x3d0   : > { %10492 = vmatprep.subr.mxu0 %v26527_v42  ;;  %v23328_v58 = vand.u32 4294901760, %v23308_v50 }
 0x3d1   : > { %10041 = vmatmul.mubr.f32.gmra.mxu1 %v23130_v46 }
 0x3d2   : > { %10126 = vmatmul.mubr.f32.gmra.mxu0 %v23111_v45  ;;  %10214 = vmatprep.mubr.f32.mxu1 %v26504_v5  ;;  %v23319_v45 = vpop.permute.xlu1 %12945  ;;  %v10553_v22 = vsub.f32 %v23308_v50, %v23328_v58 }
 0x3d3   : > { %10131 = vmatprep.mubr.f32.mxu0 %v26504_v5 }
 0x3d5   : > { %10218 = vmatmul.mubr.f32.vlgmr.msra.gmra.mxu1 %v23106_v56  ;;  %v23315_v56 = vpop.permute.xlu0 %11691 }
 0x3d6   : > { %10134 = vmatmul.mubr.f32.gmra.mxu0 %v23125_v6  ;;  %10223 = vmatprep.mubr.f32.mxu1 %v26504_v5 }
 0x3d7   : > { %10139 = vmatprep.mubr.f32.mxu0 %v26504_v5  ;;  %10383 = vmatpush1.msra.mxu1 %v26521_v61 }
 0x3d8   : > { %10607 = vmatprep.subr.mxu1 %v26528_v24 }
 0x3d9   : > { %10227 = vmatmul.mubr.f32.gmra.mxu1 %v23128_v62  ;;  %v23338_v6 = vpop.permute.xlu0 %12943  ;;  %v23344_v62 = vand.u32 4294901760, %v23331_v47 }
 0x3da   : > { %10142 = vmatmul.mubr.f32.gmra.mxu0 %v23145_v31  ;;  %10232 = vmatprep.mubr.f32.mxu1 %v26504_v5 }
 0x3db   : > { %10321 = vmatprep.mubr.f32.mxu0 %v26504_v5  ;;  %v10564_v31 = vsub.f32 %v23331_v47, %v23344_v62 }
 0x3dd   : > { %10236 = vmatmul.mubr.f32.gmra.mxu1 %v23142_v37  ;;  %v23360_v37 = vand.u32 4294901760, %v10553_v22 }
 0x3de   : > { %10323 = vmatmul.mubr.f32.vlgmr.msra.gmra.mxu0 %v23077_v7  ;;  %10241 = vmatprep.mubr.f32.mxu1 %v26504_v5 }
 0x3df   : > { %10328 = vmatprep.mubr.f32.mxu0 %v26504_v5  ;;  %10494 = vmatpush1.msra.mxu0 %v26529_v0 }
 0x3e0   : > { %10707 = vmatprep.subr.mxu0 %v26530_v48 }
 0x3e1   : > { %10245 = vmatmul.mubr.f32.gmra.mxu1 %v23156_v21 }
 0x3e2   : > { %10330 = vmatmul.mubr.f32.gmra.mxu0 %v23094_v14  ;;  %10416 = vmatprep.mubr.f32.mxu1 %v26504_v5 }
 0x3e3   : > { %10335 = vmatprep.mubr.f32.mxu0 %v26504_v5 }
 0x3e5   : > { %10418 = vmatmul.mubr.f32.vlgmr.msra.gmra.mxu1 %v23077_v7  ;;  %v26531_v7 = vld [vmem:[#allocation25_spill] sm:$0xff] }
 0x3e6   : > { %10337 = vmatmul.mubr.f32.gmra.mxu0 %v23108_v33  ;;  %10423 = vmatprep.mubr.f32.mxu1 %v26504_v5 }
 0x3e7   : > { %10342 = vmatprep.mubr.f32.mxu0 %v26504_v5  ;;  %10613 = vmatpush1.msra.mxu1 %v26531_v7 }
 0x3e8   : > { %10807 = vmatprep.subr.mxu1 %v26527_v42 }
 0x3e9   : > { %10425 = vmatmul.mubr.f32.gmra.mxu1 %v23094_v14  ;;  %v23340_v14 = vpop.permute.xlu1 %14197 }
 0x3ea   : > { %10344 = vmatmul.mubr.f32.gmra.mxu0 %v23130_v46  ;;  %10430 = vmatprep.mubr.f32.mxu1 %v26504_v5 }
 0x3eb   : > { %10527 = vmatprep.mubr.f32.mxu0 %v26504_v5 }
 0x3ed   : > { %10432 = vmatmul.mubr.f32.gmra.mxu1 %v23108_v33  ;;  %v23356_v33 = vpop.permute.xlu0 %12947  ;;  %v23364_v27 = vpop.permute.xlu1 %14201 }
 0x3ee   : > { %10533 = vmatmul.mubr.f32.vlgmr.msra.gmra.mxu0 %v23325_v63  ;;  %10437 = vmatprep.mubr.f32.mxu1 %v26504_v5 }
 0x3ef   : > { %10538 = vmatprep.mubr.f32.mxu0 %v26504_v5  ;;  %10710 = vmatpush1.msra.mxu0 %v26532_v32 }
 0x3f0   : > { %10912 = vmatprep.subr.mxu0 %v26533_v51 }
 0x3f1   : > { %10439 = vmatmul.mubr.f32.gmra.mxu1 %v23130_v46  ;;  %v23370_v46 = vand.u32 4294901760, %v10564_v31  ;;  %v23374_v21 = vpop.permute.xlu0 %14199  ;;  %v23377_v16 = vpop.permute.xlu1 %7790 }
 0x3f2   : > { %10544 = vmatmul.mubr.f32.gmra.mxu0 %v23348_v38  ;;  %10646 = vmatprep.mubr.f32.mxu1 %v26504_v5 }
 0x3f3   : > { %10549 = vmatprep.mubr.f32.mxu0 %v26504_v5 }
 0x3f5   : > { %10648 = vmatmul.mubr.f32.vlgmr.msra.gmra.mxu1 %v23267_v36  ;;  %v23384_v43 = vpop.permute.xlu0 %14203  ;;  %v23388_v17 = vpop.permute.xlu1 %7780 }
 0x3f6   : > { %10555 = vmatmul.mubr.f32.gmra.mxu0 %v23360_v37  ;;  %10653 = vmatprep.mubr.f32.mxu1 %v26504_v5 }
 0x3f7   : > { %10560 = vmatprep.mubr.f32.mxu0 %v26504_v5  ;;  %v7882_v35 = vpop.f32.mrf.mxu0  ;;  %10809 = vmatpush1.msra.mxu1 %v26529_v0 }
 0x3f8   : > { %11009 = vmatprep.subr.mxu1 %v26527_v42  ;;  %v7883_v10 = vadd.f32 %v7882_v35, %v23388_v17 }
 0x3f9   : > { %10655 = vmatmul.mubr.f32.gmra.mxu1 %v23279_v26  ;;  %v7884_v28 = vpop.f32.mrf.mxu0  ;;  %v23399_v3 = vpop.permute.xlu0 %7785 }
 0x3fa   : > { %10566 = vmatmul.mubr.f32.gmra.mxu0 %v23370_v46  ;;  %10660 = vmatprep.mubr.f32.mxu1 %v26504_v5  ;;  %v7885_v34 = vadd.f32 %v7884_v28, %v23388_v17 }
 0x3fb   : > { %10743 = vmatprep.mubr.f32.mxu0 %v26504_v5 }
 0x3fc   : > { %v7893_v52 = vpop.f32.mrf.mxu0 }
 0x3fd   : > { %10662 = vmatmul.mubr.f32.gmra.mxu1 %v23295_v12  ;;  %v7894_v19 = vadd.f32 %v7893_v52, %v23399_v3 }
 0x3fe   : > { %10746 = vmatmul.mubr.f32.vlgmr.msra.gmra.mxu0 %v23277_v53  ;;  %v7895_v44 = vpop.f32.mrf.mxu0  ;;  %10667 = vmatprep.mubr.f32.mxu1 %v26504_v5 }
 0x3ff   : > { %10751 = vmatprep.mubr.f32.mxu0 %v26504_v5  ;;  %10916 = vmatpush1.msra.mxu0 %v26534_v15  ;;  %v7896_v24 = vadd.f32 %v7895_v44, %v23399_v3  ;;  %v26537_v15 = vld [vmem:[#allocation30_spill] sm:$0xff] }
 0x400   : > { %11104 = vmatprep.subr.mxu0 %v26535_v2 }
 0x401   : > { %v7904_v9 = vpop.f32.mrf.mxu0  ;;  %v8016_v61 = vpop.f32.mrf.mxu1  ;;  %10669 = vmatmul.mubr.f32.gmra.mxu1 %v23313_v18 }
 0x402   : > { %v8017_v4 = vadd.f32 %v8016_v61, %v7883_v10  ;;  %10754 = vmatmul.mubr.f32.gmra.mxu0 %v23298_v59  ;;  %10842 = vmatprep.mubr.f32.mxu1 %v26504_v5  ;;  %v7905_v7 = vadd.f32 %v7904_v9, %v23377_v16  ;;  %v26538_v61 = vld [vmem:[#allocation27_spill] sm:$0xff] }
 0x403   : > { %v7906_v54 = vpop.f32.mrf.mxu0  ;;  %v8018_v25 = vpop.f32.mrf.mxu1  ;;  %10759 = vmatprep.mubr.f32.mxu0 %v26504_v5 }
 0x404   : > { %v8019_v60 = vadd.f32 %v8018_v25, %v7885_v34  ;;  %v7907_v22 = vadd.f32 %v7906_v54, %v23377_v16 }
 0x405   : > { %v8119_v42 = vpop.f32.mrf.mxu0  ;;  %10846 = vmatmul.mubr.f32.vlgmr.msra.gmra.mxu1 %v23293_v13 }
 0x406   : > { %v8023_v41 = vpop.f32.mrf.mxu1  ;;  %v8120_v1 = vadd.f32 %v8119_v42, %v8017_v4  ;;  %10762 = vmatmul.mubr.f32.gmra.mxu0 %v23308_v50  ;;  %10851 = vmatprep.mubr.f32.mxu1 %v26504_v5 }
 0x407   : > { %v8024_v11 = vadd.f32 %v8023_v41, %v7894_v19  ;;  %v8121_v57 = vpop.f32.mrf.mxu0  ;;  %10767 = vmatprep.mubr.f32.mxu0 %v26504_v5  ;;  %11011 = vmatpush1.msra.mxu1 %v26529_v0 }
 0x408   : > { %v8025_v20 = vpop.f32.mrf.mxu1  ;;  %v8122_v48 = vadd.f32 %v8121_v57, %v8019_v60  ;;  %11219 = vmatprep.subr.mxu1 %v26536_v55  ;;  %v26539_v55 = vld [vmem:[#allocation34_spill] sm:$0xff] }
 0x409   : > { %v8026_v40 = vadd.f32 %v8025_v20, %v7896_v24  ;;  %10855 = vmatmul.mubr.f32.gmra.mxu1 %v23311_v39 }
 0x40a   : > { %10770 = vmatmul.mubr.f32.gmra.mxu0 %v23331_v47  ;;  %10860 = vmatprep.mubr.f32.mxu1 %v26504_v5 }
 0x40b   : > { %v8030_v29 = vpop.f32.mrf.mxu1  ;;  %10949 = vmatprep.mubr.f32.mxu0 %v26504_v5 }
 0x40c   : > { %v8031_v32 = vadd.f32 %v8030_v29, %v7905_v7  ;;  %v8127_v0 = vpop.f32.mrf.mxu0 }
 0x40d   : > { %v8128_v51 = vadd.f32 %v8127_v0, %v8024_v11  ;;  %v8032_v31 = vpop.f32.mrf.mxu1  ;;  %10864 = vmatmul.mubr.f32.gmra.mxu1 %v23328_v58 }
 0x40e   : > { %v8033_v35 = vadd.f32 %v8032_v31, %v7907_v22  ;;  %v8129_v28 = vpop.f32.mrf.mxu0  ;;  %10951 = vmatmul.mubr.f32.vlgmr.msra.gmra.mxu0 %v23267_v36  ;;  %10869 = vmatprep.mubr.f32.mxu1 %v26504_v5 }
 0x40f   : > { %v8130_v52 = vadd.f32 %v8129_v28, %v8026_v40  ;;  %v8217_v44 = vpop.f32.mrf.mxu1  ;;  %10956 = vmatprep.mubr.f32.mxu0 %v26504_v5  ;;  %11106 = vmatpush1.msra.mxu0 %v26537_v15 }
 0x410   : > { %v8135_v10 = vpop.f32.mrf.mxu0  ;;  %v8218_v9 = vadd.f32 %v8217_v44, %v8120_v1  ;;  %11319 = vmatprep.subr.mxu0 %v26538_v61 }
 0x411   : > { %v8136_v34 = vadd.f32 %v8135_v10, %v8031_v32  ;;  %v8219_v4 = vpop.f32.mrf.mxu1  ;;  %10873 = vmatmul.mubr.f32.gmra.mxu1 %v23344_v62 }
 0x412   : > { %v8137_v54 = vpop.f32.mrf.mxu0  ;;  %v8220_v25 = vadd.f32 %v8219_v4, %v8122_v48  ;;  %10958 = vmatmul.mubr.f32.gmra.mxu0 %v23279_v26  ;;  %11044 = vmatprep.mubr.f32.mxu1 %v26504_v5  ;;  %v26542_v4 = vld [vmem:[#allocation32_spill] sm:$0xff] }
 0x413   : > { %v8138_v60 = vadd.f32 %v8137_v54, %v8033_v35  ;;  %v8226_v19 = vpop.f32.mrf.mxu1  ;;  %10963 = vmatprep.mubr.f32.mxu0 %v26504_v5 }
 0x414   : > { %v8227_v42 = vadd.f32 %v8226_v19, %v8128_v51  ;;  %v8331_v41 = vpop.f32.mrf.mxu0 }
 0x415   : > { %v8332_v24 = vadd.f32 %v8331_v41, %v8218_v9  ;;  %v8228_v1 = vpop.f32.mrf.mxu1  ;;  %11046 = vmatmul.mubr.f32.vlgmr.msra.gmra.mxu1 %v23267_v36 }
 0x416   : > { %v8229_v11 = vadd.f32 %v8228_v1, %v8130_v52  ;;  %v8333_v57 = vpop.f32.mrf.mxu0  ;;  %10965 = vmatmul.mubr.f32.gmra.mxu0 %v23295_v12  ;;  %11051 = vmatprep.mubr.f32.mxu1 %v26504_v5 }
 0x417   : > { %v8334_v20 = vadd.f32 %v8333_v57, %v8220_v25  ;;  %v8235_v48 = vpop.f32.mrf.mxu1  ;;  %10970 = vmatprep.mubr.f32.mxu0 %v26504_v5  ;;  %11225 = vmatpush1.msra.mxu1 %v26539_v55  ;;  %v26544_v25 = vld [vmem:[#allocation28_spill] sm:$0xff] }
 0x418   : > { %v8236_v40 = vadd.f32 %v8235_v48, %v8136_v34  ;;  %v8338_v7 = vpop.f32.mrf.mxu0  ;;  %11419 = vmatprep.subr.mxu1 %v26535_v2  ;;  %v26546_v48 = vld [vmem:[#allocation33_spill] sm:$0xff] }
 0x419   : > { %v8339_v29 = vadd.f32 %v8338_v7, %v8227_v42  ;;  %v8237_v22 = vpop.f32.mrf.mxu1  ;;  %11053 = vmatmul.mubr.f32.gmra.mxu1 %v23279_v26 }
 0x41a   : > { %v8238_v32 = vadd.f32 %v8237_v22, %v8138_v60  ;;  %v8340_v0 = vpop.f32.mrf.mxu0  ;;  %10972 = vmatmul.mubr.f32.gmra.mxu0 %v23313_v18  ;;  %11058 = vmatprep.mubr.f32.mxu1 %v26504_v5 }
 0x41b   : > { %v8341_v51 = vadd.f32 %v8340_v0, %v8229_v11  ;;  %v8425_v31 = vpop.f32.mrf.mxu1  ;;  %11139 = vmatprep.mubr.f32.mxu0 %v26504_v5 }
 0x41c   : > { %v8345_v35 = vpop.f32.mrf.mxu0  ;;  %v23435_v28 = vadd.f32 %v8425_v31, %v8332_v24 }
 0x41d   : > { %v8346_v52 = vadd.f32 %v8345_v35, %v8236_v40  ;;  %v8427_v44 = vpop.f32.mrf.mxu1  ;;  %11060 = vmatmul.mubr.f32.gmra.mxu1 %v23295_v12  ;;  %v26547_v40 = vld [vmem:[#allocation35_spill] sm:$0xff] }
 0x41e   : > { %26540 = vst [vmem:[#allocation89_spill] sm:$0xff] %v23435_v28  ;;  %v8347_v10 = vpop.f32.mrf.mxu0  ;;  %v23438_v9 = vadd.f32 %v8427_v44, %v8334_v20  ;;  %11145 = vmatmul.mubr.f32.vlgmr.msra.gmra.mxu0 %v23325_v63  ;;  %11065 = vmatprep.mubr.f32.mxu1 %v26504_v5  ;;  %v11693_v44 = vsel %vm1298_vm14, %v23257_v49, 0  ;;  %v11695_v49 = vsel %vm1298_vm14, %v23286_v30, 0 }
 0x41f   : > { %v8348_v61 = vadd.f32 %v8347_v10, %v8238_v32  ;;  %v8432_v34 = vpop.f32.mrf.mxu1  ;;  %11150 = vmatprep.mubr.f32.mxu0 %v26504_v5  ;;  %11322 = vmatpush1.msra.mxu0 %v26542_v4 }
 0x420   : > { %26541 = vst [vmem:[#allocation95_spill] sm:$0xff] %v23438_v9  ;;  %v23444_v54 = vadd.f32 %v8432_v34, %v8339_v29  ;;  %11524 = vmatprep.subr.mxu0 %v26544_v25 }
 0x421   : > { %v8434_v60 = vpop.f32.mrf.mxu1  ;;  %11067 = vmatmul.mubr.f32.gmra.mxu1 %v23313_v18 }
 0x422   : > { %26543 = vst [vmem:[#allocation91_spill] sm:$0xff] %v23444_v54  ;;  %11156 = vmatmul.mubr.f32.gmra.mxu0 %v23348_v38  ;;  %11258 = vmatprep.mubr.f32.mxu1 %v26504_v5  ;;  %v23450_v63 = vadd.f32 %v8434_v60, %v8341_v51 }
 0x423   : > { %v8439_v19 = vpop.f32.mrf.mxu1  ;;  %11161 = vmatprep.mubr.f32.mxu0 %v26504_v5 }
 0x424   : > { %26545 = vst [vmem:[#allocation97_spill] sm:$0xff] %v23450_v63  ;;  %v23453_v42 = vadd.f32 %v8439_v19, %v8346_v52 }
 0x425   : > { %v8441_v41 = vpop.f32.mrf.mxu1  ;;  %11260 = vmatmul.mubr.f32.vlgmr.msra.gmra.mxu1 %v23267_v36  ;;  %v8523_v24 = vpop.f32.mrf.mxu0 }
 0x426   : > { %v23456_v1 = vadd.f32 %v8441_v41, %v8348_v61  ;;  %11167 = vmatmul.mubr.f32.gmra.mxu0 %v23360_v37  ;;  %11265 = vmatprep.mubr.f32.mxu1 %v26504_v5  ;;  %v8524_v37 = vadd.f32 %v8523_v24, %v23388_v17  ;;  %v26548_v61 = vld [vmem:[#allocation39_spill] sm:$0xff] }
 0x427   : > { %11172 = vmatprep.mubr.f32.mxu0 %v26504_v5  ;;  %v8525_v38 = vpop.f32.mrf.mxu0  ;;  %11421 = vmatpush1.msra.mxu1 %v26537_v15 }
 0x428   : > { %11621 = vmatprep.subr.mxu1 %v26535_v2 }
 0x429   : > { %11267 = vmatmul.mubr.f32.gmra.mxu1 %v23279_v26 }
 0x42a   : > { %11178 = vmatmul.mubr.f32.gmra.mxu0 %v23370_v46  ;;  %11272 = vmatprep.mubr.f32.mxu1 %v26504_v5  ;;  %v8534_v11 = vpop.f32.mrf.mxu0  ;;  %v8526_v46 = vadd.f32 %v8525_v38, %v23388_v17  ;;  %v23505_v38 = vand.u32 4294901760, %v11695_v49 }
 0x42b   : > { %11355 = vmatprep.mubr.f32.mxu0 %v26504_v5  ;;  %v8535_v22 = vadd.f32 %v8534_v11, %v23399_v3 }
 0x42c   : > { %v8536_v57 = vpop.f32.mrf.mxu0 }
 0x42d   : > { %11274 = vmatmul.mubr.f32.gmra.mxu1 %v23295_v12  ;;  %v8537_v17 = vadd.f32 %v8536_v57, %v23399_v3 }
 0x42e   : > { %11358 = vmatmul.mubr.f32.vlgmr.msra.gmra.mxu0 %v23277_v53  ;;  %11279 = vmatprep.mubr.f32.mxu1 %v26504_v5 }
 0x42f   : > { %11363 = vmatprep.mubr.f32.mxu0 %v26504_v5  ;;  %v8545_v2 = vpop.f32.mrf.mxu0  ;;  %v8657_v20 = vpop.f32.mrf.mxu1  ;;  %11528 = vmatpush1.msra.mxu0 %v26546_v48  ;;  %v26550_v48 = vld [vmem:[#allocation36_spill] sm:$0xff] }
 0x430   : > { %v8658_v55 = vadd.f32 %v8657_v20, %v8524_v37  ;;  %11732 = vmatprep.subr.mxu0 %v26547_v40  ;;  %v8546_v3 = vadd.f32 %v8545_v2, %v23377_v16  ;;  %v26549_v2 = vld [vmem:[#allocation38_spill] sm:$0xff] }
 0x431   : > { %11281 = vmatmul.mubr.f32.gmra.mxu1 %v23313_v18  ;;  %v8547_v7 = vpop.f32.mrf.mxu0  ;;  %v8659_v29 = vpop.f32.mrf.mxu1 }
 0x432   : > { %11366 = vmatmul.mubr.f32.gmra.mxu0 %v23298_v59  ;;  %v8660_v53 = vadd.f32 %v8659_v29, %v8526_v46  ;;  %11454 = vmatprep.mubr.f32.mxu1 %v26504_v5  ;;  %v8548_v34 = vadd.f32 %v8547_v7, %v23377_v16  ;;  %v23519_v29 = vsub.f32 %v11695_v49, %v23505_v38 }
 0x433   : > { %11371 = vmatprep.mubr.f32.mxu0 %v26504_v5  ;;  %v8760_v32 = vpop.f32.mrf.mxu0 }
 0x434   : > { %v8664_v0 = vpop.f32.mrf.mxu1  ;;  %v8761_v51 = vadd.f32 %v8760_v32, %v8658_v55  ;;  %v11699_v32 = vsel %vm1298_vm14, %v23315_v56, 0 }
 0x435   : > { %v8665_v31 = vadd.f32 %v8664_v0, %v8535_v22  ;;  %11458 = vmatmul.mubr.f32.vlgmr.msra.gmra.mxu1 %v23293_v13  ;;  %v8762_v35 = vpop.f32.mrf.mxu0  ;;  %v23535_v56 = vand.u32 4294901760, %v11699_v32 }
 0x436   : > { %11374 = vmatmul.mubr.f32.gmra.mxu0 %v23308_v50  ;;  %v8666_v52 = vpop.f32.mrf.mxu1  ;;  %v8763_v59 = vadd.f32 %v8762_v35, %v8660_v53  ;;  %11463 = vmatprep.mubr.f32.mxu1 %v26504_v5  ;;  %v23491_v50 = vand.u32 4294901760, %v11693_v44 }
 0x437   : > { %v8667_v10 = vadd.f32 %v8666_v52, %v8537_v17  ;;  %11379 = vmatprep.mubr.f32.mxu0 %v26504_v5  ;;  %11623 = vmatpush1.msra.mxu1 %v26537_v15 }
 0x438   : > { %11847 = vmatprep.subr.mxu1 %v26548_v61  ;;  %v23501_v16 = vsub.f32 %v11693_v44, %v23491_v50  ;;  %v23533_v44 = vand.u32 4294901760, %v23519_v29 }
 0x439   : > { %v8671_v13 = vpop.f32.mrf.mxu1  ;;  %11467 = vmatmul.mubr.f32.gmra.mxu1 %v23311_v39 }
 0x43a   : > { %v8672_v4 = vadd.f32 %v8671_v13, %v8546_v3  ;;  %v8768_v25 = vpop.f32.mrf.mxu0  ;;  %11382 = vmatmul.mubr.f32.gmra.mxu0 %v23331_v47  ;;  %11472 = vmatprep.mubr.f32.mxu1 %v26504_v5  ;;  %v11697_v47 = vsel %vm1298_vm14, %v23272_v23, 0  ;;  %v23516_v7 = vand.u32 4294901760, %v23501_v16 }
 0x43b   : > { %v8769_v15 = vadd.f32 %v8768_v25, %v8665_v31  ;;  %v8673_v60 = vpop.f32.mrf.mxu1  ;;  %11561 = vmatprep.mubr.f32.mxu0 %v26504_v5  ;;  %v23512_v46 = vand.u32 4294901760, %v11697_v47 }
 0x43c   : > { %v8674_v19 = vadd.f32 %v8673_v60, %v8548_v34  ;;  %v8770_v41 = vpop.f32.mrf.mxu0  ;;  %v26551_v34 = vld [vmem:[#allocation42_spill] sm:$0xff] }
 0x43d   : > { %v8771_v39 = vadd.f32 %v8770_v41, %v8667_v10  ;;  %v8858_v24 = vpop.f32.mrf.mxu1  ;;  %11476 = vmatmul.mubr.f32.gmra.mxu1 %v23328_v58  ;;  %v23527_v31 = vsub.f32 %v11697_v47, %v23512_v46 }
 0x43e   : > { %v8776_v11 = vpop.f32.mrf.mxu0  ;;  %v8859_v30 = vadd.f32 %v8858_v24, %v8761_v51  ;;  %11563 = vmatmul.mubr.f32.vlgmr.msra.gmra.mxu0 %v23267_v36  ;;  %11481 = vmatprep.mubr.f32.mxu1 %v26504_v5  ;;  %v11782_v24 = vsub.f32 %v23519_v29, %v23533_v44 }
 0x43f   : > { %v8777_v57 = vadd.f32 %v8776_v11, %v8672_v4  ;;  %v8860_v37 = vpop.f32.mrf.mxu1  ;;  %11568 = vmatprep.mubr.f32.mxu0 %v26504_v5  ;;  %11734 = vmatpush1.msra.mxu0 %v26549_v2  ;;  %v23543_v25 = vand.u32 4294901760, %v23527_v31 }
 0x440   : > { %v8778_v58 = vpop.f32.mrf.mxu0  ;;  %v8861_v20 = vadd.f32 %v8860_v37, %v8763_v59  ;;  %11947 = vmatprep.subr.mxu0 %v26550_v48  ;;  %v11771_v59 = vsub.f32 %v23501_v16, %v23516_v7  ;;  %v23566_v48 = vand.u32 4294901760, %v11782_v24 }
 0x441   : > { %v8779_v23 = vadd.f32 %v8778_v58, %v8674_v19  ;;  %v8867_v55 = vpop.f32.mrf.mxu1  ;;  %11485 = vmatmul.mubr.f32.gmra.mxu1 %v23344_v62  ;;  %v23549_v19 = vsub.f32 %v11699_v32, %v23535_v56 }
 0x442   : > { %v8868_v53 = vadd.f32 %v8867_v55, %v8769_v15  ;;  %v8972_v22 = vpop.f32.mrf.mxu0  ;;  %11570 = vmatmul.mubr.f32.gmra.mxu0 %v23279_v26  ;;  %11656 = vmatprep.mubr.f32.mxu1 %v26504_v5  ;;  %v23546_v60 = vand.u32 4294901760, %v11771_v59 }
 0x443   : > { %v8973_v0 = vadd.f32 %v8972_v22, %v8859_v30  ;;  %v8869_v51 = vpop.f32.mrf.mxu1  ;;  %11575 = vmatprep.mubr.f32.mxu0 %v26504_v5  ;;  %v23562_v58 = vand.u32 4294901760, %v23549_v19  ;;  %v26554_v22 = vld [vmem:[#allocation40_spill] sm:$0xff] }
 0x444   : > { %v8870_v62 = vadd.f32 %v8869_v51, %v8771_v39  ;;  %v8974_v17 = vpop.f32.mrf.mxu0 }
 0x445   : > { %v8975_v35 = vadd.f32 %v8974_v17, %v8861_v20  ;;  %v8876_v52 = vpop.f32.mrf.mxu1  ;;  %11658 = vmatmul.mubr.f32.vlgmr.msra.gmra.mxu1 %v23267_v36 }
 0x446   : > { %v8877_v10 = vadd.f32 %v8876_v52, %v8777_v57  ;;  %v8979_v3 = vpop.f32.mrf.mxu0  ;;  %11577 = vmatmul.mubr.f32.gmra.mxu0 %v23295_v12  ;;  %11663 = vmatprep.mubr.f32.mxu1 %v26504_v5  ;;  %v11804_v52 = vsub.f32 %v23549_v19, %v23562_v58 }
 0x447   : > { %v8980_v61 = vadd.f32 %v8979_v3, %v8868_v53  ;;  %v8878_v13 = vpop.f32.mrf.mxu1  ;;  %11582 = vmatprep.mubr.f32.mxu0 %v26504_v5  ;;  %11853 = vmatpush1.msra.mxu1 %v26551_v34 }
 0x448   : > { %v8879_v36 = vadd.f32 %v8878_v13, %v8779_v23  ;;  %v8981_v4 = vpop.f32.mrf.mxu0  ;;  %12047 = vmatprep.subr.mxu1 %v26547_v40  ;;  %v11793_v23 = vsub.f32 %v23527_v31, %v23543_v25  ;;  %v23592_v13 = vand.u32 4294901760, %v11804_v52 }
 0x449   : > { %v8982_v49 = vadd.f32 %v8981_v4, %v8870_v62  ;;  %v9066_v15 = vpop.f32.mrf.mxu1  ;;  %11665 = vmatmul.mubr.f32.gmra.mxu1 %v23279_v26 }
 0x44a   : > { %v8986_v41 = vpop.f32.mrf.mxu0  ;;  %v23551_v39 = vadd.f32 %v9066_v15, %v8973_v0  ;;  %11584 = vmatmul.mubr.f32.gmra.mxu0 %v23313_v18  ;;  %11670 = vmatprep.mubr.f32.mxu1 %v26504_v5  ;;  %v26555_v0 = vld [vmem:[#allocation37_spill] sm:$0xff] }
 0x44b   : > { %v8987_v47 = vadd.f32 %v8986_v41, %v8877_v10  ;;  %v9068_v11 = vpop.f32.mrf.mxu1  ;;  %11767 = vmatprep.mubr.f32.mxu0 %v26504_v5 }
 0x44c   : > { %26552 = vst [vmem:[#allocation94_spill] sm:$0xff] %v23551_v39  ;;  %v8988_v26 = vpop.f32.mrf.mxu0  ;;  %v23558_v57 = vadd.f32 %v9068_v11, %v8975_v35  ;;  %v23582_v35 = vand.u32 4294901760, %v11793_v23 }
 0x44d   : > { %v8989_v30 = vadd.f32 %v8988_v26, %v8879_v36  ;;  %v9073_v37 = vpop.f32.mrf.mxu1  ;;  %11672 = vmatmul.mubr.f32.gmra.mxu1 %v23295_v12 }
 0x44e   : > { %26553 = vst [vmem:[#allocation99_spill] sm:$0xff] %v23558_v57  ;;  %v9294_v20 = vpop.f32.mrf.mxu0  ;;  %11773 = vmatmul.mubr.f32.vlgmr.msra.gmra.mxu0 %v23546_v60  ;;  %11677 = vmatprep.mubr.f32.mxu1 %v26504_v5  ;;  %v23570_v55 = vadd.f32 %v9073_v37, %v8980_v61 }
 0x44f   : > { %v9075_v53 = vpop.f32.mrf.mxu1  ;;  %11778 = vmatprep.mubr.f32.mxu0 %v26504_v5  ;;  %11950 = vmatpush1.msra.mxu0 %v26554_v22 }
 0x450   : > { %v23574_v12 = vadd.f32 %v9075_v53, %v8982_v49  ;;  %v9296_v32 = vpop.f32.mrf.mxu0  ;;  %12152 = vmatprep.subr.mxu0 %v26555_v0  ;;  %v26556_v53 = vld [vmem:[#allocation41_spill] sm:$0xff]  ;;  %v26557_v0 = vld [vmem:[#allocation43_spill] sm:$0xff] }
 0x451   : > { %v9080_v51 = vpop.f32.mrf.mxu1  ;;  %11679 = vmatmul.mubr.f32.gmra.mxu1 %v23313_v18 }
 0x452   : > { %v23578_v62 = vadd.f32 %v9080_v51, %v8987_v47  ;;  %v9305_v17 = vpop.f32.mrf.mxu0  ;;  %11784 = vmatmul.mubr.f32.gmra.mxu0 %v23566_v48  ;;  %11886 = vmatprep.mubr.f32.mxu1 %v26504_v5 }
 0x453   : > { %v9082_v59 = vpop.f32.mrf.mxu1  ;;  %11789 = vmatprep.mubr.f32.mxu0 %v26504_v5 }
 0x454   : > { %v23587_v10 = vadd.f32 %v9082_v59, %v8989_v30  ;;  %v9307_v3 = vpop.f32.mrf.mxu0 }
 0x455   : > { %v9409_v61 = vpop.f32.mrf.mxu1  ;;  %11888 = vmatmul.mubr.f32.vlgmr.msra.gmra.mxu1 %v23491_v50 }
 0x456   : > { %v9316_v18 = vpop.f32.mrf.mxu0  ;;  %11795 = vmatmul.mubr.f32.gmra.mxu0 %v23582_v35  ;;  %11893 = vmatprep.mubr.f32.mxu1 %v26504_v5  ;;  %v9410_v34 = vadd.f32 %v9409_v61, %v9294_v20 }
 0x457   : > { %v9411_v36 = vpop.f32.mrf.mxu1  ;;  %11800 = vmatprep.mubr.f32.mxu0 %v26504_v5  ;;  %12049 = vmatpush1.msra.mxu1 %v26549_v2 }
 0x458   : > { %v9318_v4 = vpop.f32.mrf.mxu0  ;;  %v9412_v49 = vadd.f32 %v9411_v36, %v9296_v32  ;;  %12249 = vmatprep.subr.mxu1 %v26547_v40 }
 0x459   : > { %v9416_v15 = vpop.f32.mrf.mxu1  ;;  %11895 = vmatmul.mubr.f32.gmra.mxu1 %v23505_v38 }
 0x45a   : > { %v9327_v41 = vpop.f32.mrf.mxu0  ;;  %v9417_v24 = vadd.f32 %v9416_v15, %v9305_v17  ;;  %11806 = vmatmul.mubr.f32.gmra.mxu0 %v23592_v13  ;;  %11900 = vmatprep.mubr.f32.mxu1 %v26504_v5 }
 0x45b   : > { %v9418_v47 = vpop.f32.mrf.mxu1  ;;  %11983 = vmatprep.mubr.f32.mxu0 %v26504_v5 }
 0x45c   : > { %v9329_v11 = vpop.f32.mrf.mxu0  ;;  %v9419_v26 = vadd.f32 %v9418_v47, %v9307_v3 }
 0x45d   : > { %v9423_v30 = vpop.f32.mrf.mxu1  ;;  %11902 = vmatmul.mubr.f32.gmra.mxu1 %v23512_v46 }
 0x45e   : > { %v9424_v37 = vadd.f32 %v9423_v30, %v9316_v18  ;;  %v9507_v20 = vpop.f32.mrf.mxu0  ;;  %11986 = vmatmul.mubr.f32.vlgmr.msra.gmra.mxu0 %v23501_v16  ;;  %11907 = vmatprep.mubr.f32.mxu1 %v26504_v5 }
 0x45f   : > { %v9508_v40 = vadd.f32 %v9507_v20, %v9410_v34  ;;  %v9425_v23 = vpop.f32.mrf.mxu1  ;;  %11991 = vmatprep.mubr.f32.mxu0 %v26504_v5  ;;  %12156 = vmatpush1.msra.mxu0 %v26556_v53 }
 0x460   : > { %v9426_v22 = vadd.f32 %v9425_v23, %v9318_v4  ;;  %v9509_v32 = vpop.f32.mrf.mxu0  ;;  %12344 = vmatprep.subr.mxu0 %v26557_v0 }
 0x461   : > { %v9510_v51 = vadd.f32 %v9509_v32, %v9412_v49  ;;  %v9430_v17 = vpop.f32.mrf.mxu1  ;;  %11909 = vmatmul.mubr.f32.gmra.mxu1 %v23535_v56 }
 0x462   : > { %v9431_v52 = vadd.f32 %v9430_v17, %v9327_v41  ;;  %v9515_v59 = vpop.f32.mrf.mxu0  ;;  %11994 = vmatmul.mubr.f32.gmra.mxu0 %v23519_v29  ;;  %12082 = vmatprep.mubr.f32.mxu1 %v26504_v5 }
 0x463   : > { %v9516_v3 = vadd.f32 %v9515_v59, %v9417_v24  ;;  %v9432_v61 = vpop.f32.mrf.mxu1  ;;  %11999 = vmatprep.mubr.f32.mxu0 %v26504_v5 }
 0x464   : > { %v9433_v18 = vadd.f32 %v9432_v61, %v9329_v11  ;;  %v9517_v34 = vpop.f32.mrf.mxu0  ;;  %v26558_v11 = vld [vmem:[#allocation47_spill] sm:$0xff] }
 0x465   : > { %v9518_v36 = vadd.f32 %v9517_v34, %v9419_v26  ;;  %v9607_v4 = vpop.f32.mrf.mxu1  ;;  %12086 = vmatmul.mubr.f32.vlgmr.msra.gmra.mxu1 %v23516_v7 }
 0x466   : > { %v9523_v49 = vpop.f32.mrf.mxu0  ;;  %v9608_v15 = vadd.f32 %v9607_v4, %v9508_v40  ;;  %12002 = vmatmul.mubr.f32.gmra.mxu0 %v23527_v31  ;;  %12091 = vmatprep.mubr.f32.mxu1 %v26504_v5 }
 0x467   : > { %v9524_v41 = vadd.f32 %v9523_v49, %v9424_v37  ;;  %v9609_v47 = vpop.f32.mrf.mxu1  ;;  %12007 = vmatprep.mubr.f32.mxu0 %v26504_v5  ;;  %12251 = vmatpush1.msra.mxu1 %v26549_v2  ;;  %v26560_v49 = vld [vmem:[#allocation44_spill] sm:$0xff] }
 0x468   : > { %v9525_v24 = vpop.f32.mrf.mxu0  ;;  %v9610_v30 = vadd.f32 %v9609_v47, %v9510_v51  ;;  %12459 = vmatprep.subr.mxu1 %v26558_v11 }
 0x469   : > { %v9526_v26 = vadd.f32 %v9525_v24, %v9426_v22  ;;  %v9616_v20 = vpop.f32.mrf.mxu1  ;;  %12095 = vmatmul.mubr.f32.gmra.mxu1 %v23533_v44 }
 0x46a   : > { %v9531_v23 = vpop.f32.mrf.mxu0  ;;  %v9617_v40 = vadd.f32 %v9616_v20, %v9516_v3  ;;  %12010 = vmatmul.mubr.f32.gmra.mxu0 %v23549_v19  ;;  %12100 = vmatprep.mubr.f32.mxu1 %v26504_v5 }
 0x46b   : > { %v9532_v37 = vadd.f32 %v9531_v23, %v9431_v52  ;;  %v9618_v53 = vpop.f32.mrf.mxu1  ;;  %12189 = vmatprep.mubr.f32.mxu0 %v26504_v5  ;;  %v26559_v52 = vld [vmem:[#allocation46_spill] sm:$0xff] }
 0x46c   : > { %v9533_v32 = vpop.f32.mrf.mxu0  ;;  %v9619_v2 = vadd.f32 %v9618_v53, %v9518_v36 }
 0x46d   : > { %v9534_v17 = vadd.f32 %v9533_v32, %v9433_v18  ;;  %v9625_v51 = vpop.f32.mrf.mxu1  ;;  %12104 = vmatmul.mubr.f32.gmra.mxu1 %v23543_v25 }
 0x46e   : > { %v9626_v22 = vadd.f32 %v9625_v51, %v9524_v41  ;;  %v9712_v59 = vpop.f32.mrf.mxu0  ;;  %12191 = vmatmul.mubr.f32.vlgmr.msra.gmra.mxu0 %v23491_v50  ;;  %12109 = vmatprep.mubr.f32.mxu1 %v26504_v5 }
 0x46f   : > { %v9713_v3 = vadd.f32 %v9712_v59, %v9608_v15  ;;  %v9627_v61 = vpop.f32.mrf.mxu1  ;;  %12196 = vmatprep.mubr.f32.mxu0 %v26504_v5  ;;  %12346 = vmatpush1.msra.mxu0 %v26559_v52 }
 0x470   : > { %v9628_v34 = vadd.f32 %v9627_v61, %v9526_v26  ;;  %v9714_v4 = vpop.f32.mrf.mxu0  ;;  %12559 = vmatprep.subr.mxu0 %v26560_v49 }
 0x471   : > { %v9715_v18 = vadd.f32 %v9714_v4, %v9610_v30  ;;  %v9634_v36 = vpop.f32.mrf.mxu1  ;;  %12113 = vmatmul.mubr.f32.gmra.mxu1 %v23562_v58 }
 0x472   : > { %v9635_v41 = vadd.f32 %v9634_v36, %v9532_v37  ;;  %v9719_v47 = vpop.f32.mrf.mxu0  ;;  %12198 = vmatmul.mubr.f32.gmra.mxu0 %v23505_v38  ;;  %12284 = vmatprep.mubr.f32.mxu1 %v26504_v5 }
 0x473   : > { %v9720_v15 = vadd.f32 %v9719_v47, %v9617_v40  ;;  %v9636_v24 = vpop.f32.mrf.mxu1  ;;  %12203 = vmatprep.mubr.f32.mxu0 %v26504_v5  ;;  %v26561_v40 = vld [vmem:[#allocation50_spill] sm:$0xff] }
 0x474   : > { %v9637_v11 = vadd.f32 %v9636_v24, %v9534_v17  ;;  %v9721_v20 = vpop.f32.mrf.mxu0 }
 0x475   : > { %v9722_v26 = vadd.f32 %v9721_v20, %v9619_v2  ;;  %v9807_v23 = vpop.f32.mrf.mxu1  ;;  %12286 = vmatmul.mubr.f32.vlgmr.msra.gmra.mxu1 %v23491_v50 }
 0x476   : > { %v9726_v30 = vpop.f32.mrf.mxu0  ;;  %12205 = vmatmul.mubr.f32.gmra.mxu0 %v23512_v46  ;;  %12291 = vmatprep.mubr.f32.mxu1 %v26504_v5  ;;  %v23634_v53 = vadd.f32 %v9807_v23, %v9713_v3  ;;  %v26563_v23 = vld [vmem:[#allocation45_spill] sm:$0xff] }
 0x477   : > { %v9727_v37 = vadd.f32 %v9726_v30, %v9626_v22  ;;  %v9809_v32 = vpop.f32.mrf.mxu1  ;;  %12210 = vmatprep.mubr.f32.mxu0 %v26504_v5  ;;  %12465 = vmatpush1.msra.mxu1 %v26561_v40 }
 0x478   : > { %v9728_v51 = vpop.f32.mrf.mxu0  ;;  %12659 = vmatprep.subr.mxu1 %v26557_v0  ;;  %v23639_v17 = vadd.f32 %v9809_v32, %v9715_v18 }
 0x479   : > { %v9729_v2 = vadd.f32 %v9728_v51, %v9628_v34  ;;  %v9814_v59 = vpop.f32.mrf.mxu1  ;;  %12293 = vmatmul.mubr.f32.gmra.mxu1 %v23505_v38 }
 0x47a   : > { %v9733_v61 = vpop.f32.mrf.mxu0  ;;  %v23642_v4 = vadd.f32 %v9814_v59, %v9720_v15  ;;  %12212 = vmatmul.mubr.f32.gmra.mxu0 %v23535_v56  ;;  %12298 = vmatprep.mubr.f32.mxu1 %v26504_v5 }
 0x47b   : > { %v9734_v22 = vadd.f32 %v9733_v61, %v9635_v41  ;;  %v9816_v3 = vpop.f32.mrf.mxu1  ;;  %12379 = vmatprep.mubr.f32.mxu0 %v26504_v5  ;;  %v26562_v41 = vld [vmem:[#allocation48_spill] sm:$0xff] }
 0x47c   : > { %v9735_v49 = vpop.f32.mrf.mxu0  ;;  %v23647_v36 = vadd.f32 %v9816_v3, %v9722_v26 }
 0x47d   : > { %v9736_v34 = vadd.f32 %v9735_v49, %v9637_v11  ;;  %v9821_v18 = vpop.f32.mrf.mxu1  ;;  %12300 = vmatmul.mubr.f32.gmra.mxu1 %v23512_v46 }
 0x47e   : > { %v23650_v47 = vadd.f32 %v9821_v18, %v9727_v37  ;;  %v9906_v24 = vpop.f32.mrf.mxu0  ;;  %12385 = vmatmul.mubr.f32.vlgmr.msra.gmra.mxu0 %v23546_v60  ;;  %12305 = vmatprep.mubr.f32.mxu1 %v26504_v5 }
 0x47f   : > { %v9823_v15 = vpop.f32.mrf.mxu1  ;;  %12390 = vmatprep.mubr.f32.mxu0 %v26504_v5  ;;  %12562 = vmatpush1.msra.mxu0 %v26562_v41 }
 0x480   : > { %v23656_v20 = vadd.f32 %v9823_v15, %v9729_v2  ;;  %v9908_v26 = vpop.f32.mrf.mxu0  ;;  %12764 = vmatprep.subr.mxu0 %v26563_v23 }
 0x481   : > { %v9828_v11 = vpop.f32.mrf.mxu1  ;;  %12307 = vmatmul.mubr.f32.gmra.mxu1 %v23535_v56 }
 0x482   : > { %v23660_v30 = vadd.f32 %v9828_v11, %v9734_v22  ;;  %v9917_v37 = vpop.f32.mrf.mxu0  ;;  %12396 = vmatmul.mubr.f32.gmra.mxu0 %v23566_v48  ;;  %12498 = vmatprep.mubr.f32.mxu1 %v26504_v5 }
 0x483   : > { %v9830_v60 = vpop.f32.mrf.mxu1  ;;  %12401 = vmatprep.mubr.f32.mxu0 %v26504_v5 }
 0x484   : > { %v23665_v32 = vadd.f32 %v9830_v60, %v9736_v34  ;;  %v9919_v40 = vpop.f32.mrf.mxu0  ;;  %v26565_v60 = vld [vmem:[#allocation51_spill] sm:$0xff] }
 0x485   : > { %v10021_v51 = vpop.f32.mrf.mxu1  ;;  %12500 = vmatmul.mubr.f32.vlgmr.msra.gmra.mxu1 %v23491_v50 }
 0x486   : > { %v9928_v2 = vpop.f32.mrf.mxu0  ;;  %v10022_v59 = vadd.f32 %v10021_v51, %v9906_v24  ;;  %12407 = vmatmul.mubr.f32.gmra.mxu0 %v23582_v35  ;;  %12505 = vmatprep.mubr.f32.mxu1 %v26504_v5 }
 0x487   : > { %v10023_v61 = vpop.f32.mrf.mxu1  ;;  %12412 = vmatprep.mubr.f32.mxu0 %v26504_v5  ;;  %12661 = vmatpush1.msra.mxu1 %v26559_v52 }
 0x488   : > { %v9930_v48 = vpop.f32.mrf.mxu0  ;;  %v10024_v22 = vadd.f32 %v10023_v61, %v9908_v26  ;;  %12861 = vmatprep.subr.mxu1 %v26557_v0 }
 0x489   : > { %v10028_v3 = vpop.f32.mrf.mxu1  ;;  %12507 = vmatmul.mubr.f32.gmra.mxu1 %v23505_v38 }
 0x48a   : > { %v9939_v49 = vpop.f32.mrf.mxu0  ;;  %v10029_v34 = vadd.f32 %v10028_v3, %v9917_v37  ;;  %12418 = vmatmul.mubr.f32.gmra.mxu0 %v23592_v13  ;;  %12512 = vmatprep.mubr.f32.mxu1 %v26504_v5  ;;  %v26564_v13 = vld [vmem:[#allocation49_spill] sm:$0xff] }
 0x48b   : > { %v10030_v35 = vpop.f32.mrf.mxu1  ;;  %12595 = vmatprep.mubr.f32.mxu0 %v26504_v5 }
 0x48c   : > { %v9941_v18 = vpop.f32.mrf.mxu0  ;;  %v10031_v24 = vadd.f32 %v10030_v35, %v9919_v40 }
 0x48d   : > { %v10035_v15 = vpop.f32.mrf.mxu1  ;;  %12514 = vmatmul.mubr.f32.gmra.mxu1 %v23512_v46 }
 0x48e   : > { %v10036_v41 = vadd.f32 %v10035_v15, %v9928_v2  ;;  %v10119_v26 = vpop.f32.mrf.mxu0  ;;  %12598 = vmatmul.mubr.f32.vlgmr.msra.gmra.mxu0 %v23501_v16  ;;  %12519 = vmatprep.mubr.f32.mxu1 %v26504_v5 }
 0x48f   : > { %v10120_v0 = vadd.f32 %v10119_v26, %v10022_v59  ;;  %v10037_v23 = vpop.f32.mrf.mxu1  ;;  %12603 = vmatprep.mubr.f32.mxu0 %v26504_v5  ;;  %12768 = vmatpush1.msra.mxu0 %v26564_v13 }
 0x490   : > { %v10038_v11 = vadd.f32 %v10037_v23, %v9930_v48  ;;  %v10121_v37 = vpop.f32.mrf.mxu0  ;;  %12988 = vmatprep.subr.mxu0 %v26565_v60  ;;  %v26566_v23 = vld [vmem:[#allocation55_spill] sm:$0xff] }
 0x491   : > { %v10122_v40 = vadd.f32 %v10121_v37, %v10024_v22  ;;  %v10042_v51 = vpop.f32.mrf.mxu1  ;;  %12521 = vmatmul.mubr.f32.gmra.mxu1 %v23535_v56 }
 0x492   : > { %v10043_v2 = vadd.f32 %v10042_v51, %v9939_v49  ;;  %v10127_v61 = vpop.f32.mrf.mxu0  ;;  %12606 = vmatmul.mubr.f32.gmra.mxu0 %v23519_v29  ;;  %12694 = vmatprep.mubr.f32.mxu1 %v26504_v5  ;;  %v12949_v29 = vsel %vm1298_vm14, %v23289_v8, 0  ;;  %v12951_v8 = vsel %vm1298_vm14, %v23338_v6, 0 }
 0x493   : > { %v10128_v16 = vadd.f32 %v10127_v61, %v10029_v34  ;;  %v10044_v59 = vpop.f32.mrf.mxu1  ;;  %12611 = vmatprep.mubr.f32.mxu0 %v26504_v5 }
 0x494   : > { %v10045_v3 = vadd.f32 %v10044_v59, %v9941_v18  ;;  %v10129_v35 = vpop.f32.mrf.mxu0 }
 0x495   : > { %v10130_v48 = vadd.f32 %v10129_v35, %v10031_v24  ;;  %v10219_v15 = vpop.f32.mrf.mxu1  ;;  %12698 = vmatmul.mubr.f32.vlgmr.msra.gmra.mxu1 %v23516_v7 }
 0x496   : > { %v10135_v22 = vpop.f32.mrf.mxu0  ;;  %v10220_v26 = vadd.f32 %v10219_v15, %v10120_v0  ;;  %12614 = vmatmul.mubr.f32.gmra.mxu0 %v23527_v31  ;;  %12703 = vmatprep.mubr.f32.mxu1 %v26504_v5  ;;  %v23696_v31 = vand.u32 4294901760, %v12949_v29  ;;  %v26568_v15 = vld [vmem:[#allocation52_spill] sm:$0xff] }
 0x497   : > { %v10136_v49 = vadd.f32 %v10135_v22, %v10036_v41  ;;  %v10221_v34 = vpop.f32.mrf.mxu1  ;;  %12619 = vmatprep.mubr.f32.mxu0 %v26504_v5  ;;  %12863 = vmatpush1.msra.mxu1 %v26559_v52 }
 0x498   : > { %v10137_v18 = vpop.f32.mrf.mxu0  ;;  %v10222_v24 = vadd.f32 %v10221_v34, %v10122_v40  ;;  %13103 = vmatprep.subr.mxu1 %v26566_v23  ;;  %v12955_v23 = vsel %vm1298_vm14, %v23356_v33, 0 }
 0x499   : > { %v10138_v7 = vadd.f32 %v10137_v18, %v10038_v11  ;;  %v10228_v13 = vpop.f32.mrf.mxu1  ;;  %12707 = vmatmul.mubr.f32.gmra.mxu1 %v23533_v44  ;;  %v23705_v44 = vsub.f32 %v12949_v29, %v23696_v31  ;;  %v23739_v33 = vand.u32 4294901760, %v12955_v23 }
 0x49a   : > { %v10143_v0 = vpop.f32.mrf.mxu0  ;;  %v10229_v37 = vadd.f32 %v10228_v13, %v10128_v16  ;;  %12622 = vmatmul.mubr.f32.gmra.mxu0 %v23549_v19  ;;  %12712 = vmatprep.mubr.f32.mxu1 %v26504_v5  ;;  %v12953_v19 = vsel %vm1298_vm14, %v23319_v45, 0  ;;  %v23709_v16 = vand.u32 4294901760, %v12951_v8 }
 0x49b   : > { %v10144_v52 = vadd.f32 %v10143_v0, %v10043_v2  ;;  %v10230_v41 = vpop.f32.mrf.mxu1  ;;  %12801 = vmatprep.mubr.f32.mxu0 %v26504_v5  ;;  %v23716_v22 = vand.u32 4294901760, %v12953_v19 }
 0x49c   : > { %v10145_v40 = vpop.f32.mrf.mxu0  ;;  %v10231_v11 = vadd.f32 %v10230_v41, %v10130_v48 }
 0x49d   : > { %v10146_v51 = vadd.f32 %v10145_v40, %v10045_v3  ;;  %v10237_v61 = vpop.f32.mrf.mxu1  ;;  %12716 = vmatmul.mubr.f32.gmra.mxu1 %v23543_v25  ;;  %v26567_v3 = vld [vmem:[#allocation54_spill] sm:$0xff]  ;;  %v23731_v0 = vsub.f32 %v12953_v19, %v23716_v22 }
 0x49e   : > { %v10238_v59 = vadd.f32 %v10237_v61, %v10136_v49  ;;  %v10324_v6 = vpop.f32.mrf.mxu0  ;;  %12803 = vmatmul.mubr.f32.vlgmr.msra.gmra.mxu0 %v23491_v50  ;;  %12721 = vmatprep.mubr.f32.mxu1 %v26504_v5  ;;  %v23720_v49 = vand.u32 4294901760, %v23705_v44 }
 0x49f   : > { %v10325_v2 = vadd.f32 %v10324_v6, %v10220_v26  ;;  %v10239_v35 = vpop.f32.mrf.mxu1  ;;  %12808 = vmatprep.mubr.f32.mxu0 %v26504_v5  ;;  %12990 = vmatpush1.msra.mxu0 %v26567_v3  ;;  %v23723_v26 = vsub.f32 %v12951_v8, %v23709_v16 }
 0x4a0   : > { %v10240_v25 = vadd.f32 %v10239_v35, %v10138_v7  ;;  %v10326_v48 = vpop.f32.mrf.mxu0  ;;  %13203 = vmatprep.subr.mxu0 %v26568_v15  ;;  %v23751_v35 = vand.u32 4294901760, %v23731_v0 }
 0x4a1   : > { %v10327_v45 = vadd.f32 %v10326_v48, %v10222_v24  ;;  %v10246_v29 = vpop.f32.mrf.mxu1  ;;  %12725 = vmatmul.mubr.f32.gmra.mxu1 %v23562_v58  ;;  %v23737_v40 = vand.u32 4294901760, %v23723_v26 }
 0x4a2   : > { %v10247_v34 = vadd.f32 %v10246_v29, %v10144_v52  ;;  %v10331_v18 = vpop.f32.mrf.mxu0  ;;  %12810 = vmatmul.mubr.f32.gmra.mxu0 %v23505_v38  ;;  %12896 = vmatprep.mubr.f32.mxu1 %v26504_v5  ;;  %v13027_v52 = vsub.f32 %v23705_v44, %v23720_v49 }
 0x4a3   : > { %v10332_v7 = vadd.f32 %v10331_v18, %v10229_v37  ;;  %v10248_v24 = vpop.f32.mrf.mxu1  ;;  %12815 = vmatprep.mubr.f32.mxu0 %v26504_v5 }
 0x4a4   : > { %v10249_v58 = vadd.f32 %v10248_v24, %v10146_v51  ;;  %v10333_v13 = vpop.f32.mrf.mxu0  ;;  %v23754_v15 = vand.u32 4294901760, %v13027_v52 }
 0x4a5   : > { %v10334_v8 = vadd.f32 %v10333_v13, %v10231_v11  ;;  %v10419_v41 = vpop.f32.mrf.mxu1  ;;  %12898 = vmatmul.mubr.f32.vlgmr.msra.gmra.mxu1 %v23491_v50  ;;  %v26569_v50 = vld [vmem:[#allocation59_spill] sm:$0xff] }
 0x4a6   : > { %v10338_v37 = vpop.f32.mrf.mxu0  ;;  %v23741_v61 = vadd.f32 %v10419_v41, %v10325_v2  ;;  %12817 = vmatmul.mubr.f32.gmra.mxu0 %v23512_v46  ;;  %12903 = vmatprep.mubr.f32.mxu1 %v26504_v5 }
 0x4a7   : > { %v10339_v51 = vadd.f32 %v10338_v37, %v10238_v59  ;;  %v10421_v11 = vpop.f32.mrf.mxu1  ;;  %12822 = vmatprep.mubr.f32.mxu0 %v26504_v5  ;;  %13109 = vmatpush1.msra.mxu1 %v26569_v50  ;;  %v23757_v59 = vsub.f32 %v12955_v23, %v23739_v33 }
 0x4a8   : > { %v10340_v19 = vpop.f32.mrf.mxu0  ;;  %v23747_v6 = vadd.f32 %v10421_v11, %v10327_v45  ;;  %13303 = vmatprep.subr.mxu1 %v26565_v60  ;;  %v13038_v45 = vsub.f32 %v23723_v26, %v23737_v40 }
 0x4a9   : > { %v10341_v2 = vadd.f32 %v10340_v19, %v10240_v25  ;;  %v10426_v48 = vpop.f32.mrf.mxu1  ;;  %12905 = vmatmul.mubr.f32.gmra.mxu1 %v23505_v38  ;;  %v26571_v19 = vld [vmem:[#allocation53_spill] sm:$0xff] }
 0x4aa   : > { %v10345_v29 = vpop.f32.mrf.mxu0  ;;  %v23759_v18 = vadd.f32 %v10426_v48, %v10332_v7  ;;  %12824 = vmatmul.mubr.f32.gmra.mxu0 %v23535_v56  ;;  %12910 = vmatprep.mubr.f32.mxu1 %v26504_v5  ;;  %v23770_v7 = vand.u32 4294901760, %v23757_v59 }
 0x4ab   : > { %v10346_v24 = vadd.f32 %v10345_v29, %v10247_v34  ;;  %v10428_v25 = vpop.f32.mrf.mxu1  ;;  %13023 = vmatprep.mubr.f32.mxu0 %v26504_v5  ;;  %v23776_v34 = vand.u32 4294901760, %v13038_v45 }
 0x4ac   : > { %v10347_v38 = vpop.f32.mrf.mxu0  ;;  %v23766_v13 = vadd.f32 %v10428_v25, %v10334_v8  ;;  %v13049_v8 = vsub.f32 %v23731_v0, %v23751_v35 }
 0x4ad   : > { %v10348_v41 = vadd.f32 %v10347_v38, %v10249_v58  ;;  %v10433_v23 = vpop.f32.mrf.mxu1  ;;  %12912 = vmatmul.mubr.f32.gmra.mxu1 %v23512_v46  ;;  %v26570_v46 = vld [vmem:[#allocation56_spill] sm:$0xff] }
 0x4ae   : > { %v23772_v52 = vadd.f32 %v10433_v23, %v10339_v51  ;;  %v10534_v37 = vpop.f32.mrf.mxu0  ;;  %13029 = vmatmul.mubr.f32.vlgmr.msra.gmra.mxu0 %v23754_v15  ;;  %12917 = vmatprep.mubr.f32.mxu1 %v26504_v5 }
 0x4af   : > { %v10535_v58 = vadd.f32 %v10534_v37, %v23634_v53  ;;  %v10435_v11 = vpop.f32.mrf.mxu1  ;;  %13034 = vmatprep.mubr.f32.mxu0 %v26504_v5  ;;  %13206 = vmatpush1.msra.mxu0 %v26570_v46  ;;  %v23792_v53 = vand.u32 4294901760, %v13049_v8 }
 0x4b0   : > { %v23783_v50 = vadd.f32 %v10435_v11, %v10341_v2  ;;  %v10536_v51 = vpop.f32.mrf.mxu0  ;;  %13408 = vmatprep.subr.mxu0 %v26571_v19  ;;  %v13060_v2 = vsub.f32 %v23757_v59, %v23770_v7 }
 0x4b1   : > { %v10537_v48 = vadd.f32 %v10536_v51, %v23639_v17  ;;  %v10440_v29 = vpop.f32.mrf.mxu1  ;;  %12919 = vmatmul.mubr.f32.gmra.mxu1 %v23535_v56 }
 0x4b2   : > { %v23788_v45 = vadd.f32 %v10440_v29, %v10346_v24  ;;  %v10545_v25 = vpop.f32.mrf.mxu0  ;;  %13040 = vmatmul.mubr.f32.gmra.mxu0 %v23776_v34  ;;  %13142 = vmatprep.mubr.f32.mxu1 %v26504_v5  ;;  %v23804_v8 = vand.u32 4294901760, %v13060_v2 }
 0x4b3   : > { %v10546_v38 = vadd.f32 %v10545_v25, %v23642_v4  ;;  %v10442_v23 = vpop.f32.mrf.mxu1  ;;  %13045 = vmatprep.mubr.f32.mxu0 %v26504_v5 }
 0x4b4   : > { %v23798_v17 = vadd.f32 %v10442_v23, %v10348_v41  ;;  %v10547_v56 = vpop.f32.mrf.mxu0 }
 0x4b5   : > { %v10548_v24 = vadd.f32 %v10547_v56, %v23647_v36  ;;  %v10649_v37 = vpop.f32.mrf.mxu1  ;;  %13144 = vmatmul.mubr.f32.vlgmr.msra.gmra.mxu1 %v23696_v31 }
 0x4b6   : > { %v10556_v11 = vpop.f32.mrf.mxu0  ;;  %v10650_v46 = vadd.f32 %v10649_v37, %v10535_v58  ;;  %13051 = vmatmul.mubr.f32.gmra.mxu0 %v23792_v53  ;;  %13149 = vmatprep.mubr.f32.mxu1 %v26504_v5 }
 0x4b7   : > { %v10557_v4 = vadd.f32 %v10556_v11, %v23650_v47  ;;  %v10651_v51 = vpop.f32.mrf.mxu1  ;;  %13056 = vmatprep.mubr.f32.mxu0 %v26504_v5  ;;  %13305 = vmatpush1.msra.mxu1 %v26567_v3 }
 0x4b8   : > { %v10558_v41 = vpop.f32.mrf.mxu0  ;;  %v10652_v36 = vadd.f32 %v10651_v51, %v10537_v48  ;;  %13505 = vmatprep.subr.mxu1 %v26565_v60 }
 0x4b9   : > { %v10559_v19 = vadd.f32 %v10558_v41, %v23656_v20  ;;  %v10656_v58 = vpop.f32.mrf.mxu1  ;;  %13151 = vmatmul.mubr.f32.gmra.mxu1 %v23709_v16 }
 0x4ba   : > { %v10567_v29 = vpop.f32.mrf.mxu0  ;;  %v10657_v25 = vadd.f32 %v10656_v58, %v10546_v38  ;;  %13062 = vmatmul.mubr.f32.gmra.mxu0 %v23804_v8  ;;  %13156 = vmatprep.mubr.f32.mxu1 %v26504_v5 }
 0x4bb   : > { %v10568_v47 = vadd.f32 %v10567_v29, %v23660_v30  ;;  %v10658_v2 = vpop.f32.mrf.mxu1  ;;  %13239 = vmatprep.mubr.f32.mxu0 %v26504_v5  ;;  %v26572_v30 = vld [vmem:[#allocation57_spill] sm:$0xff] }
 0x4bc   : > { %v10569_v23 = vpop.f32.mrf.mxu0  ;;  %v10659_v48 = vadd.f32 %v10658_v2, %v10548_v24  ;;  %v26573_v24 = vld [vmem:[#allocation60_spill] sm:$0xff] }
 0x4bd   : > { %v10570_v60 = vadd.f32 %v10569_v23, %v23665_v32  ;;  %v10663_v56 = vpop.f32.mrf.mxu1  ;;  %13158 = vmatmul.mubr.f32.gmra.mxu1 %v23716_v22 }
 0x4be   : > { %v10664_v20 = vadd.f32 %v10663_v56, %v10557_v4  ;;  %v10747_v37 = vpop.f32.mrf.mxu0  ;;  %13242 = vmatmul.mubr.f32.vlgmr.msra.gmra.mxu0 %v23705_v44  ;;  %13163 = vmatprep.mubr.f32.mxu1 %v26504_v5 }
 0x4bf   : > { %v10748_v38 = vadd.f32 %v10747_v37, %v10650_v46  ;;  %v10665_v11 = vpop.f32.mrf.mxu1  ;;  %13247 = vmatprep.mubr.f32.mxu0 %v26504_v5  ;;  %13412 = vmatpush1.msra.mxu0 %v26572_v30 }
 0x4c0   : > { %v10666_v51 = vadd.f32 %v10665_v11, %v10559_v19  ;;  %v10749_v41 = vpop.f32.mrf.mxu0  ;;  %13600 = vmatprep.subr.mxu0 %v26573_v24 }
 0x4c1   : > { %v10750_v32 = vadd.f32 %v10749_v41, %v10652_v36  ;;  %v10670_v58 = vpop.f32.mrf.mxu1  ;;  %13165 = vmatmul.mubr.f32.gmra.mxu1 %v23739_v33 }
 0x4c2   : > { %v10671_v4 = vadd.f32 %v10670_v58, %v10568_v47  ;;  %v10755_v29 = vpop.f32.mrf.mxu0  ;;  %13250 = vmatmul.mubr.f32.gmra.mxu0 %v23723_v26  ;;  %13338 = vmatprep.mubr.f32.mxu1 %v26504_v5 }
 0x4c3   : > { %v10756_v46 = vadd.f32 %v10755_v29, %v10657_v25  ;;  %v10672_v2 = vpop.f32.mrf.mxu1  ;;  %13255 = vmatprep.mubr.f32.mxu0 %v26504_v5 }
 0x4c4   : > { %v10673_v23 = vadd.f32 %v10672_v2, %v10570_v60  ;;  %v10757_v56 = vpop.f32.mrf.mxu0  ;;  %v26574_v60 = vld [vmem:[#allocation64_spill] sm:$0xff] }
 0x4c5   : > { %v10758_v19 = vadd.f32 %v10757_v56, %v10659_v48  ;;  %v10847_v37 = vpop.f32.mrf.mxu1  ;;  %13342 = vmatmul.mubr.f32.vlgmr.msra.gmra.mxu1 %v23720_v49 }
 0x4c6   : > { %v10763_v36 = vpop.f32.mrf.mxu0  ;;  %v10848_v11 = vadd.f32 %v10847_v37, %v10748_v38  ;;  %13258 = vmatmul.mubr.f32.gmra.mxu0 %v23731_v0  ;;  %13347 = vmatprep.mubr.f32.mxu1 %v26504_v5 }
 0x4c7   : > { %v10764_v47 = vadd.f32 %v10763_v36, %v10664_v20  ;;  %v10849_v30 = vpop.f32.mrf.mxu1  ;;  %13263 = vmatprep.mubr.f32.mxu0 %v26504_v5  ;;  %13507 = vmatpush1.msra.mxu1 %v26567_v3 }
 0x4c8   : > { %v10765_v25 = vpop.f32.mrf.mxu0  ;;  %v10850_v41 = vadd.f32 %v10849_v30, %v10750_v32  ;;  %13715 = vmatprep.subr.mxu1 %v26574_v60 }
 0x4c9   : > { %v10766_v48 = vadd.f32 %v10765_v25, %v10666_v51  ;;  %v10856_v58 = vpop.f32.mrf.mxu1  ;;  %13351 = vmatmul.mubr.f32.gmra.mxu1 %v23737_v40 }
 0x4ca   : > { %v10771_v29 = vpop.f32.mrf.mxu0  ;;  %v10857_v38 = vadd.f32 %v10856_v58, %v10756_v46  ;;  %13266 = vmatmul.mubr.f32.gmra.mxu0 %v23757_v59  ;;  %13356 = vmatprep.mubr.f32.mxu1 %v26504_v5  ;;  %v26576_v58 = vld [vmem:[#allocation61_spill] sm:$0xff] }
 0x4cb   : > { %v10772_v20 = vadd.f32 %v10771_v29, %v10671_v4  ;;  %v10858_v2 = vpop.f32.mrf.mxu1  ;;  %13445 = vmatprep.mubr.f32.mxu0 %v26504_v5  ;;  %v26575_v4 = vld [vmem:[#allocation63_spill] sm:$0xff] }
 0x4cc   : > { %v10773_v56 = vpop.f32.mrf.mxu0  ;;  %v10859_v3 = vadd.f32 %v10858_v2, %v10758_v19 }
 0x4cd   : > { %v10774_v37 = vadd.f32 %v10773_v56, %v10673_v23  ;;  %v10865_v32 = vpop.f32.mrf.mxu1  ;;  %13360 = vmatmul.mubr.f32.gmra.mxu1 %v23751_v35 }
 0x4ce   : > { %v10866_v51 = vadd.f32 %v10865_v32, %v10764_v47  ;;  %v10952_v36 = vpop.f32.mrf.mxu0  ;;  %13447 = vmatmul.mubr.f32.vlgmr.msra.gmra.mxu0 %v23696_v31  ;;  %13365 = vmatprep.mubr.f32.mxu1 %v26504_v5 }
 0x4cf   : > { %v10953_v46 = vadd.f32 %v10952_v36, %v10848_v11  ;;  %v10867_v30 = vpop.f32.mrf.mxu1  ;;  %13452 = vmatprep.mubr.f32.mxu0 %v26504_v5  ;;  %13602 = vmatpush1.msra.mxu0 %v26575_v4 }
 0x4d0   : > { %v10868_v25 = vadd.f32 %v10867_v30, %v10766_v48  ;;  %v10954_v60 = vpop.f32.mrf.mxu0  ;;  %13815 = vmatprep.subr.mxu0 %v26576_v58 }
 0x4d1   : > { %v10955_v23 = vadd.f32 %v10954_v60, %v10850_v41  ;;  %v10874_v19 = vpop.f32.mrf.mxu1  ;;  %13369 = vmatmul.mubr.f32.gmra.mxu1 %v23770_v7 }
 0x4d2   : > { %v10875_v47 = vadd.f32 %v10874_v19, %v10772_v20  ;;  %v10959_v29 = vpop.f32.mrf.mxu0  ;;  %13454 = vmatmul.mubr.f32.gmra.mxu0 %v23709_v16  ;;  %13540 = vmatprep.mubr.f32.mxu1 %v26504_v5 }
 0x4d3   : > { %v10960_v11 = vadd.f32 %v10959_v29, %v10857_v38  ;;  %v10876_v2 = vpop.f32.mrf.mxu1  ;;  %13459 = vmatprep.mubr.f32.mxu0 %v26504_v5  ;;  %v26577_v38 = vld [vmem:[#allocation67_spill] sm:$0xff] }
 0x4d4   : > { %v10877_v56 = vadd.f32 %v10876_v2, %v10774_v37  ;;  %v10961_v32 = vpop.f32.mrf.mxu0 }
 0x4d5   : > { %v10962_v48 = vadd.f32 %v10961_v32, %v10859_v3  ;;  %v11047_v36 = vpop.f32.mrf.mxu1  ;;  %13542 = vmatmul.mubr.f32.vlgmr.msra.gmra.mxu1 %v23696_v31 }
 0x4d6   : > { %v10966_v41 = vpop.f32.mrf.mxu0  ;;  %v23848_v30 = vadd.f32 %v11047_v36, %v10953_v46  ;;  %13461 = vmatmul.mubr.f32.gmra.mxu0 %v23716_v22  ;;  %13547 = vmatprep.mubr.f32.mxu1 %v26504_v5 }
 0x4d7   : > { %v10967_v20 = vadd.f32 %v10966_v41, %v10866_v51  ;;  %v11049_v60 = vpop.f32.mrf.mxu1  ;;  %13466 = vmatprep.mubr.f32.mxu0 %v26504_v5  ;;  %13721 = vmatpush1.msra.mxu1 %v26577_v38  ;;  %v26578_v38 = vld [vmem:[#allocation65_spill] sm:$0xff] }
 0x4d8   : > { %v10968_v58 = vpop.f32.mrf.mxu0  ;;  %v23854_v37 = vadd.f32 %v11049_v60, %v10955_v23  ;;  %13915 = vmatprep.subr.mxu1 %v26573_v24 }
 0x4d9   : > { %v10969_v3 = vadd.f32 %v10968_v58, %v10868_v25  ;;  %v11054_v19 = vpop.f32.mrf.mxu1  ;;  %13549 = vmatmul.mubr.f32.gmra.mxu1 %v23709_v16  ;;  %v26579_v58 = vld [vmem:[#allocation62_spill] sm:$0xff] }
 0x4da   : > { %v10973_v46 = vpop.f32.mrf.mxu0  ;;  %v23858_v29 = vadd.f32 %v11054_v19, %v10960_v11  ;;  %13468 = vmatmul.mubr.f32.gmra.mxu0 %v23739_v33  ;;  %13554 = vmatprep.mubr.f32.mxu1 %v26504_v5 }
 0x4db   : > { %v10974_v51 = vadd.f32 %v10973_v46, %v10875_v47  ;;  %v11056_v2 = vpop.f32.mrf.mxu1  ;;  %13635 = vmatprep.mubr.f32.mxu0 %v26504_v5 }
 0x4dc   : > { %v10975_v32 = vpop.f32.mrf.mxu0  ;;  %v23863_v23 = vadd.f32 %v11056_v2, %v10962_v48 }
 0x4dd   : > { %v10976_v36 = vadd.f32 %v10975_v32, %v10877_v56  ;;  %v11061_v41 = vpop.f32.mrf.mxu1  ;;  %13556 = vmatmul.mubr.f32.gmra.mxu1 %v23716_v22 }
 0x4de   : > { %v23866_v25 = vadd.f32 %v11061_v41, %v10967_v20  ;;  %v11146_v60 = vpop.f32.mrf.mxu0  ;;  %13641 = vmatmul.mubr.f32.vlgmr.msra.gmra.mxu0 %v23754_v15  ;;  %13561 = vmatprep.mubr.f32.mxu1 %v26504_v5 }
 0x4df   : > { %v11147_v11 = vadd.f32 %v11146_v60, %v23741_v61  ;;  %v11063_v47 = vpop.f32.mrf.mxu1  ;;  %13646 = vmatprep.mubr.f32.mxu0 %v26504_v5  ;;  %13818 = vmatpush1.msra.mxu0 %v26578_v38 }
 0x4e0   : > { %v23873_v48 = vadd.f32 %v11063_v47, %v10969_v3  ;;  %v11148_v56 = vpop.f32.mrf.mxu0  ;;  %14020 = vmatprep.subr.mxu0 %v26579_v58 }
 0x4e1   : > { %v11149_v20 = vadd.f32 %v11148_v56, %v23747_v6  ;;  %v11068_v19 = vpop.f32.mrf.mxu1  ;;  %13563 = vmatmul.mubr.f32.gmra.mxu1 %v23739_v33 }
 0x4e2   : > { %v23878_v15 = vadd.f32 %v11068_v19, %v10974_v51  ;;  %v11157_v46 = vpop.f32.mrf.mxu0  ;;  %13652 = vmatmul.mubr.f32.gmra.mxu0 %v23776_v34  ;;  %13754 = vmatprep.mubr.f32.mxu1 %v26504_v5 }
 0x4e3   : > { %v11158_v61 = vadd.f32 %v11157_v46, %v23759_v18  ;;  %v11070_v2 = vpop.f32.mrf.mxu1  ;;  %13657 = vmatprep.mubr.f32.mxu0 %v26504_v5 }
 0x4e4   : > { %v23884_v3 = vadd.f32 %v11070_v2, %v10976_v36  ;;  %v11159_v32 = vpop.f32.mrf.mxu0 }
 0x4e5   : > { %v11160_v6 = vadd.f32 %v11159_v32, %v23766_v13  ;;  %v11261_v41 = vpop.f32.mrf.mxu1  ;;  %13756 = vmatmul.mubr.f32.vlgmr.msra.gmra.mxu1 %v23696_v31 }
 0x4e6   : > { %v11168_v51 = vpop.f32.mrf.mxu0  ;;  %v11262_v60 = vadd.f32 %v11261_v41, %v11147_v11  ;;  %13663 = vmatmul.mubr.f32.gmra.mxu0 %v23792_v53  ;;  %13761 = vmatprep.mubr.f32.mxu1 %v26504_v5 }
 0x4e7   : > { %v11169_v34 = vadd.f32 %v11168_v51, %v23772_v52  ;;  %v11263_v18 = vpop.f32.mrf.mxu1  ;;  %13668 = vmatprep.mubr.f32.mxu0 %v26504_v5  ;;  %13917 = vmatpush1.msra.mxu1 %v26575_v4 }
 0x4e8   : > { %v11170_v36 = vpop.f32.mrf.mxu0  ;;  %v11264_v47 = vadd.f32 %v11263_v18, %v11149_v20  ;;  %14117 = vmatprep.subr.mxu1 %v26573_v24 }
 0x4e9   : > { %v11171_v13 = vadd.f32 %v11170_v36, %v23783_v50  ;;  %v11268_v38 = vpop.f32.mrf.mxu1  ;;  %13763 = vmatmul.mubr.f32.gmra.mxu1 %v23709_v16 }
 0x4ea   : > { %v11179_v11 = vpop.f32.mrf.mxu0  ;;  %v11269_v53 = vadd.f32 %v11268_v38, %v11158_v61  ;;  %13674 = vmatmul.mubr.f32.gmra.mxu0 %v23804_v8  ;;  %13768 = vmatprep.mubr.f32.mxu1 %v26504_v5 }
 0x4eb   : > { %v11180_v52 = vadd.f32 %v11179_v11, %v23788_v45  ;;  %v11270_v56 = vpop.f32.mrf.mxu1  ;;  %13851 = vmatprep.mubr.f32.mxu0 %v26504_v5  ;;  %v26580_v45 = vld [vmem:[#allocation66_spill] sm:$0xff] }
 0x4ec   : > { %v11181_v58 = vpop.f32.mrf.mxu0  ;;  %v11271_v20 = vadd.f32 %v11270_v56, %v11160_v6  ;;  %v26581_v6 = vld [vmem:[#allocation68_spill] sm:$0xff] }
 0x4ed   : > { %v11182_v24 = vadd.f32 %v11181_v58, %v23798_v17  ;;  %v11275_v19 = vpop.f32.mrf.mxu1  ;;  %13770 = vmatmul.mubr.f32.gmra.mxu1 %v23716_v22 }
 0x4ee   : > { %v11276_v50 = vadd.f32 %v11275_v19, %v11169_v34  ;;  %v11359_v46 = vpop.f32.mrf.mxu0  ;;  %13854 = vmatmul.mubr.f32.vlgmr.msra.gmra.mxu0 %v23705_v44  ;;  %13775 = vmatprep.mubr.f32.mxu1 %v26504_v5 }
 0x4ef   : > { %v11360_v8 = vadd.f32 %v11359_v46, %v11262_v60  ;;  %v11277_v61 = vpop.f32.mrf.mxu1  ;;  %13859 = vmatprep.mubr.f32.mxu0 %v26504_v5  ;;  %14024 = vmatpush1.msra.mxu0 %v26580_v45 }
 0x4f0   : > { %v11278_v2 = vadd.f32 %v11277_v61, %v11171_v13  ;;  %v11361_v32 = vpop.f32.mrf.mxu0  ;;  %14244 = vmatprep.subr.mxu0 %v26581_v6 }
 0x4f1   : > { %v11362_v17 = vadd.f32 %v11361_v32, %v11264_v47  ;;  %v11282_v41 = vpop.f32.mrf.mxu1  ;;  %13777 = vmatmul.mubr.f32.gmra.mxu1 %v23739_v33  ;;  %v14205_v47 = vsel %vm1298_vm14, %v23340_v14, 0 }
 0x4f2   : > { %v11283_v51 = vadd.f32 %v11282_v41, %v11180_v52  ;;  %v11367_v34 = vpop.f32.mrf.mxu0  ;;  %13862 = vmatmul.mubr.f32.gmra.mxu0 %v23723_v26  ;;  %13950 = vmatprep.mubr.f32.mxu1 %v26504_v5 }
 0x4f3   : > { %v11368_v44 = vadd.f32 %v11367_v34, %v11269_v53  ;;  %v11284_v60 = vpop.f32.mrf.mxu1  ;;  %13867 = vmatprep.mubr.f32.mxu0 %v26504_v5  ;;  %v26583_v34 = vld [vmem:[#allocation71_spill] sm:$0xff] }
 0x4f4   : > { %v11285_v18 = vadd.f32 %v11284_v60, %v11182_v24  ;;  %v11369_v36 = vpop.f32.mrf.mxu0 }
 0x4f5   : > { %v11370_v13 = vadd.f32 %v11369_v36, %v11271_v20  ;;  %v11459_v38 = vpop.f32.mrf.mxu1  ;;  %13954 = vmatmul.mubr.f32.vlgmr.msra.gmra.mxu1 %v23720_v49  ;;  %v26582_v20 = vld [vmem:[#allocation72_spill] sm:$0xff]  ;;  %v23919_v49 = vand.u32 4294901760, %v14205_v47 }
 0x4f6   : > { %v11375_v11 = vpop.f32.mrf.mxu0  ;;  %v11460_v52 = vadd.f32 %v11459_v38, %v11360_v8  ;;  %13870 = vmatmul.mubr.f32.gmra.mxu0 %v23731_v0  ;;  %13959 = vmatprep.mubr.f32.mxu1 %v26504_v5 }
 0x4f7   : > { %v11376_v26 = vadd.f32 %v11375_v11, %v11276_v50  ;;  %v11461_v53 = vpop.f32.mrf.mxu1  ;;  %13875 = vmatprep.mubr.f32.mxu0 %v26504_v5  ;;  %14119 = vmatpush1.msra.mxu1 %v26575_v4  ;;  %v14207_v50 = vsel %vm1298_vm14, %v23374_v21, 0  ;;  %v23928_v45 = vsub.f32 %v14205_v47, %v23919_v49  ;;  %v14209_v21 = vsel %vm1298_vm14, %v23364_v27, 0 }
 0x4f8   : > { %v11377_v56 = vpop.f32.mrf.mxu0  ;;  %v11462_v58 = vadd.f32 %v11461_v53, %v11362_v17  ;;  %14359 = vmatprep.subr.mxu1 %v26582_v20  ;;  %v23931_v32 = vand.u32 4294901760, %v14207_v50  ;;  %v23944_v38 = vand.u32 4294901760, %v14209_v21 }
 0x4f9   : > { %v11378_v24 = vadd.f32 %v11377_v56, %v11278_v2  ;;  %v11468_v14 = vpop.f32.mrf.mxu1  ;;  %13963 = vmatmul.mubr.f32.gmra.mxu1 %v23737_v40 }
 0x4fa   : > { %v11383_v19 = vpop.f32.mrf.mxu0  ;;  %v11469_v0 = vadd.f32 %v11468_v14, %v11368_v44  ;;  %13878 = vmatmul.mubr.f32.gmra.mxu0 %v23757_v59  ;;  %13968 = vmatprep.mubr.f32.mxu1 %v26504_v5  ;;  %v23947_v27 = vsub.f32 %v14207_v50, %v23931_v32  ;;  %v23958_v14 = vsub.f32 %v14209_v21, %v23944_v38 }
 0x4fb   : > { %v11384_v4 = vadd.f32 %v11383_v19, %v11283_v51  ;;  %v11470_v46 = vpop.f32.mrf.mxu1  ;;  %14057 = vmatprep.mubr.f32.mxu0 %v26504_v5 }
 0x4fc   : > { %v11385_v8 = vpop.f32.mrf.mxu0  ;;  %v11471_v61 = vadd.f32 %v11470_v46, %v11370_v13  ;;  %v23961_v19 = vand.u32 4294901760, %v23947_v27  ;;  %v23978_v21 = vand.u32 4294901760, %v23958_v14 }
 0x4fd   : > { %v11386_v2 = vadd.f32 %v11385_v8, %v11285_v18  ;;  %v11477_v40 = vpop.f32.mrf.mxu1  ;;  %13972 = vmatmul.mubr.f32.gmra.mxu1 %v23751_v35  ;;  %v26584_v35 = vld [vmem:[#allocation69_spill] sm:$0xff]  ;;  %v23941_v18 = vand.u32 4294901760, %v23928_v45 }
 0x4fe   : > { %v11478_v59 = vadd.f32 %v11477_v40, %v11376_v26  ;;  %v11564_v17 = vpop.f32.mrf.mxu0  ;;  %14059 = vmatmul.mubr.f32.vlgmr.msra.gmra.mxu0 %v23696_v31  ;;  %13977 = vmatprep.mubr.f32.mxu1 %v26504_v5  ;;  %26585 = vst [vmem:[#allocation96_spill] sm:$0xff] %v23961_v19  ;;  %26589 = vst [vmem:[#allocation105_spill] sm:$0xff] %v23978_v21 }
 0x4ff   : > { %v11565_v41 = vadd.f32 %v11564_v17, %v11460_v52  ;;  %v11479_v51 = vpop.f32.mrf.mxu1  ;;  %14064 = vmatprep.mubr.f32.mxu0 %v26504_v5  ;;  %14246 = vmatpush1.msra.mxu0 %v26583_v34  ;;  %v14211_v52 = vsel %vm1298_vm14, %v23384_v43, 0 }
 0x500   : > { %v11480_v44 = vadd.f32 %v11479_v51, %v11378_v24  ;;  %v11566_v60 = vpop.f32.mrf.mxu0  ;;  %14459 = vmatprep.subr.mxu0 %v26584_v35  ;;  %v23963_v43 = vand.u32 4294901760, %v14211_v52 }
 0x501   : > { %v11567_v36 = vadd.f32 %v11566_v60, %v11462_v58  ;;  %v11486_v13 = vpop.f32.mrf.mxu1  ;;  %13981 = vmatmul.mubr.f32.gmra.mxu1 %v23770_v7  ;;  %v14283_v58 = vsub.f32 %v23928_v45, %v23941_v18  ;;  %v14294_v60 = vsub.f32 %v23947_v27, %v23961_v19 }
 0x502   : > { %v11487_v47 = vadd.f32 %v11486_v13, %v11384_v4  ;;  %v11571_v11 = vpop.f32.mrf.mxu0  ;;  %14066 = vmatmul.mubr.f32.gmra.mxu0 %v23709_v16  ;;  %14152 = vmatprep.mubr.f32.mxu1 %v26504_v5 }
 0x503   : > { %v11572_v26 = vadd.f32 %v11571_v11, %v11469_v0  ;;  %v11488_v53 = vpop.f32.mrf.mxu1  ;;  %14071 = vmatprep.mubr.f32.mxu0 %v26504_v5 }
 0x504   : > { %v11489_v56 = vadd.f32 %v11488_v53, %v11386_v2  ;;  %v11573_v7 = vpop.f32.mrf.mxu0  ;;  %v23974_v2 = vand.u32 4294901760, %v14283_v58  ;;  %v14305_v58 = vsub.f32 %v23958_v14, %v23978_v21 }
 0x505   : > { %v11574_v20 = vadd.f32 %v11573_v7, %v11471_v61  ;;  %v11659_v24 = vpop.f32.mrf.mxu1  ;;  %14154 = vmatmul.mubr.f32.vlgmr.msra.gmra.mxu1 %v23696_v31  ;;  %v26587_v31 = vld [vmem:[#allocation75_spill] sm:$0xff] }
 0x506   : > { %v11578_v0 = vpop.f32.mrf.mxu0  ;;  %v23965_v50 = vadd.f32 %v11659_v24, %v11565_v41  ;;  %14073 = vmatmul.mubr.f32.gmra.mxu0 %v23716_v22  ;;  %14159 = vmatprep.mubr.f32.mxu1 %v26504_v5 }
 0x507   : > { %v11579_v4 = vadd.f32 %v11578_v0, %v11478_v59  ;;  %v11661_v46 = vpop.f32.mrf.mxu1  ;;  %14078 = vmatprep.mubr.f32.mxu0 %v26504_v5  ;;  %14365 = vmatpush1.msra.mxu1 %v26587_v31  ;;  %v23981_v59 = vsub.f32 %v14211_v52, %v23963_v43 }
 0x508   : > { %26586 = vst [vmem:[#allocation101_spill] sm:$0xff] %v23965_v50  ;;  %v11580_v8 = vpop.f32.mrf.mxu0  ;;  %v23971_v61 = vadd.f32 %v11661_v46, %v11567_v36  ;;  %14559 = vmatprep.subr.mxu1 %v26581_v6 }
 0x509   : > { %v11581_v40 = vadd.f32 %v11580_v8, %v11480_v44  ;;  %v11666_v17 = vpop.f32.mrf.mxu1  ;;  %14161 = vmatmul.mubr.f32.gmra.mxu1 %v23709_v16  ;;  %26590 = vst [vmem:[#allocation107_spill] sm:$0xff] %v23981_v59  ;;  %v23990_v44 = vmul.f32 100.0, %v23456_v1 }
 0x50a   : > { %26588 = vst [vmem:[#allocation103_spill] sm:$0xff] %v23971_v61  ;;  %v11585_v41 = vpop.f32.mrf.mxu0  ;;  %v23983_v51 = vadd.f32 %v11666_v17, %v11572_v26  ;;  %14080 = vmatmul.mubr.f32.gmra.mxu0 %v23739_v33  ;;  %14166 = vmatprep.mubr.f32.mxu1 %v26504_v5  ;;  %v23997_v26 = vand.u32 4294901760, %v23981_v59  ;;  %v24018_v17 = vand.u32 4294901760, %v14305_v58 }
 0x50b   : > { %v11586_v16 = vadd.f32 %v11585_v41, %v11487_v47  ;;  %v11668_v35 = vpop.f32.mrf.mxu1  ;;  %14279 = vmatprep.mubr.f32.mxu0 %v26504_v5  ;;  %v24003_v47 = vand.u32 4294901760, %v14294_v60  ;;  %vm9106_vm14 = vcmp.gt.f32.partialorder %v23990_v44, 20.0 }
 0x50c   : > { %26591 = vst [vmem:[#allocation98_spill] sm:$0xff] %v23983_v51  ;;  %v11587_v36 = vpop.f32.mrf.mxu0  ;;  %v23993_v13 = vadd.f32 %v11668_v35, %v11574_v20  ;;  %26593 = vst [vmem:[#allocation102_spill] sm:$0xff] %v23997_v26  ;;  %v14316_v41 = vsub.f32 %v23981_v59, %v23997_v26 }
 0x50d   : > { %v11588_v11 = vadd.f32 %v11587_v36, %v11489_v56  ;;  %v11673_v52 = vpop.f32.mrf.mxu1  ;;  %14168 = vmatmul.mubr.f32.gmra.mxu1 %v23716_v22  ;;  %v9127_v56 = vmul.f32 1.442695, %v23990_v44  ;;  %v26595_v22 = vld [vmem:[#allocation73_spill] sm:$0xff] }
 0x50e   : > { %26592 = vst [vmem:[#allocation100_spill] sm:$0xff] %v23993_v13  ;;  %v23999_v53 = vadd.f32 %v11673_v52, %v11579_v4  ;;  %v11774_v7 = vpop.f32.mrf.mxu0  ;;  %14285 = vmatmul.mubr.f32.vlgmr.msra.gmra.mxu0 %v23974_v2  ;;  %14173 = vmatprep.mubr.f32.mxu1 %v26504_v5  ;;  %v26597_v4 = vld [vmem:[#allocation70_spill] sm:$0xff]  ;;  %v24028_v52 = vand.u32 4294901760, %v14316_v41 }
 0x50f   : > { %v11675_v20 = vpop.f32.mrf.mxu1  ;;  %14290 = vmatprep.mubr.f32.mxu0 %v26504_v5  ;;  %14462 = vmatpush1.msra.mxu0 %v26595_v22  ;;  %20047 = vpow2.f32 %v9127_v56 }
 0x510   : > { %26594 = vst [vmem:[#allocation109_spill] sm:$0xff] %v23999_v53  ;;  %v24010_v24 = vadd.f32 %v11675_v20, %v11581_v40  ;;  %v11776_v0 = vpop.f32.mrf.mxu0  ;;  %14664 = vmatprep.subr.mxu0 %v26597_v4  ;;  %v26600_v53 = vld [vmem:[#allocation74_spill] sm:$0xff] }
 0x511   : > { %v11680_v46 = vpop.f32.mrf.mxu1  ;;  %14175 = vmatmul.mubr.f32.gmra.mxu1 %v23739_v33 }
 0x512   : > { %26596 = vst [vmem:[#allocation104_spill] sm:$0xff] %v24010_v24  ;;  %v24014_v31 = vadd.f32 %v11680_v46, %v11586_v16  ;;  %v11785_v8 = vpop.f32.mrf.mxu0  ;;  %14296 = vmatmul.mubr.f32.gmra.mxu0 %v24003_v47  ;;  %14398 = vmatprep.mubr.f32.mxu1 %v26504_v5  ;;  %v24040_v46 = vmul.f32 100.0, %v23435_v28 }
 0x513   : > { %v11682_v40 = vpop.f32.mrf.mxu1  ;;  %14301 = vmatprep.mubr.f32.mxu0 %v26504_v5 }
 0x514   : > { %26598 = vst [vmem:[#allocation112_spill] sm:$0xff] %v24014_v31  ;;  %v24023_v60 = vadd.f32 %v11682_v40, %v11588_v11  ;;  %v11787_v35 = vpop.f32.mrf.mxu0  ;;  %v9109_v24 = vmul.f32 1.442695, %v24040_v46  ;;  %vm9097_vm11 = vcmp.gt.f32.partialorder %v24040_v46, 20.0 }
 0x515   : > { %v11889_v33 = vpop.f32.mrf.mxu1  ;;  %14400 = vmatmul.mubr.f32.vlgmr.msra.gmra.mxu1 %v23919_v49 }
 0x516   : > { %26599 = vst [vmem:[#allocation115_spill] sm:$0xff] %v24023_v60  ;;  %v11796_v16 = vpop.f32.mrf.mxu0  ;;  %v11890_v36 = vadd.f32 %v11889_v33, %v11774_v7  ;;  %14307 = vmatmul.mubr.f32.gmra.mxu0 %v24018_v17  ;;  %14405 = vmatprep.mubr.f32.mxu1 %v26504_v5  ;;  %v24035_v7 = vmul.f32 100.0, %v23453_v42  ;;  %v24047_v33 = vmul.f32 100.0, %v23438_v9 }
 0x517   : > { %v11891_v58 = vpop.f32.mrf.mxu1  ;;  %14312 = vmatprep.mubr.f32.mxu0 %v26504_v5  ;;  %14561 = vmatpush1.msra.mxu1 %v26583_v34 }
 0x518   : > { %v11798_v56 = vpop.f32.mrf.mxu0  ;;  %v11892_v11 = vadd.f32 %v11891_v58, %v11776_v0  ;;  %14761 = vmatprep.subr.mxu1 %v26581_v6  ;;  %v24044_v6 = vmul.f32 100.0, %v23450_v63  ;;  %vm9098_vm12 = vcmp.gt.f32.partialorder %v24047_v33, 20.0  ;;  %vm9105_vm0 = vcmp.gt.f32.partialorder %v24035_v7, 20.0 }
 0x519   : > { %v11896_v20 = vpop.f32.mrf.mxu1  ;;  %14407 = vmatmul.mubr.f32.gmra.mxu1 %v23931_v32 }
 0x51a   : > { %v11807_v22 = vpop.f32.mrf.mxu0  ;;  %v11897_v4 = vadd.f32 %v11896_v20, %v11785_v8  ;;  %14318 = vmatmul.mubr.f32.gmra.mxu0 %v24028_v52  ;;  %14412 = vmatprep.mubr.f32.mxu1 %v26504_v5  ;;  %v24051_v8 = vmul.f32 100.0, %v23444_v54  ;;  %v9125_v20 = vmul.f32 1.442695, %v24035_v7  ;;  %v9119_v51 = vmul.f32 1.442695, %v24044_v6  ;;  %v26601_v54 = vld [vmem:[#allocation58_spill] sm:$0xff] }
 0x51b   : > { %v11898_v41 = vpop.f32.mrf.mxu1  ;;  %14495 = vmatprep.mubr.f32.mxu0 %v26504_v5  ;;  %vm9102_vm1 = vcmp.gt.f32.partialorder %v24044_v6, 20.0 }
 0x51c   : > { %v11809_v0 = vpop.f32.mrf.mxu0  ;;  %v11899_v40 = vadd.f32 %v11898_v41, %v11787_v35  ;;  %v20048_v13 = vpop.eup %20047  ;;  %20049 = vpow2.f32 %v9125_v20  ;;  %vm9101_vm15 = vcmp.gt.f32.partialorder %v24051_v8, 20.0 }
 0x51d   : > { %v11903_v58 = vpop.f32.mrf.mxu1  ;;  %14414 = vmatmul.mubr.f32.gmra.mxu1 %v23944_v38  ;;  %20051 = vpow2.f32 %v9109_v24 }
 0x51e   : > { %v11904_v60 = vadd.f32 %v11903_v58, %v11796_v16  ;;  %v11987_v31 = vpop.f32.mrf.mxu0  ;;  %14498 = vmatmul.mubr.f32.vlgmr.msra.gmra.mxu0 %v23928_v45  ;;  %14419 = vmatprep.mubr.f32.mxu1 %v26504_v5  ;;  %v9111_v16 = vmul.f32 1.442695, %v24047_v33  ;;  %20053 = vpow2.f32 %v9119_v51 }
 0x51f   : > { %v11988_v35 = vadd.f32 %v11987_v31, %v11890_v36  ;;  %v11905_v41 = vpop.f32.mrf.mxu1  ;;  %14503 = vmatprep.mubr.f32.mxu0 %v26504_v5  ;;  %14668 = vmatpush1.msra.mxu0 %v26600_v53  ;;  %v9117_v31 = vmul.f32 1.442695, %v24051_v8  ;;  %v9142_v53 = vadd.f32 1.0, %v20048_v13  ;;  %v20227_v8 = vld [vmem:[%s26094_s5] sm:$0xff] }
 0x520   : > { %v11906_v61 = vadd.f32 %v11905_v41, %v11798_v56  ;;  %v11989_v50 = vpop.f32.mrf.mxu0  ;;  %14856 = vmatprep.subr.mxu0 %v26601_v54  ;;  %20055 = vpow2.f32 %v9111_v16 }
 0x521   : > { %v11990_v58 = vadd.f32 %v11989_v50, %v11892_v11  ;;  %v11910_v9 = vpop.f32.mrf.mxu1  ;;  %14421 = vmatmul.mubr.f32.gmra.mxu1 %v23963_v43  ;;  %20057 = vpow2.f32 %v9117_v31 }
 0x522   : > { %v11911_v36 = vadd.f32 %v11910_v9, %v11807_v22  ;;  %v11995_v28 = vpop.f32.mrf.mxu0  ;;  %14506 = vmatmul.mubr.f32.gmra.mxu0 %v23947_v27  ;;  %14594 = vmatprep.mubr.f32.mxu1 %v26504_v5  ;;  %20059 = vlog2.f32 %v9142_v53 }
 0x523   : > { %v11996_v56 = vadd.f32 %v11995_v28, %v11897_v4  ;;  %v11912_v41 = vpop.f32.mrf.mxu1  ;;  %14511 = vmatprep.mubr.f32.mxu0 %v26504_v5  ;;  %v26602_v4 = vld [vmem:[#allocation79_spill] sm:$0xff] }
 0x524   : > { %v11913_v50 = vadd.f32 %v11912_v41, %v11809_v0  ;;  %v11997_v11 = vpop.f32.mrf.mxu0 }
 0x525   : > { %v11998_v57 = vadd.f32 %v11997_v11, %v11899_v40  ;;  %v12087_v63 = vpop.f32.mrf.mxu1  ;;  %14598 = vmatmul.mubr.f32.vlgmr.msra.gmra.mxu1 %v23941_v18 }
 0x526   : > { %v12003_v9 = vpop.f32.mrf.mxu0  ;;  %v12088_v22 = vadd.f32 %v12087_v63, %v11988_v35  ;;  %14514 = vmatmul.mubr.f32.gmra.mxu0 %v23958_v14  ;;  %14603 = vmatprep.mubr.f32.mxu1 %v26504_v5 }
 0x527   : > { %v12004_v28 = vadd.f32 %v12003_v9, %v11904_v60  ;;  %v12089_v13 = vpop.f32.mrf.mxu1  ;;  %14519 = vmatprep.mubr.f32.mxu0 %v26504_v5  ;;  %14763 = vmatpush1.msra.mxu1 %v26583_v34 }
 0x528   : > { %v12005_v51 = vpop.f32.mrf.mxu0  ;;  %v12090_v24 = vadd.f32 %v12089_v13, %v11990_v58  ;;  %14971 = vmatprep.subr.mxu1 %v26602_v4 }
 0x529   : > { %v12006_v0 = vadd.f32 %v12005_v51, %v11906_v61  ;;  %v12096_v40 = vpop.f32.mrf.mxu1  ;;  %14607 = vmatmul.mubr.f32.gmra.mxu1 %v23961_v19 }
 0x52a   : > { %v12011_v63 = vpop.f32.mrf.mxu0  ;;  %v12097_v20 = vadd.f32 %v12096_v40, %v11996_v56  ;;  %14522 = vmatmul.mubr.f32.gmra.mxu0 %v23981_v59  ;;  %14612 = vmatprep.mubr.f32.mxu1 %v26504_v5  ;;  %v20050_v56 = vpop.eup %20049 }
 0x52b   : > { %v12012_v60 = vadd.f32 %v12011_v63, %v11911_v36  ;;  %v12098_v35 = vpop.f32.mrf.mxu1  ;;  %14701 = vmatprep.mubr.f32.mxu0 %v26504_v5  ;;  %v26603_v36 = vld [vmem:[#allocation78_spill] sm:$0xff]  ;;  %v20052_v9 = vpop.eup %20051  ;;  %v9141_v63 = vadd.f32 1.0, %v20050_v56 }
 0x52c   : > { %v12013_v16 = vpop.f32.mrf.mxu0  ;;  %v12099_v34 = vadd.f32 %v12098_v35, %v11998_v57  ;;  %v20054_v51 = vpop.eup %20053 }
 0x52d   : > { %v12014_v31 = vadd.f32 %v12013_v16, %v11913_v50  ;;  %v12105_v58 = vpop.f32.mrf.mxu1  ;;  %14616 = vmatmul.mubr.f32.gmra.mxu1 %v23978_v21  ;;  %v26604_v50 = vld [vmem:[#allocation29_spill] sm:$0xff]  ;;  %v20056_v40 = vpop.eup %20055  ;;  %20061 = vlog2.f32 %v9141_v63 }
 0x52e   : > { %v12106_v61 = vadd.f32 %v12105_v58, %v12004_v28  ;;  %v12192_v53 = vpop.f32.mrf.mxu0  ;;  %14703 = vmatmul.mubr.f32.vlgmr.msra.gmra.mxu0 %v23919_v49  ;;  %14621 = vmatprep.mubr.f32.mxu1 %v26504_v5 }
 0x52f   : > { %v12193_v41 = vadd.f32 %v12192_v53, %v12088_v22  ;;  %v12107_v11 = vpop.f32.mrf.mxu1  ;;  %14708 = vmatprep.mubr.f32.mxu0 %v26504_v5  ;;  %14858 = vmatpush1.msra.mxu0 %v26603_v36  ;;  %v20058_v22 = vpop.eup %20057 }
 0x530   : > { %v12108_v13 = vadd.f32 %v12107_v11, %v12006_v0  ;;  %v12194_v57 = vpop.f32.mrf.mxu0  ;;  %15071 = vmatprep.subr.mxu0 %v26604_v50  ;;  %v20060_v0 = vpop.eup %20059  ;;  %v9138_v11 = vadd.f32 1.0, %v20054_v51 }
 0x531   : > { %v12195_v4 = vadd.f32 %v12194_v57, %v12090_v24  ;;  %v12114_v28 = vpop.f32.mrf.mxu1  ;;  %14625 = vmatmul.mubr.f32.gmra.mxu1 %v23997_v26  ;;  %v9133_v57 = vadd.f32 1.0, %v20052_v9 }
 0x532   : > { %v12115_v35 = vadd.f32 %v12114_v28, %v12012_v60  ;;  %v12199_v16 = vpop.f32.mrf.mxu0  ;;  %14710 = vmatmul.mubr.f32.gmra.mxu0 %v23931_v32  ;;  %14796 = vmatprep.mubr.f32.mxu1 %v26504_v5  ;;  %v9134_v60 = vadd.f32 1.0, %v20056_v40  ;;  %20063 = vlog2.f32 %v9138_v11 }
 0x533   : > { %v12200_v58 = vadd.f32 %v12199_v16, %v12097_v20  ;;  %v12116_v53 = vpop.f32.mrf.mxu1  ;;  %14715 = vmatprep.mubr.f32.mxu0 %v26504_v5  ;;  %v9137_v20 = vadd.f32 1.0, %v20058_v22  ;;  %v9164_v16 = vmul.f32 0.6931472, %v20060_v0  ;;  %20065 = vlog2.f32 %v9133_v57  ;;  %v26612_v57 = vld [vmem:[#allocation76_spill] sm:$0xff] }
 0x534   : > { %v12117_v50 = vadd.f32 %v12116_v53, %v12014_v31  ;;  %v12201_v24 = vpop.f32.mrf.mxu0  ;;  %v26605_v31 = vld [vmem:[#allocation82_spill] sm:$0xff]  ;;  %20067 = vlog2.f32 %v9134_v60 }
 0x535   : > { %v12202_v21 = vadd.f32 %v12201_v24, %v12099_v34  ;;  %v12287_v26 = vpop.f32.mrf.mxu1  ;;  %14798 = vmatmul.mubr.f32.vlgmr.msra.gmra.mxu1 %v23919_v49  ;;  %20069 = vlog2.f32 %v9137_v20 }
 0x536   : > { %v12206_v56 = vpop.f32.mrf.mxu0  ;;  %v12288_v28 = vadd.f32 %v12287_v26, %v12193_v41  ;;  %14717 = vmatmul.mubr.f32.gmra.mxu0 %v23944_v38  ;;  %14803 = vmatprep.mubr.f32.mxu1 %v26504_v5 }
 0x537   : > { %v12207_v59 = vadd.f32 %v12206_v56, %v12106_v61  ;;  %v12289_v19 = vpop.f32.mrf.mxu1  ;;  %14722 = vmatprep.mubr.f32.mxu0 %v26504_v5  ;;  %14977 = vmatpush1.msra.mxu1 %v26605_v31 }
 0x538   : > { %v24093_v34 = vadd.f32 %v12288_v28, %v23848_v30  ;;  %v12208_v9 = vpop.f32.mrf.mxu0  ;;  %v12290_v51 = vadd.f32 %v12289_v19, %v12195_v4  ;;  %15171 = vmatprep.subr.mxu1 %v26601_v54  ;;  %v9178_v30 = vmul.f32 0.01, %v9164_v16 }
 0x539   : > { %v12209_v26 = vadd.f32 %v12208_v9, %v12108_v13  ;;  %v12294_v41 = vpop.f32.mrf.mxu1  ;;  %14805 = vmatmul.mubr.f32.gmra.mxu1 %v23931_v32 }
 0x53a   : > { %26606 = vst [vmem:[#allocation117_spill] sm:$0xff] %v24093_v34  ;;  %v24098_v61 = vadd.f32 %v12290_v51, %v23854_v37  ;;  %v12213_v40 = vpop.f32.mrf.mxu0  ;;  %v12295_v63 = vadd.f32 %v12294_v41, %v12200_v58  ;;  %14724 = vmatmul.mubr.f32.gmra.mxu0 %v23963_v43  ;;  %14810 = vmatprep.mubr.f32.mxu1 %v26504_v5 }
 0x53b   : > { %v12214_v19 = vadd.f32 %v12213_v40, %v12115_v35  ;;  %v12296_v4 = vpop.f32.mrf.mxu1  ;;  %14891 = vmatprep.mubr.f32.mxu0 %v26504_v5  ;;  %v24115_v35 = vmul.f32 100.0, %v23587_v10 }
 0x53c   : > { %26607 = vst [vmem:[#allocation106_spill] sm:$0xff] %v24098_v61  ;;  %v24104_v13 = vadd.f32 %v12295_v63, %v23858_v29  ;;  %v12215_v22 = vpop.f32.mrf.mxu0  ;;  %v12297_v53 = vadd.f32 %v12296_v4, %v12202_v21  ;;  %v9190_v29 = vsel %vm9106_vm14, %v23456_v1, %v9178_v30 }
 0x53d   : > { %v12216_v0 = vadd.f32 %v12215_v22, %v12117_v50  ;;  %v12301_v37 = vpop.f32.mrf.mxu1  ;;  %14812 = vmatmul.mubr.f32.gmra.mxu1 %v23944_v38  ;;  %v26610_v50 = vld [vmem:[#allocation80_spill] sm:$0xff]  ;;  %v15467_v1 = vsel %vm15462_vm8, %v9190_v29, 0  ;;  %v9131_v20 = vmul.f32 1.442695, %v24115_v35  ;;  %vm9108_vm13 = vcmp.gt.f32.partialorder %v24115_v35, 20.0 }
 0x53e   : > { %26608 = vst [vmem:[#allocation108_spill] sm:$0xff] %v24104_v13  ;;  %v24109_v58 = vadd.f32 %v12297_v53, %v23863_v23  ;;  %v12302_v11 = vadd.f32 %v12301_v37, %v12207_v59  ;;  %v12386_v24 = vpop.f32.mrf.mxu0  ;;  %14897 = vmatmul.mubr.f32.vlgmr.msra.gmra.mxu0 %v23974_v2  ;;  %14817 = vmatprep.mubr.f32.mxu1 %v26504_v5  ;;  %v24136_v41 = vand.u32 4294901760, %v15467_v1 }
 0x53f   : > { %v12303_v21 = vpop.f32.mrf.mxu1  ;;  %14902 = vmatprep.mubr.f32.mxu0 %v26504_v5  ;;  %15074 = vmatpush1.msra.mxu0 %v26610_v50  ;;  %20071 = vpow2.f32 %v9131_v20 }
 0x540   : > { %26609 = vst [vmem:[#allocation110_spill] sm:$0xff] %v24109_v58  ;;  %v24120_v44 = vadd.f32 %v12302_v11, %v23866_v25  ;;  %v12304_v23 = vadd.f32 %v12303_v21, %v12209_v26  ;;  %v12388_v59 = vpop.f32.mrf.mxu0  ;;  %15276 = vmatprep.subr.mxu0 %v26612_v57  ;;  %v20062_v25 = vpop.eup %20061  ;;  %v24147_v11 = vmul.f32 100.0, %v23578_v62 }
 0x541   : > { %v12308_v2 = vpop.f32.mrf.mxu1  ;;  %14819 = vmatmul.mubr.f32.gmra.mxu1 %v23963_v43  ;;  %v20064_v26 = vpop.eup %20063  ;;  %v9162_v40 = vmul.f32 0.6931472, %v20062_v25 }
 0x542   : > { %26611 = vst [vmem:[#allocation113_spill] sm:$0xff] %v24120_v44  ;;  %v24126_v60 = vadd.f32 %v12304_v23, %v23873_v48  ;;  %v12309_v56 = vadd.f32 %v12308_v2, %v12214_v19  ;;  %v12397_v28 = vpop.f32.mrf.mxu0  ;;  %14908 = vmatmul.mubr.f32.gmra.mxu0 %v24003_v47  ;;  %15010 = vmatprep.mubr.f32.mxu1 %v26504_v5  ;;  %v20066_v47 = vpop.eup %20065  ;;  %v9156_v53 = vmul.f32 0.6931472, %v20064_v26  ;;  %v24160_v2 = vmul.f32 100.0, %v23574_v12 }
 0x543   : > { %v12310_v16 = vpop.f32.mrf.mxu1  ;;  %14913 = vmatprep.mubr.f32.mxu0 %v26504_v5  ;;  %v9177_v21 = vmul.f32 0.01, %v9162_v40  ;;  %v24168_v26 = vmul.f32 100.0, %v23551_v39  ;;  %vm9107_vm2 = vcmp.gt.f32.partialorder %v24147_v11, 20.0 }
 0x544   : > { %26613 = vst [vmem:[#allocation85_spill] sm:$0xff] %v24126_v60  ;;  %v24133_v31 = vadd.f32 %v12309_v56, %v23878_v15  ;;  %v12311_v9 = vadd.f32 %v12310_v16, %v12216_v0  ;;  %v12399_v51 = vpop.f32.mrf.mxu0  ;;  %v20068_v15 = vpop.eup %20067  ;;  %v9174_v57 = vmul.f32 0.01, %v9156_v53  ;;  %vm9104_vm3 = vcmp.gt.f32.partialorder %v24160_v2, 20.0 }
 0x545   : > { %v12501_v48 = vpop.f32.mrf.mxu1  ;;  %15012 = vmatmul.mubr.f32.vlgmr.msra.gmra.mxu1 %v23919_v49  ;;  %v20070_v22 = vpop.eup %20069  ;;  %v9148_v29 = vmul.f32 0.6931472, %v20068_v15  ;;  %26616 = vst [vmem:[#allocation77_spill] sm:$0xff] %v24168_v26  ;;  %v26617_v15 = vld [vmem:[#allocation81_spill] sm:$0xff] }
 0x546   : > { %26614 = vst [vmem:[#allocation86_spill] sm:$0xff] %v24133_v31  ;;  %v24139_v63 = vadd.f32 %v12311_v9, %v23884_v3  ;;  %v12408_v30 = vpop.f32.mrf.mxu0  ;;  %v12502_v19 = vadd.f32 %v12501_v48, %v12386_v24  ;;  %14919 = vmatmul.mubr.f32.gmra.mxu0 %v24018_v17  ;;  %15017 = vmatprep.mubr.f32.mxu1 %v26504_v5  ;;  %v9146_v3 = vmul.f32 0.6931472, %v20066_v47 }
 0x547   : > { %v12503_v4 = vpop.f32.mrf.mxu1  ;;  %14924 = vmatprep.mubr.f32.mxu0 %v26504_v5  ;;  %15173 = vmatpush1.msra.mxu1 %v26603_v36  ;;  %v24151_v24 = vsub.f32 %v15467_v1, %v24136_v41  ;;  %v9170_v16 = vmul.f32 0.01, %v9148_v29  ;;  %v9189_v9 = vsel %vm9105_vm0, %v23453_v42, %v9177_v21  ;;  %v26618_v42 = vld [vmem:[#allocation97_spill] sm:$0xff] }
 0x548   : > { %26615 = vst [vmem:[#allocation87_spill] sm:$0xff] %v24139_v63  ;;  %v12410_v0 = vpop.f32.mrf.mxu0  ;;  %v12504_v37 = vadd.f32 %v12503_v4, %v12388_v59  ;;  %15373 = vmatprep.subr.mxu1 %v26601_v54  ;;  %v9154_v54 = vmul.f32 0.6931472, %v20070_v22  ;;  %v9186_v22 = vsel %vm9102_vm1, %v26618_v42, %v9174_v57  ;;  %v26621_v57 = vld [vmem:[#allocation95_spill] sm:$0xff] }
 0x549   : > { %v12508_v17 = vpop.f32.mrf.mxu1  ;;  %15019 = vmatmul.mubr.f32.gmra.mxu1 %v23931_v32  ;;  %v26251_v20 = vand.u32 4294901760, %v24151_v24 }
 0x54a   : > { %v12419_v50 = vpop.f32.mrf.mxu0  ;;  %v12509_v23 = vadd.f32 %v12508_v17, %v12397_v28  ;;  %14930 = vmatmul.mubr.f32.gmra.mxu0 %v24028_v52  ;;  %15024 = vmatprep.mubr.f32.mxu1 %v26504_v5  ;;  %v9169_v52 = vmul.f32 0.01, %v9146_v3  ;;  %v9129_v28 = vmul.f32 1.442695, %v24147_v11  ;;  %v9173_v7 = vmul.f32 0.01, %v9154_v54 }
 0x54b   : > { %v12510_v59 = vpop.f32.mrf.mxu1  ;;  %15107 = vmatprep.mubr.f32.mxu0 %v26504_v5  ;;  %v15464_v17 = vsel %vm15462_vm8, %v9189_v9, 0  ;;  %v15619_v21 = vsub.f32 %v24151_v24, %v26251_v20  ;;  %v26620_v54 = vld [vmem:[#allocation89_spill] sm:$0xff] }
 0x54c   : > { %v12421_v1 = vpop.f32.mrf.mxu0  ;;  %v12511_v56 = vadd.f32 %v12510_v59, %v12399_v51  ;;  %v24174_v51 = vmul.f32 100.0, %v23570_v55  ;;  %20073 = vpow2.f32 %v9129_v28  ;;  %v9181_v59 = vsel %vm9097_vm11, %v26620_v54, %v9169_v52  ;;  %v20072_v33 = vpop.eup %20071 }
 0x54d   : > { %v12515_v25 = vpop.f32.mrf.mxu1  ;;  %15026 = vmatmul.mubr.f32.gmra.mxu1 %v23944_v38  ;;  %v24213_v54 = vand.u32 4294901760, %v9181_v59 }
 0x54e   : > { %v12516_v48 = vadd.f32 %v12515_v25, %v12408_v30  ;;  %v12599_v47 = vpop.f32.mrf.mxu0  ;;  %15110 = vmatmul.mubr.f32.vlgmr.msra.gmra.mxu0 %v23928_v45  ;;  %15031 = vmatprep.mubr.f32.mxu1 %v26504_v5  ;;  %v26619_v30 = vld [vmem:[#allocation99_spill] sm:$0xff]  ;;  %v9123_v45 = vmul.f32 1.442695, %v24160_v2  ;;  %v9113_v25 = vmul.f32 1.442695, %v24168_v26  ;;  %v26631_v26 = vld [vmem:[#allocation101_spill] sm:$0xff] }
 0x54f   : > { %v12600_v40 = vadd.f32 %v12599_v47, %v12502_v19  ;;  %15280 = vmatpush1.msra.mxu0 %v26617_v15  ;;  %v12517_v4 = vpop.f32.mrf.mxu1  ;;  %15115 = vmatprep.mubr.f32.mxu0 %v26504_v5  ;;  %v24180_v53 = vmul.f32 100.0, %v26619_v30  ;;  %v24201_v15 = vand.u32 4294901760, %v9186_v22  ;;  %v9121_v46 = vmul.f32 1.442695, %v24174_v51 }
 0x550   : > { %15502 = vmatprep.subr.mxu0 %v24136_v41  ;;  %v12518_v3 = vadd.f32 %v12517_v4, %v12410_v0  ;;  %v12601_v6 = vpop.f32.mrf.mxu0  ;;  %v9182_v0 = vsel %vm9098_vm12, %v26621_v57, %v9170_v16  ;;  %v24205_v16 = vand.u32 4294901760, %v15464_v17  ;;  %20075 = vpow2.f32 %v9123_v45 }
 0x551   : > { %v12602_v19 = vadd.f32 %v12601_v6, %v12504_v37  ;;  %v12522_v29 = vpop.f32.mrf.mxu1  ;;  %15033 = vmatmul.mubr.f32.gmra.mxu1 %v23963_v43  ;;  %v26622_v37 = vld [vmem:[#allocation91_spill] sm:$0xff]  ;;  %20077 = vpow2.f32 %v9113_v25  ;;  %vm9103_vm4 = vcmp.gt.f32.partialorder %v24174_v51, 20.0  ;;  %vm9100_vm5 = vcmp.gt.f32.partialorder %v24180_v53, 20.0  ;;  %v26647_v51 = vld [vmem:[#allocation77_spill] sm:$0xff] }
 0x552   : > { %v12523_v9 = vadd.f32 %v12522_v29, %v12419_v50  ;;  %v12607_v28 = vpop.f32.mrf.mxu0  ;;  %15118 = vmatmul.mubr.f32.gmra.mxu0 %v23947_v27  ;;  %15206 = vmatprep.mubr.f32.mxu1 %v26504_v5  ;;  %v9185_v47 = vsel %vm9101_vm15, %v26622_v37, %v9173_v7  ;;  %v9115_v50 = vmul.f32 1.442695, %v24180_v53  ;;  %v15454_v7 = vsel %vm15453_vm10, %v20227_v8, 0  ;;  %v26624_v8 = vld [vmem:[#allocation107_spill] sm:$0xff] }
 0x553   : > { %v12608_v52 = vadd.f32 %v12607_v28, %v12509_v23  ;;  %v12524_v4 = vpop.f32.mrf.mxu1  ;;  %15123 = vmatprep.mubr.f32.mxu0 %v26504_v5  ;;  %v15620_v23 = vand.u32 4294901760, %v15619_v21  ;;  %v24215_v57 = vand.u32 4294901760, %v9185_v47  ;;  %20079 = vpow2.f32 %v9121_v46 }
 0x554   : > { %v12525_v27 = vadd.f32 %v12524_v4, %v12421_v1  ;;  %v12609_v42 = vpop.f32.mrf.mxu0  ;;  %v24219_v1 = vand.u32 4294901760, %v9182_v0  ;;  %v9144_v37 = vadd.f32 1.0, %v20072_v33  ;;  %v24226_v21 = vsub.f32 %v15464_v17, %v24205_v16  ;;  %v20228_v17 = vld [vmem:[%s26094_s5 + $0x8] sm:$0xff] }
 0x555   : > { %v12610_v6 = vadd.f32 %v12609_v42, %v12511_v56  ;;  %v12699_v29 = vpop.f32.mrf.mxu1  ;;  %15210 = vmatmul.mubr.f32.vlgmr.msra.gmra.mxu1 %v23941_v18  ;;  %v24223_v18 = vsub.f32 %v9186_v22, %v24201_v15  ;;  %20081 = vpow2.f32 %v9115_v50  ;;  %v24233_v33 = vsub.f32 %v9185_v47, %v24215_v57 }
 0x556   : > { %v12615_v28 = vpop.f32.mrf.mxu0  ;;  %v12700_v45 = vadd.f32 %v12699_v29, %v12600_v40  ;;  %15126 = vmatmul.mubr.f32.gmra.mxu0 %v23958_v14  ;;  %15375 = vmatpush1.msra.mxu1 %v26603_v36  ;;  %v24229_v36 = vand.u32 4294901760, %v15454_v7  ;;  %v24245_v50 = vsub.f32 %v9182_v0, %v24219_v1  ;;  %20083 = vlog2.f32 %v9144_v37 }
 0x557   : > { %v12616_v56 = vadd.f32 %v12615_v28, %v12516_v48  ;;  %15621 = vmatprep.subr.mxu1 %v15620_v23  ;;  %v12701_v4 = vpop.f32.mrf.mxu1  ;;  %15131 = vmatprep.mubr.f32.mxu0 %v26504_v5  ;;  %v26623_v48 = vld [vmem:[#allocation96_spill] sm:$0xff]  ;;  %v26252_v28 = vand.u32 4294901760, %v24226_v21  ;;  %vm9099_vm6 = vcmp.gt.f32.partialorder %v26647_v51, 20.0 }
 0x558   : > { %v12617_v40 = vpop.f32.mrf.mxu0  ;;  %v12702_v14 = vadd.f32 %v12701_v4, %v12602_v19  ;;  %15215 = vmatprep.mubr.f32.mxu1 %v26504_v5  ;;  %v15456_v19 = vsel %vm15453_vm10, %v20228_v17, 0  ;;  %v26253_v4 = vand.u32 4294901760, %v24223_v18 }
 0x559   : > { %v12618_v25 = vadd.f32 %v12617_v40, %v12518_v3  ;;  %v12708_v46 = vpop.f32.mrf.mxu1  ;;  %15219 = vmatmul.mubr.f32.gmra.mxu1 %v26623_v48  ;;  %v24242_v3 = vsub.f32 %v9181_v59, %v24213_v54  ;;  %v24251_v40 = vsub.f32 %v15454_v7, %v24229_v36  ;;  %v26625_v48 = vld [vmem:[#allocation105_spill] sm:$0xff]  ;;  %v24254_v0 = vand.u32 4294901760, %v15456_v19  ;;  %v20074_v37 = vpop.eup %20073 }
 0x55a   : > { %v12623_v42 = vpop.f32.mrf.mxu0  ;;  %v12709_v22 = vadd.f32 %v12708_v46, %v12608_v52  ;;  %15134 = vmatmul.mubr.f32.gmra.mxu0 %v26624_v8  ;;  %15224 = vmatprep.mubr.f32.mxu1 %v26504_v5  ;;  %v9143_v20 = vadd.f32 1.0, %v20074_v37 }
 0x55b   : > { %v12624_v47 = vadd.f32 %v12623_v42, %v12523_v9  ;;  %v12710_v29 = vpop.f32.mrf.mxu1  ;;  %15313 = vmatprep.mubr.f32.mxu0 %v26504_v5 }
 0x55c   : > { %v12625_v52 = vpop.f32.mrf.mxu0  ;;  %v12711_v23 = vadd.f32 %v12710_v29, %v12610_v6  ;;  %20085 = vlog2.f32 %v9143_v20 }
 0x55d   : > { %v12626_v46 = vadd.f32 %v12625_v52, %v12525_v27  ;;  %v12717_v59 = vpop.f32.mrf.mxu1  ;;  %15228 = vmatmul.mubr.f32.gmra.mxu1 %v26625_v48  ;;  %v15631_v48 = vsub.f32 %v24223_v18, %v26253_v4 }
 0x55e   : > { %v24256_v9 = vadd.f32 %v12717_v59, %v12616_v56  ;;  %v12804_v42 = vpop.f32.mrf.mxu0  ;;  %15315 = vmatmul.mubr.f32.vlgmr.msra.gmra.mxu0 %v23919_v49  ;;  %15233 = vmatprep.mubr.f32.mxu1 %v26504_v5  ;;  %v20229_v56 = vld [vmem:[%s26094_s5 + $0x10] sm:$0xff]  ;;  %v15625_v59 = vsub.f32 %v24226_v21, %v26252_v28 }
 0x55f   : > { %v12805_v8 = vadd.f32 %v12804_v42, %v12700_v45  ;;  %15504 = vmatpush1.msra.mxu0 %v24205_v16  ;;  %v12719_v7 = vpop.f32.mrf.mxu1  ;;  %15320 = vmatprep.mubr.f32.mxu0 %v26504_v5  ;;  %v15458_v29 = vsel %vm15453_vm10, %v20229_v56, 0  ;;  %v20076_v42 = vpop.eup %20075  ;;  %v26626_v56 = vld [vmem:[#allocation102_spill] sm:$0xff] }
 0x560   : > { %15506 = vmatprep.subr.mxu0 %v24201_v15  ;;  %v24270_v52 = vadd.f32 %v12719_v7, %v12618_v25  ;;  %v12806_v45 = vpop.f32.mrf.mxu0  ;;  %v24281_v25 = vand.u32 4294901760, %v24251_v40  ;;  %v24284_v7 = vsub.f32 %v15456_v19, %v24254_v0  ;;  %v26629_v19 = vand.u32 4294901760, %v24245_v50 }
 0x561   : > { %v12807_v17 = vadd.f32 %v12806_v45, %v12702_v14  ;;  %15508 = vmatpush1.msra.mxu0 %v24215_v57  ;;  %v12726_v27 = vpop.f32.mrf.mxu1  ;;  %15237 = vmatmul.mubr.f32.gmra.mxu1 %v26626_v56  ;;  %v26628_v14 = vand.u32 4294901760, %v24233_v33  ;;  %v24293_v45 = vand.u32 4294901760, %v15458_v29  ;;  %v20078_v56 = vpop.eup %20077  ;;  %v15626_v13 = vand.u32 4294901760, %v15625_v59 }
 0x562   : > { %26627 = vst [vmem:[#allocation111_spill] sm:$0xff] %v24281_v25  ;;  %15510 = vmatprep.subr.mxu0 %v24219_v1  ;;  %v24287_v28 = vadd.f32 %v12726_v27, %v12624_v47  ;;  %v12811_v6 = vpop.f32.mrf.mxu0  ;;  %15322 = vmatmul.mubr.f32.gmra.mxu0 %v23931_v32  ;;  %v15643_v47 = vsub.f32 %v24245_v50, %v26629_v19  ;;  %v26630_v27 = vand.u32 4294901760, %v24242_v3  ;;  %v15632_v19 = vand.u32 4294901760, %v15631_v48 }
 0x563   : > { %v15637_v37 = vsub.f32 %v24233_v33, %v26628_v14  ;;  %v12812_v4 = vadd.f32 %v12811_v6, %v12709_v22  ;;  %15512 = vmatpush1.msra.mxu0 %v24213_v54  ;;  %v12728_v63 = vpop.f32.mrf.mxu1  ;;  %15327 = vmatprep.mubr.f32.mxu0 %v26504_v5  ;;  %v20230_v14 = vld [vmem:[%s26094_s5 + $0x18] sm:$0xff]  ;;  %v20080_v22 = vpop.eup %20079  ;;  %v9140_v6 = vadd.f32 1.0, %v20076_v42  ;;  %v15549_v39 = vsub.f32 %v24251_v40, %v24281_v25 }
 0x564   : > { %v15649_v31 = vsub.f32 %v24242_v3, %v26630_v27  ;;  %v15460_v60 = vsel %vm15453_vm10, %v20230_v14, 0  ;;  %15741 = vmatprep.subr.mxu0 %v24151_v24  ;;  %v12729_v44 = vadd.f32 %v12728_v63, %v12626_v46  ;;  %v12813_v58 = vpop.f32.mrf.mxu0  ;;  %15408 = vmatprep.mubr.f32.mxu1 %v26504_v5  ;;  %v20082_v61 = vpop.eup %20081  ;;  %v24313_v14 = vand.u32 4294901760, %v24284_v7 }
 0x565   : > { %v12814_v34 = vadd.f32 %v12813_v58, %v12711_v23  ;;  %v12899_v27 = vpop.f32.mrf.mxu1  ;;  %15410 = vmatmul.mubr.f32.vlgmr.msra.gmra.mxu1 %v23919_v49  ;;  %v15638_v63 = vand.u32 4294901760, %v15637_v37  ;;  %v24317_v46 = vsub.f32 %v15458_v29, %v24293_v45  ;;  %v24319_v20 = vand.u32 4294901760, %v15460_v60  ;;  %v20084_v25 = vpop.eup %20083 }
 0x566   : > { %v12818_v42 = vpop.f32.mrf.mxu0  ;;  %v12900_v30 = vadd.f32 %v12899_v27, %v12805_v8  ;;  %15329 = vmatmul.mubr.f32.gmra.mxu0 %v23944_v38  ;;  %15627 = vmatpush1.msra.mxu1 %v15626_v13  ;;  %v9139_v58 = vadd.f32 1.0, %v20080_v22  ;;  %v15644_v59 = vand.u32 4294901760, %v15643_v47  ;;  %v15650_v48 = vand.u32 4294901760, %v15649_v31  ;;  %v26632_v31 = vld [vmem:[#allocation103_spill] sm:$0xff] }
 0x567   : > { %v12819_v49 = vadd.f32 %v12818_v42, %v24256_v9  ;;  %15633 = vmatprep.subr.mxu1 %v15632_v19  ;;  %v12901_v23 = vpop.f32.mrf.mxu1  ;;  %15334 = vmatprep.mubr.f32.mxu0 %v26504_v5  ;;  %v9135_v8 = vadd.f32 1.0, %v20078_v56  ;;  %v9136_v27 = vadd.f32 1.0, %v20082_v61  ;;  %20087 = vlog2.f32 %v9140_v6 }
 0x568   : > { %v24324_v13 = vadd.f32 %v12900_v30, %v26631_v26  ;;  %v12820_v37 = vpop.f32.mrf.mxu0  ;;  %v12902_v29 = vadd.f32 %v12901_v23, %v12807_v17  ;;  %15639 = vmatpush1.msra.mxu1 %v15638_v63  ;;  %15415 = vmatprep.mubr.f32.mxu1 %v26504_v5  ;;  %v24329_v47 = vand.u32 4294901760, %v15549_v39  ;;  %v15560_v61 = vsub.f32 %v24284_v7, %v24313_v14 }
 0x569   : > { %v12821_v9 = vadd.f32 %v12820_v37, %v24270_v52  ;;  %15645 = vmatprep.subr.mxu1 %v15644_v59  ;;  %v12906_v22 = vpop.f32.mrf.mxu1  ;;  %15417 = vmatmul.mubr.f32.gmra.mxu1 %v23931_v32  ;;  %v24338_v56 = vand.u32 4294901760, %v24317_v46  ;;  %v24341_v52 = vsub.f32 %v15460_v60, %v24319_v20  ;;  %20089 = vlog2.f32 %v9139_v58 }
 0x56a   : > { %v24334_v26 = vadd.f32 %v12902_v29, %v26632_v31  ;;  %v12825_v30 = vpop.f32.mrf.mxu0  ;;  %v12907_v17 = vadd.f32 %v12906_v22, %v12812_v4  ;;  %15336 = vmatmul.mubr.f32.gmra.mxu0 %v23963_v43  ;;  %15651 = vmatpush1.msra.mxu1 %v15650_v48  ;;  %v9168_v39 = vmul.f32 0.6931472, %v20084_v25  ;;  %20091 = vlog2.f32 %v9136_v27  ;;  %v26633_v4 = vld [vmem:[#allocation98_spill] sm:$0xff]  ;;  %v26635_v27 = vld [vmem:[#allocation109_spill] sm:$0xff]  ;;  %v26636_v31 = vld [vmem:[#allocation104_spill] sm:$0xff] }
 0x56b   : > { %v12826_v32 = vadd.f32 %v12825_v30, %v24287_v28  ;;  %15849 = vmatprep.subr.mxu1 %v24136_v41  ;;  %v12908_v6 = vpop.f32.mrf.mxu1  ;;  %15422 = vmatprep.mubr.f32.mxu1 %v26504_v5  ;;  %20093 = vlog2.f32 %v9135_v8  ;;  %v24351_v25 = vand.u32 4294901760, %v15560_v61  ;;  %v26634_v28 = vld [vmem:[#allocation100_spill] sm:$0xff]  ;;  %v24361_v8 = vand.u32 4294901760, %v24341_v52  ;;  %v20086_v61 = vpop.eup %20085 }
 0x56c   : > { %v24347_v19 = vadd.f32 %v12907_v17, %v26633_v4  ;;  %v12827_v42 = vpop.f32.mrf.mxu0  ;;  %v12909_v63 = vadd.f32 %v12908_v6, %v12814_v34  ;;  %15545 = vmatprep.mubr.f32.mxu0 %v26504_v5  ;;  %v15571_v34 = vsub.f32 %v24317_v46, %v24338_v56  ;;  %v26637_v4 = vld [vmem:[#allocation112_spill] sm:$0xff] }
 0x56d   : > { %v12828_v60 = vadd.f32 %v12827_v42, %v12729_v44  ;;  %v12913_v23 = vpop.f32.mrf.mxu1  ;;  %15424 = vmatmul.mubr.f32.gmra.mxu1 %v23944_v38  ;;  %v9180_v44 = vmul.f32 0.01, %v9168_v39  ;;  %v15582_v35 = vsub.f32 %v24341_v52, %v24361_v8 }
 0x56e   : > { %v24354_v58 = vadd.f32 %v12909_v63, %v26634_v28  ;;  %v12914_v59 = vadd.f32 %v12913_v23, %v12819_v49  ;;  %v13030_v48 = vpop.f32.mrf.mxu0  ;;  %15551 = vmatmul.mubr.f32.vlgmr.msra.gmra.mxu0 %v24329_v47  ;;  %15429 = vmatprep.mubr.f32.mxu1 %v26504_v5  ;;  %v24377_v6 = vand.u32 4294901760, %v15571_v34  ;;  %v9166_v28 = vmul.f32 0.6931472, %v20086_v61 }
 0x56f   : > { %15744 = vmatpush1.msra.mxu0 %v24226_v21  ;;  %v12915_v38 = vpop.f32.mrf.mxu1  ;;  %15556 = vmatprep.mubr.f32.mxu0 %v26504_v5 }
 0x570   : > { %v24366_v37 = vadd.f32 %v12914_v59, %v26635_v27  ;;  %15747 = vmatprep.subr.mxu0 %v24223_v18  ;;  %v12916_v49 = vadd.f32 %v12915_v38, %v12821_v9  ;;  %v13032_v29 = vpop.f32.mrf.mxu0  ;;  %v9192_v9 = vsel %vm9108_vm13, %v23587_v10, %v9180_v44  ;;  %v26640_v44 = vld [vmem:[#allocation115_spill] sm:$0xff] }
 0x571   : > { %15750 = vmatpush1.msra.mxu0 %v24233_v33  ;;  %v12920_v22 = vpop.f32.mrf.mxu1  ;;  %15431 = vmatmul.mubr.f32.gmra.mxu1 %v23963_v43  ;;  %v15473_v34 = vsel %vm15462_vm8, %v9192_v9, 0 }
 0x572   : > { %v24373_v30 = vadd.f32 %v12916_v49, %v26636_v31  ;;  %15753 = vmatprep.subr.mxu0 %v24245_v50  ;;  %v12921_v17 = vadd.f32 %v12920_v22, %v12826_v32  ;;  %v13041_v39 = vpop.f32.mrf.mxu0  ;;  %15562 = vmatmul.mubr.f32.gmra.mxu0 %v24351_v25  ;;  %v26639_v32 = vand.u32 4294901760, %v24151_v24  ;;  %v24397_v24 = vand.u32 4294901760, %v15582_v35 }
 0x573   : > { %15756 = vmatpush1.msra.mxu0 %v24242_v3  ;;  %v12922_v43 = vpop.f32.mrf.mxu1  ;;  %15567 = vmatprep.mubr.f32.mxu0 %v26504_v5  ;;  %v24405_v35 = vand.u32 4294901760, %v15473_v34 }
 0x574   : > { %v24385_v42 = vadd.f32 %v12921_v17, %v26637_v4  ;;  %15958 = vmatprep.subr.mxu0 %v26639_v32  ;;  %v12923_v63 = vadd.f32 %v12922_v43, %v12828_v60  ;;  %v13043_v23 = vpop.f32.mrf.mxu0  ;;  %15684 = vmatprep.mubr.f32.mxu1 %v26504_v5  ;;  %v20088_v10 = vpop.eup %20087  ;;  %v9179_v4 = vmul.f32 0.01, %v9166_v28 }
 0x575   : > { %v13145_v59 = vpop.f32.mrf.mxu1  ;;  %15686 = vmatmul.mubr.f32.vlgmr.msra.gmra.mxu1 %v24229_v36  ;;  %v9160_v43 = vmul.f32 0.6931472, %v20088_v10 }
 0x576   : > { %26638 = vst [vmem:[#allocation119_spill] sm:$0xff] %v24385_v42  ;;  %v24393_v38 = vadd.f32 %v12923_v63, %v26640_v44  ;;  %v13052_v27 = vpop.f32.mrf.mxu0  ;;  %v13146_v49 = vadd.f32 %v13145_v59, %v13030_v48  ;;  %15573 = vmatmul.mubr.f32.gmra.mxu0 %v24377_v6  ;;  %15851 = vmatpush1.msra.mxu1 %v24205_v16  ;;  %v20090_v22 = vpop.eup %20089 }
 0x577   : > { %15853 = vmatprep.subr.mxu1 %v24201_v15  ;;  %v13147_v60 = vpop.f32.mrf.mxu1  ;;  %15578 = vmatprep.mubr.f32.mxu0 %v26504_v5  ;;  %v20092_v17 = vpop.eup %20091  ;;  %v9176_v10 = vmul.f32 0.01, %v9160_v43 }
 0x578   : > { %26641 = vst [vmem:[#allocation114_spill] sm:$0xff] %v24393_v38  ;;  %v13054_v61 = vpop.f32.mrf.mxu0  ;;  %v13148_v31 = vadd.f32 %v13147_v60, %v13032_v29  ;;  %15855 = vmatpush1.msra.mxu1 %v24215_v57  ;;  %15691 = vmatprep.mubr.f32.mxu1 %v26504_v5  ;;  %v20094_v9 = vpop.eup %20093  ;;  %v9158_v29 = vmul.f32 0.6931472, %v20090_v22  ;;  %v9152_v44 = vmul.f32 0.6931472, %v20092_v17 }
 0x579   : > { %15857 = vmatprep.subr.mxu1 %v24219_v1  ;;  %v13152_v48 = vpop.f32.mrf.mxu1  ;;  %15693 = vmatmul.mubr.f32.gmra.mxu1 %v24254_v0  ;;  %v9150_v42 = vmul.f32 0.6931472, %v20094_v9  ;;  %v26642_v9 = vand.u32 4294901760, %v24226_v21  ;;  %v9188_v2 = vsel %vm9104_vm3, %v23574_v12, %v9176_v10  ;;  %v26648_v12 = vld [vmem:[#allocation99_spill] sm:$0xff] }
 0x57a   : > { %v13063_v32 = vpop.f32.mrf.mxu0  ;;  %v13153_v63 = vadd.f32 %v13152_v48, %v13041_v39  ;;  %15584 = vmatmul.mubr.f32.gmra.mxu0 %v24397_v24  ;;  %15859 = vmatpush1.msra.mxu1 %v24213_v54  ;;  %v24415_v39 = vsub.f32 %v15473_v34, %v24405_v35  ;;  %v26643_v34 = vand.u32 4294901760, %v24223_v18  ;;  %v26645_v18 = vand.u32 4294901760, %v24245_v50 }
 0x57b   : > { %16067 = vmatprep.subr.mxu1 %v24136_v41  ;;  %v13154_v59 = vpop.f32.mrf.mxu1  ;;  %15698 = vmatprep.mubr.f32.mxu1 %v26504_v5  ;;  %v9191_v41 = vsel %vm9107_vm2, %v23578_v62, %v9179_v4  ;;  %v9171_v43 = vmul.f32 0.01, %v9150_v42 }
 0x57c   : > { %v13065_v60 = vpop.f32.mrf.mxu0  ;;  %v13155_v38 = vadd.f32 %v13154_v59, %v13043_v23  ;;  %15789 = vmatprep.mubr.f32.mxu0 %v26504_v5  ;;  %v9175_v23 = vmul.f32 0.01, %v9158_v29  ;;  %v9172_v59 = vmul.f32 0.01, %v9152_v44  ;;  %v15470_v4 = vsel %vm15462_vm8, %v9191_v41, 0 }
 0x57d   : > { %v13159_v28 = vpop.f32.mrf.mxu1  ;;  %15700 = vmatmul.mubr.f32.gmra.mxu1 %v24293_v45  ;;  %v16282_v29 = vand.u32 4294901760, %v24415_v39  ;;  %v26646_v44 = vand.u32 4294901760, %v24242_v3  ;;  %v24443_v10 = vand.u32 4294901760, %v15470_v4 }
 0x57e   : > { %v13160_v22 = vadd.f32 %v13159_v28, %v13052_v27  ;;  %v13243_v48 = vpop.f32.mrf.mxu0  ;;  %15792 = vmatmul.mubr.f32.vlgmr.msra.gmra.mxu0 %v24251_v40  ;;  %15705 = vmatprep.mubr.f32.mxu1 %v26504_v5  ;;  %v9184_v50 = vsel %vm9100_vm5, %v26648_v12, %v9172_v59 }
 0x57f   : > { %v13244_v17 = vadd.f32 %v13243_v48, %v13146_v49  ;;  %15962 = vmatpush1.msra.mxu0 %v26642_v9  ;;  %v13161_v11 = vpop.f32.mrf.mxu1  ;;  %15797 = vmatprep.mubr.f32.mxu0 %v26504_v5  ;;  %v26644_v49 = vand.u32 4294901760, %v24233_v33  ;;  %v9187_v33 = vsel %vm9103_vm4, %v23570_v55, %v9175_v23  ;;  %v26649_v55 = vld [vmem:[#allocation94_spill] sm:$0xff]  ;;  %v26650_v9 = vld [vmem:[#allocation111_spill] sm:$0xff] }
 0x580   : > { %15966 = vmatprep.subr.mxu0 %v26643_v34  ;;  %v13162_v62 = vadd.f32 %v13161_v11, %v13054_v61  ;;  %v13245_v27 = vpop.f32.mrf.mxu0  ;;  %v9183_v53 = vsel %vm9099_vm6, %v26649_v55, %v9171_v43  ;;  %v16283_v11 = vsub.f32 %v24415_v39, %v16282_v29  ;;  %v24454_v59 = vand.u32 4294901760, %v9187_v33 }
 0x581   : > { %v13246_v28 = vadd.f32 %v13245_v27, %v13148_v31  ;;  %15970 = vmatpush1.msra.mxu0 %v26644_v49  ;;  %v13166_v21 = vpop.f32.mrf.mxu1  ;;  %15707 = vmatmul.mubr.f32.gmra.mxu1 %v24319_v20  ;;  %v24462_v49 = vand.u32 4294901760, %v9183_v53 }
 0x582   : > { %15974 = vmatprep.subr.mxu0 %v26645_v18  ;;  %v13167_v61 = vadd.f32 %v13166_v21, %v13063_v32  ;;  %v13251_v42 = vpop.f32.mrf.mxu0  ;;  %15800 = vmatmul.mubr.f32.gmra.mxu0 %v24284_v7  ;;  %v24465_v21 = vsub.f32 %v15470_v4, %v24443_v10 }
 0x583   : > { %v13252_v31 = vadd.f32 %v13251_v42, %v13153_v63  ;;  %15978 = vmatpush1.msra.mxu0 %v26646_v44  ;;  %v13168_v41 = vpop.f32.mrf.mxu1  ;;  %15805 = vmatprep.mubr.f32.mxu0 %v26504_v5  ;;  %v24448_v63 = vand.u32 4294901760, %v9188_v2  ;;  %v24475_v44 = vsub.f32 %v9187_v33, %v24454_v59 }
 0x584   : > { %16166 = vmatprep.subr.mxu0 %v24405_v35  ;;  %v13169_v32 = vadd.f32 %v13168_v41, %v13065_v60  ;;  %v13253_v48 = vpop.f32.mrf.mxu0  ;;  %15892 = vmatprep.mubr.f32.mxu1 %v26504_v5  ;;  %v24458_v60 = vand.u32 4294901760, %v9184_v50 }
 0x585   : > { %v13254_v3 = vadd.f32 %v13253_v48, %v13155_v38  ;;  %v13343_v23 = vpop.f32.mrf.mxu1  ;;  %15896 = vmatmul.mubr.f32.vlgmr.msra.gmra.mxu1 %v26650_v9  ;;  %v26259_v48 = vand.u32 4294901760, %v24475_v44 }
 0x586   : > { %v13259_v34 = vpop.f32.mrf.mxu0  ;;  %v13344_v27 = vadd.f32 %v13343_v23, %v13244_v17  ;;  %15808 = vmatmul.mubr.f32.gmra.mxu0 %v24317_v46  ;;  %16069 = vmatpush1.msra.mxu1 %v24205_v16  ;;  %v24470_v16 = vsub.f32 %v9188_v2, %v24448_v63  ;;  %v16284_v17 = vand.u32 4294901760, %v16283_v11 }
 0x587   : > { %v13260_v43 = vadd.f32 %v13259_v34, %v13160_v22  ;;  %16071 = vmatprep.subr.mxu1 %v24201_v15  ;;  %v13345_v38 = vpop.f32.mrf.mxu1  ;;  %15813 = vmatprep.mubr.f32.mxu0 %v26504_v5 }
 0x588   : > { %v13261_v18 = vpop.f32.mrf.mxu0  ;;  %v13346_v42 = vadd.f32 %v13345_v38, %v13246_v28  ;;  %16073 = vmatpush1.msra.mxu1 %v24215_v57  ;;  %15901 = vmatprep.mubr.f32.mxu1 %v26504_v5  ;;  %v24480_v57 = vsub.f32 %v9184_v50, %v24458_v60 }
 0x589   : > { %v13262_v22 = vadd.f32 %v13261_v18, %v13162_v62  ;;  %16075 = vmatprep.subr.mxu1 %v24219_v1  ;;  %v13352_v15 = vpop.f32.mrf.mxu1  ;;  %15905 = vmatmul.mubr.f32.gmra.mxu1 %v24313_v14  ;;  %v24484_v1 = vsub.f32 %v9183_v53, %v24462_v49 }
 0x58a   : > { %v13267_v4 = vpop.f32.mrf.mxu0  ;;  %v13353_v41 = vadd.f32 %v13352_v15, %v13252_v31  ;;  %15816 = vmatmul.mubr.f32.gmra.mxu0 %v24341_v52  ;;  %16077 = vmatpush1.msra.mxu1 %v24213_v54  ;;  %v16288_v31 = vand.u32 4294901760, %v24465_v21  ;;  %v16294_v54 = vand.u32 4294901760, %v24470_v16  ;;  %v16301_v15 = vsub.f32 %v24475_v44, %v26259_v48 }
 0x58b   : > { %v13268_v28 = vadd.f32 %v13267_v4, %v13167_v61  ;;  %16285 = vmatprep.subr.mxu1 %v16284_v17  ;;  %v13354_v62 = vpop.f32.mrf.mxu1  ;;  %15910 = vmatprep.mubr.f32.mxu1 %v26504_v5  ;;  %v16312_v34 = vand.u32 4294901760, %v24484_v1 }
 0x58c   : > { %v13269_v2 = vpop.f32.mrf.mxu0  ;;  %v13355_v33 = vadd.f32 %v13354_v62, %v13254_v3  ;;  %16011 = vmatprep.mubr.f32.mxu0 %v26504_v5  ;;  %v16289_v11 = vsub.f32 %v24465_v21, %v16288_v31  ;;  %v16295_v38 = vsub.f32 %v24470_v16, %v16294_v54 }
 0x58d   : > { %v13270_v51 = vadd.f32 %v13269_v2, %v13169_v32  ;;  %v13361_v12 = vpop.f32.mrf.mxu1  ;;  %15914 = vmatmul.mubr.f32.gmra.mxu1 %v24338_v56  ;;  %v26258_v32 = vand.u32 4294901760, %v24480_v57 }
 0x58e   : > { %v13362_v61 = vadd.f32 %v13361_v12, %v13260_v43  ;;  %v13448_v50 = vpop.f32.mrf.mxu0  ;;  %16013 = vmatmul.mubr.f32.vlgmr.msra.gmra.mxu0 %v24229_v36  ;;  %15919 = vmatprep.mubr.f32.mxu1 %v26504_v5  ;;  %v16290_v2 = vand.u32 4294901760, %v16289_v11 }
 0x58f   : > { %v13449_v55 = vadd.f32 %v13448_v50, %v13344_v27  ;;  %16168 = vmatpush1.msra.mxu0 %v24443_v10  ;;  %v13363_v53 = vpop.f32.mrf.mxu1  ;;  %16018 = vmatprep.mubr.f32.mxu0 %v26504_v5  ;;  %v16307_v4 = vsub.f32 %v24480_v57, %v26258_v32  ;;  %v26651_v32 = vld [vmem:[#allocation117_spill] sm:$0xff] }
 0x590   : > { %16170 = vmatprep.subr.mxu0 %v24448_v63  ;;  %v13364_v3 = vadd.f32 %v13363_v53, %v13262_v22  ;;  %v13450_v23 = vpop.f32.mrf.mxu0  ;;  %v16296_v53 = vand.u32 4294901760, %v16295_v38 }
 0x591   : > { %v13451_v43 = vadd.f32 %v13450_v23, %v13346_v42  ;;  %16172 = vmatpush1.msra.mxu0 %v24454_v59  ;;  %v13370_v27 = vpop.f32.mrf.mxu1  ;;  %15923 = vmatmul.mubr.f32.gmra.mxu1 %v24361_v8  ;;  %v16308_v11 = vand.u32 4294901760, %v16307_v4  ;;  %v26653_v4 = vld [vmem:[#allocation108_spill] sm:$0xff] }
 0x592   : > { %16174 = vmatprep.subr.mxu0 %v24458_v60  ;;  %v13371_v18 = vadd.f32 %v13370_v27, %v13268_v28  ;;  %v13455_v22 = vpop.f32.mrf.mxu0  ;;  %16020 = vmatmul.mubr.f32.gmra.mxu0 %v24254_v0 }
 0x593   : > { %v13456_v42 = vadd.f32 %v13455_v22, %v13353_v41  ;;  %16176 = vmatpush1.msra.mxu0 %v24462_v49  ;;  %v13372_v17 = vpop.f32.mrf.mxu1  ;;  %16025 = vmatprep.mubr.f32.mxu0 %v26504_v5  ;;  %v16313_v41 = vsub.f32 %v24484_v1, %v16312_v34  ;;  %v16302_v22 = vand.u32 4294901760, %v16301_v15 }
 0x594   : > { %16405 = vmatprep.subr.mxu0 %v24415_v39  ;;  %v13373_v28 = vadd.f32 %v13372_v17, %v13270_v51  ;;  %v13457_v62 = vpop.f32.mrf.mxu0  ;;  %16110 = vmatprep.mubr.f32.mxu1 %v26504_v5 }
 0x595   : > { %v13458_v12 = vadd.f32 %v13457_v62, %v13355_v33  ;;  %v13543_v50 = vpop.f32.mrf.mxu1  ;;  %16112 = vmatmul.mubr.f32.vlgmr.msra.gmra.mxu1 %v24229_v36  ;;  %v16314_v38 = vand.u32 4294901760, %v16313_v41 }
 0x596   : > { %v13462_v23 = vpop.f32.mrf.mxu0  ;;  %v13544_v27 = vadd.f32 %v13543_v50, %v13449_v55  ;;  %16027 = vmatmul.mubr.f32.gmra.mxu0 %v24293_v45  ;;  %16291 = vmatpush1.msra.mxu1 %v16290_v2 }
 0x597   : > { %v13463_v51 = vadd.f32 %v13462_v23, %v13362_v61  ;;  %16297 = vmatprep.subr.mxu1 %v16296_v53  ;;  %v13545_v17 = vpop.f32.mrf.mxu1  ;;  %16032 = vmatprep.mubr.f32.mxu0 %v26504_v5  ;;  %v26652_v61 = vld [vmem:[#allocation106_spill] sm:$0xff] }
 0x598   : > { %v24525_v48 = vadd.f32 %v13544_v27, %v26651_v32  ;;  %v13464_v33 = vpop.f32.mrf.mxu0  ;;  %v13546_v62 = vadd.f32 %v13545_v17, %v13451_v43  ;;  %16303 = vmatpush1.msra.mxu1 %v16302_v22  ;;  %16117 = vmatprep.mubr.f32.mxu1 %v26504_v5 }
 0x599   : > { %v13465_v55 = vadd.f32 %v13464_v33, %v13364_v3  ;;  %16309 = vmatprep.subr.mxu1 %v16308_v11  ;;  %v13550_v50 = vpop.f32.mrf.mxu1  ;;  %16119 = vmatmul.mubr.f32.gmra.mxu1 %v24254_v0 }
 0x59a   : > { %v24530_v15 = vadd.f32 %v13546_v62, %v26652_v61  ;;  %v13469_v2 = vpop.f32.mrf.mxu0  ;;  %v13551_v53 = vadd.f32 %v13550_v50, %v13456_v42  ;;  %16034 = vmatmul.mubr.f32.gmra.mxu0 %v24319_v20  ;;  %16315 = vmatpush1.msra.mxu1 %v16314_v38  ;;  %v26654_v42 = vld [vmem:[#allocation110_spill] sm:$0xff] }
 0x59b   : > { %v13470_v32 = vadd.f32 %v13469_v2, %v13371_v18  ;;  %16513 = vmatprep.subr.mxu1 %v24405_v35  ;;  %v13552_v43 = vpop.f32.mrf.mxu1  ;;  %16124 = vmatprep.mubr.f32.mxu1 %v26504_v5 }
 0x59c   : > { %v24536_v3 = vadd.f32 %v13551_v53, %v26653_v4  ;;  %v13471_v41 = vpop.f32.mrf.mxu0  ;;  %v13553_v23 = vadd.f32 %v13552_v43, %v13458_v12  ;;  %16209 = vmatprep.mubr.f32.mxu0 %v26504_v5  ;;  %v26655_v12 = vld [vmem:[#allocation113_spill] sm:$0xff] }
 0x59d   : > { %v13472_v27 = vadd.f32 %v13471_v41, %v13373_v28  ;;  %v13557_v22 = vpop.f32.mrf.mxu1  ;;  %16126 = vmatmul.mubr.f32.gmra.mxu1 %v24293_v45 }
 0x59e   : > { %v24541_v17 = vadd.f32 %v13553_v23, %v26654_v42  ;;  %v13558_v18 = vadd.f32 %v13557_v22, %v13463_v51  ;;  %v13642_v11 = vpop.f32.mrf.mxu0  ;;  %16215 = vmatmul.mubr.f32.vlgmr.msra.gmra.mxu0 %v24329_v47  ;;  %16131 = vmatprep.mubr.f32.mxu1 %v26504_v5  ;;  %v26656_v47 = vld [vmem:[#allocation85_spill] sm:$0xff] }
 0x59f   : > { %16408 = vmatpush1.msra.mxu0 %v24465_v21  ;;  %v13559_v33 = vpop.f32.mrf.mxu1  ;;  %16220 = vmatprep.mubr.f32.mxu0 %v26504_v5 }
 0x5a0   : > { %v24548_v62 = vadd.f32 %v13558_v18, %v26655_v12  ;;  %16411 = vmatprep.subr.mxu0 %v24470_v16  ;;  %v13560_v28 = vadd.f32 %v13559_v33, %v13465_v55  ;;  %v13644_v38 = vpop.f32.mrf.mxu0  ;;  %v26657_v55 = vld [vmem:[#allocation86_spill] sm:$0xff] }
 0x5a1   : > { %16414 = vmatpush1.msra.mxu0 %v24475_v44  ;;  %v13564_v51 = vpop.f32.mrf.mxu1  ;;  %16133 = vmatmul.mubr.f32.gmra.mxu1 %v24319_v20 }
 0x5a2   : > { %v24554_v50 = vadd.f32 %v13560_v28, %v26656_v47  ;;  %16417 = vmatprep.subr.mxu0 %v24480_v57  ;;  %v13565_v61 = vadd.f32 %v13564_v51, %v13470_v32  ;;  %v13653_v2 = vpop.f32.mrf.mxu0  ;;  %16226 = vmatmul.mubr.f32.gmra.mxu0 %v24351_v25  ;;  %v26658_v32 = vld [vmem:[#allocation87_spill] sm:$0xff] }
 0x5a3   : > { %16420 = vmatpush1.msra.mxu0 %v24484_v1  ;;  %v13566_v53 = vpop.f32.mrf.mxu1  ;;  %16231 = vmatprep.mubr.f32.mxu0 %v26504_v5 }
 0x5a4   : > { %v24561_v43 = vadd.f32 %v13565_v61, %v26657_v55  ;;  %16622 = vmatprep.subr.mxu0 %v16282_v29  ;;  %v13567_v4 = vadd.f32 %v13566_v53, %v13472_v27  ;;  %v13655_v41 = vpop.f32.mrf.mxu0  ;;  %16348 = vmatprep.mubr.f32.mxu1 %v26504_v5  ;;  %v26659_v53 = vand.u32 4294901760, %v24475_v44 }
 0x5a5   : > { %v13757_v23 = vpop.f32.mrf.mxu1  ;;  %16350 = vmatmul.mubr.f32.vlgmr.msra.gmra.mxu1 %v24229_v36 }
 0x5a6   : > { %v24568_v25 = vadd.f32 %v13567_v4, %v26658_v32  ;;  %v13664_v22 = vpop.f32.mrf.mxu0  ;;  %v13758_v42 = vadd.f32 %v13757_v23, %v13642_v11  ;;  %16237 = vmatmul.mubr.f32.gmra.mxu0 %v24377_v6  ;;  %16515 = vmatpush1.msra.mxu1 %v24443_v10 }
 0x5a7   : > { %16517 = vmatprep.subr.mxu1 %v24448_v63  ;;  %v13759_v39 = vpop.f32.mrf.mxu1  ;;  %16242 = vmatprep.mubr.f32.mxu0 %v26504_v5 }
 0x5a8   : > { %v13666_v29 = vpop.f32.mrf.mxu0  ;;  %v24574_v27 = vadd.f32 %v13759_v39, %v13644_v38  ;;  %16519 = vmatpush1.msra.mxu1 %v24454_v59  ;;  %16355 = vmatprep.mubr.f32.mxu1 %v26504_v5 }
 0x5a9   : > { %16521 = vmatprep.subr.mxu1 %v24458_v60  ;;  %v13764_v18 = vpop.f32.mrf.mxu1  ;;  %16357 = vmatmul.mubr.f32.gmra.mxu1 %v24254_v0 }
 0x5aa   : > { %v13675_v6 = vpop.f32.mrf.mxu0  ;;  %v13765_v11 = vadd.f32 %v13764_v18, %v13653_v2  ;;  %16248 = vmatmul.mubr.f32.gmra.mxu0 %v24397_v24  ;;  %16523 = vmatpush1.msra.mxu1 %v24462_v49 }
 0x5ab   : > { %16731 = vmatprep.subr.mxu1 %v24405_v35  ;;  %v13766_v33 = vpop.f32.mrf.mxu1  ;;  %16362 = vmatprep.mubr.f32.mxu1 %v26504_v5 }
 0x5ac   : > { %v13677_v12 = vpop.f32.mrf.mxu0  ;;  %v24584_v28 = vadd.f32 %v13766_v33, %v13655_v41  ;;  %16453 = vmatprep.mubr.f32.mxu0 %v26504_v5 }
 0x5ad   : > { %v13771_v38 = vpop.f32.mrf.mxu1  ;;  %16364 = vmatmul.mubr.f32.gmra.mxu1 %v24293_v45 }
 0x5ae   : > { %v13772_v51 = vadd.f32 %v13771_v38, %v13664_v22  ;;  %v13855_v47 = vpop.f32.mrf.mxu0  ;;  %16456 = vmatmul.mubr.f32.vlgmr.msra.gmra.mxu0 %v24251_v40  ;;  %16369 = vmatprep.mubr.f32.mxu1 %v26504_v5  ;;  %v26660_v40 = vand.u32 4294901760, %v24480_v57 }
 0x5af   : > { %v13856_v24 = vadd.f32 %v13855_v47, %v13758_v42  ;;  %16626 = vmatpush1.msra.mxu0 %v16288_v31  ;;  %v13773_v35 = vpop.f32.mrf.mxu1  ;;  %16461 = vmatprep.mubr.f32.mxu0 %v26504_v5 }
 0x5b0   : > { %16630 = vmatprep.subr.mxu0 %v16294_v54  ;;  %v24595_v61 = vadd.f32 %v13773_v35, %v13666_v29  ;;  %v13857_v2 = vpop.f32.mrf.mxu0 }
 0x5b1   : > { %16634 = vmatpush1.msra.mxu0 %v26659_v53  ;;  %v13778_v55 = vpop.f32.mrf.mxu1  ;;  %16371 = vmatmul.mubr.f32.gmra.mxu1 %v24319_v20  ;;  %v13858_v29 = vadd.f32 %v13857_v2, %v24574_v27 }
 0x5b2   : > { %16638 = vmatprep.subr.mxu0 %v26660_v40  ;;  %v13779_v21 = vadd.f32 %v13778_v55, %v13675_v6  ;;  %v13863_v31 = vpop.f32.mrf.mxu0  ;;  %16464 = vmatmul.mubr.f32.gmra.mxu0 %v24284_v7 }
 0x5b3   : > { %v13864_v4 = vadd.f32 %v13863_v31, %v13765_v11  ;;  %16642 = vmatpush1.msra.mxu0 %v16312_v34  ;;  %v13780_v16 = vpop.f32.mrf.mxu1  ;;  %16469 = vmatprep.mubr.f32.mxu0 %v26504_v5 }
 0x5b4   : > { %v24606_v54 = vadd.f32 %v13780_v16, %v13677_v12  ;;  %v13865_v44 = vpop.f32.mrf.mxu0  ;;  %16556 = vmatprep.mubr.f32.mxu1 %v26504_v5 }
 0x5b5   : > { %v13955_v41 = vpop.f32.mrf.mxu1  ;;  %16560 = vmatmul.mubr.f32.vlgmr.msra.gmra.mxu1 %v26650_v9 }
 0x5b6   : > { %v13871_v57 = vpop.f32.mrf.mxu0  ;;  %v13956_v23 = vadd.f32 %v13955_v41, %v13856_v24  ;;  %16472 = vmatmul.mubr.f32.gmra.mxu0 %v24317_v46  ;;  %16733 = vmatpush1.msra.mxu1 %v24443_v10 }
 0x5b7   : > { %v13872_v7 = vadd.f32 %v13871_v57, %v13772_v51  ;;  %16735 = vmatprep.subr.mxu1 %v24448_v63  ;;  %v13957_v1 = vpop.f32.mrf.mxu1  ;;  %16477 = vmatprep.mubr.f32.mxu0 %v26504_v5  ;;  %v13866_v51 = vadd.f32 %v13865_v44, %v24584_v28 }
 0x5b8   : > { %v13873_v34 = vpop.f32.mrf.mxu0  ;;  %16737 = vmatpush1.msra.mxu1 %v24454_v59  ;;  %16565 = vmatprep.mubr.f32.mxu1 %v26504_v5  ;;  %v13958_v33 = vadd.f32 %v13957_v1, %v13858_v29 }
 0x5b9   : > { %16739 = vmatprep.subr.mxu1 %v24458_v60  ;;  %v13964_v9 = vpop.f32.mrf.mxu1  ;;  %16569 = vmatmul.mubr.f32.gmra.mxu1 %v24313_v14 }
 0x5ba   : > { %v13879_v32 = vpop.f32.mrf.mxu0  ;;  %v13965_v46 = vadd.f32 %v13964_v9, %v13864_v4  ;;  %16480 = vmatmul.mubr.f32.gmra.mxu0 %v24341_v52  ;;  %16741 = vmatpush1.msra.mxu1 %v24462_v49 }
 0x5bb   : > { %v13880_v10 = vadd.f32 %v13879_v32, %v13779_v21  ;;  %v13966_v63 = vpop.f32.mrf.mxu1  ;;  %16574 = vmatprep.mubr.f32.mxu1 %v26504_v5  ;;  %16675 = vmatprep.mubr.f32.mxu0 %v26504_v5 }
 0x5bc   : > { %v13881_v59 = vpop.f32.mrf.mxu0  ;;  %v13967_v2 = vadd.f32 %v13966_v63, %v13866_v51 }
 0x5bd   : > { %v13973_v22 = vpop.f32.mrf.mxu1  ;;  %16578 = vmatmul.mubr.f32.gmra.mxu1 %v24338_v56 }
 0x5be   : > { %v13974_v60 = vadd.f32 %v13973_v22, %v13872_v7  ;;  %v14060_v42 = vpop.f32.mrf.mxu0  ;;  %16677 = vmatmul.mubr.f32.vlgmr.msra.gmra.mxu0 %v24229_v36  ;;  %16583 = vmatprep.mubr.f32.mxu1 %v26504_v5 }
 0x5bf   : > { %v14061_v14 = vadd.f32 %v14060_v42, %v13956_v23  ;;  %v13975_v52 = vpop.f32.mrf.mxu1  ;;  %16682 = vmatprep.mubr.f32.mxu0 %v26504_v5  ;;  %v26664_v42 = vld [vmem:[#allocation119_spill] sm:$0xff] }
 0x5c0   : > { %v14062_v49 = vpop.f32.mrf.mxu0 }
 0x5c1   : > { %v13982_v39 = vpop.f32.mrf.mxu1  ;;  %16587 = vmatmul.mubr.f32.gmra.mxu1 %v24361_v8  ;;  %v14063_v8 = vadd.f32 %v14062_v49, %v13958_v33 }
 0x5c2   : > { %v13983_v18 = vadd.f32 %v13982_v39, %v13880_v10  ;;  %v14067_v6 = vpop.f32.mrf.mxu0  ;;  %16684 = vmatmul.mubr.f32.gmra.mxu0 %v24254_v0  ;;  %16774 = vmatprep.mubr.f32.mxu1 %v26504_v5  ;;  %v26665_v39 = vld [vmem:[#allocation114_spill] sm:$0xff] }
 0x5c3   : > { %v14068_v56 = vadd.f32 %v14067_v6, %v13965_v46  ;;  %v13984_v11 = vpop.f32.mrf.mxu1  ;;  %16689 = vmatprep.mubr.f32.mxu0 %v26504_v5 }
 0x5c4   : > { %v14069_v12 = vpop.f32.mrf.mxu0 }
 0x5c5   : > { %v14155_v38 = vpop.f32.mrf.mxu1  ;;  %16776 = vmatmul.mubr.f32.vlgmr.msra.gmra.mxu1 %v24229_v36  ;;  %v13874_v36 = vadd.f32 %v13873_v34, %v24595_v61  ;;  %v14070_v21 = vadd.f32 %v14069_v12, %v13967_v2 }
 0x5c6   : > { %v14074_v47 = vpop.f32.mrf.mxu0  ;;  %v14156_v27 = vadd.f32 %v14155_v38, %v14061_v14  ;;  %16691 = vmatmul.mubr.f32.gmra.mxu0 %v24293_v45  ;;  %16781 = vmatprep.mubr.f32.mxu1 %v26504_v5 }
 0x5c7   : > { %v14075_v24 = vadd.f32 %v14074_v47, %v13974_v60  ;;  %v14157_v35 = vpop.f32.mrf.mxu1  ;;  %16696 = vmatprep.mubr.f32.mxu0 %v26504_v5  ;;  %v13976_v41 = vadd.f32 %v13975_v52, %v13874_v36 }
 0x5c8   : > { %v24637_v53 = vadd.f32 %v14156_v27, %v24324_v13  ;;  %v14076_v55 = vpop.f32.mrf.mxu0  ;;  %v14158_v40 = vadd.f32 %v14157_v35, %v14063_v8 }
 0x5c9   : > { %v14162_v28 = vpop.f32.mrf.mxu1  ;;  %16783 = vmatmul.mubr.f32.gmra.mxu1 %v24254_v0  ;;  %v14077_v7 = vadd.f32 %v14076_v55, %v13976_v41 }
 0x5ca   : > { %v24642_v31 = vadd.f32 %v14158_v40, %v24334_v26  ;;  %v14081_v4 = vpop.f32.mrf.mxu0  ;;  %v14163_v16 = vadd.f32 %v14162_v28, %v14068_v56  ;;  %16698 = vmatmul.mubr.f32.gmra.mxu0 %v24319_v20  ;;  %16788 = vmatprep.mubr.f32.mxu1 %v26504_v5  ;;  %v13882_v26 = vadd.f32 %v13881_v59, %v24606_v54 }
 0x5cb   : > { %v14082_v44 = vadd.f32 %v14081_v4, %v13983_v18  ;;  %v14164_v13 = vpop.f32.mrf.mxu1  ;;  %17095 = vmatprep.mubr.f32.mxu0 %v26504_v5 }
 0x5cc   : > { %26661 = vst [vmem:[#allocation120_spill] sm:$0xff] %v24642_v31  ;;  %v24648_v61 = vadd.f32 %v14163_v16, %v24347_v19  ;;  %v14083_v57 = vpop.f32.mrf.mxu0  ;;  %v14165_v0 = vadd.f32 %v14164_v13, %v14070_v21  ;;  %v13985_v46 = vadd.f32 %v13984_v11, %v13882_v26 }
 0x5cd   : > { %v14169_v23 = vpop.f32.mrf.mxu1  ;;  %16790 = vmatmul.mubr.f32.gmra.mxu1 %v24293_v45 }
 0x5ce   : > { %v24653_v1 = vadd.f32 %v14165_v0, %v24354_v58  ;;  %v14170_v34 = vadd.f32 %v14169_v23, %v14075_v24  ;;  %v14286_v9 = vpop.f32.mrf.mxu0  ;;  %16795 = vmatprep.mubr.f32.mxu1 %v26504_v5  ;;  %v14084_v45 = vadd.f32 %v14083_v57, %v13985_v46 }
 0x5cf   : > { %v14171_v32 = vpop.f32.mrf.mxu1 }
 0x5d0   : > { %26662 = vst [vmem:[#allocation124_spill] sm:$0xff] %v24653_v1  ;;  %v24657_v19 = vadd.f32 %v14170_v34, %v24366_v37  ;;  %v14172_v10 = vadd.f32 %v14171_v32, %v14077_v7  ;;  %v24659_v63 = vpop.f32.mrf.mxu0 }
 0x5d1   : > { %v14176_v22 = vpop.f32.mrf.mxu1  ;;  %16797 = vmatmul.mubr.f32.gmra.mxu1 %v24319_v20 }
 0x5d2   : > { %v24663_v54 = vadd.f32 %v14172_v10, %v24373_v30  ;;  %v14177_v58 = vadd.f32 %v14176_v22, %v14082_v44  ;;  %v14297_v59 = vpop.f32.mrf.mxu0  ;;  %17244 = vmatprep.mubr.f32.mxu1 %v26504_v5 }
 0x5d3   : > { %v14178_v60 = vpop.f32.mrf.mxu1 }
 0x5d4   : > { %26663 = vst [vmem:[#allocation83_spill] sm:$0xff] %v24663_v54  ;;  %v24667_v14 = vadd.f32 %v14177_v58, %v26664_v42  ;;  %v14179_v37 = vadd.f32 %v14178_v60, %v14084_v45  ;;  %v24669_v52 = vpop.f32.mrf.mxu0 }
 0x5d5   : > { %v14401_v49 = vpop.f32.mrf.mxu1 }
 0x5d6   : > { %v24672_v29 = vadd.f32 %v14179_v37, %v26665_v39  ;;  %v14308_v20 = vpop.f32.mrf.mxu0  ;;  %v14402_v18 = vadd.f32 %v14401_v49, %v14286_v9 }
 0x5d7   : > { %v24674_v6 = vpop.f32.mrf.mxu1 }
 0x5d8   : > { %26666 = vst [vmem:[#allocation116_spill] sm:$0xff] %v24672_v29  ;;  %v24676_v30 = vpop.f32.mrf.mxu0 }
 0x5d9   : > { %v14408_v56 = vpop.f32.mrf.mxu1 }
 0x5da   : > { %v14319_v11 = vpop.f32.mrf.mxu0  ;;  %v14409_v33 = vadd.f32 %v14408_v56, %v14297_v59 }
 0x5db   : > { %v24678_v12 = vpop.f32.mrf.mxu1 }
 0x5dc   : > { %v24680_v38 = vpop.f32.mrf.mxu0 }
 0x5dd   : > { %v14415_v51 = vpop.f32.mrf.mxu1 }
 0x5de   : > { %v14416_v8 = vadd.f32 %v14415_v51, %v14308_v20  ;;  %v14499_v47 = vpop.f32.mrf.mxu0 }
 0x5df   : > { %v14500_v27 = vadd.f32 %v14499_v47, %v14402_v18  ;;  %v24682_v24 = vpop.f32.mrf.mxu1 }
 0x5e0   : > { %v24684_v35 = vpop.f32.mrf.mxu0 }
 0x5e1   : > { %v14422_v2 = vpop.f32.mrf.mxu1 }
 0x5e2   : > { %v14423_v55 = vadd.f32 %v14422_v2, %v14319_v11  ;;  %v14507_v40 = vpop.f32.mrf.mxu0 }
 0x5e3   : > { %v14508_v36 = vadd.f32 %v14507_v40, %v14409_v33  ;;  %v24686_v28 = vpop.f32.mrf.mxu1 }
 0x5e4   : > { %v24688_v21 = vpop.f32.mrf.mxu0 }
 0x5e5   : > { %v14599_v4 = vpop.f32.mrf.mxu1 }
 0x5e6   : > { %v14515_v16 = vpop.f32.mrf.mxu0  ;;  %v14600_v44 = vadd.f32 %v14599_v4, %v14500_v27 }
 0x5e7   : > { %v14516_v13 = vadd.f32 %v14515_v16, %v14416_v8  ;;  %v24690_v41 = vpop.f32.mrf.mxu1 }
 0x5e8   : > { %v24692_v57 = vpop.f32.mrf.mxu0 }
 0x5e9   : > { %v14608_v0 = vpop.f32.mrf.mxu1 }
 0x5ea   : > { %v14523_v23 = vpop.f32.mrf.mxu0  ;;  %v14609_v26 = vadd.f32 %v14608_v0, %v14508_v36 }
 0x5eb   : > { %v14524_v7 = vadd.f32 %v14523_v23, %v14423_v55  ;;  %v24694_v34 = vpop.f32.mrf.mxu1 }
 0x5ec   : > { %v24696_v9 = vpop.f32.mrf.mxu0 }
 0x5ed   : > { %v14617_v32 = vpop.f32.mrf.mxu1 }
 0x5ee   : > { %v14618_v46 = vadd.f32 %v14617_v32, %v14516_v13  ;;  %v14704_v10 = vpop.f32.mrf.mxu0 }
 0x5ef   : > { %v14705_v22 = vadd.f32 %v14704_v10, %v14600_v44  ;;  %v24698_v45 = vpop.f32.mrf.mxu1 }
 0x5f0   : > { %v24700_v58 = vpop.f32.mrf.mxu0 }
 0x5f1   : > { %v14626_v59 = vpop.f32.mrf.mxu1 }
 0x5f2   : > { %v14627_v60 = vadd.f32 %v14626_v59, %v14524_v7  ;;  %v14711_v42 = vpop.f32.mrf.mxu0 }
 0x5f3   : > { %v14712_v37 = vadd.f32 %v14711_v42, %v14609_v26  ;;  %v24702_v49 = vpop.f32.mrf.mxu1 }
 0x5f4   : > { %v24704_v39 = vpop.f32.mrf.mxu0 }
 0x5f5   : > { %v14799_v20 = vpop.f32.mrf.mxu1 }
 0x5f6   : > { %v14718_v18 = vpop.f32.mrf.mxu0  ;;  %v14800_v56 = vadd.f32 %v14799_v20, %v14705_v22 }
 0x5f7   : > { %v14719_v11 = vadd.f32 %v14718_v18, %v14618_v46  ;;  %v24706_v33 = vpop.f32.mrf.mxu1 }
 0x5f8   : > { %v24708_v51 = vpop.f32.mrf.mxu0  ;;  %v24711_v8 = vadd.f32 %v14800_v56, %v24525_v48 }
 0x5f9   : > { %v14806_v47 = vpop.f32.mrf.mxu1 }
 0x5fa   : > { %v14725_v27 = vpop.f32.mrf.mxu0  ;;  %v14807_v2 = vadd.f32 %v14806_v47, %v14712_v37 }
 0x5fb   : > { %v14726_v55 = vadd.f32 %v14725_v27, %v14627_v60  ;;  %v24713_v40 = vpop.f32.mrf.mxu1 }
 0x5fc   : > { %v24715_v36 = vpop.f32.mrf.mxu0  ;;  %v24718_v4 = vadd.f32 %v14807_v2, %v24536_v3 }
 0x5fd   : > { %v14813_v16 = vpop.f32.mrf.mxu1 }
 0x5fe   : > { %v14814_v44 = vadd.f32 %v14813_v16, %v14719_v11  ;;  %v14898_v13 = vpop.f32.mrf.mxu0 }
 0x5ff   : > { %v24720_v0 = vpop.f32.mrf.mxu1 }
 0x600   : > { %v24722_v23 = vpop.f32.mrf.mxu0  ;;  %v24725_v48 = vadd.f32 %v14814_v44, %v24548_v62 }
 0x601   : > { %v14820_v26 = vpop.f32.mrf.mxu1 }
 0x602   : > { %v14821_v7 = vadd.f32 %v14820_v26, %v14726_v55  ;;  %v14909_v32 = vpop.f32.mrf.mxu0 }
 0x603   : > { %v24727_v46 = vpop.f32.mrf.mxu1 }
 0x604   : > { %v24729_v10 = vpop.f32.mrf.mxu0  ;;  %v24732_v3 = vadd.f32 %v14821_v7, %v24561_v43 }
 0x605   : > { %v15013_v22 = vpop.f32.mrf.mxu1 }
 0x606   : > { %v14920_v59 = vpop.f32.mrf.mxu0  ;;  %v15014_v60 = vadd.f32 %v15013_v22, %v14898_v13 }
 0x607   : > { %v24734_v42 = vpop.f32.mrf.mxu1 }
 0x608   : > { %v24736_v37 = vpop.f32.mrf.mxu0 }
 0x609   : > { %26667 = vst [vmem:[#allocation123_spill] sm:$0xff] %v24736_v37  ;;  %v15020_v20 = vpop.f32.mrf.mxu1 }
 0x60a   : > { %v14931_v62 = vpop.f32.mrf.mxu0  ;;  %v15021_v18 = vadd.f32 %v15020_v20, %v14909_v32 }
 0x60b   : > { %v24738_v56 = vpop.f32.mrf.mxu1 }
 0x60c   : > { %v24740_v11 = vpop.f32.mrf.mxu0 }
 0x60d   : > { %26668 = vst [vmem:[#allocation118_spill] sm:$0xff] %v24740_v11  ;;  %v15027_v47 = vpop.f32.mrf.mxu1 }
 0x60e   : > { %v15028_v27 = vadd.f32 %v15027_v47, %v14920_v59  ;;  %v15111_v2 = vpop.f32.mrf.mxu0 }
 0x60f   : > { %v15112_v55 = vadd.f32 %v15111_v2, %v15014_v60  ;;  %v24742_v43 = vpop.f32.mrf.mxu1 }
 0x610   : > { %26669 = vst [vmem:[#allocation121_spill] sm:$0xff] %v24742_v43  ;;  %v24744_v16 = vpop.f32.mrf.mxu0 }
 0x611   : > { %26670 = vst [vmem:[#allocation90_spill] sm:$0xff] %v24744_v16  ;;  %v15034_v44 = vpop.f32.mrf.mxu1 }
 0x612   : > { %v15035_v13 = vadd.f32 %v15034_v44, %v14931_v62  ;;  %v15119_v26 = vpop.f32.mrf.mxu0 }
 0x613   : > { %v15120_v7 = vadd.f32 %v15119_v26, %v15021_v18  ;;  %v24746_v22 = vpop.f32.mrf.mxu1 }
 0x614   : > { %26671 = vst [vmem:[#allocation122_spill] sm:$0xff] %v24746_v22  ;;  %v24748_v5 = vpop.f32.mrf.mxu0 }
 0x615   : > { %26672 = vst [vmem:[#allocation88_spill] sm:$0xff] %v24748_v5  ;;  %v15211_v32 = vpop.f32.mrf.mxu1 }
 0x616   : > { %v15127_v20 = vpop.f32.mrf.mxu0  ;;  %v15212_v29 = vadd.f32 %v15211_v32, %v15112_v55 }
 0x617   : > { %v15128_v54 = vadd.f32 %v15127_v20, %v15028_v27  ;;  %v24750_v1 = vpop.f32.mrf.mxu1 }
 0x618   : > { %26673 = vst [vmem:[#allocation92_spill] sm:$0xff] %v24750_v1  ;;  %v24752_v59 = vpop.f32.mrf.mxu0 }
 0x619   : > { %26674 = vst [vmem:[#allocation84_spill] sm:$0xff] %v24752_v59  ;;  %v15220_v60 = vpop.f32.mrf.mxu1 }
 0x61a   : > { %v15135_v47 = vpop.f32.mrf.mxu0  ;;  %v15221_v2 = vadd.f32 %v15220_v60, %v15120_v7 }
 0x61b   : > { %v15136_v31 = vadd.f32 %v15135_v47, %v15035_v13  ;;  %v24754_v11 = vpop.f32.mrf.mxu1 }
 0x61c   : > { %26675 = vst [vmem:[#allocation93_spill] sm:$0xff] %v24754_v11  ;;  %v24756_v62 = vpop.f32.mrf.mxu0 }
 0x61d   : > { %26676 = vst [vmem:[#allocation3_spill] sm:$0xff] %v24756_v62  ;;  %v15229_v18 = vpop.f32.mrf.mxu1 }
 0x61e   : > { %v15230_v44 = vadd.f32 %v15229_v18, %v15128_v54  ;;  %v15316_v26 = vpop.f32.mrf.mxu0 }
 0x61f   : > { %v15317_v5 = vadd.f32 %v15316_v26, %v15212_v29  ;;  %v24758_v22 = vpop.f32.mrf.mxu1 }
 0x620   : > { %26677 = vst [vmem:[#allocation2_spill] sm:$0xff] %v24758_v22  ;;  %v24760_v55 = vpop.f32.mrf.mxu0 }
 0x621   : > { %26678 = vst [vmem:[#allocation9_spill] sm:$0xff] %v24760_v55  ;;  %v15238_v27 = vpop.f32.mrf.mxu1  ;;  %v14411_v55 = vadd.f32 %v24678_v12, %v24669_v52 }
 0x622   : > { %v15239_v32 = vadd.f32 %v15238_v27, %v15136_v31  ;;  %v15323_v20 = vpop.f32.mrf.mxu0 }
 0x623   : > { %v15324_v1 = vadd.f32 %v15323_v20, %v15221_v2  ;;  %v24762_v59 = vpop.f32.mrf.mxu1 }
 0x624   : > { %26679 = vst [vmem:[#allocation5_spill] sm:$0xff] %v24762_v59  ;;  %v24764_v7 = vpop.f32.mrf.mxu0 }
 0x625   : > { %26680 = vst [vmem:[#allocation8_spill] sm:$0xff] %v24764_v7  ;;  %v15411_v13 = vpop.f32.mrf.mxu1 }
 0x626   : > { %v15330_v60 = vpop.f32.mrf.mxu0  ;;  %v15412_v47 = vadd.f32 %v15411_v13, %v15317_v5 }
 0x627   : > { %v15331_v11 = vadd.f32 %v15330_v60, %v15230_v44  ;;  %v24766_v62 = vpop.f32.mrf.mxu1 }
 0x628   : > { %26681 = vst [vmem:[#allocation4_spill] sm:$0xff] %v24766_v62  ;;  %v24768_v54 = vpop.f32.mrf.mxu0  ;;  %v24771_v29 = vadd.f32 %v15412_v47, %v24637_v53 }
 0x629   : > { %26682 = vst [vmem:[#allocation7_spill] sm:$0xff] %v24768_v54  ;;  %v15418_v18 = vpop.f32.mrf.mxu1 }
 0x62a   : > { %26683 = vst [vmem:[#allocation6_spill] sm:$0xff] %v24771_v29  ;;  %v15337_v26 = vpop.f32.mrf.mxu0  ;;  %v15419_v31 = vadd.f32 %v15418_v18, %v15324_v1 }
 0x62b   : > { %v15338_v27 = vadd.f32 %v15337_v26, %v15239_v32  ;;  %v24773_v2 = vpop.f32.mrf.mxu1 }
 0x62c   : > { %26684 = vst [vmem:[#allocation10_spill] sm:$0xff] %v24773_v2  ;;  %v24775_v20 = vpop.f32.mrf.mxu0  ;;  %v24778_v7 = vadd.f32 %v15419_v31, %v24648_v61 }
 0x62d   : > { %26685 = vst [vmem:[#allocation14_spill] sm:$0xff] %v24775_v20  ;;  %v15425_v5 = vpop.f32.mrf.mxu1 }
 0x62e   : > { %26686 = vst [vmem:[#allocation13_spill] sm:$0xff] %v24778_v7  ;;  %v15426_v44 = vadd.f32 %v15425_v5, %v15331_v11  ;;  %v15552_v13 = vpop.f32.mrf.mxu0 }
 0x62f   : > { %v24780_v60 = vpop.f32.mrf.mxu1 }
 0x630   : > { %26687 = vst [vmem:[#allocation11_spill] sm:$0xff] %v24780_v60  ;;  %v15554_v62 = vpop.f32.mrf.mxu0  ;;  %v24783_v53 = vadd.f32 %v15426_v44, %v24657_v19 }
 0x631   : > { %v15432_v47 = vpop.f32.mrf.mxu1 }
 0x632   : > { %26688 = vst [vmem:[#allocation17_spill] sm:$0xff] %v24783_v53  ;;  %v15433_v29 = vadd.f32 %v15432_v47, %v15338_v27  ;;  %v15563_v1 = vpop.f32.mrf.mxu0 }
 0x633   : > { %v24785_v32 = vpop.f32.mrf.mxu1 }
 0x634   : > { %26689 = vst [vmem:[#allocation15_spill] sm:$0xff] %v24785_v32  ;;  %v24787_v18 = vpop.f32.mrf.mxu0  ;;  %v24790_v26 = vadd.f32 %v15433_v29, %v24667_v14  ;;  %v14404_v14 = vadd.f32 %v24674_v6, %v24659_v63  ;;  %v14510_v63 = vadd.f32 %v24688_v21, %v14411_v55 }
 0x635   : > { %v15687_v61 = vpop.f32.mrf.mxu1 }
 0x636   : > { %26690 = vst [vmem:[#allocation12_spill] sm:$0xff] %v24790_v26  ;;  %v24792_v31 = vpop.f32.mrf.mxu0  ;;  %v14502_v32 = vadd.f32 %v24684_v35, %v14404_v14  ;;  %v14418_v35 = vadd.f32 %v24682_v24, %v24676_v30  ;;  %v15553_v30 = vadd.f32 %v15552_v13, %v24711_v8  ;;  %v15564_v8 = vadd.f32 %v15563_v1, %v24718_v4 }
 0x637   : > { %v15689_v11 = vpop.f32.mrf.mxu1 }
 0x638   : > { %v24794_v5 = vpop.f32.mrf.mxu0  ;;  %v14602_v54 = vadd.f32 %v24690_v41, %v14502_v32  ;;  %v14611_v41 = vadd.f32 %v24694_v34, %v14510_v63  ;;  %v14518_v52 = vadd.f32 %v24692_v57, %v14418_v35 }
 0x639   : > { %v15694_v7 = vpop.f32.mrf.mxu1 }
 0x63a   : > { %v24796_v60 = vpop.f32.mrf.mxu0  ;;  %v14707_v16 = vadd.f32 %v24700_v58, %v14602_v54  ;;  %v14425_v58 = vadd.f32 %v24686_v28, %v24680_v38  ;;  %v14714_v21 = vadd.f32 %v24704_v39, %v14611_v41  ;;  %v14620_v54 = vadd.f32 %v24698_v45, %v14518_v52  ;;  %v24845_v52 = vpop.permute.xlu1 %16815 }
 0x63b   : > { %v24798_v19 = vpop.f32.mrf.mxu1  ;;  %v15688_v38 = vadd.f32 %v15687_v61, %v15553_v30  ;;  %26691 = vst [vmem:[#allocation16_spill] sm:$0xff] %v24845_v52 }
 0x63c   : > { %v24800_v27 = vpop.f32.mrf.mxu0  ;;  %v14802_v14 = vadd.f32 %v24706_v33, %v14707_v16  ;;  %v14526_v34 = vadd.f32 %v24696_v9, %v14425_v58  ;;  %v14809_v57 = vadd.f32 %v24713_v40, %v14714_v21  ;;  %v14721_v63 = vadd.f32 %v24708_v51, %v14620_v54 }
 0x63d   : > { %v24802_v44 = vpop.f32.mrf.mxu1 }
 0x63e   : > { %v15793_v47 = vpop.f32.mrf.mxu0  ;;  %v15438_v24 = vadd.f32 %v14802_v14, %v24530_v15  ;;  %v14629_v39 = vadd.f32 %v24702_v49, %v14526_v34  ;;  %v14816_v45 = vadd.f32 %v24720_v0, %v14721_v63  ;;  %v15442_v40 = vadd.f32 %v14809_v57, %v24541_v17  ;;  %v24858_v57 = vpop.permute.xlu1 %16805 }
 0x63f   : > { %v24804_v53 = vpop.f32.mrf.mxu1  ;;  %v15794_v13 = vadd.f32 %v15793_v47, %v15688_v38  ;;  %v15575_v17 = vadd.f32 %v24792_v31, %v24725_v48 }
 0x640   : > { %v15795_v29 = vpop.f32.mrf.mxu0  ;;  %v15555_v35 = vadd.f32 %v15554_v62, %v15438_v24  ;;  %v14728_v9 = vadd.f32 %v24715_v36, %v14629_v39  ;;  %v15695_v62 = vadd.f32 %v15694_v7, %v15564_v8  ;;  %v15566_v0 = vadd.f32 %v24787_v18, %v15442_v40  ;;  %v24852_v24 = vpop.permute.xlu0 %16820 }
 0x641   : > { %v24808_v26 = vpop.f32.mrf.mxu1  ;;  %v15446_v4 = vadd.f32 %v14816_v45, %v24554_v50  ;;  %26692 = vst [vmem:[#allocation18_spill] sm:$0xff] %v24852_v24  ;;  %v15586_v50 = vadd.f32 %v24796_v60, %v24732_v3 }
 0x642   : > { %v15801_v2 = vpop.f32.mrf.mxu0  ;;  %v15690_v15 = vadd.f32 %v15689_v11, %v15555_v35  ;;  %v14823_v49 = vadd.f32 %v24727_v46, %v14728_v9  ;;  %v15697_v36 = vadd.f32 %v24798_v19, %v15566_v0 }
 0x643   : > { %v24811_v20 = vpop.f32.mrf.mxu1  ;;  %v15802_v1 = vadd.f32 %v15801_v2, %v15695_v62  ;;  %v15577_v7 = vadd.f32 %v24794_v5, %v15446_v4 }
 0x644   : > { %v24814_v59 = vpop.f32.mrf.mxu0  ;;  %v15796_v61 = vadd.f32 %v15795_v29, %v15690_v15  ;;  %v15450_v2 = vadd.f32 %v14823_v49, %v24568_v25  ;;  %v24879_v8 = vpop.permute.xlu0 %16810 }
 0x645   : > { %v15897_v22 = vpop.f32.mrf.mxu1  ;;  %v15804_v48 = vadd.f32 %v24814_v59, %v15697_v36  ;;  %v15704_v19 = vadd.f32 %v24804_v53, %v15577_v7  ;;  %26693 = vst [vmem:[#allocation22_spill] sm:$0xff] %v24879_v8 }
 0x646   : > { %v24819_v43 = vpop.f32.mrf.mxu0  ;;  %v15898_v58 = vadd.f32 %v15897_v22, %v15794_v13  ;;  %v15588_v38 = vadd.f32 %v24800_v27, %v15450_v2 }
 0x647   : > { %v15899_v6 = vpop.f32.mrf.mxu1 }
 0x648   : > { %v24825_v37 = vpop.f32.mrf.mxu0  ;;  %v15900_v11 = vadd.f32 %v15899_v6, %v15796_v61  ;;  %v15702_v6 = vadd.f32 %v24802_v44, %v15575_v17  ;;  %v15711_v27 = vadd.f32 %v24811_v20, %v15588_v38 }
 0x649   : > { %v15906_v32 = vpop.f32.mrf.mxu1  ;;  %v15812_v44 = vadd.f32 %v24825_v37, %v15704_v19 }
 0x64a   : > { %v24829_v12 = vpop.f32.mrf.mxu0  ;;  %v15907_v46 = vadd.f32 %v15906_v32, %v15802_v1  ;;  %v15810_v3 = vadd.f32 %v24819_v43, %v15702_v6 }
 0x64b   : > { %v15908_v55 = vpop.f32.mrf.mxu1 }
 0x64c   : > { %v24837_v33 = vpop.f32.mrf.mxu0  ;;  %v15909_v25 = vadd.f32 %v15908_v55, %v15804_v48 }
 0x64d   : > { %v15915_v16 = vpop.f32.mrf.mxu1  ;;  %v15820_v62 = vadd.f32 %v24837_v33, %v15711_v27  ;;  %v16985_v27 = vld [vmem:[%s26096_s7 + $0x10] sm:$0xff] }
 0x64e   : > { %v16014_v28 = vpop.f32.mrf.mxu0  ;;  %v15916_v15 = vadd.f32 %v15915_v16, %v15810_v3 }
 0x64f   : > { %v15917_v41 = vpop.f32.mrf.mxu1  ;;  %v16015_v47 = vadd.f32 %v16014_v28, %v15898_v58  ;;  %v15709_v28 = vadd.f32 %v24808_v26, %v15586_v50 }
 0x650   : > { %v16016_v14 = vpop.f32.mrf.mxu0  ;;  %v15918_v13 = vadd.f32 %v15917_v41, %v15812_v44 }
 0x651   : > { %v15924_v51 = vpop.f32.mrf.mxu1  ;;  %v16017_v29 = vadd.f32 %v16016_v14, %v15900_v11  ;;  %v15818_v26 = vadd.f32 %v24829_v12, %v15709_v28 }
 0x652   : > { %v16021_v21 = vpop.f32.mrf.mxu0 }
 0x653   : > { %v15926_v54 = vpop.f32.mrf.mxu1  ;;  %v16022_v63 = vadd.f32 %v16021_v21, %v15907_v46  ;;  %v15925_v61 = vadd.f32 %v15924_v51, %v15818_v26 }
 0x654   : > { %v16023_v30 = vpop.f32.mrf.mxu0  ;;  %v15927_v0 = vadd.f32 %v15926_v54, %v15820_v62  ;;  %v16983_v54 = vld [vmem:[%s26096_s7] sm:$0xff]  ;;  %v17018_v62 = vsel %vm7793_vm9, %v16985_v27, 0  ;;  %v26709_v27 = vld [vmem:[#allocation3_spill] sm:$0xff] }
 0x655   : > { %v16113_v22 = vpop.f32.mrf.mxu1  ;;  %v16024_v43 = vadd.f32 %v16023_v30, %v15909_v25 }
 0x656   : > { %v16028_v18 = vpop.f32.mrf.mxu0  ;;  %v16114_v34 = vadd.f32 %v16113_v22, %v16015_v47 }
 0x657   : > { %v16115_v31 = vpop.f32.mrf.mxu1  ;;  %v16029_v58 = vadd.f32 %v16028_v18, %v15916_v15 }
 0x658   : > { %v24867_v5 = vadd.f32 %v24858_v57, %v16114_v34  ;;  %v16030_v32 = vpop.f32.mrf.mxu0  ;;  %v16116_v35 = vadd.f32 %v16115_v31, %v16017_v29  ;;  %v16984_v34 = vld [vmem:[%s26096_s7 + $0x8] sm:$0xff] }
 0x659   : > { %v16120_v60 = vpop.f32.mrf.mxu1  ;;  %v16031_v12 = vadd.f32 %v16030_v32, %v15918_v13  ;;  %v17012_v32 = vsel %vm7793_vm9, %v16983_v54, 0  ;;  %v17015_v28 = vsel %vm7793_vm9, %v16984_v34, 0  ;;  %v26705_v54 = vld [vmem:[#allocation88_spill] sm:$0xff]  ;;  %v24989_v34 = vand.u32 4294901760, %v17018_v62 }
 0x65a   : > { %v24874_v59 = vmul.f32 100.0, %v24867_v5  ;;  %v24877_v53 = vadd.f32 %v24858_v57, %v16116_v35  ;;  %v16035_v39 = vpop.f32.mrf.mxu0  ;;  %v16121_v45 = vadd.f32 %v16120_v60, %v16022_v63 }
 0x65b   : > { %v16122_v55 = vpop.f32.mrf.mxu1  ;;  %v16036_v33 = vadd.f32 %v16035_v39, %v15925_v61  ;;  %26706 = vst [vmem:[#allocation26_spill] sm:$0xff] %v24989_v34 }
 0x65c   : > { %v16871_v37 = vmul.f32 1.442695, %v24874_v59  ;;  %v24885_v14 = vmul.f32 100.0, %v24877_v53  ;;  %v24888_v9 = vadd.f32 %v24879_v8, %v16121_v45  ;;  %v16037_v40 = vpop.f32.mrf.mxu0  ;;  %v16123_v20 = vadd.f32 %v16122_v55, %v16024_v43 }
 0x65d   : > { %v16127_v21 = vpop.f32.mrf.mxu1  ;;  %v16038_v7 = vadd.f32 %v16037_v40, %v15927_v0  ;;  %v24948_v45 = vand.u32 4294901760, %v17012_v32  ;;  %v24959_v55 = vand.u32 4294901760, %v17015_v28  ;;  %v26700_v0 = vld [vmem:[#allocation121_spill] sm:$0xff]  ;;  %vm16855_vm7 = vcmp.gt.f32.partialorder %v24874_v59, 20.0 }
 0x65e   : > { %20095 = vpow2.f32 %v16871_v37  ;;  %v16873_v16 = vmul.f32 1.442695, %v24885_v14  ;;  %v24893_v41 = vmul.f32 100.0, %v24888_v9  ;;  %v24895_v49 = vpop.f32.mrf.mxu0  ;;  %v24898_v4 = vadd.f32 %v24879_v8, %v16123_v20 }
 0x65f   : > { %v16128_v1 = vadd.f32 %v16127_v21, %v16029_v58  ;;  %v16129_v11 = vpop.f32.mrf.mxu1  ;;  %26696 = vst [vmem:[#allocation25_spill] sm:$0xff] %v24948_v45  ;;  %26697 = vst [vmem:[#allocation23_spill] sm:$0xff] %v24959_v55  ;;  %v15016_v58 = vadd.f32 %v24734_v42, %v24722_v23  ;;  %v15023_v20 = vadd.f32 %v24738_v56, %v24729_v10  ;;  %v26702_v23 = vld [vmem:[#allocation90_spill] sm:$0xff]  ;;  %vm16856_vm14 = vcmp.gt.f32.partialorder %v24885_v14, 20.0 }
 0x660   : > { %20097 = vpow2.f32 %v16873_v16  ;;  %v16879_v51 = vmul.f32 1.442695, %v24893_v41  ;;  %v16130_v47 = vadd.f32 %v16129_v11, %v16031_v12  ;;  %v24901_v30 = vpop.f32.mrf.mxu0  ;;  %v24904_v17 = vmul.f32 100.0, %v24898_v4  ;;  %v26699_v16 = vld [vmem:[#allocation123_spill] sm:$0xff]  ;;  %v26704_v10 = vld [vmem:[#allocation122_spill] sm:$0xff] }
 0x661   : > { %v24907_v36 = vadd.f32 %v24845_v52, %v16128_v1  ;;  %v16134_v22 = vpop.f32.mrf.mxu1  ;;  %v24974_v12 = vsub.f32 %v17012_v32, %v24948_v45  ;;  %v15030_v1 = vadd.f32 %v26700_v0, %v26699_v16  ;;  %v15114_v42 = vadd.f32 %v26702_v23, %v15016_v58  ;;  %v26712_v16 = vld [vmem:[#allocation2_spill] sm:$0xff]  ;;  %v26714_v23 = vld [vmem:[#allocation9_spill] sm:$0xff] }
 0x662   : > { %20099 = vpow2.f32 %v16879_v51  ;;  %v24913_v46 = vadd.f32 %v24845_v52, %v16130_v47  ;;  %v16135_v29 = vadd.f32 %v16134_v22, %v16036_v33  ;;  %v24915_v18 = vpop.f32.mrf.mxu0  ;;  %v16881_v50 = vmul.f32 1.442695, %v24904_v17  ;;  %v26703_v22 = vld [vmem:[#allocation118_spill] sm:$0xff]  ;;  %v26727_v52 = vld [vmem:[#allocation83_spill] sm:$0xff] }
 0x663   : > { %v24922_v2 = vmul.f32 100.0, %v24907_v36  ;;  %v16136_v6 = vpop.f32.mrf.mxu1  ;;  %26698 = vst [vmem:[#allocation20_spill] sm:$0xff] %v24974_v12  ;;  %v24981_v51 = vsub.f32 %v17015_v28, %v24959_v55  ;;  %v15037_v56 = vadd.f32 %v26704_v10, %v26703_v22  ;;  %v26708_v28 = vld [vmem:[#allocation92_spill] sm:$0xff]  ;;  %v26715_v22 = vld [vmem:[#allocation5_spill] sm:$0xff]  ;;  %vm16859_vm8 = vcmp.gt.f32.partialorder %v24893_v41, 20.0 }
 0x664   : > { %26694 = vst [vmem:[#allocation21_spill] sm:$0xff] %v24913_v46  ;;  %v24925_v48 = vmul.f32 100.0, %v24913_v46  ;;  %v24928_v31 = vadd.f32 %v24852_v24, %v16135_v29  ;;  %v16137_v19 = vadd.f32 %v16136_v6, %v16038_v7  ;;  %v24930_v63 = vpop.f32.mrf.mxu0  ;;  %20101 = vpow2.f32 %v16881_v50  ;;  %v26707_v50 = vld [vmem:[#allocation84_spill] sm:$0xff] }
 0x665   : > { %v16887_v35 = vmul.f32 1.442695, %v24922_v2  ;;  %v24934_v38 = vpop.f32.mrf.mxu1  ;;  %26701 = vst [vmem:[#allocation24_spill] sm:$0xff] %v24981_v51  ;;  %v15122_v7 = vadd.f32 %v26705_v54, %v15023_v20  ;;  %v15130_v6 = vadd.f32 %v26707_v50, %v15030_v1  ;;  %v25000_v20 = vand.u32 4294901760, %v24974_v12  ;;  %v26717_v50 = vld [vmem:[#allocation8_spill] sm:$0xff] }
 0x666   : > { %v16889_v3 = vmul.f32 1.442695, %v24925_v48  ;;  %v24939_v25 = vmul.f32 100.0, %v24928_v31  ;;  %v24942_v60 = vadd.f32 %v24852_v24, %v16137_v19  ;;  %v24944_v44 = vpop.f32.mrf.mxu0  ;;  %v25013_v54 = vsub.f32 %v17018_v62, %v24989_v34  ;;  %v16986_v62 = vld [vmem:[%s26096_s7 + $0x18] sm:$0xff] }
 0x667   : > { %20103 = vpow2.f32 %v16887_v35  ;;  %v24946_v39 = vpop.f32.mrf.mxu1  ;;  %26711 = vst [vmem:[#allocation31_spill] sm:$0xff] %v25000_v20  ;;  %v15232_v0 = vadd.f32 %v26712_v16, %v15130_v6  ;;  %v26718_v6 = vld [vmem:[#allocation7_spill] sm:$0xff]  ;;  %v26720_v16 = vld [vmem:[#allocation14_spill] sm:$0xff]  ;;  %vm16860_vm10 = vcmp.gt.f32.partialorder %v24904_v17, 20.0  ;;  %vm16863_vm11 = vcmp.gt.f32.partialorder %v24922_v2, 20.0 }
 0x668   : > { %26695 = vst [vmem:[#allocation19_spill] sm:$0xff] %v24942_v60  ;;  %20105 = vpow2.f32 %v16889_v3  ;;  %v16895_v26 = vmul.f32 1.442695, %v24939_v25  ;;  %v24955_v15 = vmul.f32 100.0, %v24942_v60  ;;  %v24957_v43 = vpop.f32.mrf.mxu0  ;;  %v15214_v3 = vadd.f32 %v26708_v28, %v15114_v42  ;;  %26716 = vst [vmem:[#allocation27_spill] sm:$0xff] %v25013_v54 }
 0x669   : > { %v24961_v13 = vpop.f32.mrf.mxu1  ;;  %v25038_v34 = vand.u32 4294901760, %v25013_v54  ;;  %vm16867_vm12 = vcmp.gt.f32.partialorder %v24939_v25, 20.0  ;;  %vm16864_vm15 = vcmp.gt.f32.partialorder %v24925_v48, 20.0 }
 0x66a   : > { %20107 = vpow2.f32 %v16895_v26  ;;  %v16897_v37 = vmul.f32 1.442695, %v24955_v15  ;;  %v24964_v40 = vpop.f32.mrf.mxu0  ;;  %v15138_v26 = vadd.f32 %v26709_v27, %v15037_v56  ;;  %v15319_v42 = vadd.f32 %v26714_v23, %v15214_v3  ;;  %v26719_v27 = vld [vmem:[#allocation4_spill] sm:$0xff] }
 0x66b   : > { %v20096_v61 = vpop.eup %20095  ;;  %v24971_v21 = vpop.f32.mrf.mxu1  ;;  %26724 = vst [vmem:[#allocation34_spill] sm:$0xff] %v25038_v34  ;;  %vm16868_vm0 = vcmp.gt.f32.partialorder %v24955_v15, 20.0 }
 0x66c   : > { %v16903_v11 = vadd.f32 1.0, %v20096_v61  ;;  %20109 = vpow2.f32 %v16897_v37  ;;  %v24978_v33 = vpop.f32.mrf.mxu0  ;;  %v26710_v37 = vld [vmem:[#allocation93_spill] sm:$0xff]  ;;  %v15241_v10 = vadd.f32 %v26715_v22, %v15138_v26  ;;  %v17099_v26 = vsub.f32 %v24974_v12, %v25000_v20  ;;  %v26721_v22 = vld [vmem:[#allocation10_spill] sm:$0xff] }
 0x66d   : > { %v20098_v47 = vpop.eup %20097  ;;  %v24987_v29 = vpop.f32.mrf.mxu1  ;;  %v15223_v61 = vadd.f32 %v26710_v37, %v15122_v7  ;;  %v15414_v37 = vadd.f32 %v26719_v27, %v15319_v42 }
 0x66e   : > { %20111 = vlog2.f32 %v16903_v11  ;;  %v16904_v19 = vadd.f32 1.0, %v20098_v47  ;;  %v24992_v32 = vpop.f32.mrf.mxu0  ;;  %v25006_v47 = vand.u32 4294901760, %v24981_v51  ;;  %v15340_v55 = vadd.f32 %v26720_v16, %v15241_v10 }
 0x66f   : > { %v20100_v35 = vpop.eup %20099  ;;  %v24997_v58 = vpop.f32.mrf.mxu1  ;;  %v15326_v28 = vadd.f32 %v26717_v50, %v15223_v61 }
 0x670   : > { %20113 = vlog2.f32 %v16904_v19  ;;  %v16907_v1 = vadd.f32 1.0, %v20100_v35  ;;  %v25003_v11 = vpop.f32.mrf.mxu0  ;;  %26713 = vst [vmem:[#allocation30_spill] sm:$0xff] %v25006_v47  ;;  %v15333_v19 = vadd.f32 %v26718_v6, %v15232_v0  ;;  %v17110_v42 = vsub.f32 %v24981_v51, %v25006_v47 }
 0x671   : > { %v25010_v56 = vpop.f32.mrf.mxu1  ;;  %v20102_v7 = vpop.eup %20101  ;;  %v15421_v0 = vadd.f32 %v26721_v22, %v15326_v28  ;;  %v25041_v28 = vsel %vm7793_vm9, %v16986_v62, 0  ;;  %v26725_v22 = vld [vmem:[#allocation120_spill] sm:$0xff]  ;;  %v25046_v51 = vand.u32 4294901760, %v17099_v26 }
 0x672   : > { %20115 = vlog2.f32 %v16907_v1  ;;  %v25017_v35 = vpop.f32.mrf.mxu0  ;;  %v16908_v3 = vadd.f32 1.0, %v20102_v7  ;;  %v26722_v1 = vld [vmem:[#allocation11_spill] sm:$0xff]  ;;  %v25049_v24 = vand.u32 4294901760, %v17110_v42  ;;  %v26728_v62 = vld [vmem:[#allocation116_spill] sm:$0xff] }
 0x673   : > { %v25021_v23 = vpop.f32.mrf.mxu1  ;;  %v15428_v50 = vadd.f32 %v26722_v1, %v15333_v19  ;;  %v26723_v7 = vld [vmem:[#allocation15_spill] sm:$0xff]  ;;  %v15440_v1 = vadd.f32 %v15414_v37, %v26725_v22 }
 0x674   : > { %v20104_v61 = vpop.eup %20103  ;;  %v25030_v6 = vpop.f32.mrf.mxu0  ;;  %v15435_v27 = vadd.f32 %v26723_v7, %v15340_v55  ;;  %20117 = vlog2.f32 %v16908_v3  ;;  %v26726_v3 = vld [vmem:[#allocation124_spill] sm:$0xff] }
 0x675   : > { %v20106_v10 = vpop.eup %20105  ;;  %v16911_v16 = vadd.f32 1.0, %v20104_v61  ;;  %v25035_v20 = vpop.f32.mrf.mxu1  ;;  %v15444_v61 = vadd.f32 %v15421_v0, %v26726_v3  ;;  %v15448_v60 = vadd.f32 %v15428_v50, %v26727_v52  ;;  %v16219_v52 = vadd.f32 %v24901_v30, %v15440_v1  ;;  %v26730_v50 = vld [vmem:[#allocation13_spill] sm:$0xff]  ;;  %v26732_v30 = vld [vmem:[#allocation12_spill] sm:$0xff] }
 0x676   : > { %v16912_v12 = vadd.f32 1.0, %v20106_v10  ;;  %v16473_v45 = vpop.f32.mrf.mxu0  ;;  %v15452_v46 = vadd.f32 %v15435_v27, %v26728_v62  ;;  %v16228_v27 = vadd.f32 %v24915_v18, %v26730_v50  ;;  %v26731_v3 = vld [vmem:[#allocation17_spill] sm:$0xff]  ;;  %v16250_v1 = vadd.f32 %v24964_v40, %v26732_v30 }
 0x677   : > { %v20108_v19 = vpop.eup %20107  ;;  %20119 = vlog2.f32 %v16911_v16  ;;  %v25044_v47 = vpop.f32.mrf.mxu1  ;;  %v25056_v16 = vand.u32 4294901760, %v25041_v28  ;;  %v16230_v22 = vadd.f32 %v24930_v63, %v15444_v61  ;;  %v16239_v62 = vadd.f32 %v24944_v44, %v26731_v3 }
 0x678   : > { %20121 = vlog2.f32 %v16912_v12  ;;  %v16915_v55 = vadd.f32 1.0, %v20108_v19  ;;  %v16475_v7 = vpop.f32.mrf.mxu0  ;;  %v26729_v12 = vld [vmem:[#allocation6_spill] sm:$0xff]  ;;  %v16354_v54 = vadd.f32 %v24946_v39, %v16219_v52  ;;  %v16359_v18 = vadd.f32 %v24961_v13, %v16228_v27 }
 0x679   : > { %v20110_v10 = vpop.eup %20109  ;;  %v16570_v8 = vpop.f32.mrf.mxu1  ;;  %v16217_v26 = vadd.f32 %v24895_v49, %v26729_v12  ;;  %v16361_v63 = vadd.f32 %v24971_v21, %v16230_v22  ;;  %v16373_v40 = vadd.f32 %v25010_v56, %v16250_v1 }
 0x67a   : > { %20123 = vlog2.f32 %v16915_v55  ;;  %v16916_v0 = vadd.f32 1.0, %v20110_v10  ;;  %v16481_v42 = vpop.f32.mrf.mxu0  ;;  %v16241_v10 = vadd.f32 %v24957_v43, %v15448_v60 }
 0x67b   : > { %v20112_v19 = vpop.eup %20111  ;;  %v16572_v37 = vpop.f32.mrf.mxu1  ;;  %v16352_v55 = vadd.f32 %v24934_v38, %v16217_v26  ;;  %v16366_v38 = vadd.f32 %v24987_v29, %v16239_v62  ;;  %v16482_v59 = vadd.f32 %v16481_v42, %v16373_v40 }
 0x67c   : > { %v16920_v49 = vmul.f32 0.6931472, %v20112_v19  ;;  %20125 = vlog2.f32 %v16916_v0  ;;  %v16483_v12 = vpop.f32.mrf.mxu0  ;;  %v16252_v0 = vadd.f32 %v24978_v33, %v15452_v46  ;;  %v16368_v39 = vadd.f32 %v24997_v58, %v16241_v10 }
 0x67d   : > { %v20114_v34 = vpop.eup %20113  ;;  %v16579_v61 = vpop.f32.mrf.mxu1  ;;  %v16458_v43 = vadd.f32 %v24992_v32, %v16352_v55  ;;  %v16460_v19 = vadd.f32 %v25003_v11, %v16354_v54  ;;  %v16468_v32 = vadd.f32 %v25030_v6, %v16361_v63  ;;  %v16474_v58 = vadd.f32 %v16473_v45, %v16366_v38 }
 0x67e   : > { %v16951_v44 = vmul.f32 0.01, %v16920_v49  ;;  %v16922_v50 = vmul.f32 0.6931472, %v20114_v34  ;;  %v16678_v26 = vpop.f32.mrf.mxu0  ;;  %v16466_v34 = vadd.f32 %v25017_v35, %v16359_v18  ;;  %v16375_v46 = vadd.f32 %v25021_v23, %v16252_v0 }
 0x67f   : > { %v20116_v60 = vpop.eup %20115  ;;  %v16581_v13 = vpop.f32.mrf.mxu1  ;;  %v16562_v11 = vadd.f32 %v25035_v20, %v16458_v43  ;;  %v16476_v22 = vadd.f32 %v16475_v7, %v16368_v39  ;;  %v16564_v35 = vadd.f32 %v25044_v47, %v16460_v19  ;;  %v16573_v49 = vadd.f32 %v16572_v37, %v16468_v32 }
 0x680   : > { %v16952_v52 = vmul.f32 0.01, %v16922_v50  ;;  %v16928_v21 = vmul.f32 0.6931472, %v20116_v60  ;;  %v16680_v33 = vpop.f32.mrf.mxu0  ;;  %v16967_v29 = vsel %vm16855_vm7, %v24867_v5, %v16951_v44  ;;  %v16571_v3 = vadd.f32 %v16570_v8, %v16466_v34 }
 0x681   : > { %v16588_v56 = vpop.f32.mrf.mxu1  ;;  %v20118_v54 = vpop.eup %20117  ;;  %v16484_v5 = vadd.f32 %v16483_v12, %v16375_v46  ;;  %v16679_v47 = vadd.f32 %v16678_v26, %v16562_v11  ;;  %v25101_v55 = vand.u32 4294901760, %v16967_v29  ;;  %v16580_v37 = vadd.f32 %v16579_v61, %v16474_v58 }
 0x682   : > { %v16955_v27 = vmul.f32 0.01, %v16928_v21  ;;  %v16685_v23 = vpop.f32.mrf.mxu0  ;;  %v16930_v62 = vmul.f32 0.6931472, %v20118_v54  ;;  %v25096_v20 = vsel %vm16856_vm14, %v24877_v53, %v16952_v52  ;;  %v16582_v12 = vadd.f32 %v16581_v13, %v16476_v22 }
 0x683   : > { %v16590_v6 = vpop.f32.mrf.mxu1  ;;  %v16681_v1 = vadd.f32 %v16680_v33, %v16564_v35  ;;  %v16589_v18 = vadd.f32 %v16588_v56, %v16482_v59  ;;  %v16686_v50 = vadd.f32 %v16685_v23, %v16571_v3  ;;  %v25108_v26 = vand.u32 4294901760, %v25096_v20 }
 0x684   : > { %v20120_v45 = vpop.eup %20119  ;;  %v16971_v7 = vsel %vm16859_vm8, %v24888_v9, %v16955_v27  ;;  %v16687_v8 = vpop.f32.mrf.mxu0  ;;  %v16956_v30 = vmul.f32 0.01, %v16930_v62  ;;  %v25114_v19 = vsub.f32 %v16967_v29, %v25101_v55  ;;  %v16591_v21 = vadd.f32 %v16590_v6, %v16484_v5 }
 0x685   : > { %v20122_v10 = vpop.eup %20121  ;;  %v16936_v42 = vmul.f32 0.6931472, %v20120_v45  ;;  %v16777_v14 = vpop.f32.mrf.mxu1  ;;  %v25105_v38 = vand.u32 4294901760, %v16971_v7  ;;  %v16688_v34 = vadd.f32 %v16687_v8, %v16573_v49  ;;  %v26734_v49 = vld [vmem:[#allocation21_spill] sm:$0xff] }
 0x686   : > { %v16938_v53 = vmul.f32 0.6931472, %v20122_v10  ;;  %v16692_v63 = vpop.f32.mrf.mxu0  ;;  %v16778_v41 = vadd.f32 %v16777_v14, %v16679_v47  ;;  %v25119_v13 = vsel %vm16860_vm10, %v24898_v4, %v16956_v30 }
 0x687   : > { %v20124_v9 = vpop.eup %20123  ;;  %v16959_v44 = vmul.f32 0.01, %v16936_v42  ;;  %v16779_v0 = vpop.f32.mrf.mxu1  ;;  %v16693_v58 = vadd.f32 %v16692_v63, %v16580_v37  ;;  %v25133_v27 = vsub.f32 %v16971_v7, %v25105_v38  ;;  %v25146_v5 = vand.u32 4294901760, %v25119_v13  ;;  %v26736_v37 = vld [vmem:[#allocation16_spill] sm:$0xff] }
 0x688   : > { %v16944_v60 = vmul.f32 0.6931472, %v20124_v9  ;;  %v25111_v43 = vadd.f32 %v24858_v57, %v16778_v41  ;;  %v16694_v61 = vpop.f32.mrf.mxu0  ;;  %v16780_v39 = vadd.f32 %v16779_v0, %v16681_v1  ;;  %v16960_v52 = vmul.f32 0.01, %v16938_v53 }
 0x689   : > { %v20126_v40 = vpop.eup %20125  ;;  %v16784_v46 = vpop.f32.mrf.mxu1  ;;  %v25127_v29 = vsel %vm16863_vm11, %v24907_v36, %v16959_v44  ;;  %v16695_v23 = vadd.f32 %v16694_v61, %v16582_v12  ;;  %v26733_v36 = vld [vmem:[#allocation22_spill] sm:$0xff] }
 0x68a   : > { %v16963_v33 = vmul.f32 0.01, %v16944_v60  ;;  %v16946_v32 = vmul.f32 0.6931472, %v20126_v40  ;;  %v25122_v11 = vmul.f32 100.0, %v25111_v43  ;;  %v16699_v56 = vpop.f32.mrf.mxu0  ;;  %v25130_v17 = vadd.f32 %v24858_v57, %v16780_v39 }
 0x68b   : > { %v16785_v4 = vadd.f32 %v16784_v46, %v16686_v50  ;;  %v16786_v54 = vpop.f32.mrf.mxu1  ;;  %v16976_v25 = vsel %vm16864_vm15, %v26734_v49, %v16960_v52  ;;  %v16700_v45 = vadd.f32 %v16699_v56, %v16589_v18  ;;  %v25187_v39 = vand.u32 4294901760, %v25127_v29 }
 0x68c   : > { %v16979_v22 = vsel %vm16867_vm12, %v24928_v31, %v16963_v33  ;;  %v16964_v35 = vmul.f32 0.01, %v16946_v32  ;;  %v16875_v3 = vmul.f32 1.442695, %v25122_v11  ;;  %v25140_v2 = vmul.f32 100.0, %v25130_v17  ;;  %v26735_v31 = vld [vmem:[#allocation19_spill] sm:$0xff]  ;;  %v16701_v7 = vpop.f32.mrf.mxu0 }
 0x68d   : > { %v25143_v62 = vadd.f32 %v26733_v36, %v16785_v4  ;;  %v16787_v57 = vadd.f32 %v16786_v54, %v16688_v34  ;;  %v16791_v59 = vpop.f32.mrf.mxu1  ;;  %v25160_v42 = vand.u32 4294901760, %v16979_v22  ;;  %v16702_v1 = vadd.f32 %v16701_v7, %v16591_v21  ;;  %v26737_v34 = vld [vmem:[#allocation18_spill] sm:$0xff] }
 0x68e   : > { %v16980_v6 = vsel %vm16868_vm0, %v26735_v31, %v16964_v35  ;;  %v16792_v47 = vadd.f32 %v16791_v59, %v16693_v58  ;;  %20127 = vpow2.f32 %v16875_v3  ;;  %v16877_v48 = vmul.f32 1.442695, %v25140_v2 }
 0x68f   : > { %v25155_v8 = vmul.f32 100.0, %v25143_v62  ;;  %v25158_v10 = vadd.f32 %v26733_v36, %v16787_v57  ;;  %v16793_v30 = vpop.f32.mrf.mxu1  ;;  %v25166_v14 = vand.u32 4294901760, %v16980_v6  ;;  %v25172_v41 = vand.u32 4294901760, %v16976_v25 }
 0x690   : > { %v25164_v12 = vadd.f32 %v26736_v37, %v16792_v47  ;;  %v16794_v15 = vadd.f32 %v16793_v30, %v16695_v23  ;;  %v25190_v40 = vsub.f32 %v16979_v22, %v25160_v42  ;;  %v25210_v54 = vsub.f32 %v25096_v20, %v25108_v26 }
 0x691   : > { %v16883_v53 = vmul.f32 1.442695, %v25155_v8  ;;  %v25170_v18 = vmul.f32 100.0, %v25158_v10  ;;  %v16798_v63 = vpop.f32.mrf.mxu1  ;;  %17048 = vmatprep.subr.mxu0 %v25166_v14  ;;  %v25182_v0 = vsub.f32 %v16980_v6, %v25166_v14  ;;  %v25223_v23 = vsub.f32 %v16976_v25, %v25172_v41 }
 0x692   : > { %v25175_v9 = vmul.f32 100.0, %v25164_v12  ;;  %v25178_v44 = vadd.f32 %v26736_v37, %v16794_v15  ;;  %v16799_v50 = vadd.f32 %v16798_v63, %v16700_v45  ;;  %17050 = vmatpush1.msra.mxu0 %v25160_v42  ;;  %v17172_v58 = vand.u32 4294901760, %v25190_v40 }
 0x693   : > { %20129 = vpow2.f32 %v16883_v53  ;;  %v16885_v60 = vmul.f32 1.442695, %v25170_v18  ;;  %v16800_v61 = vpop.f32.mrf.mxu1  ;;  %17052 = vmatprep.subr.mxu0 %v25172_v41  ;;  %v17166_v32 = vand.u32 4294901760, %v25182_v0  ;;  %v25229_v36 = vsub.f32 %v25127_v29, %v25187_v39 }
 0x694   : > { %20131 = vpow2.f32 %v16877_v48  ;;  %v16891_v52 = vmul.f32 1.442695, %v25175_v9  ;;  %v25194_v21 = vmul.f32 100.0, %v25178_v44  ;;  %v25197_v46 = vadd.f32 %v26737_v34, %v16799_v50  ;;  %17054 = vmatpush1.msra.mxu0 %v25187_v39 }
 0x695   : > { %20133 = vpow2.f32 %v16885_v60  ;;  %v16801_v33 = vadd.f32 %v16800_v61, %v16702_v1  ;;  %17056 = vmatprep.subr.mxu0 %v25146_v5  ;;  %v17167_v35 = vsub.f32 %v25182_v0, %v17166_v32  ;;  %v17173_v3 = vsub.f32 %v25190_v40, %v17172_v58 }
 0x696   : > { %20135 = vpow2.f32 %v16891_v52  ;;  %v16893_v56 = vmul.f32 1.442695, %v25194_v21  ;;  %v25205_v4 = vmul.f32 100.0, %v25197_v46  ;;  %17058 = vmatpush1.msra.mxu0 %v25105_v38  ;;  %v25233_v57 = vsub.f32 %v25041_v28, %v25056_v16  ;;  %v26739_v52 = vld [vmem:[#allocation27_spill] sm:$0xff] }
 0x697   : > { %v25213_v22 = vadd.f32 %v26737_v34, %v16801_v33  ;;  %17060 = vmatprep.subr.mxu0 %v25108_v26  ;;  %v17168_v49 = vand.u32 4294901760, %v17167_v35  ;;  %v17178_v25 = vand.u32 4294901760, %v25223_v23  ;;  %v17196_v31 = vand.u32 4294901760, %v25133_v27  ;;  %v26740_v34 = vld [vmem:[#allocation34_spill] sm:$0xff] }
 0x698   : > { %20137 = vpow2.f32 %v16893_v56  ;;  %v16899_v20 = vmul.f32 1.442695, %v25205_v4  ;;  %17062 = vmatpush1.msra.mxu0 %v25101_v55  ;;  %v17174_v29 = vand.u32 4294901760, %v17173_v3  ;;  %v17184_v6 = vand.u32 4294901760, %v25229_v36 }
 0x699   : > { %v25236_v59 = vmul.f32 100.0, %v25213_v22  ;;  %17101 = vmatmul.mubr.f32.vlgmr.msra.gmra.mxu0 %v25046_v51  ;;  %17299 = vmatprep.subr.mxu0 %v25182_v0  ;;  %v25246_v28 = vsub.f32 %v25119_v13, %v25146_v5  ;;  %v17179_v7 = vsub.f32 %v25223_v23, %v17178_v25  ;;  %v26288_v47 = vand.u32 4294901760, %v25210_v54 }
 0x69a   : > { %20139 = vpow2.f32 %v16899_v20  ;;  %17169 = vmatprep.subr.mxu1 %v17168_v49  ;;  %17302 = vmatpush1.msra.mxu0 %v25190_v40  ;;  %v26287_v30 = vand.u32 4294901760, %v25114_v19  ;;  %v17185_v13 = vsub.f32 %v25229_v36, %v17184_v6  ;;  %v25261_v15 = vand.u32 4294901760, %v25233_v57  ;;  %v26746_v40 = vld [vmem:[#allocation24_spill] sm:$0xff] }
 0x69b   : > { %v16901_v45 = vmul.f32 1.442695, %v25236_v59  ;;  %v20128_v48 = vpop.eup %20127  ;;  %17175 = vmatpush1.msra.mxu1 %v17174_v29  ;;  %17305 = vmatprep.subr.mxu0 %v25223_v23  ;;  %v17190_v37 = vand.u32 4294901760, %v25246_v28  ;;  %v17180_v53 = vand.u32 4294901760, %v17179_v7  ;;  %v26738_v1 = vmov 0.0  }
 0x69c   : > { %17106 = vmatprep.mubr.f32.mxu0 %v26738_v1  ;;  %17308 = vmatpush1.msra.mxu0 %v25229_v36  ;;  %v17197_v63 = vsub.f32 %v25133_v27, %v17196_v31  ;;  %v17186_v50 = vand.u32 4294901760, %v17185_v13  ;;  %v17203_v61 = vsub.f32 %v25210_v54, %v26288_v47  ;;  %v26741_v33 = vsub.f32 %v26739_v52, %v26740_v34 }
 0x69d   : > { %20141 = vpow2.f32 %v16901_v45  ;;  %17112 = vmatmul.mubr.f32.gmra.mxu0 %v25049_v24  ;;  %v17191_v60 = vsub.f32 %v25246_v28, %v17190_v37  ;;  %17311 = vmatprep.subr.mxu0 %v25246_v28  ;;  %v17209_v35 = vsub.f32 %v25114_v19, %v26287_v30  ;;  %v16905_v20 = vadd.f32 1.0, %v20128_v48 }
 0x69e   : > { %v25279_v56 = vand.u32 4294901760, %v26741_v33  ;;  %17181 = vmatprep.subr.mxu1 %v17180_v53  ;;  %17314 = vmatpush1.msra.mxu0 %v25133_v27  ;;  %v17132_v29 = vsub.f32 %v25233_v57, %v25261_v15  ;;  %v17198_v13 = vand.u32 4294901760, %v17197_v63  ;;  %v17204_v33 = vand.u32 4294901760, %v17203_v61  ;;  %v26749_v27 = vld [vmem:[#allocation31_spill] sm:$0xff] }
 0x69f   : > { %17187 = vmatpush1.msra.mxu1 %v17186_v50  ;;  %v17192_v49 = vand.u32 4294901760, %v17191_v60  ;;  %17317 = vmatprep.subr.mxu0 %v25210_v54  ;;  %v17210_v60 = vand.u32 4294901760, %v17209_v35  ;;  %20143 = vlog2.f32 %v16905_v20  ;;  %v26747_v23 = vand.u32 4294901760, %v25210_v54 }
 0x6a0   : > { %v20130_v3 = vpop.eup %20129  ;;  %17117 = vmatprep.mubr.f32.mxu0 %v26738_v1  ;;  %17320 = vmatpush1.msra.mxu0 %v25114_v19  ;;  %v25294_v63 = vand.u32 4294901760, %v17132_v29  ;;  %v26744_v29 = vld [vmem:[#allocation20_spill] sm:$0xff]  ;;  %vm16866_vm1 = vcmp.gt.f32.partialorder %v25194_v21, 20.0  ;;  %vm16869_vm13 = vcmp.gt.f32.partialorder %v25205_v4, 20.0  ;;  %vm16865_vm2 = vcmp.gt.f32.partialorder %v25175_v9, 20.0 }
 0x6a1   : > { %v20132_v45 = vpop.eup %20131  ;;  %v16909_v7 = vadd.f32 1.0, %v20130_v3  ;;  %17193 = vmatprep.subr.mxu1 %v17192_v49  ;;  %17123 = vmatmul.mubr.f32.gmra.mxu0 %v25279_v56  ;;  %v26742_v49 = vld [vmem:[#allocation25_spill] sm:$0xff]  ;;  %vm16862_vm3 = vcmp.gt.f32.partialorder %v25170_v18, 20.0  ;;  %vm16870_vm4 = vcmp.gt.f32.partialorder %v25236_v59, 20.0  ;;  %vm16861_vm5 = vcmp.gt.f32.partialorder %v25155_v8, 20.0 }
 0x6a2   : > { %v20134_v53 = vpop.eup %20133  ;;  %17199 = vmatpush1.msra.mxu1 %v17198_v13  ;;  %17522 = vmatprep.subr.mxu0 %v17166_v32  ;;  %v16906_v47 = vadd.f32 1.0, %v20132_v45  ;;  %vm16858_vm6 = vcmp.gt.f32.partialorder %v25140_v2, 20.0  ;;  %vm16857_vm7 = vcmp.gt.f32.partialorder %v25122_v11, 20.0 }
 0x6a3   : > { %v20136_v48 = vpop.eup %20135  ;;  %v16910_v50 = vadd.f32 1.0, %v20134_v53  ;;  %17205 = vmatprep.subr.mxu1 %v17204_v33  ;;  %17128 = vmatprep.mubr.f32.mxu0 %v26738_v1  ;;  %20145 = vlog2.f32 %v16909_v7 }
 0x6a4   : > { %v16913_v30 = vadd.f32 1.0, %v20136_v48  ;;  %17211 = vmatpush1.msra.mxu1 %v17210_v60 }
 0x6a5   : > { %v20138_v3 = vpop.eup %20137  ;;  %17246 = vmatmul.mubr.f32.vlgmr.msra.gmra.mxu1 %v26742_v49  ;;  %17411 = vmatprep.subr.mxu1 %v25166_v14 }
 0x6a6   : > { %20147 = vlog2.f32 %v16913_v30  ;;  %v16914_v61 = vadd.f32 1.0, %v20138_v3  ;;  %17413 = vmatpush1.msra.mxu1 %v25160_v42  ;;  %17251 = vmatprep.mubr.f32.mxu1 %v26738_v1  ;;  %v26743_v30 = vld [vmem:[#allocation23_spill] sm:$0xff] }
 0x6a7   : > { %v20140_v35 = vpop.eup %20139  ;;  %20149 = vlog2.f32 %v16910_v50  ;;  %17415 = vmatprep.subr.mxu1 %v25172_v41  ;;  %17134 = vmatmul.mubr.f32.gmra.mxu0 %v25294_v63 }
 0x6a8   : > { %20151 = vlog2.f32 %v16914_v61  ;;  %v16917_v0 = vadd.f32 1.0, %v20140_v35  ;;  %17417 = vmatpush1.msra.mxu1 %v25187_v39  ;;  %17353 = vmatprep.mubr.f32.mxu0 %v26738_v1 }
 0x6a9   : > { %20153 = vlog2.f32 %v16906_v47  ;;  %17253 = vmatmul.mubr.f32.gmra.mxu1 %v26743_v30  ;;  %17419 = vmatprep.subr.mxu1 %v25146_v5  ;;  %v26745_v47 = vld [vmem:[#allocation26_spill] sm:$0xff] }
 0x6aa   : > { %v20142_v32 = vpop.eup %20141  ;;  %20155 = vlog2.f32 %v16917_v0  ;;  %17421 = vmatpush1.msra.mxu1 %v25105_v38  ;;  %17258 = vmatprep.mubr.f32.mxu1 %v26738_v1 }
 0x6ab   : > { %v16918_v20 = vadd.f32 1.0, %v20142_v32  ;;  %17423 = vmatprep.subr.mxu1 %v25108_v26  ;;  %17356 = vmatmul.mubr.f32.vlgmr.msra.gmra.mxu0 %v26744_v29 }
 0x6ac   : > { %17425 = vmatpush1.msra.mxu1 %v25101_v55  ;;  %17526 = vmatpush1.msra.mxu0 %v17172_v58  ;;  %v20144_v45 = vpop.eup %20143 }
 0x6ad   : > { %20157 = vlog2.f32 %v16918_v20  ;;  %17260 = vmatmul.mubr.f32.gmra.mxu1 %v26745_v47  ;;  %17637 = vmatprep.subr.mxu1 %v25166_v14  ;;  %v16924_v60 = vmul.f32 0.6931472, %v20144_v45 }
 0x6ae   : > { %17530 = vmatprep.subr.mxu0 %v17178_v25  ;;  %17265 = vmatprep.mubr.f32.mxu1 %v26738_v1  ;;  %v26748_v25 = vand.u32 4294901760, %v25114_v19 }
 0x6af   : > { %17534 = vmatpush1.msra.mxu0 %v17184_v6  ;;  %17361 = vmatprep.mubr.f32.mxu0 %v26738_v1  ;;  %v16953_v4 = vmul.f32 0.01, %v16924_v60 }
 0x6b0   : > { %17538 = vmatprep.subr.mxu0 %v17190_v37  ;;  %17364 = vmatmul.mubr.f32.gmra.mxu0 %v26746_v40  ;;  %v20146_v58 = vpop.eup %20145 }
 0x6b1   : > { %17267 = vmatmul.mubr.f32.gmra.mxu1 %v25056_v16  ;;  %17542 = vmatpush1.msra.mxu0 %v17196_v31  ;;  %v16932_v19 = vmul.f32 0.6931472, %v20146_v58 }
 0x6b2   : > { %17546 = vmatprep.subr.mxu0 %v26747_v23  ;;  %17369 = vmatprep.mubr.f32.mxu0 %v26738_v1 }
 0x6b3   : > { %v20148_v14 = vpop.eup %20147  ;;  %17550 = vmatpush1.msra.mxu0 %v26748_v25  ;;  %17458 = vmatprep.mubr.f32.mxu1 %v26738_v1 }
 0x6b4   : > { %v20150_v36 = vpop.eup %20149  ;;  %v16940_v28 = vmul.f32 0.6931472, %v20148_v14  ;;  %17372 = vmatmul.mubr.f32.gmra.mxu0 %v26739_v52 }
 0x6b5   : > { %v20152_v6 = vpop.eup %20151  ;;  %17462 = vmatmul.mubr.f32.vlgmr.msra.gmra.mxu1 %v26749_v27  ;;  %17377 = vmatprep.mubr.f32.mxu0 %v26738_v1  ;;  %v16934_v31 = vmul.f32 0.6931472, %v20150_v36 }
 0x6b6   : > { %v20154_v37 = vpop.eup %20153  ;;  %v16942_v7 = vmul.f32 0.6931472, %v20152_v6  ;;  %17639 = vmatpush1.msra.mxu1 %v25160_v42  ;;  %17467 = vmatprep.mubr.f32.mxu1 %v26738_v1  ;;  %v16961_v48 = vmul.f32 0.01, %v16940_v28  ;;  %v26750_v42 = vld [vmem:[#allocation30_spill] sm:$0xff] }
 0x6b7   : > { %v20156_v54 = vpop.eup %20155  ;;  %17641 = vmatprep.subr.mxu1 %v25172_v41  ;;  %v16926_v33 = vmul.f32 0.6931472, %v20154_v37  ;;  %v16958_v61 = vmul.f32 0.01, %v16934_v31 }
 0x6b8   : > { %v16962_v13 = vmul.f32 0.01, %v16942_v7  ;;  %v16948_v53 = vmul.f32 0.6931472, %v20156_v54  ;;  %17643 = vmatpush1.msra.mxu1 %v25187_v39  ;;  %17380 = vmatmul.mubr.f32.gmra.mxu0 %v25233_v57  ;;  %v16957_v39 = vmul.f32 0.01, %v16932_v19  ;;  %v16977_v0 = vsel %vm16865_vm2, %v25164_v12, %v16961_v48 }
 0x6b9   : > { %17645 = vmatprep.subr.mxu1 %v25146_v5  ;;  %17471 = vmatmul.mubr.f32.gmra.mxu1 %v26750_v42  ;;  %v16954_v5 = vmul.f32 0.01, %v16926_v33  ;;  %v16974_v12 = vsel %vm16862_vm3, %v25158_v10, %v16958_v61  ;;  %v16969_v10 = vsel %vm16857_vm7, %v25111_v43, %v16953_v4 }
 0x6ba   : > { %v20158_v50 = vpop.eup %20157  ;;  %v16965_v3 = vmul.f32 0.01, %v16948_v53  ;;  %v16978_v35 = vsel %vm16866_vm1, %v25178_v44, %v16962_v13  ;;  %17647 = vmatpush1.msra.mxu1 %v25105_v38  ;;  %17476 = vmatprep.mubr.f32.mxu1 %v26738_v1  ;;  %v16973_v18 = vsel %vm16861_vm5, %v25143_v62, %v16957_v39  ;;  %v25382_v2 = vand.u32 4294901760, %v16974_v12 }
 0x6bb   : > { %v16950_v41 = vmul.f32 0.6931472, %v20158_v50  ;;  %17649 = vmatprep.subr.mxu1 %v25108_v26  ;;  %17583 = vmatprep.mubr.f32.mxu0 %v26738_v1  ;;  %v25361_v26 = vand.u32 4294901760, %v16978_v35  ;;  %v16970_v59 = vsel %vm16858_vm6, %v25130_v17, %v16954_v5  ;;  %v25392_v17 = vand.u32 4294901760, %v16973_v18 }
 0x6bc   : > { %v16981_v21 = vsel %vm16869_vm13, %v25197_v46, %v16965_v3  ;;  %17651 = vmatpush1.msra.mxu1 %v25101_v55  ;;  %17585 = vmatmul.mubr.f32.vlgmr.msra.gmra.mxu0 %v26742_v49  ;;  %v25371_v46 = vand.u32 4294901760, %v16977_v0  ;;  %v25395_v43 = vand.u32 4294901760, %v16970_v59  ;;  %v25403_v20 = vand.u32 4294901760, %v16969_v10 }
 0x6bd   : > { %v16966_v44 = vmul.f32 0.01, %v16950_v41  ;;  %v25355_v38 = vand.u32 4294901760, %v16981_v21  ;;  %17480 = vmatmul.mubr.f32.gmra.mxu1 %v26740_v34  ;;  %17590 = vmatprep.mubr.f32.mxu0 %v26738_v1  ;;  %v25388_v11 = vsub.f32 %v16978_v35, %v25361_v26  ;;  %v25413_v23 = vsub.f32 %v16974_v12, %v25382_v2 }
 0x6be   : > { %17485 = vmatprep.mubr.f32.mxu1 %v26738_v1  ;;  %v25399_v32 = vsub.f32 %v16977_v0, %v25371_v46  ;;  %v25418_v36 = vsub.f32 %v16973_v18, %v25392_v17  ;;  %v25423_v6 = vsub.f32 %v16970_v59, %v25395_v43  ;;  %v25430_v7 = vsub.f32 %v16969_v10, %v25403_v20 }
 0x6bf   : > { %v16982_v55 = vsel %vm16870_vm4, %v25213_v22, %v16966_v44  ;;  %v25377_v8 = vsub.f32 %v16981_v21, %v25355_v38  ;;  %v17868_v14 = vand.u32 4294901760, %v25388_v11  ;;  %v17880_v31 = vand.u32 4294901760, %v25413_v23 }
 0x6c0   : > { %v25369_v9 = vand.u32 4294901760, %v16982_v55  ;;  %17592 = vmatmul.mubr.f32.gmra.mxu0 %v26743_v30  ;;  %v17874_v25 = vand.u32 4294901760, %v25399_v32  ;;  %v17886_v19 = vand.u32 4294901760, %v25418_v36  ;;  %v17892_v53 = vand.u32 4294901760, %v25423_v6 }
 0x6c1   : > { %17489 = vmatmul.mubr.f32.gmra.mxu1 %v25261_v15  ;;  %17597 = vmatprep.mubr.f32.mxu0 %v26738_v1  ;;  %v17862_v45 = vand.u32 4294901760, %v25377_v8  ;;  %v17869_v54 = vsub.f32 %v25388_v11, %v17868_v14  ;;  %v17898_v48 = vand.u32 4294901760, %v25430_v7  ;;  %v17881_v60 = vsub.f32 %v25413_v23, %v17880_v31 }
 0x6c2   : > { %v25385_v62 = vsub.f32 %v16982_v55, %v25369_v9  ;;  %17684 = vmatprep.mubr.f32.mxu1 %v26738_v1  ;;  %17738 = vmatprep.subr.mxu0 %v25369_v9  ;;  %v17875_v13 = vsub.f32 %v25399_v32, %v17874_v25  ;;  %v17893_v61 = vsub.f32 %v25423_v6, %v17892_v53  ;;  %v25560_v55 = vpop.permute.xlu1 %17003 }
 0x6c3   : > { %17740 = vmatpush1.msra.mxu0 %v25355_v38  ;;  %v17863_v37 = vsub.f32 %v25377_v8, %v17862_v45  ;;  %v17870_v50 = vand.u32 4294901760, %v17869_v54  ;;  %v17899_v35 = vsub.f32 %v25430_v7, %v17898_v48  ;;  %v17882_v41 = vand.u32 4294901760, %v17881_v60 }
 0x6c4   : > { %v17856_v22 = vand.u32 4294901760, %v25385_v62  ;;  %17599 = vmatmul.mubr.f32.gmra.mxu0 %v26745_v47  ;;  %17742 = vmatprep.subr.mxu0 %v25361_v26  ;;  %v17876_v3 = vand.u32 4294901760, %v17875_v13  ;;  %v17894_v21 = vand.u32 4294901760, %v17893_v61 }
 0x6c5   : > { %17686 = vmatmul.mubr.f32.vlgmr.msra.gmra.mxu1 %v26742_v49  ;;  %17604 = vmatprep.mubr.f32.mxu0 %v26738_v1  ;;  %v17864_v33 = vand.u32 4294901760, %v17863_v37  ;;  %v17900_v5 = vand.u32 4294901760, %v17899_v35 }
 0x6c6   : > { %v17857_v58 = vsub.f32 %v25385_v62, %v17856_v22  ;;  %17691 = vmatprep.mubr.f32.mxu1 %v26738_v1  ;;  %17744 = vmatpush1.msra.mxu0 %v25371_v46 }
 0x6c7   : > { %17746 = vmatprep.subr.mxu0 %v25382_v2 }
 0x6c8   : > { %17606 = vmatmul.mubr.f32.gmra.mxu0 %v25056_v16  ;;  %v17858_v28 = vand.u32 4294901760, %v17857_v58 }
 0x6c9   : > { %17693 = vmatmul.mubr.f32.gmra.mxu1 %v26743_v30  ;;  %17748 = vmatpush1.msra.mxu0 %v25392_v17 }
 0x6ca   : > { %17750 = vmatprep.subr.mxu0 %v25395_v43  ;;  %17698 = vmatprep.mubr.f32.mxu1 %v26738_v1 }
 0x6cb   : > { %17752 = vmatpush1.msra.mxu0 %v25403_v20  ;;  %17785 = vmatprep.mubr.f32.mxu0 %v26738_v1 }
 0x6cc   : > { %17791 = vmatmul.mubr.f32.vlgmr.msra.gmra.mxu0 %v25046_v51  ;;  %17859 = vmatprep.subr.mxu1 %v17858_v28  ;;  %v17887_v51 = vsub.f32 %v25418_v36, %v17886_v19 }
 0x6cd   : > { %17700 = vmatmul.mubr.f32.gmra.mxu1 %v26745_v47  ;;  %17989 = vmatprep.subr.mxu0 %v25385_v62  ;;  %v25568_v62 = vpop.permute.xlu1 %16993 }
 0x6ce   : > { %17865 = vmatpush1.msra.mxu1 %v17864_v33  ;;  %17992 = vmatpush1.msra.mxu0 %v25377_v8  ;;  %v17888_v39 = vand.u32 4294901760, %v17887_v51  ;;  %v25564_v8 = vpop.permute.xlu0 %17008 }
 0x6cf   : > { %17871 = vmatprep.subr.mxu1 %v17870_v50  ;;  %17995 = vmatprep.subr.mxu0 %v25388_v11 }
 0x6d0   : > { %17705 = vmatprep.mubr.f32.mxu1 %v26738_v1  ;;  %17796 = vmatprep.mubr.f32.mxu0 %v26738_v1 }
 0x6d1   : > { %17877 = vmatpush1.msra.mxu1 %v17876_v3  ;;  %17998 = vmatpush1.msra.mxu0 %v25399_v32 }
 0x6d2   : > { %17707 = vmatmul.mubr.f32.gmra.mxu1 %v25056_v16  ;;  %17802 = vmatmul.mubr.f32.gmra.mxu0 %v25049_v24  ;;  %v25572_v58 = vpop.permute.xlu0 %16998 }
 0x6d3   : > { %17883 = vmatprep.subr.mxu1 %v17882_v41  ;;  %18001 = vmatprep.subr.mxu0 %v25413_v23 }
 0x6d4   : > { %17889 = vmatpush1.msra.mxu1 %v17888_v39  ;;  %18004 = vmatpush1.msra.mxu0 %v25418_v36 }
 0x6d5   : > { %17895 = vmatprep.subr.mxu1 %v17894_v21  ;;  %18007 = vmatprep.subr.mxu0 %v25423_v6 }
 0x6d6   : > { %17807 = vmatprep.mubr.f32.mxu0 %v26738_v1  ;;  %17901 = vmatpush1.msra.mxu1 %v17900_v5 }
 0x6d7   : > { %17934 = vmatprep.mubr.f32.mxu1 %v26738_v1  ;;  %18010 = vmatpush1.msra.mxu0 %v25430_v7 }
 0x6d8   : > { %17813 = vmatmul.mubr.f32.gmra.mxu0 %v25279_v56  ;;  %17936 = vmatmul.mubr.f32.vlgmr.msra.gmra.mxu1 %v26742_v49 }
 0x6d9   : > { %18101 = vmatprep.subr.mxu1 %v25369_v9  ;;  %18212 = vmatprep.subr.mxu0 %v17856_v22 }
 0x6da   : > { %18103 = vmatpush1.msra.mxu1 %v25355_v38  ;;  %17818 = vmatprep.mubr.f32.mxu0 %v26738_v1 }
 0x6db   : > { %18105 = vmatprep.subr.mxu1 %v25361_v26  ;;  %17941 = vmatprep.mubr.f32.mxu1 %v26738_v1 }
 0x6dc   : > { %18107 = vmatpush1.msra.mxu1 %v25371_v46  ;;  %17824 = vmatmul.mubr.f32.gmra.mxu0 %v25294_v63 }
 0x6dd   : > { %17943 = vmatmul.mubr.f32.gmra.mxu1 %v26743_v30  ;;  %18109 = vmatprep.subr.mxu1 %v25382_v2 }
 0x6de   : > { %18111 = vmatpush1.msra.mxu1 %v25392_v17  ;;  %17948 = vmatprep.mubr.f32.mxu1 %v26738_v1 }
 0x6df   : > { %18113 = vmatprep.subr.mxu1 %v25395_v43  ;;  %18043 = vmatprep.mubr.f32.mxu0 %v26738_v1 }
 0x6e0   : > { %18115 = vmatpush1.msra.mxu1 %v25403_v20  ;;  %18046 = vmatmul.mubr.f32.vlgmr.msra.gmra.mxu0 %v26744_v29 }
 0x6e1   : > { %17950 = vmatmul.mubr.f32.gmra.mxu1 %v26745_v47  ;;  %18216 = vmatpush1.msra.mxu0 %v17862_v45 }
 0x6e2   : > { %18327 = vmatprep.subr.mxu1 %v25369_v9  ;;  %18220 = vmatprep.subr.mxu0 %v17868_v14 }
 0x6e3   : > { %18224 = vmatpush1.msra.mxu0 %v17874_v25  ;;  %17955 = vmatprep.mubr.f32.mxu1 %v26738_v1 }
 0x6e4   : > { %18051 = vmatprep.mubr.f32.mxu0 %v26738_v1  ;;  %18228 = vmatprep.subr.mxu0 %v17880_v31 }
 0x6e5   : > { %17957 = vmatmul.mubr.f32.gmra.mxu1 %v25056_v16  ;;  %18054 = vmatmul.mubr.f32.gmra.mxu0 %v26746_v40 }
 0x6e6   : > { %18232 = vmatpush1.msra.mxu0 %v17886_v19  ;;  %18059 = vmatprep.mubr.f32.mxu0 %v26738_v1 }
 0x6e7   : > { %18236 = vmatprep.subr.mxu0 %v17892_v53  ;;  %18148 = vmatprep.mubr.f32.mxu1 %v26738_v1 }
 0x6e8   : > { %18240 = vmatpush1.msra.mxu0 %v17898_v48 }
 0x6e9   : > { %18062 = vmatmul.mubr.f32.gmra.mxu0 %v26739_v52  ;;  %18152 = vmatmul.mubr.f32.vlgmr.msra.gmra.mxu1 %v26749_v27 }
 0x6ea   : > { %18329 = vmatpush1.msra.mxu1 %v25355_v38  ;;  %18067 = vmatprep.mubr.f32.mxu0 %v26738_v1 }
 0x6eb   : > { %18331 = vmatprep.subr.mxu1 %v25361_v26  ;;  %18157 = vmatprep.mubr.f32.mxu1 %v26738_v1 }
 0x6ec   : > { %18333 = vmatpush1.msra.mxu1 %v25371_v46 }
 0x6ed   : > { %18335 = vmatprep.subr.mxu1 %v25382_v2  ;;  %18070 = vmatmul.mubr.f32.gmra.mxu0 %v25233_v57 }
 0x6ee   : > { %18161 = vmatmul.mubr.f32.gmra.mxu1 %v26750_v42  ;;  %18273 = vmatprep.mubr.f32.mxu0 %v26738_v1 }
 0x6ef   : > { %18337 = vmatpush1.msra.mxu1 %v25392_v17  ;;  %18166 = vmatprep.mubr.f32.mxu1 %v26738_v1 }
 0x6f0   : > { %18339 = vmatprep.subr.mxu1 %v25395_v43 }
 0x6f1   : > { %18341 = vmatpush1.msra.mxu1 %v25403_v20  ;;  %18275 = vmatmul.mubr.f32.vlgmr.msra.gmra.mxu0 %v26742_v49 }
 0x6f2   : > { %18170 = vmatmul.mubr.f32.gmra.mxu1 %v26740_v34  ;;  %18280 = vmatprep.mubr.f32.mxu0 %v26738_v1 }
 0x6f3   : > { %18175 = vmatprep.mubr.f32.mxu1 %v26738_v1 }
 0x6f5   : > { %18282 = vmatmul.mubr.f32.gmra.mxu0 %v26743_v30 }
 0x6f6   : > { %18179 = vmatmul.mubr.f32.gmra.mxu1 %v25261_v15  ;;  %18287 = vmatprep.mubr.f32.mxu0 %v26738_v1 }
 0x6f7   : > { %18374 = vmatprep.mubr.f32.mxu1 %v26738_v1 }
 0x6f9   : > { %18289 = vmatmul.mubr.f32.gmra.mxu0 %v26745_v47 }
 0x6fa   : > { %18376 = vmatmul.mubr.f32.vlgmr.msra.gmra.mxu1 %v26742_v49  ;;  %18294 = vmatprep.mubr.f32.mxu0 %v26738_v1 }
 0x6fb   : > { %18381 = vmatprep.mubr.f32.mxu1 %v26738_v1 }
 0x6fd   : > { %18296 = vmatmul.mubr.f32.gmra.mxu0 %v25056_v16 }
 0x6fe   : > { %18383 = vmatmul.mubr.f32.gmra.mxu1 %v26743_v30  ;;  %18639 = vmatprep.mubr.f32.mxu0 %v26738_v1 }
 0x6ff   : > { %18388 = vmatprep.mubr.f32.mxu1 %v26738_v1 }
 0x702   : > { %18390 = vmatmul.mubr.f32.gmra.mxu1 %v26745_v47 }
 0x703   : > { %18395 = vmatprep.mubr.f32.mxu1 %v26738_v1 }
 0x706   : > { %18397 = vmatmul.mubr.f32.gmra.mxu1 %v25056_v16 }
 0x707   : > { %18766 = vmatprep.mubr.f32.mxu1 %v26738_v1 }
 0x759   : > { %v17102_v24 = vpop.f32.mrf.mxu0 }
 0x75a   : > { %v17103_v17 = vadd.f32 %v17102_v24, %v25568_v62 }
 0x75b   : > { %v17104_v57 = vpop.f32.mrf.mxu0 }
 0x75c   : > { %v17105_v32 = vadd.f32 %v17104_v57, %v25568_v62 }
 0x75d   : > { %v17113_v15 = vpop.f32.mrf.mxu0 }
 0x75e   : > { %v17114_v23 = vadd.f32 %v17113_v15, %v25572_v58 }
 0x75f   : > { %v17115_v52 = vpop.f32.mrf.mxu0 }
 0x760   : > { %v17116_v19 = vadd.f32 %v17115_v52, %v25572_v58 }
 0x761   : > { %v17124_v34 = vpop.f32.mrf.mxu0 }
 0x762   : > { %v17125_v53 = vadd.f32 %v17124_v34, %v25560_v55 }
 0x763   : > { %v17126_v56 = vpop.f32.mrf.mxu0 }
 0x764   : > { %v17127_v51 = vadd.f32 %v17126_v56, %v25560_v55 }
 0x765   : > { %v17247_v63 = vpop.f32.mrf.mxu1 }
 0x766   : > { %v17248_v20 = vadd.f32 %v17247_v63, %v17103_v17 }
 0x767   : > { %v17249_v49 = vpop.f32.mrf.mxu1  ;;  %v25552_v30 = vpop.f32.mrf.mxu0 }
 0x768   : > { %v17250_v36 = vadd.f32 %v17249_v49, %v17105_v32  ;;  %v17136_v56 = vadd.f32 %v25552_v30, %v25564_v8 }
 0x769   : > { %v17254_v29 = vpop.f32.mrf.mxu1  ;;  %v25554_v40 = vpop.f32.mrf.mxu0 }
 0x76a   : > { %v17255_v37 = vadd.f32 %v17254_v29, %v17114_v23 }
 0x76b   : > { %v17256_v47 = vpop.f32.mrf.mxu1  ;;  %v17357_v27 = vpop.f32.mrf.mxu0 }
 0x76c   : > { %v17358_v25 = vadd.f32 %v17357_v27, %v17248_v20  ;;  %v17257_v3 = vadd.f32 %v17256_v47, %v17116_v19 }
 0x76d   : > { %v17261_v42 = vpop.f32.mrf.mxu1  ;;  %v17359_v0 = vpop.f32.mrf.mxu0 }
 0x76e   : > { %v17360_v7 = vadd.f32 %v17359_v0, %v17250_v36  ;;  %v17262_v35 = vadd.f32 %v17261_v42, %v17125_v53 }
 0x76f   : > { %v17263_v16 = vpop.f32.mrf.mxu1 }
 0x770   : > { %v17365_v44 = vpop.f32.mrf.mxu0  ;;  %v17264_v24 = vadd.f32 %v17263_v16, %v17127_v51 }
 0x771   : > { %v25556_v38 = vpop.f32.mrf.mxu1  ;;  %v17366_v33 = vadd.f32 %v17365_v44, %v17255_v37 }
 0x772   : > { %v17367_v4 = vpop.f32.mrf.mxu0 }
 0x773   : > { %v25558_v26 = vpop.f32.mrf.mxu1  ;;  %v17368_v57 = vadd.f32 %v17367_v4, %v17257_v3 }
 0x774   : > { %v17373_v12 = vpop.f32.mrf.mxu0 }
 0x775   : > { %v17463_v18 = vpop.f32.mrf.mxu1  ;;  %v17374_v52 = vadd.f32 %v17373_v12, %v17262_v35 }
 0x776   : > { %v17375_v9 = vpop.f32.mrf.mxu0  ;;  %v17464_v54 = vadd.f32 %v17463_v18, %v17358_v25  ;;  %v17138_v18 = vadd.f32 %v25554_v40, %v25564_v8 }
 0x777   : > { %v17465_v46 = vpop.f32.mrf.mxu1  ;;  %v17376_v47 = vadd.f32 %v17375_v9, %v17264_v24 }
 0x778   : > { %v25562_v59 = vpop.f32.mrf.mxu0  ;;  %v17466_v48 = vadd.f32 %v17465_v46, %v17360_v7  ;;  %v17269_v46 = vadd.f32 %v25556_v38, %v17136_v56  ;;  %v17271_v32 = vadd.f32 %v25558_v26, %v17138_v18 }
 0x779   : > { %v17472_v10 = vpop.f32.mrf.mxu1 }
 0x77a   : > { %v25566_v2 = vpop.f32.mrf.mxu0  ;;  %v17473_v41 = vadd.f32 %v17472_v10, %v17366_v33  ;;  %v17382_v20 = vadd.f32 %v25562_v59, %v17269_v46 }
 0x77b   : > { %v17474_v11 = vpop.f32.mrf.mxu1  ;;  %v17384_v25 = vadd.f32 %v25566_v2, %v17271_v32 }
 0x77c   : > { %v17586_v43 = vpop.f32.mrf.mxu0  ;;  %v17475_v27 = vadd.f32 %v17474_v11, %v17368_v57 }
 0x77d   : > { %v17481_v22 = vpop.f32.mrf.mxu1  ;;  %v17587_v50 = vadd.f32 %v17586_v43, %v17464_v54 }
 0x77e   : > { %v17588_v45 = vpop.f32.mrf.mxu0  ;;  %v17482_v0 = vadd.f32 %v17481_v22, %v17374_v52 }
 0x77f   : > { %v17483_v14 = vpop.f32.mrf.mxu1  ;;  %v17589_v39 = vadd.f32 %v17588_v45, %v17466_v48 }
 0x780   : > { %v17593_v6 = vpop.f32.mrf.mxu0  ;;  %v17484_v10 = vadd.f32 %v17483_v14, %v17376_v47 }
 0x781   : > { %v17490_v28 = vpop.f32.mrf.mxu1  ;;  %v17594_v63 = vadd.f32 %v17593_v6, %v17473_v41 }
 0x782   : > { %v17595_v31 = vpop.f32.mrf.mxu0  ;;  %v17491_v6 = vadd.f32 %v17490_v28, %v17382_v20 }
 0x783   : > { %v17492_v13 = vpop.f32.mrf.mxu1  ;;  %v17596_v17 = vadd.f32 %v17595_v31, %v17475_v27 }
 0x784   : > { %v17600_v60 = vpop.f32.mrf.mxu0  ;;  %v17493_v54 = vadd.f32 %v17492_v13, %v17384_v25 }
 0x785   : > { %v17687_v61 = vpop.f32.mrf.mxu1  ;;  %v17601_v9 = vadd.f32 %v17600_v60, %v17482_v0  ;;  %v18547_v60 = vld [vmem:[%s26098_s9] sm:$0xff] }
 0x786   : > { %v25578_v21 = vadd.f32 %v17687_v61, %v17587_v50  ;;  %v17602_v5 = vpop.f32.mrf.mxu0  ;;  %v18548_v61 = vld [vmem:[%s26098_s9 + $0x8] sm:$0x1] }
 0x787   : > { %v17689_v15 = vpop.f32.mrf.mxu1  ;;  %v17603_v38 = vadd.f32 %v17602_v5, %v17484_v10  ;;  %v18565_v57 = vsel %vm7793_vm9, %v18548_v61, 0 }
 0x788   : > { %v25581_v34 = vmul.f32 100.0, %v25578_v21  ;;  %v25583_v49 = vadd.f32 %v17689_v15, %v17589_v39  ;;  %v17607_v29 = vpop.f32.mrf.mxu0  ;;  %v18562_v39 = vsel %vm7793_vm9, %v18547_v60, 0  ;;  %v25660_v0 = vand.u32 4294901760, %v18565_v57 }
 0x789   : > { %v17694_v42 = vpop.f32.mrf.mxu1  ;;  %v17608_v31 = vadd.f32 %v17607_v29, %v17491_v6  ;;  %v25654_v56 = vand.u32 4294901760, %v18562_v39 }
 0x78a   : > { %v18435_v44 = vmul.f32 1.442695, %v25581_v34  ;;  %v25589_v16 = vmul.f32 100.0, %v25583_v49  ;;  %v25591_v4 = vadd.f32 %v17694_v42, %v17594_v63  ;;  %v17609_v12 = vpop.f32.mrf.mxu0  ;;  %vm18419_vm9 = vcmp.gt.f32.partialorder %v25581_v34, 20.0 }
 0x78b   : > { %v17696_v30 = vpop.f32.mrf.mxu1  ;;  %v17610_v48 = vadd.f32 %v17609_v12, %v17493_v54 }
 0x78c   : > { %20159 = vpow2.f32 %v18435_v44  ;;  %v18437_v11 = vmul.f32 1.442695, %v25589_v16  ;;  %v25598_v43 = vmul.f32 100.0, %v25591_v4  ;;  %v25600_v22 = vpop.f32.mrf.mxu0  ;;  %v25604_v45 = vadd.f32 %v17696_v30, %v17596_v17 }
 0x78d   : > { %v17701_v40 = vpop.f32.mrf.mxu1  ;;  %v25667_v17 = vsub.f32 %v18562_v39, %v25654_v56  ;;  %vm18420_vm14 = vcmp.gt.f32.partialorder %v25589_v16, 20.0 }
 0x78e   : > { %20161 = vpow2.f32 %v18437_v11  ;;  %v18443_v14 = vmul.f32 1.442695, %v25598_v43  ;;  %v25607_v23 = vadd.f32 %v17701_v40, %v17601_v9  ;;  %v25609_v36 = vpop.f32.mrf.mxu0  ;;  %v25613_v37 = vmul.f32 100.0, %v25604_v45 }
 0x78f   : > { %v17703_v26 = vpop.f32.mrf.mxu1  ;;  %v25672_v11 = vsub.f32 %v18565_v57, %v25660_v0  ;;  %v25679_v6 = vand.u32 4294901760, %v25667_v17  ;;  %vm18423_vm8 = vcmp.gt.f32.partialorder %v25598_v43, 20.0 }
 0x790   : > { %20163 = vpow2.f32 %v18443_v14  ;;  %v25616_v59 = vmul.f32 100.0, %v25607_v23  ;;  %v25618_v7 = vadd.f32 %v17703_v26, %v17603_v38  ;;  %v18445_v19 = vmul.f32 1.442695, %v25613_v37 }
 0x791   : > { %vm18424_vm10 = vcmp.gt.f32.partialorder %v25613_v37, 20.0 }
 0x792   : > { %v18451_v53 = vmul.f32 1.442695, %v25616_v59  ;;  %v25623_v33 = vmul.f32 100.0, %v25618_v7  ;;  %v17708_v2 = vpop.f32.mrf.mxu1  ;;  %v25625_v28 = vpop.f32.mrf.mxu0  ;;  %20165 = vpow2.f32 %v18445_v19  ;;  %vm18427_vm11 = vcmp.gt.f32.partialorder %v25616_v59, 20.0 }
 0x793   : > { %v25627_v50 = vadd.f32 %v17708_v2, %v17608_v31  ;;  %v25682_v31 = vand.u32 4294901760, %v25672_v11 }
 0x794   : > { %20167 = vpow2.f32 %v18451_v53  ;;  %v18453_v13 = vmul.f32 1.442695, %v25623_v33  ;;  %v17710_v51 = vpop.f32.mrf.mxu1  ;;  %v25633_v3 = vpop.f32.mrf.mxu0  ;;  %vm18428_vm12 = vcmp.gt.f32.partialorder %v25623_v33, 20.0 }
 0x795   : > { %v25639_v35 = vmul.f32 100.0, %v25627_v50  ;;  %v25641_v41 = vadd.f32 %v17710_v51, %v17610_v48  ;;  %26751 = vst [vmem:[#allocation32_spill] sm:$0xff] %v25682_v31  ;;  %v18654_v61 = vsub.f32 %v25672_v11, %v25682_v31 }
 0x796   : > { %20169 = vpow2.f32 %v18453_v13  ;;  %v18643_v13 = vsub.f32 %v25667_v17, %v25679_v6 }
 0x797   : > { %v18459_v5 = vmul.f32 1.442695, %v25639_v35  ;;  %v25646_v24 = vmul.f32 100.0, %v25641_v41  ;;  %vm18431_vm15 = vcmp.gt.f32.partialorder %v25639_v35, 20.0 }
 0x798   : > { %v25649_v15 = vpop.f32.mrf.mxu0  ;;  %v25651_v52 = vpop.f32.mrf.mxu1 }
 0x799   : > { %v20160_v63 = vpop.eup %20159  ;;  %20171 = vpow2.f32 %v18459_v5  ;;  %v18461_v29 = vmul.f32 1.442695, %v25646_v24  ;;  %vm18432_vm0 = vcmp.gt.f32.partialorder %v25646_v24, 20.0 }
 0x79a   : > { %v18467_v47 = vadd.f32 1.0, %v20160_v63  ;;  %v25656_v27 = vpop.f32.mrf.mxu0  ;;  %v25658_v42 = vpop.f32.mrf.mxu1 }
 0x79b   : > { %v20162_v44 = vpop.eup %20161  ;;  %20173 = vpow2.f32 %v18461_v29 }
 0x79c   : > { %20175 = vlog2.f32 %v18467_v47  ;;  %v18468_v12 = vadd.f32 1.0, %v20162_v44  ;;  %v25662_v18 = vpop.f32.mrf.mxu0 }
 0x79d   : > { %v20164_v46 = vpop.eup %20163  ;;  %v25664_v10 = vpop.f32.mrf.mxu1 }
 0x79e   : > { %20177 = vlog2.f32 %v18468_v12  ;;  %v18471_v30 = vadd.f32 1.0, %v20164_v46  ;;  %v25669_v9 = vpop.f32.mrf.mxu0  ;;  %v25690_v46 = vand.u32 4294901760, %v18643_v13 }
 0x79f   : > { %v25674_v32 = vpop.f32.mrf.mxu1  ;;  %v20166_v20 = vpop.eup %20165 }
 0x7a0   : > { %20179 = vlog2.f32 %v18471_v30  ;;  %v18047_v40 = vpop.f32.mrf.mxu0  ;;  %v18472_v14 = vadd.f32 1.0, %v20166_v20  ;;  %v25694_v20 = vand.u32 4294901760, %v18654_v61  ;;  %v17806_v61 = vadd.f32 %v25633_v3, %v25572_v58 }
 0x7a1   : > { %v20168_v38 = vpop.eup %20167  ;;  %v25676_v25 = vpop.f32.mrf.mxu1 }
 0x7a2   : > { %v18475_v26 = vadd.f32 1.0, %v20168_v38  ;;  %v18049_v54 = vpop.f32.mrf.mxu0  ;;  %20181 = vlog2.f32 %v18472_v14  ;;  %v17793_v14 = vadd.f32 %v25600_v22, %v25568_v62  ;;  %v17815_v22 = vadd.f32 %v25649_v15, %v25560_v55 }
 0x7a3   : > { %v20170_v19 = vpop.eup %20169  ;;  %v17953_v53 = vpop.f32.mrf.mxu1 }
 0x7a4   : > { %20183 = vlog2.f32 %v18475_v26  ;;  %v18476_v2 = vadd.f32 1.0, %v20170_v19  ;;  %v17795_v26 = vadd.f32 %v25609_v36, %v25568_v62  ;;  %v17817_v62 = vadd.f32 %v25656_v27, %v25560_v55 }
 0x7a5   : > { %v17958_v48 = vpop.f32.mrf.mxu1  ;;  %v18055_v60 = vpop.f32.mrf.mxu0  ;;  %v17828_v55 = vadd.f32 %v25669_v9, %v25564_v8 }
 0x7a6   : > { %v20172_v51 = vpop.eup %20171  ;;  %20185 = vlog2.f32 %v18476_v2  ;;  %v17940_v36 = vadd.f32 %v25658_v42, %v17795_v26  ;;  %v17952_v26 = vadd.f32 %v25676_v25, %v17815_v22 }
 0x7a7   : > { %v18479_v39 = vadd.f32 1.0, %v20172_v51  ;;  %v17960_v5 = vpop.f32.mrf.mxu1  ;;  %v18057_v57 = vpop.f32.mrf.mxu0 }
 0x7a8   : > { %v20174_v63 = vpop.eup %20173 }
 0x7a9   : > { %v20176_v29 = vpop.eup %20175  ;;  %20187 = vlog2.f32 %v18479_v39  ;;  %v18480_v47 = vadd.f32 1.0, %v20174_v63  ;;  %v18063_v44 = vpop.f32.mrf.mxu0  ;;  %v17804_v39 = vadd.f32 %v25625_v28, %v25572_v58  ;;  %v17826_v58 = vadd.f32 %v25662_v18, %v25564_v8 }
 0x7aa   : > { %v25688_v12 = vpop.f32.mrf.mxu1  ;;  %v18484_v30 = vmul.f32 0.6931472, %v20176_v29  ;;  %v17938_v29 = vadd.f32 %v25651_v52, %v17793_v14  ;;  %v17947_v52 = vadd.f32 %v25674_v32, %v17806_v61 }
 0x7ab   : > { %v20178_v38 = vpop.eup %20177  ;;  %20189 = vlog2.f32 %v18480_v47  ;;  %v18065_v19 = vpop.f32.mrf.mxu0  ;;  %v17945_v28 = vadd.f32 %v25664_v10, %v17804_v39  ;;  %v17954_v39 = vadd.f32 %v17953_v53, %v17817_v62  ;;  %v18064_v53 = vadd.f32 %v18063_v44, %v17952_v26 }
 0x7ac   : > { %v18155_v2 = vpop.f32.mrf.mxu1  ;;  %v18515_v13 = vmul.f32 0.01, %v18484_v30  ;;  %v18486_v51 = vmul.f32 0.6931472, %v20178_v38  ;;  %v18048_v27 = vadd.f32 %v18047_v40, %v17938_v29  ;;  %v17961_v40 = vadd.f32 %v17960_v5, %v17828_v55 }
 0x7ad   : > { %v20180_v63 = vpop.eup %20179  ;;  %v18071_v47 = vpop.f32.mrf.mxu0  ;;  %v18056_v31 = vadd.f32 %v18055_v60, %v17945_v28  ;;  %v18058_v61 = vadd.f32 %v18057_v57, %v17947_v52 }
 0x7ae   : > { %v18516_v30 = vmul.f32 0.01, %v18486_v51  ;;  %v18492_v38 = vmul.f32 0.6931472, %v20180_v63  ;;  %v18162_v3 = vpop.f32.mrf.mxu1  ;;  %v18531_v15 = vsel %vm18419_vm9, %v25578_v21, %v18515_v13  ;;  %v18050_v51 = vadd.f32 %v18049_v54, %v17940_v36 }
 0x7af   : > { %v18073_v42 = vpop.f32.mrf.mxu0  ;;  %v20182_v14 = vpop.eup %20181  ;;  %v17959_v63 = vadd.f32 %v17958_v48, %v17826_v58  ;;  %v25727_v9 = vand.u32 4294901760, %v18531_v15  ;;  %v18154_v62 = vadd.f32 %v25688_v12, %v18048_v27  ;;  %v18066_v36 = vadd.f32 %v18065_v19, %v17954_v39 }
 0x7b0   : > { %v18532_v18 = vsel %vm18420_vm14, %v25583_v49, %v18516_v30  ;;  %v18519_v10 = vmul.f32 0.01, %v18492_v38  ;;  %v18164_v34 = vpop.f32.mrf.mxu1  ;;  %v18494_v13 = vmul.f32 0.6931472, %v20182_v14  ;;  %v18156_v57 = vadd.f32 %v18155_v2, %v18050_v51 }
 0x7b1   : > { %v20184_v21 = vpop.eup %20183  ;;  %v18276_v8 = vpop.f32.mrf.mxu0  ;;  %v25730_v29 = vand.u32 4294901760, %v18532_v18  ;;  %v18072_v30 = vadd.f32 %v18071_v47, %v17959_v63  ;;  %v18163_v38 = vadd.f32 %v18162_v3, %v18056_v31  ;;  %v25737_v58 = vadd.f32 %v18073_v42, %v17961_v40 }
 0x7b2   : > { %v18500_v32 = vmul.f32 0.6931472, %v20184_v21  ;;  %v18171_v16 = vpop.f32.mrf.mxu1  ;;  %v18535_v25 = vsel %vm18423_vm8, %v25591_v4, %v18519_v10  ;;  %v18520_v54 = vmul.f32 0.01, %v18494_v13  ;;  %v25740_v4 = vsub.f32 %v18531_v15, %v25727_v9 }
 0x7b3   : > { %v20186_v49 = vpop.eup %20185  ;;  %v18278_v48 = vpop.f32.mrf.mxu0  ;;  %v25742_v43 = vand.u32 4294901760, %v18535_v25  ;;  %v25748_v19 = vsub.f32 %v18532_v18, %v25730_v29  ;;  %v18165_v47 = vadd.f32 %v18164_v34, %v18058_v61  ;;  %v18172_v42 = vadd.f32 %v18171_v16, %v18064_v53 }
 0x7b4   : > { %v18523_v60 = vmul.f32 0.01, %v18500_v32  ;;  %v18502_v22 = vmul.f32 0.6931472, %v20186_v49  ;;  %v18173_v5 = vpop.f32.mrf.mxu1  ;;  %v18536_v44 = vsel %vm18424_vm10, %v25604_v45, %v18520_v54  ;;  %v18277_v37 = vadd.f32 %v18276_v8, %v18154_v62 }
 0x7b5   : > { %v18283_v28 = vpop.f32.mrf.mxu0  ;;  %v18279_v45 = vadd.f32 %v18278_v48, %v18156_v57  ;;  %v25756_v10 = vand.u32 4294901760, %v18536_v44  ;;  %v18174_v21 = vadd.f32 %v18173_v5, %v18066_v36  ;;  %v18724_v8 = vand.u32 4294901760, %v25748_v19 }
 0x7b6   : > { %v20188_v55 = vpop.eup %20187  ;;  %v18524_v52 = vmul.f32 0.01, %v18502_v22  ;;  %v18180_v12 = vpop.f32.mrf.mxu1  ;;  %v18539_v31 = vsel %vm18427_vm11, %v25607_v23, %v18523_v60  ;;  %v25761_v23 = vsub.f32 %v18535_v25, %v25742_v43  ;;  %v18284_v16 = vadd.f32 %v18283_v28, %v18163_v38 }
 0x7b7   : > { %v18508_v2 = vmul.f32 0.6931472, %v20188_v55  ;;  %v18285_v3 = vpop.f32.mrf.mxu0  ;;  %v25763_v34 = vand.u32 4294901760, %v18539_v31  ;;  %v18181_v61 = vadd.f32 %v18180_v12, %v18072_v30  ;;  %v25778_v25 = vsub.f32 %v18536_v44, %v25756_v10 }
 0x7b8   : > { %v20190_v15 = vpop.eup %20189  ;;  %v18540_v27 = vsel %vm18428_vm12, %v25618_v7, %v18524_v52  ;;  %v18182_v14 = vpop.f32.mrf.mxu1  ;;  %v18730_v7 = vand.u32 4294901760, %v25740_v4  ;;  %v18718_v36 = vand.u32 4294901760, %v25761_v23  ;;  %v18286_v5 = vadd.f32 %v18285_v3, %v18165_v47 }
 0x7b9   : > { %v25758_v18 = vand.u32 4294901760, %v18540_v27  ;;  %v18527_v26 = vmul.f32 0.01, %v18508_v2  ;;  %v18510_v51 = vmul.f32 0.6931472, %v20190_v15  ;;  %v18290_v59 = vpop.f32.mrf.mxu0  ;;  %v25789_v48 = vsub.f32 %v18539_v31, %v25763_v34 }
 0x7ba   : > { %v18377_v13 = vpop.f32.mrf.mxu1  ;;  %v18291_v38 = vadd.f32 %v18290_v59, %v18172_v42  ;;  %v18712_v2 = vand.u32 4294901760, %v25778_v25 }
 0x7bb   : > { %v18543_v33 = vsel %vm18431_vm15, %v25627_v50, %v18527_v26  ;;  %v18528_v39 = vmul.f32 0.01, %v18510_v51  ;;  %v25769_v63 = vadd.f32 %v18377_v13, %v18277_v37  ;;  %v25773_v32 = vsub.f32 %v18540_v27, %v25758_v18  ;;  %v18292_v54 = vpop.f32.mrf.mxu0 }
 0x7bc   : > { %v25775_v40 = vand.u32 4294901760, %v18543_v33  ;;  %v18379_v49 = vpop.f32.mrf.mxu1  ;;  %v18293_v47 = vadd.f32 %v18292_v54, %v18174_v21  ;;  %v18706_v42 = vand.u32 4294901760, %v25789_v48  ;;  %v18183_v51 = vadd.f32 %v18182_v14, %v25737_v58 }
 0x7bd   : > { %v18544_v50 = vsel %vm18432_vm0, %v25641_v41, %v18528_v39  ;;  %v25784_v35 = vmul.f32 100.0, %v25769_v63  ;;  %v25786_v53 = vadd.f32 %v18379_v49, %v18279_v45  ;;  %v18700_v44 = vand.u32 4294901760, %v25773_v32  ;;  %v18297_v12 = vpop.f32.mrf.mxu0 }
 0x7be   : > { %v25792_v60 = vsub.f32 %v18543_v33, %v25775_v40  ;;  %v25794_v22 = vand.u32 4294901760, %v18544_v50  ;;  %v18384_v62 = vpop.f32.mrf.mxu1  ;;  %v18298_v39 = vadd.f32 %v18297_v12, %v18181_v61  ;;  %v18713_v61 = vsub.f32 %v25778_v25, %v18712_v2 }
 0x7bf   : > { %v18439_v41 = vmul.f32 1.442695, %v25784_v35  ;;  %v25799_v24 = vmul.f32 100.0, %v25786_v53  ;;  %v25801_v57 = vadd.f32 %v18384_v62, %v18284_v16  ;;  %v18701_v33 = vsub.f32 %v25773_v32, %v18700_v44  ;;  %v18299_v16 = vpop.f32.mrf.mxu0 }
 0x7c0   : > { %v25804_v30 = vsub.f32 %v18544_v50, %v25794_v22  ;;  %v18386_v28 = vpop.f32.mrf.mxu1  ;;  %18592 = vmatprep.subr.mxu0 %v25794_v22  ;;  %v18694_v55 = vand.u32 4294901760, %v25792_v60  ;;  %v18707_v62 = vsub.f32 %v25789_v48, %v18706_v42  ;;  %vm18421_vm6 = vcmp.gt.f32.partialorder %v25784_v35, 20.0 }
 0x7c1   : > { %20191 = vpow2.f32 %v18439_v41  ;;  %v18441_v52 = vmul.f32 1.442695, %v25799_v24  ;;  %v25811_v31 = vmul.f32 100.0, %v25801_v57  ;;  %18594 = vmatpush1.msra.mxu0 %v25775_v40  ;;  %v25815_v3 = vadd.f32 %v18386_v28, %v18286_v5 }
 0x7c2   : > { %v18391_v15 = vpop.f32.mrf.mxu1  ;;  %18596 = vmatprep.subr.mxu0 %v25758_v18  ;;  %v18688_v27 = vand.u32 4294901760, %v25804_v30  ;;  %v18695_v26 = vsub.f32 %v25792_v60, %v18694_v55  ;;  %vm18422_vm1 = vcmp.gt.f32.partialorder %v25799_v24, 20.0 }
 0x7c3   : > { %20193 = vpow2.f32 %v18441_v52  ;;  %v18447_v37 = vmul.f32 1.442695, %v25811_v31  ;;  %v25821_v45 = vadd.f32 %v18391_v15, %v18291_v38  ;;  %18598 = vmatpush1.msra.mxu0 %v25763_v34  ;;  %v25829_v59 = vmul.f32 100.0, %v25815_v3 }
 0x7c4   : > { %v18393_v21 = vpop.f32.mrf.mxu1  ;;  %18600 = vmatprep.subr.mxu0 %v25756_v10  ;;  %v18689_v13 = vsub.f32 %v25804_v30, %v18688_v27  ;;  %v18696_v28 = vand.u32 4294901760, %v18695_v26  ;;  %v18300_v52 = vadd.f32 %v18299_v16, %v18183_v51  ;;  %v18719_v15 = vsub.f32 %v25761_v23, %v18718_v36 }
 0x7c5   : > { %20195 = vpow2.f32 %v18447_v37  ;;  %v25839_v49 = vmul.f32 100.0, %v25821_v45  ;;  %v25841_v58 = vadd.f32 %v18393_v21, %v18293_v47  ;;  %18602 = vmatpush1.msra.mxu0 %v25742_v43  ;;  %v18449_v14 = vmul.f32 1.442695, %v25829_v59 }
 0x7c6   : > { %v18398_v50 = vpop.f32.mrf.mxu1  ;;  %18604 = vmatprep.subr.mxu0 %v25730_v29  ;;  %v18690_v54 = vand.u32 4294901760, %v18689_v13  ;;  %v18702_v47 = vand.u32 4294901760, %v18701_v33  ;;  %v18725_v26 = vsub.f32 %v25748_v19, %v18724_v8  ;;  %v18708_v13 = vand.u32 4294901760, %v18707_v62 }
 0x7c7   : > { %v18455_v5 = vmul.f32 1.442695, %v25839_v49  ;;  %v25854_v41 = vmul.f32 100.0, %v25841_v58  ;;  %v25856_v38 = vadd.f32 %v18398_v50, %v18298_v39  ;;  %18606 = vmatpush1.msra.mxu0 %v25727_v9  ;;  %20197 = vpow2.f32 %v18449_v14 }
 0x7c8   : > { %v18400_v12 = vpop.f32.mrf.mxu1  ;;  %18645 = vmatmul.mubr.f32.vlgmr.msra.gmra.mxu0 %v25690_v46  ;;  %18691 = vmatprep.subr.mxu1 %v18690_v54  ;;  %v18731_v33 = vsub.f32 %v25740_v4, %v18730_v7  ;;  %v18714_v16 = vand.u32 4294901760, %v18713_v61  ;;  %v18720_v50 = vand.u32 4294901760, %v18719_v15  ;;  %v18726_v54 = vand.u32 4294901760, %v18725_v26 }
 0x7c9   : > { %20199 = vpow2.f32 %v18455_v5  ;;  %v18457_v37 = vmul.f32 1.442695, %v25854_v41  ;;  %v25865_v21 = vmul.f32 100.0, %v25856_v38  ;;  %18807 = vmatprep.subr.mxu0 %v25804_v30  ;;  %18697 = vmatpush1.msra.mxu1 %v18696_v28  ;;  %v25871_v51 = vadd.f32 %v18400_v12, %v18300_v52 }
 0x7ca   : > { %18810 = vmatpush1.msra.mxu0 %v25792_v60  ;;  %18703 = vmatprep.subr.mxu1 %v18702_v47  ;;  %v18732_v28 = vand.u32 4294901760, %v18731_v33  ;;  %vm18429_vm13 = vcmp.gt.f32.partialorder %v25839_v49, 20.0  ;;  %vm18426_vm2 = vcmp.gt.f32.partialorder %v25829_v59, 20.0  ;;  %vm18430_vm3 = vcmp.gt.f32.partialorder %v25854_v41, 20.0 }
 0x7cb   : > { %20201 = vpow2.f32 %v18457_v37  ;;  %v18463_v39 = vmul.f32 1.442695, %v25865_v21  ;;  %18813 = vmatprep.subr.mxu0 %v25773_v32  ;;  %18650 = vmatprep.mubr.f32.mxu0 %v26738_v1  ;;  %v25881_v14 = vmul.f32 100.0, %v25871_v51  ;;  %vm18425_vm4 = vcmp.gt.f32.partialorder %v25811_v31, 20.0 }
 0x7cc   : > { %18709 = vmatpush1.msra.mxu1 %v18708_v13  ;;  %18816 = vmatpush1.msra.mxu0 %v25789_v48  ;;  %vm18433_vm5 = vcmp.gt.f32.partialorder %v25865_v21, 20.0 }
 0x7cd   : > { %20203 = vpow2.f32 %v18463_v39  ;;  %18656 = vmatmul.mubr.f32.gmra.mxu0 %v25694_v20  ;;  %18715 = vmatprep.subr.mxu1 %v18714_v16  ;;  %v18465_v5 = vmul.f32 1.442695, %v25881_v14  ;;  %vm18434_vm7 = vcmp.gt.f32.partialorder %v25881_v14, 20.0 }
 0x7ce   : > { %v20192_v62 = vpop.eup %20191  ;;  %18819 = vmatprep.subr.mxu0 %v25778_v25  ;;  %18721 = vmatpush1.msra.mxu1 %v18720_v50 }
 0x7cf   : > { %18822 = vmatpush1.msra.mxu0 %v25761_v23  ;;  %18727 = vmatprep.subr.mxu1 %v18726_v54  ;;  %20205 = vpow2.f32 %v18465_v5  ;;  %v18469_v52 = vadd.f32 1.0, %v20192_v62 }
 0x7d0   : > { %v20194_v61 = vpop.eup %20193  ;;  %18825 = vmatprep.subr.mxu0 %v25748_v19  ;;  %18733 = vmatpush1.msra.mxu1 %v18732_v28  ;;  %v26752_v19 = vld [vmem:[#allocation32_spill] sm:$0xff] }
 0x7d1   : > { %18828 = vmatpush1.msra.mxu0 %v25740_v4  ;;  %18768 = vmatmul.mubr.f32.vlgmr.msra.gmra.mxu1 %v25654_v56  ;;  %v18470_v47 = vadd.f32 1.0, %v20194_v61  ;;  %20207 = vlog2.f32 %v18469_v52 }
 0x7d2   : > { %v20196_v12 = vpop.eup %20195  ;;  %18861 = vmatprep.mubr.f32.mxu0 %v26738_v1  ;;  %18903 = vmatprep.subr.mxu1 %v25794_v22 }
 0x7d3   : > { %v18473_v15 = vadd.f32 1.0, %v20196_v12  ;;  %18996 = vmatprep.subr.mxu0 %v18688_v27  ;;  %18864 = vmatmul.mubr.f32.vlgmr.msra.gmra.mxu0 %v25667_v17 }
 0x7d4   : > { %18905 = vmatpush1.msra.mxu1 %v25775_v40  ;;  %19000 = vmatpush1.msra.mxu0 %v18694_v55  ;;  %v20198_v37 = vpop.eup %20197 }
 0x7d5   : > { %18907 = vmatprep.subr.mxu1 %v25758_v18  ;;  %19004 = vmatprep.subr.mxu0 %v18700_v44  ;;  %20209 = vlog2.f32 %v18473_v15  ;;  %v18474_v13 = vadd.f32 1.0, %v20198_v37 }
 0x7d6   : > { %v20200_v26 = vpop.eup %20199  ;;  %18773 = vmatprep.mubr.f32.mxu1 %v26738_v1  ;;  %18909 = vmatpush1.msra.mxu1 %v25763_v34  ;;  %20211 = vlog2.f32 %v18470_v47 }
 0x7d7   : > { %v18477_v30 = vadd.f32 1.0, %v20200_v26  ;;  %19008 = vmatpush1.msra.mxu0 %v18706_v42  ;;  %18775 = vmatmul.mubr.f32.gmra.mxu1 %v25660_v0  ;;  %20213 = vlog2.f32 %v18474_v13 }
 0x7d8   : > { %v20202_v60 = vpop.eup %20201  ;;  %18911 = vmatprep.subr.mxu1 %v25756_v10  ;;  %19012 = vmatprep.subr.mxu0 %v18712_v2 }
 0x7d9   : > { %20215 = vlog2.f32 %v18477_v30  ;;  %v18478_v32 = vadd.f32 1.0, %v20202_v60  ;;  %18869 = vmatprep.mubr.f32.mxu0 %v26738_v1  ;;  %18913 = vmatpush1.msra.mxu1 %v25742_v43 }
 0x7da   : > { %v20204_v55 = vpop.eup %20203  ;;  %19016 = vmatpush1.msra.mxu0 %v18718_v36  ;;  %18915 = vmatprep.subr.mxu1 %v25730_v29 }
 0x7db   : > { %20217 = vlog2.f32 %v18478_v32  ;;  %v18481_v48 = vadd.f32 1.0, %v20204_v55  ;;  %18872 = vmatmul.mubr.f32.gmra.mxu0 %v25672_v11  ;;  %19020 = vmatprep.subr.mxu0 %v18724_v8 }
 0x7dc   : > { %18917 = vmatpush1.msra.mxu1 %v25727_v9  ;;  %18950 = vmatprep.mubr.f32.mxu1 %v26738_v1  ;;  %v20206_v25 = vpop.eup %20205 }
 0x7dd   : > { %20219 = vlog2.f32 %v18481_v48  ;;  %19024 = vmatpush1.msra.mxu0 %v18730_v7  ;;  %18954 = vmatmul.mubr.f32.vlgmr.msra.gmra.mxu1 %v25679_v6  ;;  %v18482_v23 = vadd.f32 1.0, %v20206_v25 }
 0x7de   : > { %19097 = vmatprep.subr.mxu1 %v25794_v22  ;;  %19057 = vmatprep.mubr.f32.mxu0 %v26738_v1  ;;  %v20208_v4 = vpop.eup %20207 }
 0x7df   : > { %19099 = vmatpush1.msra.mxu1 %v25775_v40  ;;  %19059 = vmatmul.mubr.f32.vlgmr.msra.gmra.mxu0 %v25654_v56  ;;  %20221 = vlog2.f32 %v18482_v23  ;;  %v18488_v44 = vmul.f32 0.6931472, %v20208_v4 }
 0x7e0   : > { %19101 = vmatprep.subr.mxu1 %v25758_v18  ;;  %18959 = vmatprep.mubr.f32.mxu1 %v26738_v1 }
 0x7e1   : > { %19103 = vmatpush1.msra.mxu1 %v25763_v34  ;;  %19064 = vmatprep.mubr.f32.mxu0 %v26738_v1  ;;  %v18517_v50 = vmul.f32 0.01, %v18488_v44 }
 0x7e2   : > { %18963 = vmatmul.mubr.f32.gmra.mxu1 %v26752_v19  ;;  %19105 = vmatprep.subr.mxu1 %v25756_v10  ;;  %v20210_v7 = vpop.eup %20209 }
 0x7e3   : > { %19107 = vmatpush1.msra.mxu1 %v25742_v43  ;;  %19066 = vmatmul.mubr.f32.gmra.mxu0 %v25660_v0  ;;  %v20212_v8 = vpop.eup %20211  ;;  %v18496_v40 = vmul.f32 0.6931472, %v20210_v7 }
 0x7e4   : > { %19109 = vmatprep.subr.mxu1 %v25730_v29  ;;  %19144 = vmatprep.mubr.f32.mxu1 %v26738_v1  ;;  %v20214_v18 = vpop.eup %20213  ;;  %v18490_v10 = vmul.f32 0.6931472, %v20212_v8 }
 0x7e5   : > { %19111 = vmatpush1.msra.mxu1 %v25727_v9  ;;  %19231 = vmatprep.mubr.f32.mxu0 %v26738_v1  ;;  %v18498_v22 = vmul.f32 0.6931472, %v20214_v18  ;;  %v18521_v9 = vmul.f32 0.01, %v18496_v40 }
 0x7e6   : > { %v20216_v34 = vpop.eup %20215  ;;  %19146 = vmatmul.mubr.f32.vlgmr.msra.gmra.mxu1 %v25654_v56  ;;  %v18518_v33 = vmul.f32 0.01, %v18490_v10 }
 0x7e7   : > { %v18504_v36 = vmul.f32 0.6931472, %v20216_v34  ;;  %19151 = vmatprep.mubr.f32.mxu1 %v26738_v1  ;;  %v18522_v2 = vmul.f32 0.01, %v18498_v22  ;;  %v18537_v61 = vsel %vm18425_vm4, %v25801_v57, %v18521_v9 }
 0x7e8   : > { %v20218_v43 = vpop.eup %20217  ;;  %v25967_v47 = vand.u32 4294901760, %v18537_v61 }
 0x7e9   : > { %v18525_v29 = vmul.f32 0.01, %v18504_v36  ;;  %v18506_v27 = vmul.f32 0.6931472, %v20218_v43  ;;  %v18538_v5 = vsel %vm18426_vm2, %v25815_v3, %v18522_v2  ;;  %v18533_v3 = vsel %vm18421_vm6, %v25769_v63, %v18517_v50 }
 0x7ea   : > { %v20220_v42 = vpop.eup %20219  ;;  %19153 = vmatmul.mubr.f32.gmra.mxu1 %v25660_v0  ;;  %v25979_v63 = vand.u32 4294901760, %v18533_v3  ;;  %v25991_v14 = vsub.f32 %v18537_v61, %v25967_v47 }
 0x7eb   : > { %v18526_v39 = vmul.f32 0.01, %v18506_v27  ;;  %v18512_v16 = vmul.f32 0.6931472, %v20220_v42  ;;  %19358 = vmatprep.mubr.f32.mxu1 %v26738_v1  ;;  %v18541_v54 = vsel %vm18429_vm13, %v25821_v45, %v18525_v29  ;;  %v18534_v45 = vsel %vm18422_vm1, %v25786_v53, %v18518_v33 }
 0x7ec   : > { %v20222_v62 = vpop.eup %20221  ;;  %v25959_v59 = vand.u32 4294901760, %v18541_v54  ;;  %v25973_v35 = vand.u32 4294901760, %v18534_v45  ;;  %v26001_v60 = vsub.f32 %v18533_v3, %v25979_v63  ;;  %v19310_v7 = vand.u32 4294901760, %v25991_v14 }
 0x7ed   : > { %v18542_v49 = vsel %vm18430_vm3, %v25841_v58, %v18526_v39  ;;  %v18529_v28 = vmul.f32 0.01, %v18512_v16  ;;  %v18514_v12 = vmul.f32 0.6931472, %v20222_v62  ;;  %v25963_v58 = vand.u32 4294901760, %v18538_v5 }
 0x7ee   : > { %v25952_v52 = vand.u32 4294901760, %v18542_v49  ;;  %v25997_v30 = vsub.f32 %v18534_v45, %v25973_v35  ;;  %v19322_v40 = vand.u32 4294901760, %v26001_v60  ;;  %v19311_v43 = vsub.f32 %v25991_v14, %v19310_v7 }
 0x7ef   : > { %v18545_v31 = vsel %vm18433_vm5, %v25856_v38, %v18529_v28  ;;  %v18530_v41 = vmul.f32 0.01, %v18514_v12  ;;  %v25982_v38 = vsub.f32 %v18541_v54, %v25959_v59  ;;  %v25987_v37 = vsub.f32 %v18538_v5, %v25963_v58  ;;  %v18554_v54 = vpop.permute.xlu0 %18553 }
 0x7f0   : > { %v25965_v57 = vand.u32 4294901760, %v18545_v31  ;;  %v25970_v21 = vsub.f32 %v18542_v49, %v25952_v52  ;;  %v19316_v8 = vand.u32 4294901760, %v25997_v30  ;;  %v19323_v29 = vsub.f32 %v26001_v60, %v19322_v40 }
 0x7f1   : > { %v18546_v24 = vsel %vm18434_vm7, %v25871_v51, %v18530_v41  ;;  %v19298_v55 = vand.u32 4294901760, %v25982_v38  ;;  %v19304_v25 = vand.u32 4294901760, %v25987_v37 }
 0x7f2   : > { %v25976_v53 = vsub.f32 %v18545_v31, %v25965_v57  ;;  %v25984_v15 = vand.u32 4294901760, %v18546_v24  ;;  %v19292_v51 = vand.u32 4294901760, %v25970_v21  ;;  %v19317_v44 = vsub.f32 %v25997_v30, %v19316_v8 }
 0x7f3   : > { %v19299_v34 = vsub.f32 %v25982_v38, %v19298_v55  ;;  %v19305_v10 = vsub.f32 %v25987_v37, %v19304_v25  ;;  %v19324_v9 = vand.u32 4294901760, %v19323_v29 }
 0x7f4   : > { %v19286_v26 = vand.u32 4294901760, %v25976_v53  ;;  %v19279_v13 = vsub.f32 %v18546_v24, %v25984_v15  ;;  %19184 = vmatprep.subr.mxu0 %v25984_v15  ;;  %v19293_v4 = vsub.f32 %v25970_v21, %v19292_v51  ;;  %v19318_v42 = vand.u32 4294901760, %v19317_v44 }
 0x7f5   : > { %19186 = vmatpush1.msra.mxu0 %v25965_v57  ;;  %v19300_v2 = vand.u32 4294901760, %v19299_v34  ;;  %v19306_v27 = vand.u32 4294901760, %v19305_v10 }
 0x7f6   : > { %19188 = vmatprep.subr.mxu0 %v25952_v52  ;;  %v19280_v32 = vand.u32 4294901760, %v19279_v13  ;;  %v19287_v48 = vsub.f32 %v25976_v53, %v19286_v26  ;;  %v19294_v36 = vand.u32 4294901760, %v19293_v4 }
 0x7f7   : > { %19190 = vmatpush1.msra.mxu0 %v25959_v59 }
 0x7f8   : > { %19192 = vmatprep.subr.mxu0 %v25963_v58  ;;  %v19281_v23 = vsub.f32 %v19279_v13, %v19280_v32  ;;  %v19288_v22 = vand.u32 4294901760, %v19287_v48 }
 0x7f9   : > { %19194 = vmatpush1.msra.mxu0 %v25967_v47 }
 0x7fa   : > { %19196 = vmatprep.subr.mxu0 %v25973_v35  ;;  %v19282_v18 = vand.u32 4294901760, %v19281_v23 }
 0x7fb   : > { %19198 = vmatpush1.msra.mxu0 %v25979_v63 }
 0x7fc   : > { %19237 = vmatmul.mubr.f32.vlgmr.msra.gmra.mxu0 %v25690_v46  ;;  %19283 = vmatprep.subr.mxu1 %v19282_v18  ;;  %v19312_v46 = vand.u32 4294901760, %v19311_v43 }
 0x7fd   : > { %19399 = vmatprep.subr.mxu0 %v19279_v13  ;;  %19289 = vmatpush1.msra.mxu1 %v19288_v22 }
 0x7fe   : > { %19402 = vmatpush1.msra.mxu0 %v25976_v53  ;;  %19295 = vmatprep.subr.mxu1 %v19294_v36 }
 0x7ff   : > { %19405 = vmatprep.subr.mxu0 %v25970_v21  ;;  %19242 = vmatprep.mubr.f32.mxu0 %v26738_v1 }
 0x800   : > { %19301 = vmatpush1.msra.mxu1 %v19300_v2  ;;  %19408 = vmatpush1.msra.mxu0 %v25982_v38 }
 0x801   : > { %19248 = vmatmul.mubr.f32.gmra.mxu0 %v25694_v20  ;;  %19307 = vmatprep.subr.mxu1 %v19306_v27 }
 0x802   : > { %19411 = vmatprep.subr.mxu0 %v25987_v37  ;;  %19313 = vmatpush1.msra.mxu1 %v19312_v46 }
 0x803   : > { %19414 = vmatpush1.msra.mxu0 %v25991_v14  ;;  %19319 = vmatprep.subr.mxu1 %v19318_v42 }
 0x804   : > { %19417 = vmatprep.subr.mxu0 %v25997_v30  ;;  %19325 = vmatpush1.msra.mxu1 %v19324_v9 }
 0x805   : > { %19420 = vmatpush1.msra.mxu0 %v26001_v60  ;;  %19360 = vmatmul.mubr.f32.vlgmr.msra.gmra.mxu1 %v25654_v56 }
 0x806   : > { %19453 = vmatprep.mubr.f32.mxu0 %v26738_v1  ;;  %19495 = vmatprep.subr.mxu1 %v25984_v15 }
 0x807   : > { %19588 = vmatprep.subr.mxu0 %v19280_v32  ;;  %19456 = vmatmul.mubr.f32.vlgmr.msra.gmra.mxu0 %v25667_v17 }
 0x808   : > { %19497 = vmatpush1.msra.mxu1 %v25965_v57  ;;  %19592 = vmatpush1.msra.mxu0 %v19286_v26 }
 0x809   : > { %19499 = vmatprep.subr.mxu1 %v25952_v52  ;;  %19596 = vmatprep.subr.mxu0 %v19292_v51 }
 0x80a   : > { %19365 = vmatprep.mubr.f32.mxu1 %v26738_v1  ;;  %19501 = vmatpush1.msra.mxu1 %v25959_v59 }
 0x80b   : > { %19600 = vmatpush1.msra.mxu0 %v19298_v55  ;;  %19367 = vmatmul.mubr.f32.gmra.mxu1 %v25660_v0 }
 0x80c   : > { %19503 = vmatprep.subr.mxu1 %v25963_v58  ;;  %19604 = vmatprep.subr.mxu0 %v19304_v25 }
 0x80d   : > { %19461 = vmatprep.mubr.f32.mxu0 %v26738_v1  ;;  %19505 = vmatpush1.msra.mxu1 %v25967_v47 }
 0x80e   : > { %19608 = vmatpush1.msra.mxu0 %v19310_v7  ;;  %19507 = vmatprep.subr.mxu1 %v25973_v35 }
 0x80f   : > { %19464 = vmatmul.mubr.f32.gmra.mxu0 %v25672_v11  ;;  %19612 = vmatprep.subr.mxu0 %v19316_v8 }
 0x810   : > { %19509 = vmatpush1.msra.mxu1 %v25979_v63  ;;  %19542 = vmatprep.mubr.f32.mxu1 %v26738_v1 }
 0x811   : > { %19616 = vmatpush1.msra.mxu0 %v19322_v40  ;;  %19546 = vmatmul.mubr.f32.vlgmr.msra.gmra.mxu1 %v25679_v6 }
 0x812   : > { %19689 = vmatprep.subr.mxu1 %v25984_v15  ;;  %19649 = vmatprep.mubr.f32.mxu0 %v26738_v1 }
 0x813   : > { %19691 = vmatpush1.msra.mxu1 %v25965_v57  ;;  %19651 = vmatmul.mubr.f32.vlgmr.msra.gmra.mxu0 %v25654_v56 }
 0x814   : > { %19693 = vmatprep.subr.mxu1 %v25952_v52  ;;  %19551 = vmatprep.mubr.f32.mxu1 %v26738_v1 }
 0x815   : > { %19695 = vmatpush1.msra.mxu1 %v25959_v59  ;;  %19656 = vmatprep.mubr.f32.mxu0 %v26738_v1 }
 0x816   : > { %19555 = vmatmul.mubr.f32.gmra.mxu1 %v26752_v19  ;;  %19697 = vmatprep.subr.mxu1 %v25963_v58 }
 0x817   : > { %19699 = vmatpush1.msra.mxu1 %v25967_v47  ;;  %19658 = vmatmul.mubr.f32.gmra.mxu0 %v25660_v0 }
 0x818   : > { %19701 = vmatprep.subr.mxu1 %v25973_v35  ;;  %19736 = vmatprep.mubr.f32.mxu1 %v26738_v1 }
 0x819   : > { %19703 = vmatpush1.msra.mxu1 %v25979_v63 }
 0x81a   : > { %19738 = vmatmul.mubr.f32.vlgmr.msra.gmra.mxu1 %v25654_v56  ;;  %v18559_v56 = vpop.permute.xlu1 %18558 }
 0x81b   : > { %19743 = vmatprep.mubr.f32.mxu1 %v26738_v1 }
 0x81e   : > { %19745 = vmatmul.mubr.f32.gmra.mxu1 %v25660_v0 }
 0x888   : > { %v18646_v17 = vpop.f32.mrf.mxu0 }
 0x889   : > { %v18647_v62 = vadd.f32 %v18646_v17, %v18554_v54 }
 0x88a   : > { %v18648_v11 = vpop.f32.mrf.mxu0 }
 0x88b   : > { %v18649_v49 = vadd.f32 %v18648_v11, %v18554_v54 }
 0x88d   : > { %v18657_v6 = vpop.f32.mrf.mxu0 }
 0x88e   : > { %v18658_v52 = vadd.f32 %v18657_v6, %v18559_v56 }
 0x88f   : > { %v18659_v20 = vpop.f32.mrf.mxu0 }
 0x890   : > { %v18660_v45 = vadd.f32 %v18659_v20, %v18559_v56 }
 0x891   : > { %v18769_v19 = vpop.f32.mrf.mxu1 }
 0x892   : > { %v18770_v28 = vadd.f32 %v18769_v19, %v18647_v62 }
 0x893   : > { %v18771_v33 = vpop.f32.mrf.mxu1  ;;  %v18865_v39 = vpop.f32.mrf.mxu0 }
 0x894   : > { %v18772_v1 = vadd.f32 %v18771_v33, %v18649_v49  ;;  %v18866_v59 = vadd.f32 %v18865_v39, %v18770_v28 }
 0x895   : > { %v18867_v50 = vpop.f32.mrf.mxu0 }
 0x896   : > { %v18868_v57 = vadd.f32 %v18867_v50, %v18772_v1 }
 0x897   : > { %v18776_v16 = vpop.f32.mrf.mxu1 }
 0x898   : > { %v18777_v31 = vadd.f32 %v18776_v16, %v18658_v52 }
 0x899   : > { %v18778_v5 = vpop.f32.mrf.mxu1 }
 0x89a   : > { %v18779_v41 = vadd.f32 %v18778_v5, %v18660_v45 }
 0x89b   : > { %v18873_v61 = vpop.f32.mrf.mxu0 }
 0x89c   : > { %v18874_v53 = vadd.f32 %v18873_v61, %v18777_v31 }
 0x89d   : > { %v18875_v0 = vpop.f32.mrf.mxu0  ;;  %v18955_v12 = vpop.f32.mrf.mxu1 }
 0x89e   : > { %v18956_v47 = vadd.f32 %v18955_v12, %v18866_v59  ;;  %v18876_v15 = vadd.f32 %v18875_v0, %v18779_v41 }
 0x89f   : > { %v18957_v3 = vpop.f32.mrf.mxu1  ;;  %v19060_v58 = vpop.f32.mrf.mxu0 }
 0x8a0   : > { %v18958_v24 = vadd.f32 %v18957_v3, %v18868_v57  ;;  %v19061_v37 = vadd.f32 %v19060_v58, %v18956_v47 }
 0x8a1   : > { %v19062_v21 = vpop.f32.mrf.mxu0 }
 0x8a2   : > { %v18964_v35 = vpop.f32.mrf.mxu1  ;;  %v19063_v13 = vadd.f32 %v19062_v21, %v18958_v24 }
 0x8a3   : > { %v19067_v38 = vpop.f32.mrf.mxu0  ;;  %v18965_v26 = vadd.f32 %v18964_v35, %v18874_v53 }
 0x8a4   : > { %v18966_v63 = vpop.f32.mrf.mxu1 }
 0x8a5   : > { %v18967_v51 = vadd.f32 %v18966_v63, %v18876_v15  ;;  %v19069_v60 = vpop.f32.mrf.mxu0  ;;  %v19068_v55 = vadd.f32 %v19067_v38, %v18965_v26 }
 0x8a6   : > { %v19147_v14 = vpop.f32.mrf.mxu1 }
 0x8a7   : > { %v19148_v30 = vadd.f32 %v19147_v14, %v19061_v37  ;;  %v19070_v23 = vadd.f32 %v19069_v60, %v18967_v51 }
 0x8a8   : > { %v19149_v32 = vpop.f32.mrf.mxu1 }
 0x8a9   : > { %19751 = vst [vmem:[%s26070_s27] sm:$0xff] %v19148_v30  ;;  %v19150_v48 = vadd.f32 %v19149_v32, %v19063_v13 }
 0x8aa   : > { %v19154_v25 = vpop.f32.mrf.mxu1 }
 0x8ab   : > { %19752 = vst [vmem:[%s26070_s27 + $0x8] sm:$0xff] %v19150_v48  ;;  %v19155_v4 = vadd.f32 %v19154_v25, %v19068_v55 }
 0x8ac   : > { %v19156_v7 = vpop.f32.mrf.mxu1 }
 0x8ad   : > { %19755 = vst [vmem:[%s26070_s27 + $0x20] sm:$0x1] %v19155_v4  ;;  %v19157_v8 = vadd.f32 %v19156_v7, %v19070_v23 }
 0x8af   : > { %19756 = vst [vmem:[%s26070_s27 + $0x28] sm:$0x1] %v19157_v8 }
 0x8bc   : > { %v19238_v18 = vpop.f32.mrf.mxu0 }
 0x8bd   : > { %v19239_v29 = vadd.f32 %v19238_v18, %v18554_v54 }
 0x8be   : > { %v19240_v34 = vpop.f32.mrf.mxu0 }
 0x8bf   : > { %v19241_v46 = vadd.f32 %v19240_v34, %v18554_v54 }
 0x8c1   : > { %v19249_v40 = vpop.f32.mrf.mxu0 }
 0x8c2   : > { %v19250_v17 = vadd.f32 %v19249_v40, %v18559_v56 }
 0x8c3   : > { %v19251_v22 = vpop.f32.mrf.mxu0 }
 0x8c4   : > { %v19252_v19 = vadd.f32 %v19251_v22, %v18559_v56 }
 0x8c5   : > { %v19361_v10 = vpop.f32.mrf.mxu1 }
 0x8c6   : > { %v19362_v42 = vadd.f32 %v19361_v10, %v19239_v29 }
 0x8c7   : > { %v19363_v36 = vpop.f32.mrf.mxu1  ;;  %v19457_v43 = vpop.f32.mrf.mxu0 }
 0x8c8   : > { %v19364_v11 = vadd.f32 %v19363_v36, %v19241_v46  ;;  %v19458_v33 = vadd.f32 %v19457_v43, %v19362_v42 }
 0x8c9   : > { %v19459_v2 = vpop.f32.mrf.mxu0 }
 0x8ca   : > { %v19460_v62 = vadd.f32 %v19459_v2, %v19364_v11 }
 0x8cb   : > { %v19368_v44 = vpop.f32.mrf.mxu1 }
 0x8cc   : > { %v19369_v39 = vadd.f32 %v19368_v44, %v19250_v17 }
 0x8cd   : > { %v19370_v27 = vpop.f32.mrf.mxu1 }
 0x8ce   : > { %v19371_v5 = vadd.f32 %v19370_v27, %v19252_v19 }
 0x8cf   : > { %v19465_v9 = vpop.f32.mrf.mxu0 }
 0x8d0   : > { %v19466_v52 = vadd.f32 %v19465_v9, %v19369_v39 }
 0x8d1   : > { %v19467_v6 = vpop.f32.mrf.mxu0  ;;  %v19547_v20 = vpop.f32.mrf.mxu1 }
 0x8d2   : > { %v19548_v49 = vadd.f32 %v19547_v20, %v19458_v33  ;;  %v19468_v12 = vadd.f32 %v19467_v6, %v19371_v5 }
 0x8d3   : > { %v19549_v16 = vpop.f32.mrf.mxu1  ;;  %v19652_v50 = vpop.f32.mrf.mxu0 }
 0x8d4   : > { %v19550_v1 = vadd.f32 %v19549_v16, %v19460_v62  ;;  %v19653_v45 = vadd.f32 %v19652_v50, %v19548_v49 }
 0x8d5   : > { %v19654_v28 = vpop.f32.mrf.mxu0 }
 0x8d6   : > { %v19556_v61 = vpop.f32.mrf.mxu1  ;;  %v19655_v31 = vadd.f32 %v19654_v28, %v19550_v1 }
 0x8d7   : > { %v19659_v0 = vpop.f32.mrf.mxu0  ;;  %v19557_v59 = vadd.f32 %v19556_v61, %v19466_v52 }
 0x8d8   : > { %v19558_v54 = vpop.f32.mrf.mxu1 }
 0x8d9   : > { %v19559_v3 = vadd.f32 %v19558_v54, %v19468_v12  ;;  %v19661_v57 = vpop.f32.mrf.mxu0  ;;  %v19660_v47 = vadd.f32 %v19659_v0, %v19557_v59 }
 0x8da   : > { %v19739_v56 = vpop.f32.mrf.mxu1 }
 0x8db   : > { %v19740_v58 = vadd.f32 %v19739_v56, %v19653_v45  ;;  %v19662_v53 = vadd.f32 %v19661_v57, %v19559_v3 }
 0x8dc   : > { %v19741_v41 = vpop.f32.mrf.mxu1 }
 0x8dd   : > { %19753 = vst [vmem:[%s26070_s27 + $0x10] sm:$0xff] %v19740_v58  ;;  %v19742_v21 = vadd.f32 %v19741_v41, %v19655_v31 }
 0x8de   : > { %v19746_v35 = vpop.f32.mrf.mxu1 }
 0x8df   : > { %19754 = vst [vmem:[%s26070_s27 + $0x18] sm:$0xff] %v19742_v21  ;;  %v19747_v24 = vadd.f32 %v19746_v35, %v19660_v47 }
 0x8e0   : > { %v19748_v63 = vpop.f32.mrf.mxu1 }
 0x8e1   : > { %19757 = vst [vmem:[%s26070_s27 + $0x30] sm:$0x1] %v19747_v24  ;;  %v19749_v38 = vadd.f32 %v19748_v63, %v19662_v53 }
 0x8e3   : > { %19758 = vst [vmem:[%s26070_s27 + $0x38] sm:$0x1] %v19749_v38 }
 0x8e4 PF: > { %s21_s19 = sadd.s32 1, %s20253_s19   ;;  %s26753_s17 = smov %s20249_s18 }
 0x8e5   : > { %p18_p5 = scmp.ge.s32.totalorder %s21_s19, 4   ;;  %s26754_s18 = smov %s26756_s20 }
 0x8e7   :  { %20 = sbr.rel (!%p18_p5) target bundleno = 2 (0x2), region = 97 }

</bundles_post_ra>
